<compile_context>
chip_gen: v5e
topology: v5e:2x2
jax: 0.10.0
libtpu: 0.0.40
codegen_flags: <defaults>
</compile_context>

<pallas_src>
import functools
import math

import jax
import jax.numpy as jnp
from jax.experimental import pallas as pl
from jax.experimental.pallas import tpu as pltpu

W0 = 30.0   # SIREN frequency factor
LANE = 128  # TPU lane width


def _round_up(x, m):
    return ((x + m - 1) // m) * m


def _tpu_layout():
    """(tensorcores_per_chip, vmem_limit_bytes) for the attached TPU generation."""
    kind = ""
    try:
        kind = jax.devices()[0].device_kind.lower()
    except Exception:
        pass
    if "v7" in kind:
        # v7x: 2 TensorCores/chip, only 64 MiB physical VMEM per TC.
        return 2, 32 * 1024 * 1024
    # v5e / v6e: 1 TensorCore/chip, 128 MiB physical VMEM.
    return 1, 64 * 1024 * 1024


def _select_tile(n, tile_n, num_cores, vmem_limit):
    """Pick a lane-dense column tile and the padded N it evenly divides."""
    n_pad = _round_up(max(int(n), LANE), LANE)
    # VMEM budget per column (f32): padded, double-buffered I/O blocks (~128 B) plus
    # a few live [hid, tile] temporaries (~512 B)  ->  ~768 B/column (conservative).
    cap = max(LANE, ((vmem_limit // 768) // LANE) * LANE)
    tile = min(_round_up(int(tile_n), LANE), n_pad, cap)
    tile = max(LANE, (tile // LANE) * LANE)

    if num_cores > 1:
        steps = -(-n_pad // tile)
        if steps == 1 and n_pad >= num_cores * LANE:
            # Split a single block across the TensorCores (v7x).
            tile = max(LANE, _round_up(-(-n_pad // num_cores), LANE))
        elif steps % num_cores != 0:
            # Best-effort: shrink the tile so the parallel grid divides the core count.
            target = _round_up(steps, num_cores)
            cand = max(LANE, _round_up(-(-n_pad // target), LANE))
            if (-(-n_pad // cand)) % num_cores == 0:
                tile = cand

    n_pad = _round_up(n_pad, tile)
    return tile, n_pad


def _inr_mlp_kernel(xT_ref, w1_ref, b1_ref, w2_ref, b2_ref, w3_ref, b3_ref,
                    oT_ref, *, sin_dtype):
    """Fused 3-layer INR MLP on a [*, tile_n] column block (N mapped to lanes).

    xT : [in_f, tile_n]             (coordinates, transposed)
    w1 : [hid, in_f],  b1: [hid, 1] (W0 already folded in)
    w2 : [hid, hid],   b2: [hid, 1] (W0 already folded in)
    w3 : [out_f, hid], b3: [out_f, 1]
    oT : [out_f, tile_n]
    """
    xT = xT_ref[...]

    # Layer 0 (SineLayer). K = in_features (2) is tiny; the zero-padded MXU push is
    # free filler (kernel is VALU/EUP-bound on the sines) and it frees the VPU
    # issue slots the old broadcast-FMA loop consumed.
    z = jnp.dot(w1_ref[...], xT, preferred_element_type=jnp.float32) + b1_ref[...]
    h = jnp.sin(z.astype(sin_dtype)).astype(jnp.float32)              # [hid, tile_n]

    # Layer 1 (SineLayer): lane-dense MXU matmul [hid, hid] @ [hid, tile_n].
    z = jnp.dot(w2_ref[...], h, preferred_element_type=jnp.float32) + b2_ref[...]
    h = jnp.sin(z.astype(sin_dtype)).astype(jnp.float32)

    # Layer 2 (final Linear, no activation): [out_f, hid] @ [hid, tile_n].
    y = jnp.dot(w3_ref[...], h, preferred_element_type=jnp.float32) + b3_ref[...]
    oT_ref[...] = y.astype(oT_ref.dtype)
    # TODO(synk): if layer 0 were a ComplexGaborLayer the forward would take y.real;
    # complex Gabor layers are not part of this synthetic config.


def _run_fused_mlp(xT_pad, w1T, b1T, w2T, b2T, w3T, b3T, *, tile, sin_bf16, vmem_limit):
    in_f, n_pad = xT_pad.shape
    out_f = w3T.shape[0]
    grid = (n_pad // tile,)

    # Tiny weights/biases: whole-array blocks with a constant block index.
    full = lambda arr: pl.BlockSpec(arr.shape, lambda i: (0,) * arr.ndim)
    kernel = functools.partial(
        _inr_mlp_kernel,
        sin_dtype=jnp.bfloat16 if sin_bf16 else jnp.float32,
    )

    return pl.pallas_call(
        kernel,
        out_shape=jax.ShapeDtypeStruct((out_f, n_pad), jnp.float32),
        grid_spec=pltpu.PrefetchScalarGridSpec(
            num_scalar_prefetch=0,
            grid=grid,
            in_specs=[
                pl.BlockSpec((in_f, tile), lambda i: (0, i)),   # x^T column block
                full(w1T), full(b1T),
                full(w2T), full(b2T),
                full(w3T), full(b3T),
            ],
            out_specs=pl.BlockSpec((out_f, tile), lambda i: (0, i)),
        ),
        compiler_params=pltpu.CompilerParams(
            dimension_semantics=("parallel",),
            vmem_limit_bytes=vmem_limit,
        ),
    )(xT_pad, w1T, b1T, w2T, b2T, w3T, b3T)


def _forward_impl(xT, params, *, tile_n, sin_bf16):
    """xT: [in_features, N] (transposed coords) -> [N, out_features]."""
    w1, b1, w2, b2, w3, b3 = params
    _, n = xT.shape

    num_cores, vmem_limit = _tpu_layout()
    tile, n_pad = _select_tile(n, tile_n, num_cores, vmem_limit)

    # Fold W0 into the sine-layer parameters (exact; tiny arrays -> effectively free):
    #   sin(W0 * (x @ W + b)) == sin(x @ (W0*W) + W0*b)
    w1T, b1T = (W0 * w1).T, (W0 * b1).T        # [hid, in_f], [hid, 1]
    w2T, b2T = (W0 * w2).T, (W0 * b2).T        # [hid, hid],  [hid, 1]
    w3T, b3T = w3.T, b3.T                      # [out_f, hid], [out_f, 1]

    xT_pad = xT.astype(jnp.float32)
    if n_pad != n:
        xT_pad = jnp.pad(xT_pad, ((0, 0), (0, n_pad - n)))

    yT = _run_fused_mlp(xT_pad, w1T, b1T, w2T, b2T, w3T, b3T,
                        tile=tile, sin_bf16=sin_bf16, vmem_limit=vmem_limit)
    # Module contract: row-major [N, out_features].
    return yT[:, :n].T


@functools.partial(jax.jit, static_argnames=("tile_n", "sin_bf16"))
def inr_forward_tT(xT, params, *, tile_n=16384, sin_bf16=False):
    """Forward from a transposed (lane-friendly) coordinate table [in_f, N]."""
    return _forward_impl(xT, params, tile_n=tile_n, sin_bf16=sin_bf16)


@functools.partial(jax.jit, static_argnames=("tile_n", "sin_bf16"))
def inr_forward(x, params, *, tile_n=16384, sin_bf16=False):
    """Forward from row-major coordinates x: [N, in_features] -> [N, out_features]."""
    return _forward_impl(x.T, params, tile_n=tile_n, sin_bf16=sin_bf16)


def init_params(key, in_features, hidden, out_features):
    """Deterministic SIREN-style initialization (matches the module's layer shapes)."""
    ks = jax.random.split(key, 7)

    def uniform(k, shape, bound):
        return jax.random.uniform(k, shape, jnp.float32, -bound, bound)

    # first sine layer: U(-1/in, 1/in)
    w1 = uniform(ks[0], (in_features, hidden), 1.0 / in_features)
    b1 = uniform(ks[1], (1, hidden), 1.0 / math.sqrt(in_features))
    # hidden sine layer: U(-sqrt(6/in)/w0, sqrt(6/in)/w0)
    w2 = uniform(ks[2], (hidden, hidden), math.sqrt(6.0 / hidden) / W0)
    b2 = uniform(ks[3], (1, hidden), 1.0 / math.sqrt(hidden))
    # final linear layer: standard nn.Linear init U(-1/sqrt(in), 1/sqrt(in))
    w3 = uniform(ks[4], (hidden, out_features), 1.0 / math.sqrt(hidden))
    b3 = uniform(ks[5], (1, out_features), 1.0 / math.sqrt(hidden))
    return (w1, b1, w2, b2, w3, b3), ks[6]


def reference_forward(x, params):
    """Pure-JAX reference matching the PyTorch nn.Sequential semantics."""
    w1, b1, w2, b2, w3, b3 = params
    h = jnp.sin(W0 * (x @ w1 + b1))
    h = jnp.sin(W0 * (h @ w2 + b2))
    return h @ w3 + b3


if __name__ == "__main__":
    # Small shapes consistent with the module: N coordinates, 2-D coords in,
    # hidden width 32, RGB (3) out.  N deliberately NOT a multiple of the tile
    # to exercise the padding path.
    N, IN_F, HID, OUT_F = 500, 2, 32, 3
    USE_LEARNABLE_COORDS = True

    key = jax.random.PRNGKey(0)
    params, key = init_params(key, IN_F, HID, OUT_F)

    # Input coordinates (ignored when use_learnable_coords, as in the module).
    key, kx, kt = jax.random.split(key, 3)
    coords = jax.random.uniform(kx, (N, IN_F), jnp.float32, -1.0, 1.0)

    # Learnable coordinate table: 0.0001 * (rand * 2 - 1), STORED TRANSPOSED
    # [in_features, N] — we own its layout, so the wrapper-side input transpose
    # is eliminated (review item).
    tableT = 0.0001 * (jax.random.uniform(kt, (IN_F, N), jnp.float32) * 2.0 - 1.0)

    # TODO(synk): sin_bf16=True (bf16 sine path) is a ~1.5-2x critical-path win on
    # v6e/v7x, but W0-scaled pre-activations amplify bf16 rounding beyond the
    # 2e-5/1e-4 tolerance used here, so it stays opt-in.
    if USE_LEARNABLE_COORDS:
        y = inr_forward_tT(tableT, params)
        x_ref = tableT.T
    else:
        y = inr_forward(coords, params)
        x_ref = coords
    y = jax.block_until_ready(y)

    y_ref = reference_forward(x_ref, params)
    assert y.shape == (N, OUT_F)
    assert jnp.allclose(y, y_ref, atol=2e-5, rtol=1e-4), "mismatch vs reference"

    print("KERNEL_OK")
</pallas_src>

<mosaic_0001>
module attributes {stable_mosaic.version = 11 : i64} {
  func.func @_inr_mlp_kernel(%arg0: i32, %arg1: memref<2x512xf32, #tpu.memory_space<vmem>>, %arg2: memref<32x2xf32, #tpu.memory_space<vmem>>, %arg3: memref<32x1xf32, #tpu.memory_space<vmem>>, %arg4: memref<32x32xf32, #tpu.memory_space<vmem>>, %arg5: memref<32x1xf32, #tpu.memory_space<vmem>>, %arg6: memref<3x32xf32, #tpu.memory_space<vmem>>, %arg7: memref<3x1xf32, #tpu.memory_space<vmem>>, %arg8: memref<3x512xf32, #tpu.memory_space<vmem>>) attributes {dimension_semantics = [#tpu.dimension_semantics<parallel>], iteration_bounds = array<i64: 1>, scalar_prefetch = 0 : i64, scratch_operands = 0 : i64, tpu.core_type = #tpu.core_type<tc>, window_params = [{transform_indices = @transform_0, window_bounds = array<i64: 2, 512>}, {pipeline_mode = #tpu.pipeline_mode<synchronous>, transform_indices = @transform_1, window_bounds = array<i64: 32, 2>}, {pipeline_mode = #tpu.pipeline_mode<synchronous>, transform_indices = @transform_2, window_bounds = array<i64: 32, 1>}, {pipeline_mode = #tpu.pipeline_mode<synchronous>, transform_indices = @transform_3, window_bounds = array<i64: 32, 32>}, {pipeline_mode = #tpu.pipeline_mode<synchronous>, transform_indices = @transform_4, window_bounds = array<i64: 32, 1>}, {pipeline_mode = #tpu.pipeline_mode<synchronous>, transform_indices = @transform_5, window_bounds = array<i64: 3, 32>}, {pipeline_mode = #tpu.pipeline_mode<synchronous>, transform_indices = @transform_6, window_bounds = array<i64: 3, 1>}, {transform_indices = @transform_7, window_bounds = array<i64: 3, 512>}]} {
    %c0 = arith.constant 0 : index
    %c0_0 = arith.constant 0 : index
    %0 = vector.load %arg1[%c0, %c0_0] : memref<2x512xf32, #tpu.memory_space<vmem>>, vector<2x512xf32>
    %c0_1 = arith.constant 0 : index
    %c0_2 = arith.constant 0 : index
    %1 = vector.load %arg2[%c0_1, %c0_2] : memref<32x2xf32, #tpu.memory_space<vmem>>, vector<32x2xf32>
    %cst = arith.constant dense<0.000000e+00> : vector<32x512xf32>
    %2 = tpu.matmul %1, %0, %cst {dimension_numbers = #tpu.dot_dimension_numbers<[1], [0], [0], [1], [0, 0, 1, 1], [], []>} : vector<32x2xf32>, vector<2x512xf32>, vector<32x512xf32> -> vector<32x512xf32>
    %c0_3 = arith.constant 0 : index
    %c0_4 = arith.constant 0 : index
    %3 = vector.load %arg3[%c0_3, %c0_4] : memref<32x1xf32, #tpu.memory_space<vmem>>, vector<32x1xf32>
    %4 = vector.broadcast %3 : vector<32x1xf32> to vector<32x512xf32>
    %5 = arith.addf %2, %4 : vector<32x512xf32>
    %6 = math.sin %5 : vector<32x512xf32>
    %c0_5 = arith.constant 0 : index
    %c0_6 = arith.constant 0 : index
    %7 = vector.load %arg4[%c0_5, %c0_6] : memref<32x32xf32, #tpu.memory_space<vmem>>, vector<32x32xf32>
    %cst_7 = arith.constant dense<0.000000e+00> : vector<32x512xf32>
    %8 = tpu.matmul %7, %6, %cst_7 {dimension_numbers = #tpu.dot_dimension_numbers<[1], [0], [0], [1], [0, 0, 1, 1], [], []>} : vector<32x32xf32>, vector<32x512xf32>, vector<32x512xf32> -> vector<32x512xf32>
    %c0_8 = arith.constant 0 : index
    %c0_9 = arith.constant 0 : index
    %9 = vector.load %arg5[%c0_8, %c0_9] : memref<32x1xf32, #tpu.memory_space<vmem>>, vector<32x1xf32>
    %10 = vector.broadcast %9 : vector<32x1xf32> to vector<32x512xf32>
    %11 = arith.addf %8, %10 : vector<32x512xf32>
    %12 = math.sin %11 : vector<32x512xf32>
    %c0_10 = arith.constant 0 : index
    %c0_11 = arith.constant 0 : index
    %13 = vector.load %arg6[%c0_10, %c0_11] : memref<3x32xf32, #tpu.memory_space<vmem>>, vector<3x32xf32>
    %cst_12 = arith.constant dense<0.000000e+00> : vector<3x512xf32>
    %14 = tpu.matmul %13, %12, %cst_12 {dimension_numbers = #tpu.dot_dimension_numbers<[1], [0], [0], [1], [0, 0, 1, 1], [], []>} : vector<3x32xf32>, vector<32x512xf32>, vector<3x512xf32> -> vector<3x512xf32>
    %c0_13 = arith.constant 0 : index
    %c0_14 = arith.constant 0 : index
    %15 = vector.load %arg7[%c0_13, %c0_14] : memref<3x1xf32, #tpu.memory_space<vmem>>, vector<3x1xf32>
    %16 = vector.broadcast %15 : vector<3x1xf32> to vector<3x512xf32>
    %17 = arith.addf %14, %16 : vector<3x512xf32>
    %c0_15 = arith.constant 0 : index
    %c0_16 = arith.constant 0 : index
    %18 = vector.load %arg8[%c0_15, %c0_16] : memref<3x512xf32, #tpu.memory_space<vmem>>, vector<3x512xf32>
    tpu.vector_store %arg8[%c0_15, %c0_16], %17 {strides = array<i32>} : memref<3x512xf32, #tpu.memory_space<vmem>>, vector<3x512xf32>,
    return
  }
  func.func @transform_0(%arg0: i32) -> (i32, i32) {
    %c0_i32 = arith.constant 0 : i32
    %c0_i32_0 = arith.constant 0 : i32
    return %c0_i32, %arg0 : i32, i32
  }
  func.func @transform_1(%arg0: i32) -> (i32, i32) {
    %c0_i32 = arith.constant 0 : i32
    %c0_i32_0 = arith.constant 0 : i32
    %c0_i32_1 = arith.constant 0 : i32
    return %c0_i32, %c0_i32_0 : i32, i32
  }
  func.func @transform_2(%arg0: i32) -> (i32, i32) {
    %c0_i32 = arith.constant 0 : i32
    %c0_i32_0 = arith.constant 0 : i32
    %c0_i32_1 = arith.constant 0 : i32
    return %c0_i32, %c0_i32_0 : i32, i32
  }
  func.func @transform_3(%arg0: i32) -> (i32, i32) {
    %c0_i32 = arith.constant 0 : i32
    %c0_i32_0 = arith.constant 0 : i32
    %c0_i32_1 = arith.constant 0 : i32
    return %c0_i32, %c0_i32_0 : i32, i32
  }
  func.func @transform_4(%arg0: i32) -> (i32, i32) {
    %c0_i32 = arith.constant 0 : i32
    %c0_i32_0 = arith.constant 0 : i32
    %c0_i32_1 = arith.constant 0 : i32
    return %c0_i32, %c0_i32_0 : i32, i32
  }
  func.func @transform_5(%arg0: i32) -> (i32, i32) {
    %c0_i32 = arith.constant 0 : i32
    %c0_i32_0 = arith.constant 0 : i32
    %c0_i32_1 = arith.constant 0 : i32
    return %c0_i32, %c0_i32_0 : i32, i32
  }
  func.func @transform_6(%arg0: i32) -> (i32, i32) {
    %c0_i32 = arith.constant 0 : i32
    %c0_i32_0 = arith.constant 0 : i32
    %c0_i32_1 = arith.constant 0 : i32
    return %c0_i32, %c0_i32_0 : i32, i32
  }
  func.func @transform_7(%arg0: i32) -> (i32, i32) {
    %c0_i32 = arith.constant 0 : i32
    %c0_i32_0 = arith.constant 0 : i32
    return %c0_i32, %arg0 : i32, i32
  }
}

</mosaic_0001>

<bundles_post_ra>
// kernel: inr_forward_tT.1
= control target key start
LH: loop header
LB: loop body
LE: loop exit
PB: predicated region body
PF: predicated region fallthrough
CT: control target
= control target key end

     0   :  { %v10784_v1 = vmov 0   ;;  %vm74_vm0 = vcmask 1041408   ;;  %vm61_vm1 = vcmask 15360   ;;  %s10776_s0 = inlined_call_operand.vmem [shape: f32[2,512], index: 0, kind: input, shape index: {}]   ;;  %s10777_s2 = inlined_call_operand.vmem [shape: f32[32,1], index: 2, kind: input, shape index: {}]   ;;  %s10778_s1 = inlined_call_operand.vmem [shape: f32[32,2], index: 1, kind: input, shape index: {}]   ;;  %s10779_s4 = inlined_call_operand.vmem [shape: f32[32,1], index: 4, kind: input, shape index: {}]   ;;  %s10780_s3 = inlined_call_operand.vmem [shape: f32[32,32], index: 3, kind: input, shape index: {}]   ;;  %s10781_s6 = inlined_call_operand.vmem [shape: f32[3,1], index: 6, kind: input, shape index: {}]   ;;  %s10782_s5 = inlined_call_operand.vmem [shape: f32[3,32], index: 5, kind: input, shape index: {}]   ;;  %s10783_s7 = inlined_call_operand.vmem [shape: f32[3,512], index: 7, kind: output, shape index: {}]  }
   0x1   :  { %v26_v0 = vld [vmem:[%s10776_s0] sm:$0xff]  ;;  %5567 = vset.pattern.permute.xlu1 %v10784_v1  ;;  %v32_v2 = vld [vmem:[%s10777_s2 + $0x8] sm:$0xff]  ;;  %5566 = vset.pattern.permute.xlu0 %v10784_v1  ;;  %v34_v3 = vld [vmem:[%s10777_s2 + $0x18] sm:$0xff] }
   0x2   :  { %56 = vst [vmem:[#allocation1] ss:$4 sm:$0xff] %v26_v0  ;;  %42 = vperm.xlu1 %5567, %v32_v2   ;;  %5568 = vset.pattern.permute.xlu2 %v10784_v1  ;;  %v27_v4 = vld [vmem:[%s10778_s1] sm:$0xff]  ;;  %v33_v10 = vld [vmem:[%s10777_s2 + $0x10] sm:$0xff]  ;;  %v28_v11 = vld [vmem:[%s10778_s1 + $0x8] sm:$0xff] }
   0x3   :  { %52 = vperm.xlu0 %5566, %v34_v3   ;;  %v31_v9 = vld [vmem:[%s10777_s2] sm:$0xff]  ;;  %v2684_v12 = vld [vmem:[%s10779_s4 + $0x8] sm:$0xff]  ;;  %v29_v14 = vld [vmem:[%s10778_s1 + $0x10] sm:$0xff] }
   0x4   :  { %v2683_v13 = vld [vmem:[%s10779_s4] sm:$0xff]  ;;  %v30_v15 = vld [vmem:[%s10778_s1 + $0x18] sm:$0xff] }
   0x9   :  { %v57_v5 = vld.sshfl [vmem:[#allocation1] sm:$0xff pattern:$0x73625140]  ;;  %v58_v6 = vld.sshfl [vmem:[#allocation1 + $0x8] sm:$0xff pattern:$0x73625140] }
   0xa   :  { %5423 = vmatpush.msk.msra.mxu0 %vm74_vm0, %v57_v5  ;;  %5428 = vmatpush.msk.msra.mxu1 %vm74_vm0, %v58_v6  ;;  %v59_v7 = vld.sshfl [vmem:[#allocation1 + $0x10] sm:$0xff pattern:$0x73625140]  ;;  %v60_v8 = vld.sshfl [vmem:[#allocation1 + $0x18] sm:$0xff pattern:$0x73625140] }
   0xb   :  { %5433 = vmatpush.msk.msra.mxu2 %vm74_vm0, %v59_v7  ;;  %5438 = vmatpush.msk.msra.mxu3 %vm74_vm0, %v60_v8  ;;  %v10795_v7 = vmov 920167782  }
   0xc   :  { %5424 = vmatmul.msk.f32.vlgmr.msra.gmra.mxu0 %vm61_vm1, %v27_v4  ;;  %5429 = vmatmul.msk.f32.vlgmr.msra.gmra.mxu1 %vm61_vm1, %v27_v4 }
   0xd   :  { %5434 = vmatmul.msk.f32.vlgmr.msra.gmra.mxu2 %vm61_vm1, %v27_v4  ;;  %5439 = vmatmul.msk.f32.vlgmr.msra.gmra.mxu3 %vm61_vm1, %v27_v4  ;;  %v10786_v4 = vmov 2102212464  }
   0xe   :  { %37 = vperm.xlu1 %5567, %v31_v9   ;;  %47 = vperm.xlu0 %5566, %v33_v10  }
  0x14   :  { %5425 = vmatmul.msk.f32.gmra.mxu0 %vm61_vm1, %v28_v11  ;;  %5430 = vmatmul.msk.f32.gmra.mxu1 %vm61_vm1, %v28_v11 }
  0x15   :  { %5435 = vmatmul.msk.f32.gmra.mxu2 %vm61_vm1, %v28_v11  ;;  %5440 = vmatmul.msk.f32.gmra.mxu3 %vm61_vm1, %v28_v11 }
  0x16   :  { %2694 = vperm.xlu0 %5566, %v2684_v12   ;;  %2689 = vperm.xlu1 %5567, %v2683_v13  }
  0x1c   :  { %5426 = vmatmul.msk.f32.gmra.mxu0 %vm61_vm1, %v29_v14  ;;  %5431 = vmatmul.msk.f32.gmra.mxu1 %vm61_vm1, %v29_v14 }
  0x1d   :  { %5436 = vmatmul.msk.f32.gmra.mxu2 %vm61_vm1, %v29_v14  ;;  %5441 = vmatmul.msk.f32.gmra.mxu3 %vm61_vm1, %v29_v14 }
  0x24   :  { %5427 = vmatmul.msk.f32.gmra.mxu0 %vm61_vm1, %v30_v15  ;;  %5432 = vmatmul.msk.f32.gmra.mxu1 %vm61_vm1, %v30_v15 }
  0x25   :  { %5437 = vmatmul.msk.f32.gmra.mxu2 %vm61_vm1, %v30_v15  ;;  %5442 = vmatmul.msk.f32.gmra.mxu3 %vm61_vm1, %v30_v15 }
  0x74   :  { %v43_v16 = vpop.permute.xlu1 %42 }
  0x75   :  { %v5680_v35 = vpop.permute.xlu0 %52 }
  0x80   :  { %v38_v17 = vpop.permute.xlu1 %37  ;;  %v48_v54 = vpop.permute.xlu0 %47 }
  0x89   :  { %v100_v18 = vpop.f32.mrf.mxu0  ;;  %v129_v19 = vpop.f32.mrf.mxu1 }
  0x8a   :  { %v5670_v20 = vadd.f32 %v100_v18, %v38_v17  ;;  %v5672_v23 = vadd.f32 %v129_v19, %v38_v17 }
  0x8c   :  { %11063 = vst [vmem:[#allocation2_spill] sm:$0xff] %v5670_v20  ;;  %v202_v26 = vand.u32 2139095040, %v5670_v20  ;;  %v357_v27 = vand.u32 2139095040, %v5672_v23 }
  0x8d   :  { %11064 = vst [vmem:[#allocation3_spill] sm:$0xff] %v5672_v23 }
  0x8e   :  { %v203_v28 = vshrl.u32 %v202_v26, 23  ;;  %v358_v29 = vshrl.u32 %v357_v27, 23 }
  0x90   :  { %v158_v21 = vpop.f32.mrf.mxu2  ;;  %v187_v22 = vpop.f32.mrf.mxu3  ;;  %v5443_v30 = vadd.s32 4294967169, %v203_v28  ;;  %v5446_v32 = vadd.s32 4294967169, %v358_v29 }
  0x91   :  { %v5674_v24 = vadd.f32 %v158_v21, %v38_v17  ;;  %v5676_v25 = vadd.f32 %v187_v22, %v38_v17  ;;  %v103_v31 = vpop.f32.mrf.mxu0  ;;  %v132_v33 = vpop.f32.mrf.mxu1  ;;  %v10793_v17 = vmov 1326507024  }
  0x92   :  { %v209_v34 = vadd.s32 1, %v5443_v30  ;;  %v5682_v36 = vadd.f32 %v103_v31, %v43_v16  ;;  %v364_v39 = vadd.s32 1, %v5446_v32  ;;  %v5684_v40 = vadd.f32 %v132_v33, %v43_v16 }
  0x93   :  { %11065 = vst [vmem:[#allocation4_spill] sm:$0xff] %v5674_v24  ;;  %v512_v41 = vand.u32 2139095040, %v5674_v24  ;;  %v667_v45 = vand.u32 2139095040, %v5676_v25 }
  0x94   :  { %11066 = vst [vmem:[#allocation5_spill] sm:$0xff] %v5676_v25  ;;  %vm210_vm2 = vcmp.gt.s32.totalorder %v209_v34, 0  ;;  %v822_v42 = vand.u32 2139095040, %v5682_v36  ;;  %vm365_vm3 = vcmp.gt.s32.totalorder %v364_v39, 0  ;;  %v977_v46 = vand.u32 2139095040, %v5684_v40 }
  0x95   :  { %11067 = vst [vmem:[#allocation6_spill] sm:$0xff] %v5684_v40  ;;  %v211_v47 = vsel %vm210_vm2, %v209_v34, 0  ;;  %v513_v48 = vshrl.u32 %v512_v41, 23  ;;  %v366_v50 = vsel %vm365_vm3, %v364_v39, 0  ;;  %v668_v52 = vshrl.u32 %v667_v45, 23 }
  0x96   :  { %v823_v49 = vshrl.u32 %v822_v42, 23  ;;  %v5694_v51 = vand.u32 31, %v211_v47  ;;  %v978_v53 = vshrl.u32 %v977_v46, 23  ;;  %v5696_v56 = vand.u32 31, %v366_v50 }
  0x97   :  { %v5449_v57 = vadd.s32 4294967169, %v513_v48  ;;  %v5452_v62 = vadd.s32 4294967169, %v668_v52  ;;  %v5703_v3 = vshrl.u32 %v211_v47, 5  ;;  %v5734_v31 = vshrl.u32 %v366_v50, 5 }
  0x98   :  { %v161_v37 = vpop.f32.mrf.mxu2  ;;  %v190_v38 = vpop.f32.mrf.mxu3  ;;  %11070 = vst [vmem:[#allocation9_spill] sm:$0xff] %v5694_v51  ;;  %v5455_v58 = vadd.s32 4294967169, %v823_v49  ;;  %v5701_v61 = vsub.s32 32, %v5694_v51  ;;  %v5458_v63 = vadd.s32 4294967169, %v978_v53  ;;  %v225_v5 = vshll.u32 %v10786_v4, %v5694_v51 }
  0x99   :  { %v5688_v43 = vadd.f32 %v161_v37, %v43_v16  ;;  %v5690_v44 = vadd.f32 %v190_v38, %v43_v16  ;;  %v106_v55 = vpop.f32.mrf.mxu0  ;;  %11071 = vst [vmem:[#allocation10_spill] sm:$0xff] %v5696_v56  ;;  %v135_v59 = vpop.f32.mrf.mxu1  ;;  %v228_v8 = vshll.u32 %v10795_v7, %v5694_v51  ;;  %v5712_v9 = vsub.s32 32, %v5696_v56 }
  0x9a   :  { %v5698_v60 = vadd.f32 %v106_v55, %v48_v54  ;;  %11072 = vst [vmem:[#allocation11_spill] sm:$0xff] %v5701_v61  ;;  %v5707_v6 = vadd.f32 %v135_v59, %v48_v54  ;;  %v519_v10 = vadd.s32 1, %v5449_v57  ;;  %v829_v11 = vadd.s32 1, %v5455_v58 }
  0x9b   :  { %11068 = vst [vmem:[#allocation7_spill] sm:$0xff] %v5688_v43  ;;  %v1132_v12 = vand.u32 2139095040, %v5688_v43  ;;  %v226_v16 = vshrl.u32 %v10795_v7, %v5701_v61  ;;  %v229_v18 = vshrl.u32 %v10793_v17, %v5701_v61  ;;  %v674_v19 = vadd.s32 1, %v5452_v62 }
  0x9c   :  { %11069 = vst [vmem:[#allocation8_spill] sm:$0xff] %v5690_v44  ;;  %v1442_v13 = vand.u32 2139095040, %v5698_v60  ;;  %v984_v21 = vadd.s32 1, %v5458_v63  ;;  %v380_v22 = vshll.u32 %v10786_v4, %v5696_v56  ;;  %v383_v26 = vshll.u32 %v10795_v7, %v5696_v56 }
  0x9d   :  { %11073 = vst [vmem:[#allocation12_spill] sm:$0xff] %v5703_v3  ;;  %v1287_v27 = vand.u32 2139095040, %v5690_v44  ;;  %v1597_v28 = vand.u32 2139095040, %v5707_v6  ;;  %v381_v29 = vshrl.u32 %v10795_v7, %v5712_v9  ;;  %v384_v30 = vshrl.u32 %v10793_v17, %v5712_v9 }
  0x9e   :  { %11074 = vst [vmem:[#allocation13_spill] sm:$0xff] %v5712_v9  ;;  %vm520_vm4 = vcmp.gt.s32.totalorder %v519_v10, 0  ;;  %vm830_vm5 = vcmp.gt.s32.totalorder %v829_v11, 0  ;;  %v1133_v32 = vshrl.u32 %v1132_v12, 23  ;;  %v1443_v33 = vshrl.u32 %v1442_v13, 23 }
  0x9f   :  { %11077 = vst [vmem:[#allocation16_spill] sm:$0xff] %v5734_v31  ;;  %v5736_v34 = vor.u32 %v226_v16, %v225_v5  ;;  %v230_v37 = vor.u32 %v229_v18, %v228_v8  ;;  %vm675_vm6 = vcmp.gt.s32.totalorder %v674_v19, 0  ;;  %vm985_vm7 = vcmp.gt.s32.totalorder %v984_v21, 0 }
  0xa0   :  { %v164_v0 = vpop.f32.mrf.mxu2  ;;  %v193_v2 = vpop.f32.mrf.mxu3  ;;  %v521_v38 = vsel %vm520_vm4, %v519_v10, 0  ;;  %v831_v39 = vsel %vm830_vm5, %v829_v11, 0  ;;  %v1288_v41 = vshrl.u32 %v1287_v27, 23  ;;  %v1598_v42 = vshrl.u32 %v1597_v28, 23 }
  0xa1   :  { %v5716_v14 = vadd.f32 %v164_v0, %v48_v54  ;;  %v5718_v15 = vadd.f32 %v193_v2, %v48_v54  ;;  %11078 = vst [vmem:[#allocation17_spill] sm:$0xff] %v5736_v34  ;;  %vm234_vm8 = vcmp.lt.s32.totalorder %v5703_v3, 4  ;;  %v5739_v45 = vor.u32 %v381_v29, %v380_v22  ;;  %v109_v54 = vpop.f32.mrf.mxu0  ;;  %v138_v55 = vpop.f32.mrf.mxu1 }
  0xa2   :  { %v385_v46 = vor.u32 %v384_v30, %v383_v26  ;;  %vm389_vm9 = vcmp.lt.s32.totalorder %v5734_v31, 4  ;;  %v986_v47 = vsel %vm985_vm7, %v984_v21, 0  ;;  %v5461_v48 = vadd.s32 4294967169, %v1133_v32 }
  0xa3   :  { %11075 = vst [vmem:[#allocation14_spill] sm:$0xff] %v5716_v14  ;;  %v5467_v49 = vadd.s32 4294967169, %v1443_v33  ;;  %v5742_v50 = vand.u32 31, %v521_v38  ;;  %v676_v52 = vsel %vm675_vm6, %v674_v19, 0  ;;  %v5744_v53 = vand.u32 31, %v831_v39 }
  0xa4   :  { %11076 = vst [vmem:[#allocation15_spill] sm:$0xff] %v5718_v15  ;;  %v5749_v57 = vsel %vm234_vm8, %v5736_v34, 920167782  ;;  %v5753_v58 = vsel %vm234_vm8, %v230_v37, 1326507024  ;;  %v5464_v59 = vadd.s32 4294967169, %v1288_v41  ;;  %v5769_v11 = vadd.f32 %v109_v54, %v5680_v35 }
  0xa5   :  { %11079 = vst [vmem:[#allocation18_spill] sm:$0xff] %v5739_v45  ;;  %v5470_v62 = vadd.s32 4294967169, %v1598_v42  ;;  %v5758_v63 = vsel %vm389_vm9, %v5739_v45, 920167782  ;;  %v5762_v0 = vsel %vm389_vm9, %v385_v46, 1326507024  ;;  %v5772_v12 = vadd.f32 %v138_v55, %v5680_v35 }
  0xa6   :  { %11080 = vst [vmem:[#allocation19_spill] sm:$0xff] %v5742_v50  ;;  %v5764_v2 = vshrl.u32 %v521_v38, 5  ;;  %v5766_v5 = vand.u32 31, %v986_v47  ;;  %v1139_v8 = vadd.s32 1, %v5461_v48  ;;  %v1449_v10 = vadd.s32 1, %v5467_v49 }
  0xa7   :  { %11081 = vst [vmem:[#allocation20_spill] sm:$0xff] %v5749_v57  ;;  %v5775_v13 = vsub.s32 32, %v5742_v50  ;;  %v5777_v16 = vshrl.u32 %v676_v52, 5  ;;  %v5779_v18 = vand.u32 31, %v676_v52  ;;  %v5782_v19 = vsub.s32 32, %v5744_v53 }
  0xa8   :  { %11082 = vst [vmem:[#allocation21_spill] sm:$0xff] %v5753_v58  ;;  %v535_v21 = vshll.u32 %v10786_v4, %v5742_v50  ;;  %v5788_v22 = vshll.u32 %v10795_v7, %v5742_v50  ;;  %v1294_v26 = vadd.s32 1, %v5464_v59  ;;  %v1604_v27 = vadd.s32 1, %v5470_v62 }
  0xa9   :  { %11083 = vst [vmem:[#allocation22_spill] sm:$0xff] %v5758_v63  ;;  %v5790_v28 = vshrl.u32 %v831_v39, 5  ;;  %v845_v29 = vshll.u32 %v10786_v4, %v5744_v53  ;;  %v848_v30 = vshll.u32 %v10795_v7, %v5744_v53  ;;  %v5797_v32 = vsub.s32 32, %v5766_v5 }
  0xaa   :  { %11084 = vst [vmem:[#allocation23_spill] sm:$0xff] %v5762_v0  ;;  %vm1140_vm10 = vcmp.gt.s32.totalorder %v1139_v8, 0  ;;  %vm1450_vm11 = vcmp.gt.s32.totalorder %v1449_v10, 0  ;;  %v2062_v33 = vand.u32 2139095040, %v5769_v11  ;;  %v2217_v37 = vand.u32 2139095040, %v5772_v12 }
  0xab   :  { %11085 = vst [vmem:[#allocation24_spill] sm:$0xff] %v5764_v2  ;;  %v846_v38 = vshrl.u32 %v10795_v7, %v5782_v19  ;;  %v849_v39 = vshrl.u32 %v10793_v17, %v5782_v19  ;;  %v1000_v41 = vshll.u32 %v10786_v4, %v5766_v5  ;;  %v1003_v42 = vshll.u32 %v10795_v7, %v5766_v5 }
  0xac   :  { %11086 = vst [vmem:[#allocation25_spill] sm:$0xff] %v5766_v5  ;;  %vm1295_vm12 = vcmp.gt.s32.totalorder %v1294_v26, 0  ;;  %vm1605_vm13 = vcmp.gt.s32.totalorder %v1604_v27, 0  ;;  %v2063_v46 = vshrl.u32 %v2062_v33, 23  ;;  %v2218_v48 = vshrl.u32 %v2217_v37, 23 }
  0xad   :  { %11087 = vst [vmem:[#allocation26_spill] sm:$0xff] %v5775_v13  ;;  %v1001_v49 = vshrl.u32 %v10795_v7, %v5797_v32  ;;  %v1004_v52 = vshrl.u32 %v10793_v17, %v5797_v32  ;;  %v1141_v54 = vsel %vm1140_vm10, %v1139_v8, 0  ;;  %v1451_v55 = vsel %vm1450_vm11, %v1449_v10, 0 }
  0xae   :  { %11088 = vst [vmem:[#allocation27_spill] sm:$0xff] %v5777_v16  ;;  %v536_v59 = vshrl.u32 %v10795_v7, %v5775_v13  ;;  %vm854_vm14 = vcmp.lt.s32.totalorder %v5790_v28, 4  ;;  %v5816_v62 = vshrl.u32 %v986_v47, 5  ;;  %v1752_v1 = vand.u32 2139095040, %v5716_v14 }
  0xaf   :  { %11089 = vst [vmem:[#allocation28_spill] sm:$0xff] %v5779_v18  ;;  %v5819_v4 = vor.u32 %v846_v38, %v845_v29  ;;  %v850_v33 = vor.u32 %v849_v39, %v848_v30  ;;  %v1296_v37 = vsel %vm1295_vm12, %v1294_v26, 0  ;;  %v1606_v25 = vsel %vm1605_vm13, %v1604_v27, 0 }
  0xb0   :  { %11090 = vst [vmem:[#allocation29_spill] sm:$0xff] %v5788_v22  ;;  %v5821_v16 = vand.u32 31, %v1141_v54  ;;  %v5823_v50 = vand.u32 31, %v1451_v55  ;;  %v5479_v8 = vadd.s32 4294967169, %v2063_v46  ;;  %v5482_v10 = vadd.s32 4294967169, %v2218_v48 }
  0xb1   :  { %11091 = vst [vmem:[#allocation30_spill] sm:$0xff] %v5797_v32  ;;  %v5826_v17 = vsub.s32 32, %v5779_v18  ;;  %v5828_v7 = vor.u32 %v1001_v49, %v1000_v41  ;;  %v1005_v47 = vor.u32 %v1004_v52, %v1003_v42  ;;  %v1907_v24 = vand.u32 2139095040, %v5718_v15 }
  0xb2   :  { %11092 = vst [vmem:[#allocation31_spill] sm:$0xff] %v5816_v62  ;;  %v11097_v29 = vmov 1326507024   ;;  %vm1009_vm15 = vcmp.lt.s32.totalorder %v5816_v62, 4  ;;  %v5836_v26 = vand.u32 31, %v1606_v25  ;;  %v1753_v27 = vshrl.u32 %v1752_v1, 23 }
  0xb3   :  { %11093 = vst [vmem:[#allocation32_spill] sm:$0xff] %v5819_v4  ;;  %v5833_v38 = vshrl.u32 %v11097_v29, %v5775_v13  ;;  %v5838_v30 = vor.u32 %v536_v59, %v535_v21  ;;  %v5843_v39 = vsel %vm854_vm14, %v5819_v4, 920167782  ;;  %v5845_v41 = vand.u32 31, %v1296_v37 }
  0xb4   :  { %11094 = vst [vmem:[#allocation33_spill] sm:$0xff] %v5821_v16  ;;  %v2069_v42 = vadd.s32 1, %v5479_v8  ;;  %v5849_v46 = vsel %vm854_vm14, %v850_v33, 1326507024  ;;  %v5852_v48 = vsub.s32 32, %v5821_v16  ;;  %v5855_v49 = vsub.s32 32, %v5823_v50 }
  0xb5   :  { %11095 = vst [vmem:[#allocation34_spill] sm:$0xff] %v5826_v17  ;;  %v2224_v1 = vadd.s32 1, %v5482_v10  ;;  %v5860_v21 = vsel %vm1009_vm15, %v5828_v7, 920167782  ;;  %v5864_v52 = vsel %vm1009_vm15, %v1005_v47, 1326507024 }
  0xb6   :  { %11096 = vst [vmem:[#allocation35_spill] sm:$0xff] %v5828_v7  ;;  %v1908_v59 = vshrl.u32 %v1907_v24, 23  ;;  %vm2070_vm0 = vcmp.gt.s32.totalorder %v2069_v42, 0  ;;  %v5866_v33 = vshrl.u32 %v1141_v54, 5  ;;  %v5869_v8 = vsub.s32 32, %v5836_v26 }
  0xb7   :  { %11098 = vst [vmem:[#allocation36_spill] sm:$0xff] %v5833_v38  ;;  %v5473_v13 = vadd.s32 4294967169, %v1753_v27  ;;  %v2071_v17 = vsel %vm2070_vm0, %v2069_v42, 0  ;;  %v11107_v10 = vmov 2102212464   ;;  %v5877_v44 = vshrl.u32 %v1296_v37, 5 }
  0xb8   :  { %11099 = vst [vmem:[#allocation37_spill] sm:$0xff] %v5838_v30  ;;  %v1155_v30 = vshll.u32 %v11107_v10, %v5821_v16  ;;  %v11108_v18 = vmov 920167782   ;;  %v5880_v47 = vsub.s32 32, %v5845_v41  ;;  %v1465_v54 = vshll.u32 %v11107_v10, %v5823_v50 }
  0xb9   :  { %11100 = vst [vmem:[#allocation38_spill] sm:$0xff] %v5843_v39  ;;  %v5875_v2 = vshll.u32 %v11108_v18, %v5821_v16  ;;  %v1156_v24 = vshrl.u32 %v11108_v18, %v5852_v48  ;;  %v1466_v27 = vshrl.u32 %v11108_v18, %v5855_v49  ;;  %vm2225_vm1 = vcmp.gt.s32.totalorder %v2224_v1, 0 }
  0xba   :  { %11101 = vst [vmem:[#allocation39_spill] sm:$0xff] %v5845_v41  ;;  %v5888_v42 = vshrl.u32 %v1451_v55, 5  ;;  %v1468_v38 = vshll.u32 %v11108_v18, %v5823_v50  ;;  %v5476_v37 = vadd.s32 4294967169, %v1908_v59  ;;  %v1469_v22 = vshrl.u32 %v11097_v29, %v5855_v49 }
  0xbb   :  { %11102 = vst [vmem:[#allocation40_spill] sm:$0xff] %v5849_v46  ;;  %v1620_v16 = vshll.u32 %v11107_v10, %v5836_v26  ;;  %v1621_v43 = vshrl.u32 %v11108_v18, %v5869_v8  ;;  %v5898_v15 = vshrl.u32 %v1606_v25, 5  ;;  %v1623_v55 = vshll.u32 %v11108_v18, %v5836_v26 }
  0xbc   :  { %11103 = vst [vmem:[#allocation41_spill] sm:$0xff] %v5852_v48  ;;  %v1624_v14 = vshrl.u32 %v11097_v29, %v5869_v8  ;;  %v2226_v59 = vsel %vm2225_vm1, %v2224_v1, 0  ;;  %v5906_v63 = vshrl.u32 %v11097_v29, %v5852_v48  ;;  %v5910_v45 = vshll.u32 %v11107_v10, %v5845_v41  ;;  %v167_v48 = vpop.f32.mrf.mxu2 }
  0xbd   :  { %11104 = vst [vmem:[#allocation42_spill] sm:$0xff] %v5860_v21  ;;  %v5916_v25 = vor.u32 %v1466_v27, %v1465_v54  ;;  %v5920_v0 = vshrl.u32 %v11108_v18, %v5880_v47  ;;  %vm1474_vm2 = vcmp.lt.s32.totalorder %v5888_v42, 4  ;;  %v1914_v1 = vadd.s32 1, %v5476_v37  ;;  %v196_v27 = vpop.f32.mrf.mxu3 }
  0xbe   :  { %11105 = vst [vmem:[#allocation43_spill] sm:$0xff] %v5864_v52  ;;  %v1470_v9 = vor.u32 %v1469_v22, %v1468_v38  ;;  %v5925_v56 = vor.u32 %v1621_v43, %v1620_v16  ;;  %v1625_v54 = vor.u32 %v1624_v14, %v1623_v55  ;;  %vm1629_vm4 = vcmp.lt.s32.totalorder %v5898_v15, 4 }
  0xbf   :  { %11106 = vst [vmem:[#allocation44_spill] sm:$0xff] %v5866_v33  ;;  %v1759_v33 = vadd.s32 1, %v5473_v13  ;;  %v5914_v13 = vshll.u32 %v11108_v18, %v5845_v41  ;;  %v5929_v41 = vor.u32 %v1156_v24, %v1155_v30  ;;  %v5938_v22 = vsel %vm1474_vm2, %v5916_v25, 920167782 }
  0xc0   :  { %11109 = vst [vmem:[#allocation45_spill] sm:$0xff] %v5875_v2  ;;  %v5940_v43 = vshrl.u32 %v2071_v17, 5  ;;  %v5943_v16 = vadd.f32 %v167_v48, %v5680_v35  ;;  %vm1915_vm5 = vcmp.gt.s32.totalorder %v1914_v1, 0  ;;  %v5953_v24 = vsel %vm1474_vm2, %v1470_v9, 1326507024 }
  0xc1   :  { %11110 = vst [vmem:[#allocation46_spill] sm:$0xff] %v5877_v44  ;;  %v2073_v44 = vand.u32 31, %v2071_v17  ;;  %vm1760_vm3 = vcmp.gt.s32.totalorder %v1759_v33, 0  ;;  %v5958_v17 = vsel %vm1629_vm4, %v5925_v56, 920167782  ;;  %v6002_v61 = vshrl.u32 %v2226_v59, 5 }
  0xc2   :  { %11111 = vst [vmem:[#allocation47_spill] sm:$0xff] %v5880_v47  ;;  %v5945_v38 = vsel %vm1760_vm3, %v1759_v33, 0  ;;  %v5964_v33 = vadd.f32 %v196_v27, %v5680_v35  ;;  %v5968_v55 = vsel %vm1629_vm4, %v1625_v54, 1326507024  ;;  %vm2094_vm6 = vcmp.lt.s32.totalorder %v5940_v43, 4 }
  0xc3   :  { %11112 = vst [vmem:[#allocation48_spill] sm:$0xff] %v5906_v63  ;;  %v5923_v31 = vsub.s32 32, %v2073_v44  ;;  %v2085_v37 = vshll.u32 %v11107_v10, %v2073_v44  ;;  %v2088_v9 = vshll.u32 %v11108_v18, %v2073_v44  ;;  %v5975_v63 = vand.u32 31, %v5945_v38 }
  0xc4   :  { %11113 = vst [vmem:[#allocation49_spill] sm:$0xff] %v5910_v45  ;;  %v5927_v45 = vand.u32 31, %v2226_v59  ;;  %v10842_v47 = vmov 683565275   ;;  %v10844_v57 = vmov 2475754826  }
  0xc5   :  { %11114 = vst [vmem:[#allocation50_spill] sm:$0xff] %v5914_v13  ;;  %v10838_v13 = vand.u32 2147483647, %v5769_v11  ;;  %v2086_v14 = vshrl.u32 %v11108_v18, %v5923_v31  ;;  %v2089_v30 = vshrl.u32 %v11097_v29, %v5923_v31  ;;  %v2076_v23 = vshll.u32 %v10842_v47, %v2073_v44 }
  0xc6   :  { %11115 = vst [vmem:[#allocation51_spill] sm:$0xff] %v5920_v0  ;;  %v5961_v48 = vsub.s32 32, %v5927_v45  ;;  %v5977_v0 = vsel %vm1915_vm5, %v1914_v1, 0  ;;  %v2079_v58 = vshll.u32 %v10844_v57, %v2073_v44  ;;  %v10851_v3 = vmov 2131351028  }
  0xc7   :  { %11116 = vst [vmem:[#allocation52_spill] sm:$0xff] %v5929_v41  ;;  %v2066_v2 = vand.u32 8388607, %v10838_v13  ;;  %v2087_v27 = vor.u32 %v2086_v14, %v2085_v37  ;;  %v2090_v41 = vor.u32 %v2089_v30, %v2088_v9  ;;  %v2077_v13 = vshrl.u32 %v10844_v57, %v5923_v31 }
  0xc8   :  { %11117 = vst [vmem:[#allocation53_spill] sm:$0xff] %v5964_v33  ;;  %v2241_v54 = vshrl.u32 %v11108_v18, %v5961_v48  ;;  %v2244_v1 = vshrl.u32 %v11097_v29, %v5961_v48  ;;  %v2080_v37 = vshrl.u32 %v10851_v3, %v5923_v31  ;;  %v2240_v14 = vshll.u32 %v11107_v10, %v5927_v45 }
  0xc9   :  { %11118 = vst [vmem:[#allocation54_spill] sm:$0xff] %v5975_v63  ;;  %v2067_v34 = vor.u32 8388608, %v2066_v2  ;;  %v2078_v30 = vor.u32 %v2077_v13, %v2076_v23  ;;  %v2082_v9 = vshll.u32 %v10851_v3, %v2073_v44  ;;  %v2083_v35 = vshrl.u32 %v11107_v10, %v5923_v31 }
  0xca   :  { %v2100_v47 = vsel %vm2094_vm6, %v2087_v27, 920167782  ;;  %v2104_v2 = vsel %vm2094_vm6, %v2090_v41, 1326507024  ;;  %v2243_v57 = vshll.u32 %v11108_v18, %v5927_v45  ;;  %v2081_v29 = vor.u32 %v2080_v37, %v2079_v58 }
  0xcb   :  { %v6004_v51 = vor.u32 %v2241_v54, %v2240_v14  ;;  %v2084_v23 = vor.u32 %v2083_v35, %v2082_v9  ;;  %vm2091_vm7 = vcmp.lt.s32.totalorder %v5940_v43, 1  ;;  %vm2093_vm10 = vcmp.lt.s32.totalorder %v5940_v43, 3 }
  0xcc   :  { %v2245_v44 = vor.u32 %v2244_v1, %v2243_v57  ;;  %v2099_v13 = vsel %vm2091_vm7, %v2078_v30, %v2081_v29  ;;  %v6010_v3 = vshll.u32 %v2067_v34, 8  ;;  %vm2092_vm11 = vcmp.lt.s32.totalorder %v5940_v43, 2 }
  0xcd   :  { %v2101_v58 = vsel %vm2093_vm10, %v2084_v23, %v2100_v47  ;;  %v2103_v41 = vsel %vm2091_vm7, %v2081_v29, %v2084_v23  ;;  %v2105_v59 = vsel %vm2093_vm10, %v2087_v27, %v2104_v2  ;;  %v2096_v35 = vsel %vm2094_vm6, %v2084_v23, 2102212464 }
  0xce   :  { %v2102_v34 = vsel %vm2092_vm11, %v2099_v13, %v2101_v58  ;;  %v2106_v54 = vsel %vm2092_vm11, %v2103_v41, %v2105_v59  ;;  %v2108_v1 = vand.u32 65535, %v6010_v3  ;;  %v2109_v47 = vshrl.u32 %v6010_v3, 16 }
  0xcf   :  { %v2110_v37 = vand.u32 65535, %v2106_v54  ;;  %v2111_v14 = vshrl.u32 %v2106_v54, 16  ;;  %vm2249_vm12 = vcmp.lt.s32.totalorder %v6002_v61, 4  ;;  %v11119_v27 = vmov 683565275  }
  0xd0   :  { %v2075_v9 = vshrl.u32 %v11119_v27, %v5923_v31  ;;  %v2132_v2 = vand.u32 65535, %v2102_v34  ;;  %v2133_v57 = vshrl.u32 %v2102_v34, 16  ;;  %v2255_v23 = vsel %vm2249_vm12, %v6004_v51, 920167782 }
  0xd1   :  { %v2259_v13 = vsel %vm2249_vm12, %v2245_v44, 1326507024  ;;  %v2113_v58 = vmul.u32 %v2111_v14, %v2108_v1  ;;  %v2114_v41 = vmul.u32 %v2110_v37, %v2109_v47  ;;  %v2097_v54 = vsel %vm2093_vm10, %v2081_v29, %v2096_v35 }
  0xd2   :  { %v2095_v59 = vsel %vm2091_vm7, %v2075_v9, %v2078_v30  ;;  %v2135_v20 = vmul.u32 %v2133_v57, %v2108_v1  ;;  %v2136_v21 = vmul.u32 %v2132_v2, %v2109_v47  ;;  %v2112_v31 = vmul.u32 %v2110_v37, %v2108_v1 }
  0xd3   :  { %v2115_v7 = vmul.u32 %v2111_v14, %v2109_v47  ;;  %v2116_v34 = vshll.u32 %v2113_v58, 16  ;;  %v2134_v52 = vmul.u32 %v2132_v2, %v2108_v1  ;;  %v2117_v62 = vshrl.u32 %v2113_v58, 16 }
  0xd4   :  { %v2118_v32 = vshll.u32 %v2114_v41, 16  ;;  %v2137_v5 = vmul.u32 %v2133_v57, %v2109_v47  ;;  %v2138_v40 = vshll.u32 %v2135_v20, 16  ;;  %v2119_v39 = vshrl.u32 %v2114_v41, 16 }
  0xd5   :  { %vm2120_vm13 = vc.u32 %v2112_v31, %v2116_v34  ;;  %v2122_v44 = vadd.s32 %v2116_v34, %v2112_v31  ;;  %v10865_v4 = vand.u32 2147483647, %v5772_v12  ;;  %v11120_v46 = vmov 0  }
  0xd6   :  { %v2121_v30 = vsel %vm2120_vm13, 1, %v11120_v46  ;;  %v2140_v9 = vshll.u32 %v2136_v21, 16  ;;  %vm2142_vm0 = vc.u32 %v2134_v52, %v2138_v40  ;;  %v2144_v29 = vadd.s32 %v2138_v40, %v2134_v52 }
  0xd7   :  { %v2123_v35 = vadd.s32 %v2121_v30, %v2115_v7  ;;  %vm2124_vm1 = vc.u32 %v2122_v44, %v2118_v32  ;;  %v2139_v37 = vshrl.u32 %v2135_v20, 16  ;;  %v2143_v14 = vsel %vm2142_vm0, 1, %v11120_v46 }
  0xd8   :  { %v2125_v1 = vsel %vm2124_vm1, 1, %v11120_v46  ;;  %v2141_v2 = vshrl.u32 %v2136_v21, 16  ;;  %v2145_v57 = vadd.s32 %v2143_v14, %v2137_v5  ;;  %vm2146_vm3 = vc.u32 %v2144_v29, %v2140_v9 }
  0xd9   :  { %v2127_v47 = vadd.s32 %v2125_v1, %v2123_v35  ;;  %v2147_v58 = vsel %vm2146_vm3, 1, %v11120_v46  ;;  %v2221_v41 = vand.u32 8388607, %v10865_v4  ;;  %v2231_v31 = vshll.u32 %v11119_v27, %v5927_v45 }
  0xda   :  { %v2149_v40 = vadd.s32 %v2147_v58, %v2145_v57  ;;  %v11121_v7 = vmov 2475754826   ;;  %v11122_v21 = vmov 2131351028   ;;  %v6055_v34 = vadd.s32 %v2144_v29, %v2140_v9 }
  0xdb   :  { %v2232_v20 = vshrl.u32 %v11121_v7, %v5961_v48  ;;  %v2234_v32 = vshll.u32 %v11121_v7, %v5927_v45  ;;  %v2235_v5 = vshrl.u32 %v11122_v21, %v5961_v48  ;;  %v2128_v52 = vadd.s32 %v2127_v47, %v2117_v62 }
  0xdc   :  { %v2237_v44 = vshll.u32 %v11122_v21, %v5927_v45  ;;  %v2238_v30 = vshrl.u32 %v11107_v10, %v5961_v48  ;;  %v2150_v35 = vadd.s32 %v2149_v40, %v2139_v37  ;;  %v2222_v14 = vor.u32 8388608, %v2221_v41 }
  0xdd   :  { %v2233_v1 = vor.u32 %v2232_v20, %v2231_v31  ;;  %v6061_v57 = vor.u32 %v2235_v5, %v2234_v32  ;;  %v6063_v58 = vadd.s32 %v2128_v52, %v2119_v39  ;;  %vm2246_vm5 = vcmp.lt.s32.totalorder %v6002_v61, 1 }
  0xde   :  { %v2239_v4 = vor.u32 %v2238_v30, %v2237_v44  ;;  %vm2248_vm6 = vcmp.lt.s32.totalorder %v6002_v61, 3  ;;  %v2098_v62 = vsel %vm2092_vm11, %v2095_v59, %v2097_v54  ;;  %v2151_v9 = vadd.s32 %v2150_v35, %v2141_v2 }
  0xdf   :  { %v2254_v45 = vsel %vm2246_vm5, %v2233_v1, %v6061_v57  ;;  %v2260_v29 = vsel %vm2248_vm6, %v6004_v51, %v2259_v13  ;;  %v6076_v39 = vand.u32 31, %v5977_v0  ;;  %vm2154_vm7 = vc.u32 %v6063_v58, %v6055_v34 }
  0xe0   :  { %vm2247_vm10 = vcmp.lt.s32.totalorder %v6002_v61, 2  ;;  %v2256_v43 = vsel %vm2248_vm6, %v2239_v4, %v2255_v23  ;;  %v11124_v59 = vand.u32 2139095040, %v5943_v16  ;;  %v2155_v37 = vadd.s32 1, %v2151_v9 }
  0xe1   :  { %11123 = vst [vmem:[#allocation55_spill] sm:$0xff] %v6076_v39  ;;  %v2257_v2 = vsel %vm2247_vm10, %v2254_v45, %v2256_v43  ;;  %v2258_v51 = vsel %vm2246_vm5, %v6061_v57, %v2239_v4  ;;  %v11125_v13 = vand.u32 2139095040, %v5964_v33  ;;  %v2152_v41 = vmul.u32 %v6010_v3, %v2098_v62 }
  0xe2   :  { %v2373_v54 = vshrl.u32 %v11124_v59, 23  ;;  %v2261_v31 = vsel %vm2247_vm10, %v2258_v51, %v2260_v29  ;;  %v6095_v23 = vshll.u32 %v2222_v14, 8  ;;  %v2156_v40 = vsel %vm2154_vm7, %v2155_v37, %v2151_v9 }
  0xe3   :  { %v2528_v47 = vshrl.u32 %v11125_v13, 23  ;;  %v2265_v20 = vand.u32 65535, %v2261_v31  ;;  %v2266_v32 = vshrl.u32 %v2261_v31, 16  ;;  %v2288_v5 = vshrl.u32 %v2257_v2, 16 }
  0xe4   :  { %v6098_v52 = vshrl.u32 %v5945_v38, 5  ;;  %v2157_v44 = vadd.s32 %v2156_v40, %v2152_v41  ;;  %v2263_v30 = vand.u32 65535, %v6095_v23  ;;  %v2264_v35 = vshrl.u32 %v6095_v23, 16 }
  0xe5   :  { %v6103_v45 = vsub.s32 32, %v5975_v63  ;;  %v6107_v3 = vshll.u32 %v11107_v10, %v5975_v63  ;;  %v6110_v14 = vshrl.u32 %v5977_v0, 5  ;;  %v2287_v62 = vand.u32 65535, %v2257_v2 }
  0xe6   :  { %11126 = vst [vmem:[#allocation56_spill] sm:$0xff] %v6098_v52  ;;  %v6114_v38 = vshll.u32 %v11108_v18, %v5975_v63  ;;  %v2158_v9 = vadd.s32 536870912, %v2157_v44  ;;  %v2268_v29 = vmul.u32 %v2266_v32, %v2263_v30  ;;  %v2269_v43 = vmul.u32 %v2265_v20, %v2264_v35 }
  0xe7   :  { %11127 = vst [vmem:[#allocation57_spill] sm:$0xff] %v6107_v3  ;;  %v6117_v59 = vsub.s32 32, %v6076_v39  ;;  %v6119_v37 = vadd.s32 4294967169, %v2373_v54  ;;  %v6121_v51 = vadd.s32 4294967169, %v2528_v47  ;;  %v2290_v13 = vmul.u32 %v2288_v5, %v2263_v30 }
  0xe8   :  { %11128 = vst [vmem:[#allocation58_spill] sm:$0xff] %v6110_v14  ;;  %v6123_v41 = vshrl.u32 %v2158_v9, 30  ;;  %v2230_v0 = vshrl.u32 %v11119_v27, %v5961_v48  ;;  %v2267_v2 = vmul.u32 %v2265_v20, %v2263_v30  ;;  %v2271_v31 = vshll.u32 %v2268_v29, 16 }
  0xe9   :  { %11129 = vst [vmem:[#allocation59_spill] sm:$0xff] %v6114_v38  ;;  %v2270_v40 = vmul.u32 %v2266_v32, %v2264_v35  ;;  %v2289_v14 = vmul.u32 %v2287_v62, %v2263_v30  ;;  %v2291_v63 = vmul.u32 %v2287_v62, %v2264_v35  ;;  %v2293_v38 = vshll.u32 %v2290_v13, 16 }
  0xea   :  { %11130 = vst [vmem:[#allocation60_spill] sm:$0xff] %v6117_v59  ;;  %v2160_v3 = vshll.u32 %v6123_v41, 30  ;;  %v2273_v52 = vshll.u32 %v2269_v43, 16  ;;  %vm2275_vm11 = vc.u32 %v2267_v2, %v2271_v31  ;;  %v2277_v54 = vadd.s32 %v2271_v31, %v2267_v2 }
  0xeb   :  { %v2250_v47 = vsel %vm2246_vm5, %v2230_v0, %v2233_v1  ;;  %v2251_v9 = vsel %vm2249_vm12, %v2239_v4, 2102212464  ;;  %v2276_v59 = vsel %vm2275_vm11, 1, %v11120_v46  ;;  %vm2297_vm13 = vc.u32 %v2289_v14, %v2293_v38 }
  0xec   :  { %v6133_v48 = vsub.s32 %v2157_v44, %v2160_v3  ;;  %v2278_v20 = vadd.s32 %v2276_v59, %v2270_v40  ;;  %vm2279_vm0 = vc.u32 %v2277_v54, %v2273_v52  ;;  %v2292_v32 = vmul.u32 %v2288_v5, %v2264_v35 }
  0xed   :  { %v2280_v30 = vsel %vm2279_vm0, 1, %v11120_v46  ;;  %v2295_v62 = vshll.u32 %v2291_v63, 16  ;;  %v2298_v33 = vsel %vm2297_vm13, 1, %v11120_v46  ;;  %v2299_v2 = vadd.s32 %v2293_v38, %v2289_v14 }
  0xee   :  { %vm2162_vm1 = vcmp.lt.s32.totalorder %v6133_v48, 0  ;;  %v2163_v1 = vsub.s32 0, %v6133_v48  ;;  %v2272_v0 = vshrl.u32 %v2268_v29, 16  ;;  %v2282_v4 = vadd.s32 %v2280_v30, %v2278_v20 }
  0xef   :  { %v2252_v44 = vsel %vm2248_vm6, %v6061_v57, %v2251_v9  ;;  %v2300_v3 = vadd.s32 %v2298_v33, %v2292_v32  ;;  %vm2301_vm12 = vc.u32 %v2299_v2, %v2295_v62  ;;  %v1439_v5 = vand.u32 2147483647, %v5698_v60 }
  0xf0   :  { %v2164_v52 = vsel %vm2162_vm1, %v2163_v1, %v6133_v48  ;;  %v2274_v35 = vshrl.u32 %v2269_v43, 16  ;;  %v2283_v59 = vadd.s32 %v2282_v4, %v2272_v0  ;;  %v2302_v14 = vsel %vm2301_vm12, 1, %v11120_v46 }
  0xf1   :  { %vm2061_vm3 = vcmp.lt.s32.totalorder %v5769_v11, 0  ;;  %v2153_v38 = vadd.s32 %v6055_v34, %v6063_v58  ;;  %v2165_v29 = vclz %v2164_v52  ;;  %v2294_v31 = vshrl.u32 %v2290_v13, 16 }
  0xf2   :  { %v2304_v40 = vadd.s32 %v2302_v14, %v2300_v3  ;;  %v2253_v33 = vsel %vm2247_vm10, %v2250_v47, %v2252_v44  ;;  %v6150_v57 = vadd.s32 %v2283_v59, %v2274_v35  ;;  %v2296_v54 = vshrl.u32 %v2291_v63, 16 }
  0xf3   :  { %v1456_v43 = vshll.u32 %v11119_v27, %v5823_v50  ;;  %v5480_v9 = vadd.s32 4294967294, %v2165_v29  ;;  %v6154_v20 = vadd.s32 %v2299_v2, %v2295_v62  ;;  %v1457_v30 = vshrl.u32 %v11121_v7, %v5855_v49 }
  0xf4   :  { %v2305_v32 = vadd.s32 %v2304_v40, %v2294_v31  ;;  %v11131_v34 = vand.u32 2147483647, %v5769_v11  ;;  %v2183_v61 = vsub.s32 4, %v6123_v41  ;;  %v1446_v63 = vand.u32 8388607, %v1439_v5 }
  0xf5   :  { %v1459_v13 = vshll.u32 %v11121_v7, %v5823_v50  ;;  %v1460_v47 = vshrl.u32 %v11122_v21, %v5855_v49  ;;  %vm5481_vm6 = vcmp.lt.s32.totalorder %v5480_v9, 0  ;;  %vm2309_vm7 = vc.u32 %v6150_v57, %v6154_v20 }
  0xf6   :  { %vm6160_vm5 = vcmp.le.f32.partialorder %v11131_v34, 0.7853982  ;;  %v2306_v62 = vadd.s32 %v2305_v32, %v2296_v54  ;;  %v1462_v2 = vshll.u32 %v11122_v21, %v5823_v50  ;;  %v2168_v1 = vsel %vm5481_vm6, 0, %v5480_v9 }
  0xf7   :  { %v1458_v0 = vor.u32 %v1457_v30, %v1456_v43  ;;  %v1461_v4 = vor.u32 %v1460_v47, %v1459_v13  ;;  %v1463_v44 = vshrl.u32 %v11107_v10, %v5855_v49  ;;  %v2169_v3 = vsub.s32 32, %v2168_v1 }
  0xf8   :  { %v2173_v52 = vsub.s32 4294967266, %v2168_v1  ;;  %v2310_v35 = vadd.s32 1, %v2306_v62  ;;  %vm1471_vm10 = vcmp.lt.s32.totalorder %v5888_v42, 1  ;;  %v2307_v59 = vmul.u32 %v6095_v23, %v2253_v33 }
  0xf9   :  { %v1447_v14 = vor.u32 8388608, %v1446_v63  ;;  %v1464_v29 = vor.u32 %v1463_v44, %v1462_v2  ;;  %vm1473_vm11 = vcmp.lt.s32.totalorder %v5888_v42, 3  ;;  %v2170_v31 = vshll.u32 %v6133_v48, %v2168_v1 }
  0xfa   :  { %v2171_v50 = vshrl.u32 %v2153_v38, %v2169_v3  ;;  %v2174_v40 = vadd.s32 127, %v2173_v52  ;;  %v2311_v54 = vsel %vm2309_vm7, %v2310_v35, %v2306_v62  ;;  %v2184_v43 = vsel %vm2061_vm3, %v2183_v61, %v6123_v41 }
  0xfb   :  { %v2312_v9 = vadd.s32 %v2311_v54, %v2307_v59  ;;  %vm1472_vm13 = vcmp.lt.s32.totalorder %v5888_v42, 2  ;;  %v1483_v23 = vsel %vm1471_vm10, %v1461_v4, %v1464_v29  ;;  %v1479_v48 = vsel %vm1471_vm10, %v1458_v0, %v1461_v4 }
  0xfc   :  { %v2172_v33 = vor.u32 %v2171_v50, %v2170_v31  ;;  %v2175_v32 = vshll.u32 %v2174_v40, 23  ;;  %v1481_v38 = vsel %vm1473_vm11, %v1464_v29, %v5938_v22  ;;  %v1455_v34 = vshrl.u32 %v11119_v27, %v5855_v49 }
  0xfd   :  { %v2313_v30 = vadd.s32 536870912, %v2312_v9  ;;  %v1485_v41 = vsel %vm1473_vm11, %v5916_v25, %v5953_v24  ;;  %v6201_v61 = vshll.u32 %v1447_v14, 8  ;;  %v2186_v13 = vsel %vm6160_vm5, 0, %v2184_v43 }
  0xfe   :  { %v2176_v63 = vor.u32 4788187, %v2175_v32  ;;  %v1476_v47 = vsel %vm1474_vm2, %v1464_v29, 2102212464  ;;  %v1486_v22 = vsel %vm1472_vm13, %v1483_v23, %v1485_v41  ;;  %v2179_v62 = vcvt.s32.f32 %v2172_v33 }
  0xff   :  { %v2314_v2 = vshrl.u32 %v2313_v30, 30  ;;  %v6211_v49 = vsel %vm1472_vm13, %v1479_v48, %v1481_v38  ;;  %v1490_v1 = vand.u32 65535, %v1486_v22  ;;  %v1488_v24 = vand.u32 65535, %v6201_v61 }
 0x100   :  { %v2177_v25 = vand.u32 2147483647, %v2176_v63  ;;  %v1489_v44 = vshrl.u32 %v6201_v61, 16  ;;  %v1491_v3 = vshrl.u32 %v1486_v22, 16  ;;  %v6217_v52 = vshll.u32 %v11107_v10, %v6076_v39 }
 0x101   :  { %v6220_v35 = vadd.s32 1, %v6119_v37  ;;  %v6223_v59 = vadd.s32 1, %v6121_v51  ;;  %v2315_v14 = vshll.u32 %v2314_v2, 30  ;;  %v2203_v31 = vadd.s32 3, %v2186_v13 }
 0x102   :  { %11134 = vst [vmem:[#allocation61_spill] sm:$0xff] %v6217_v52  ;;  %v2180_v29 = vmul.f32 %v2179_v62, %v2177_v25  ;;  %vm2216_vm2 = vcmp.lt.s32.totalorder %v5772_v12, 0  ;;  %v1493_v50 = vmul.u32 %v1491_v3, %v1488_v24  ;;  %v6226_v40 = vmul.u32 %v1490_v1, %v1489_v44 }
 0x103   :  { %v6228_v54 = vsub.s32 %v2312_v9, %v2315_v14  ;;  %v1475_v43 = vsel %vm1471_vm10, %v1455_v34, %v1458_v0  ;;  %v1477_v37 = vsel %vm1473_vm11, %v1461_v4, %v1476_v47  ;;  %v1513_v23 = vshrl.u32 %v6211_v49, 16 }
 0x104   :  { %v2181_v51 = vxor.u32 2147483648, %v2180_v29  ;;  %v1492_v33 = vmul.u32 %v1490_v1, %v1488_v24  ;;  %v1496_v32 = vshll.u32 %v1493_v50, 16  ;;  %v1512_v48 = vand.u32 65535, %v6211_v49 }
 0x105   :  { %vm2317_vm0 = vcmp.lt.s32.totalorder %v6228_v54, 0  ;;  %v2318_v38 = vsub.s32 0, %v6228_v54  ;;  %v2338_v30 = vsub.s32 4, %v2314_v2  ;;  %v1495_v9 = vmul.u32 %v1491_v3, %v1489_v44 }
 0x106   :  { %v2182_v41 = vsel %vm2061_vm3, %v2181_v51, %v2180_v29  ;;  %v1498_v0 = vshll.u32 %v6226_v40, 16  ;;  %vm1500_vm1 = vc.u32 %v1492_v33, %v1496_v32  ;;  %v1502_v4 = vadd.s32 %v1496_v32, %v1492_v33 }
 0x107   :  { %v6244_v34 = vsel %vm6160_vm5, %v5769_v11, %v2182_v41  ;;  %v2319_v63 = vsel %vm2317_vm0, %v2318_v38, %v6228_v54  ;;  %v1501_v13 = vsel %vm1500_vm1, 1, %v11120_v46  ;;  %v1515_v47 = vmul.u32 %v1513_v23, %v1488_v24 }
 0x108   :  { %v2187_v22 = vmul.f32 %v6244_v34, %v6244_v34  ;;  %v2320_v62 = vclz %v2319_v63  ;;  %v1503_v49 = vadd.s32 %v1501_v13, %v1495_v9  ;;  %vm1504_vm12 = vc.u32 %v1502_v4, %v1498_v0 }
 0x109   :  { %v6250_v1 = vand.u32 3, %v2203_v31  ;;  %v2308_v25 = vadd.s32 %v6154_v20, %v6150_v57  ;;  %v1505_v58 = vsel %vm1504_vm12, 1, %v11120_v46  ;;  %v1516_v3 = vmul.u32 %v1512_v48, %v1489_v44 }
 0x10a   :  { %v2188_v14 = vmul.f32 -0.001358992, %v2187_v22  ;;  %v2195_v29 = vmul.f32 -0.00019511016, %v2187_v22  ;;  %v5483_v51 = vadd.s32 4294967294, %v2320_v62  ;;  %v6257_v33 = vsel %vm1472_vm13, %v1475_v43, %v1477_v37 }
 0x10b   :  { %v6261_v32 = vsel %vm2216_vm2, %v2338_v30, %v2314_v2  ;;  %v1507_v38 = vadd.s32 %v1505_v58, %v1503_v49  ;;  %v1514_v31 = vmul.u32 %v1512_v48, %v1488_v24  ;;  %v1518_v9 = vshll.u32 %v1515_v47, 16 }
 0x10c   :  { %v2189_v41 = vadd.f32 0.041655596, %v2188_v14  ;;  %v2196_v0 = vadd.f32 0.008332121, %v2195_v29  ;;  %v11135_v57 = vand.u32 2147483647, %v5772_v12  ;;  %v1517_v13 = vmul.u32 %v1513_v23, %v1489_v44 }
 0x10d   :  { %vm5484_vm5 = vcmp.lt.s32.totalorder %v5483_v51, 0  ;;  %v1497_v4 = vshrl.u32 %v1493_v50, 16  ;;  %v1520_v43 = vshll.u32 %v1516_v3, 16  ;;  %vm1522_vm6 = vc.u32 %v1514_v31, %v1518_v9 }
 0x10e   :  { %vm6265_vm3 = vcmp.le.f32.partialorder %v11135_v57, 0.7853982  ;;  %v2323_v42 = vsel %vm5484_vm5, 0, %v5483_v51  ;;  %v1524_v37 = vadd.s32 %v1518_v9, %v1514_v31  ;;  %v2190_v63 = vmul.f32 %v2189_v41, %v2187_v22 }
 0x10f   :  { %v2197_v2 = vmul.f32 %v2196_v0, %v2187_v22  ;;  %v2324_v30 = vsub.s32 32, %v2323_v42  ;;  %v2328_v24 = vsub.s32 4294967266, %v2323_v42  ;;  %v1508_v48 = vadd.s32 %v1507_v38, %v1497_v4 }
 0x110   :  { %v1523_v62 = vsel %vm1522_vm6, 1, %v11120_v46  ;;  %vm1526_vm7 = vc.u32 %v1524_v37, %v1520_v43  ;;  %v2191_v49 = vadd.f32 -0.4999988, %v2190_v63  ;;  %vm2209_vm10 = vcmp.eq.s32.totalorder %v6250_v1, 2 }
 0x111   :  { %v2198_v58 = vadd.f32 -0.16666654, %v2197_v2  ;;  %v2326_v14 = vshrl.u32 %v2308_v25, %v2324_v30  ;;  %v1525_v29 = vadd.s32 %v1523_v62, %v1517_v13  ;;  %vm2206_vm11 = vcmp.eq.s32.totalorder %v6250_v1, 0 }
 0x112   :  { %v2325_v50 = vshll.u32 %v6228_v54, %v2323_v42  ;;  %v2329_v51 = vadd.s32 127, %v2328_v24  ;;  %v1499_v31 = vshrl.u32 %v6226_v40, 16  ;;  %v1527_v44 = vsel %vm1526_vm7, 1, %v11120_v46 }
 0x113   :  { %v2192_v23 = vmul.f32 %v2191_v49, %v2187_v22  ;;  %v2199_v38 = vmul.f32 %v2198_v58, %v2187_v22  ;;  %vm2205_vm13 = vcmp.lt.s32.totalorder %v6250_v1, 2  ;;  %v1519_v9 = vshrl.u32 %v1515_v47, 16 }
 0x114   :  { %v1529_v41 = vadd.s32 %v1527_v44, %v1525_v29  ;;  %vm2202_vm0 = vweird.f32 %v5769_v11  ;;  %v2327_v0 = vor.u32 %v2326_v14, %v2325_v50  ;;  %v2330_v25 = vshll.u32 %v2329_v51, 23 }
 0x115   :  { %v6277_v57 = vadd.s32 %v1508_v48, %v1499_v31  ;;  %v1594_v4 = vand.u32 2147483647, %v5707_v6  ;;  %v2193_v54 = vadd.f32 1.0, %v2192_v23  ;;  %v2200_v42 = vadd.f32 1.0, %v2199_v38 }
 0x116   :  { %v1521_v63 = vshrl.u32 %v1516_v3, 16  ;;  %v1530_v40 = vadd.s32 %v1529_v41, %v1519_v9  ;;  %v2331_v2 = vor.u32 4788187, %v2330_v25  ;;  %v2341_v22 = vsel %vm6265_vm3, 0, %v6261_v32 }
 0x117   :  { %v6283_v30 = vadd.s32 %v1524_v37, %v1520_v43  ;;  %v1532_v47 = vmul.u32 %v6201_v61, %v6257_v33  ;;  %v2201_v13 = vmul.f32 %v2200_v42, %v6244_v34  ;;  %v2210_v24 = vxor.u32 2147483648, %v2193_v54 }
 0x118   :  { %v1531_v48 = vadd.s32 %v1530_v40, %v1521_v63  ;;  %v1601_v62 = vand.u32 8388607, %v1594_v4  ;;  %v2332_v49 = vand.u32 2147483647, %v2331_v2  ;;  %v2334_v3 = vcvt.s32.f32 %v2327_v0 }
 0x119   :  { %vm1534_vm1 = vc.u32 %v6277_v57, %v6283_v30  ;;  %v1614_v32 = vshll.u32 %v11121_v7, %v5836_v26  ;;  %v2207_v43 = vxor.u32 2147483648, %v2201_v13  ;;  %v1611_v61 = vshll.u32 %v11119_v27, %v5836_v26 }
 0x11a   :  { %v1535_v37 = vadd.s32 1, %v1531_v48  ;;  %v1612_v34 = vshrl.u32 %v11121_v7, %v5869_v8  ;;  %v2211_v33 = vsel %vm2209_vm10, %v2210_v24, %v2201_v13  ;;  %v2335_v58 = vmul.f32 %v2334_v3, %v2332_v49 }
 0x11b   :  { %v1615_v14 = vshrl.u32 %v11122_v21, %v5869_v8  ;;  %v1617_v29 = vshll.u32 %v11122_v21, %v5836_v26  ;;  %v2208_v50 = vsel %vm2206_vm11, %v2193_v54, %v2207_v43  ;;  %v1602_v31 = vor.u32 8388608, %v1601_v62 }
 0x11c   :  { %v1536_v51 = vsel %vm1534_vm1, %v1535_v37, %v1531_v48  ;;  %v1618_v44 = vshrl.u32 %v11107_v10, %v5869_v8  ;;  %v2212_v23 = vsel %vm2205_vm13, %v2208_v50, %v2211_v33  ;;  %v2336_v38 = vxor.u32 2147483648, %v2335_v58 }
 0x11d   :  { %v1537_v9 = vadd.s32 %v1536_v51, %v1532_v47  ;;  %v6310_v41 = vor.u32 %v1615_v14, %v1614_v32  ;;  %v2213_v0 = vsel %vm2202_vm0, nan, %v2212_v23  ;;  %v1613_v25 = vor.u32 %v1612_v34, %v1611_v61 }
 0x11e   :  { %v1619_v26 = vor.u32 %v1618_v44, %v1617_v29  ;;  %vm1626_vm12 = vcmp.lt.s32.totalorder %v5898_v15, 1  ;;  %v6317_v54 = vshll.u32 %v11108_v18, %v6076_v39  ;;  %2732 = vmatpush.msrb.mxu0 %v2213_v0  ;;  %v2337_v1 = vsel %vm2216_vm2, %v2336_v38, %v2335_v58 }
 0x11f   :  { %v1538_v42 = vadd.s32 536870912, %v1537_v9  ;;  %vm1628_vm5 = vcmp.lt.s32.totalorder %v5898_v15, 3  ;;  %vm2380_vm6 = vcmp.gt.s32.totalorder %v6220_v35, 0  ;;  %vm2535_vm7 = vcmp.gt.s32.totalorder %v6223_v59, 0 }
 0x120   :  { %11138 = vst [vmem:[#allocation62_spill] sm:$0xff] %v6317_v54  ;;  %v2340_v11 = vsel %vm6265_vm3, %v5772_v12, %v2337_v1  ;;  %v2358_v63 = vadd.s32 3, %v2341_v22  ;;  %vm1627_vm10 = vcmp.lt.s32.totalorder %v5898_v15, 2  ;;  %v1638_v47 = vsel %vm1626_vm12, %v6310_v41, %v1619_v26 }
 0x121   :  { %v2342_v40 = vmul.f32 %v2340_v11, %v2340_v11  ;;  %v6327_v2 = vshrl.u32 %v1538_v42, 30  ;;  %v6335_v13 = vshrl.u32 %v11108_v18, %v6103_v45  ;;  %v1634_v24 = vsel %vm1626_vm12, %v1613_v25, %v6310_v41 }
 0x122   :  { %v1640_v20 = vsel %vm1628_vm5, %v5925_v56, %v5968_v55  ;;  %v6344_v22 = vshll.u32 %v1602_v31, 8  ;;  %v1636_v3 = vsel %vm1628_vm5, %v1619_v26, %v5958_v17  ;;  %v6353_v32 = vsel %vm2380_vm6, %v6220_v35, 0 }
 0x123   :  { %v2343_v48 = vmul.f32 -0.001358992, %v2342_v40  ;;  %v2350_v62 = vmul.f32 -0.00019511016, %v2342_v40  ;;  %v1540_v49 = vshll.u32 %v6327_v2, 30  ;;  %v6358_v43 = vsel %vm2535_vm7, %v6223_v59, 0 }
 0x124   :  { %v6360_v56 = vand.u32 3, %v2358_v63  ;;  %v1641_v55 = vsel %vm1627_vm10, %v1638_v47, %v1640_v20  ;;  %v1610_v17 = vshrl.u32 %v11119_v27, %v5869_v8  ;;  %v6370_v35 = vsel %vm1627_vm10, %v1634_v24, %v1636_v3 }
 0x125   :  { %v2344_v37 = vadd.f32 0.041655596, %v2343_v48  ;;  %v2351_v61 = vadd.f32 0.008332121, %v2350_v62  ;;  %v6364_v34 = vsub.s32 %v1537_v9, %v1540_v49  ;;  %v1643_v33 = vand.u32 65535, %v6344_v22 }
 0x126   :  { %v1645_v59 = vand.u32 65535, %v1641_v55  ;;  %v1646_v58 = vshrl.u32 %v1641_v55, 16  ;;  %v6376_v51 = vshrl.u32 %v6353_v32, 5  ;;  %v1533_v8 = vadd.s32 %v6283_v30, %v6277_v57 }
 0x127   :  { %v2345_v14 = vmul.f32 %v2344_v37, %v2342_v40  ;;  %v2352_v29 = vmul.f32 %v2351_v61, %v2342_v40  ;;  %vm1542_vm2 = vcmp.lt.s32.totalorder %v6364_v34, 0  ;;  %v1543_v50 = vsub.s32 0, %v6364_v34 }
 0x128   :  { %v1644_v31 = vshrl.u32 %v6344_v22, 16  ;;  %v1648_v44 = vmul.u32 %v1646_v58, %v1643_v33  ;;  %v1631_v0 = vsel %vm1629_vm4, %v1619_v26, 2102212464  ;;  %vm2361_vm3 = vcmp.eq.s32.totalorder %v6360_v56, 0 }
 0x129   :  { %v2346_v23 = vadd.f32 -0.4999988, %v2345_v14  ;;  %v2353_v38 = vadd.f32 -0.16666654, %v2352_v29  ;;  %v1544_v9 = vsel %vm1542_vm2, %v1543_v50, %v6364_v34  ;;  %vm2364_vm11 = vcmp.eq.s32.totalorder %v6360_v56, 2 }
 0x12a   :  { %v1545_v1 = vclz %v1544_v9  ;;  %v6386_v42 = vmul.u32 %v1645_v59, %v1644_v31  ;;  %v1651_v63 = vshll.u32 %v1648_v44, 16  ;;  %v1668_v57 = vshrl.u32 %v6370_v35, 16 }
 0x12b   :  { %v2347_v30 = vmul.f32 %v2346_v23, %v2342_v40  ;;  %v2354_v47 = vmul.f32 %v2353_v38, %v2342_v40  ;;  %vm2360_vm13 = vcmp.lt.s32.totalorder %v6360_v56, 2  ;;  %v1630_v24 = vsel %vm1626_vm12, %v1610_v17, %v1613_v25 }
 0x12c   :  { %v1647_v20 = vmul.u32 %v1645_v59, %v1643_v33  ;;  %vm2357_vm4 = vweird.f32 %v5772_v12  ;;  %v5468_v26 = vadd.s32 4294967294, %v1545_v1  ;;  %v1632_v48 = vsel %vm1628_vm5, %v6310_v41, %v1631_v0 }
 0x12d   :  { %v1650_v62 = vmul.u32 %v1646_v58, %v1644_v31  ;;  %v1667_v49 = vand.u32 65535, %v6370_v35  ;;  %v2348_v3 = vadd.f32 1.0, %v2347_v30  ;;  %v2355_v55 = vadd.f32 1.0, %v2354_v47 }
 0x12e   :  { %vm1655_vm0 = vc.u32 %v1647_v20, %v1651_v63  ;;  %v1657_v40 = vadd.s32 %v1651_v63, %v1647_v20  ;;  %vm5469_vm1 = vcmp.lt.s32.totalorder %v5468_v26, 0  ;;  %v1653_v37 = vshll.u32 %v6386_v42, 16 }
 0x12f   :  { %v1656_v25 = vsel %vm1655_vm0, 1, %v11120_v46  ;;  %v1670_v61 = vmul.u32 %v1668_v57, %v1643_v33  ;;  %v2356_v17 = vmul.f32 %v2355_v55, %v2340_v11  ;;  %v2365_v59 = vxor.u32 2147483648, %v2348_v3 }
 0x130   :  { %v1548_v14 = vsel %vm5469_vm1, 0, %v5468_v26  ;;  %v1658_v29 = vadd.s32 %v1656_v25, %v1650_v62  ;;  %vm1441_vm12 = vcmp.lt.s32.totalorder %v5698_v60, 0  ;;  %v1563_v35 = vsub.s32 4, %v6327_v2 }
 0x131   :  { %v1549_v41 = vsub.s32 32, %v1548_v14  ;;  %v1553_v58 = vsub.s32 4294967266, %v1548_v14  ;;  %vm1659_vm5 = vc.u32 %v1657_v40, %v1653_v37  ;;  %v2362_v50 = vxor.u32 2147483648, %v2356_v17 }
 0x132   :  { %v1550_v23 = vshll.u32 %v6364_v34, %v1548_v14  ;;  %v1660_v38 = vsel %vm1659_vm5, 1, %v11120_v46  ;;  %v1671_v9 = vmul.u32 %v1667_v49, %v1644_v31  ;;  %v1673_v11 = vshll.u32 %v1670_v61, 16 }
 0x133   :  { %v1551_v0 = vshrl.u32 %v1533_v8, %v1549_v41  ;;  %v1554_v1 = vadd.s32 127, %v1553_v58  ;;  %v1662_v63 = vadd.s32 %v1660_v38, %v1658_v29  ;;  %v2363_v30 = vsel %vm2361_vm3, %v2348_v3, %v2362_v50  ;;  %v11141_v3 = vld [vmem:[#allocation40_spill] sm:$0xff] }
 0x134   :  { %v2366_v47 = vsel %vm2364_vm11, %v2365_v59, %v2356_v17  ;;  %v1652_v20 = vshrl.u32 %v1648_v44, 16  ;;  %v1669_v26 = vmul.u32 %v1667_v49, %v1643_v33  ;;  %v1672_v40 = vmul.u32 %v1668_v57, %v1644_v31 }
 0x135   :  { %v2367_v62 = vsel %vm2360_vm13, %v2363_v30, %v2366_v47  ;;  %v1552_v55 = vor.u32 %v1551_v0, %v1550_v23  ;;  %v1555_v34 = vshll.u32 %v1554_v1, 23  ;;  %v1675_v37 = vshll.u32 %v1671_v9, 16 }
 0x136   :  { %v2368_v8 = vsel %vm2357_vm4, nan, %v2367_v62  ;;  %vm1677_vm6 = vc.u32 %v1669_v26, %v1673_v11  ;;  %v1679_v25 = vadd.s32 %v1673_v11, %v1669_v26  ;;  %vm6413_vm7 = vcmp.le.f32.partialorder %v1439_v5, 0.7853982 }
 0x137   :  { %2761 = vmatpush.msrb.mxu1 %v2368_v8  ;;  %v1556_v33 = vor.u32 4788187, %v1555_v34  ;;  %v1663_v44 = vadd.s32 %v1662_v63, %v1652_v20  ;;  %v1678_v56 = vsel %vm1677_vm6, 1, %v11120_v46  ;;  %v1633_v31 = vsel %vm1627_vm10, %v1630_v24, %v1632_v48 }
 0x138   :  { %v1654_v12 = vshrl.u32 %v6386_v42, 16  ;;  %v1680_v57 = vadd.s32 %v1678_v56, %v1672_v40  ;;  %vm1681_vm2 = vc.u32 %v1679_v25, %v1675_v37  ;;  %v1559_v17 = vcvt.s32.f32 %v1552_v55 }
 0x139   :  { %v1557_v49 = vand.u32 2147483647, %v1556_v33  ;;  %v1682_v59 = vsel %vm1681_vm2, 1, %v11120_v46  ;;  %v819_v5 = vand.u32 2147483647, %v5682_v36  ;;  %v1564_v14 = vsel %vm1441_vm12, %v1563_v35, %v6327_v2  ;;  %v11142_v33 = vld [vmem:[#allocation32_spill] sm:$0xff] }
 0x13a   :  { %v1674_v29 = vshrl.u32 %v1670_v61, 16  ;;  %v1676_v41 = vshrl.u32 %v1671_v9, 16  ;;  %v1684_v58 = vadd.s32 %v1682_v59, %v1680_v57  ;;  %v6426_v15 = vadd.s32 %v1663_v44, %v1654_v12 }
 0x13b   :  { %v1560_v50 = vmul.f32 %v1559_v17, %v1557_v49  ;;  %v826_v42 = vand.u32 8388607, %v819_v5  ;;  %v836_v24 = vshll.u32 %v11119_v27, %v5744_v53  ;;  %v837_v23 = vshrl.u32 %v11121_v7, %v5782_v19 }
 0x13c   :  { %v1685_v48 = vadd.s32 %v1684_v58, %v1674_v29  ;;  %v839_v38 = vshll.u32 %v11121_v7, %v5744_v53  ;;  %v840_v2 = vshrl.u32 %v11122_v21, %v5782_v19  ;;  %v6438_v35 = vadd.s32 %v1679_v25, %v1675_v37 }
 0x13d   :  { %v1561_v61 = vxor.u32 2147483648, %v1560_v50  ;;  %v842_v9 = vshll.u32 %v11122_v21, %v5744_v53  ;;  %v843_v0 = vshrl.u32 %v11107_v10, %v5782_v19  ;;  %v1566_v1 = vsel %vm6413_vm7, 0, %v1564_v14 }
 0x13e   :  { %v1686_v63 = vadd.s32 %v1685_v48, %v1676_v41  ;;  %v6446_v11 = vor.u32 %v840_v2, %v839_v38  ;;  %vm851_vm10 = vcmp.lt.s32.totalorder %v5790_v28, 1  ;;  %vm1689_vm3 = vc.u32 %v6426_v15, %v6438_v35 }
 0x13f   :  { %v1562_v30 = vsel %vm1441_vm12, %v1561_v61, %v1560_v50  ;;  %v844_v47 = vor.u32 %v843_v0, %v842_v9  ;;  %vm853_vm11 = vcmp.lt.s32.totalorder %v5790_v28, 3  ;;  %v827_v26 = vor.u32 8388608, %v826_v42 }
 0x140   :  { %v1565_v53 = vsel %vm6413_vm7, %v5698_v60, %v1562_v30  ;;  %v1690_v20 = vadd.s32 1, %v1686_v63  ;;  %v6457_v62 = vor.u32 %v837_v23, %v836_v24  ;;  %v1687_v34 = vmul.u32 %v6344_v22, %v1633_v31 }
 0x141   :  { %v1567_v55 = vmul.f32 %v1565_v53, %v1565_v53  ;;  %vm852_vm13 = vcmp.lt.s32.totalorder %v5790_v28, 2  ;;  %v863_v40 = vsel %vm851_vm10, %v6446_v11, %v844_v47  ;;  %v6465_v8 = vand.u32 31, %v6353_v32  ;;  %v11143_v32 = vld [vmem:[#allocation38_spill] sm:$0xff] }
 0x142   :  { %v1583_v37 = vadd.s32 3, %v1566_v1  ;;  %v1691_v25 = vsel %vm1689_vm3, %v1690_v20, %v1686_v63  ;;  %v865_v44 = vsel %vm853_vm11, %v11142_v33, %v11141_v3  ;;  %v6472_v56 = vshrl.u32 %v6358_v43, 5 }
 0x143   :  { %v1568_v22 = vmul.f32 -0.001358992, %v1567_v55  ;;  %v1575_v31 = vmul.f32 -0.00019511016, %v1567_v55  ;;  %v1692_v12 = vadd.s32 %v1691_v25, %v1687_v34  ;;  %v859_v57 = vsel %vm851_vm10, %v6457_v62, %v6446_v11 }
 0x144   :  { %v861_v49 = vsel %vm853_vm11, %v844_v47, %v11143_v32  ;;  %v866_v17 = vsel %vm852_vm13, %v863_v40, %v865_v44  ;;  %v6483_v59 = vshll.u32 %v827_v26, 8  ;;  %v1584_v50 = vand.u32 3, %v1583_v37 }
 0x145   :  { %v1569_v14 = vadd.f32 0.041655596, %v1568_v22  ;;  %v1576_v29 = vadd.f32 0.008332121, %v1575_v31  ;;  %v1693_v41 = vadd.s32 536870912, %v1692_v12  ;;  %v870_v58 = vand.u32 65535, %v866_v17 }
 0x146   :  { %v868_v42 = vand.u32 65535, %v6483_v59  ;;  %v869_v24 = vshrl.u32 %v6483_v59, 16  ;;  %v871_v48 = vshrl.u32 %v866_v17, 16  ;;  %v862_v61 = vsel %vm852_vm13, %v859_v57, %v861_v49 }
 0x147   :  { %v1570_v23 = vmul.f32 %v1569_v14, %v1567_v55  ;;  %v1577_v38 = vmul.f32 %v1576_v29, %v1567_v55  ;;  %v6487_v2 = vshrl.u32 %v1693_v41, 30  ;;  %v6492_v9 = vand.u32 31, %v6358_v43 }
 0x148   :  { %v872_v0 = vmul.u32 %v870_v58, %v868_v42  ;;  %v6494_v1 = vmul.u32 %v871_v48, %v868_v42  ;;  %v6496_v63 = vmul.u32 %v870_v58, %v869_v24  ;;  %v6499_v30 = vsub.s32 32, %v6465_v8 }
 0x149   :  { %v1571_v20 = vadd.f32 -0.4999988, %v1570_v23  ;;  %v1578_v26 = vadd.f32 -0.16666654, %v1577_v38  ;;  %v1695_v34 = vshll.u32 %v6487_v2, 30  ;;  %vm1586_vm4 = vcmp.eq.s32.totalorder %v1584_v50, 0 }
 0x14a   :  { %v876_v40 = vshll.u32 %v6494_v1, 16  ;;  %v878_v37 = vshll.u32 %v6496_v63, 16  ;;  %v893_v25 = vshrl.u32 %v862_v61, 16  ;;  %vm1585_vm0 = vcmp.lt.s32.totalorder %v1584_v50, 2 }
 0x14b   :  { %v1572_v43 = vmul.f32 %v1571_v20, %v1567_v55  ;;  %v1579_v3 = vmul.f32 %v1578_v26, %v1567_v55  ;;  %v6504_v33 = vsub.s32 %v1692_v12, %v1695_v34  ;;  %v875_v44 = vmul.u32 %v871_v48, %v869_v24 }
 0x14c   :  { %vm1582_vm1 = vweird.f32 %v5698_v60  ;;  %v835_v22 = vshrl.u32 %v11119_v27, %v5782_v19  ;;  %vm880_vm12 = vc.u32 %v872_v0, %v876_v40  ;;  %v882_v31 = vadd.s32 %v876_v40, %v872_v0 }
 0x14d   :  { %v892_v57 = vand.u32 65535, %v862_v61  ;;  %v1573_v32 = vadd.f32 1.0, %v1572_v43  ;;  %v1580_v49 = vadd.f32 1.0, %v1579_v3  ;;  %vm1697_vm5 = vcmp.lt.s32.totalorder %v6504_v33, 0 }
 0x14e   :  { %v1698_v17 = vsub.s32 0, %v6504_v33  ;;  %v856_v55 = vsel %vm854_vm14, %v844_v47, 2102212464  ;;  %v881_v12 = vsel %vm880_vm12, 1, %v11120_v46  ;;  %vm884_vm6 = vc.u32 %v882_v31, %v878_v37 }
 0x14f   :  { %v895_v14 = vmul.u32 %v893_v25, %v868_v42  ;;  %v1581_v29 = vmul.f32 %v1580_v49, %v1565_v53  ;;  %v1590_v41 = vxor.u32 2147483648, %v1573_v32  ;;  %v883_v58 = vadd.s32 %v881_v12, %v875_v44  ;;  %v11144_v49 = vld [vmem:[#allocation6_spill] sm:$0xff]  ;;  %v11145_v12 = vld [vmem:[#allocation25_spill] sm:$0xff] }
 0x150   :  { %v1699_v19 = vsel %vm1697_vm5, %v1698_v17, %v6504_v33  ;;  %vm1589_vm7 = vcmp.eq.s32.totalorder %v1584_v50, 2  ;;  %vm1596_vm2 = vcmp.lt.s32.totalorder %v5707_v6, 0  ;;  %v855_v23 = vsel %vm851_vm10, %v835_v22, %v6457_v62 }
 0x151   :  { %v1700_v48 = vclz %v1699_v19  ;;  %v885_v38 = vsel %vm884_vm6, 1, %v11120_v46  ;;  %v1587_v47 = vxor.u32 2147483648, %v1581_v29  ;;  %v857_v61 = vsel %vm853_vm11, %v6446_v11, %v856_v55 }
 0x152   :  { %v894_v53 = vmul.u32 %v892_v57, %v868_v42  ;;  %v896_v0 = vmul.u32 %v892_v57, %v869_v24  ;;  %v1591_v20 = vsel %vm1589_vm7, %v1590_v41, %v1581_v29  ;;  %v1688_v26 = vadd.s32 %v6438_v35, %v6426_v15 }
 0x153   :  { %v5471_v34 = vadd.s32 4294967294, %v1700_v48  ;;  %v877_v40 = vshrl.u32 %v6494_v1, 16  ;;  %v1588_v37 = vsel %vm1586_vm4, %v1573_v32, %v1587_v47  ;;  %v887_v43 = vadd.s32 %v885_v38, %v883_v58  ;;  %v11148_v38 = vld [vmem:[#allocation30_spill] sm:$0xff] }
 0x154   :  { %v897_v62 = vmul.u32 %v893_v25, %v869_v24  ;;  %v898_v3 = vshll.u32 %v895_v14, 16  ;;  %v1592_v44 = vsel %vm1585_vm0, %v1588_v37, %v1591_v20  ;;  %v1718_v22 = vsub.s32 4, %v6487_v2 }
 0x155   :  { %vm5472_vm14 = vcmp.lt.s32.totalorder %v5471_v34, 0  ;;  %v6531_v11 = vsel %vm852_vm13, %v855_v23, %v857_v61  ;;  %v1593_v15 = vsel %vm1582_vm1, nan, %v1592_v44  ;;  %v900_v42 = vshll.u32 %v896_v0, 16  ;;  %v11149_v44 = vld [vmem:[#allocation31_spill] sm:$0xff] }
 0x156   :  { %v1703_v35 = vsel %vm5472_vm14, 0, %v5471_v34  ;;  %vm902_vm10 = vc.u32 %v894_v53, %v898_v3  ;;  %2733 = vmatpush.msrb.mxu0 %v1593_v15  ;;  %v879_v24 = vshrl.u32 %v6496_v63, 16  ;;  %v888_v25 = vadd.s32 %v887_v43, %v877_v40 }
 0x157   :  { %v1704_v1 = vsub.s32 32, %v1703_v35  ;;  %v1708_v31 = vsub.s32 4294967266, %v1703_v35  ;;  %v903_v50 = vsel %vm902_vm10, 1, %v11120_v46  ;;  %v904_v57 = vadd.s32 %v898_v3, %v894_v53 }
 0x158   :  { %v905_v32 = vadd.s32 %v903_v50, %v897_v62  ;;  %v10874_v28 = vand.u32 2147483647, %v11144_v49  ;;  %v1705_v17 = vshll.u32 %v6504_v33, %v1703_v35  ;;  %v991_v29 = vshll.u32 %v11119_v27, %v11145_v12 }
 0x159   :  { %v1706_v55 = vshrl.u32 %v1688_v26, %v1704_v1  ;;  %v1709_v60 = vadd.s32 127, %v1708_v31  ;;  %vm6543_vm3 = vcmp.le.f32.partialorder %v1594_v4, 0.7853982  ;;  %v1719_v63 = vsel %vm1596_vm2, %v1718_v22, %v6487_v2  ;;  %v11150_v1 = vld [vmem:[#allocation43_spill] sm:$0xff] }
 0x15a   :  { %v899_v19 = vshrl.u32 %v895_v14, 16  ;;  %vm906_vm11 = vc.u32 %v904_v57, %v900_v42  ;;  %v981_v33 = vand.u32 8388607, %v10874_v28  ;;  %v992_v47 = vshrl.u32 %v11121_v7, %v11148_v38  ;;  %v11151_v31 = vld [vmem:[#allocation35_spill] sm:$0xff] }
 0x15b   :  { %v1707_v58 = vor.u32 %v1706_v55, %v1705_v17  ;;  %v1710_v48 = vshll.u32 %v1709_v60, 23  ;;  %v907_v23 = vsel %vm906_vm11, 1, %v11120_v46  ;;  %v6555_v4 = vadd.s32 %v888_v25, %v879_v24  ;;  %v11152_v17 = vld [vmem:[#allocation42_spill] sm:$0xff] }
 0x15c   :  { %v901_v61 = vshrl.u32 %v896_v0, 16  ;;  %v6557_v53 = vadd.s32 %v904_v57, %v900_v42  ;;  %v909_v20 = vadd.s32 %v907_v23, %v905_v32  ;;  %v982_v2 = vor.u32 8388608, %v981_v33 }
 0x15d   :  { %v1711_v26 = vor.u32 4788187, %v1710_v48  ;;  %v993_v14 = vor.u32 %v992_v47, %v991_v29  ;;  %v994_v34 = vshll.u32 %v11121_v7, %v11145_v12  ;;  %v995_v37 = vshrl.u32 %v11122_v21, %v11148_v38 }
 0x15e   :  { %v910_v40 = vadd.s32 %v909_v20, %v899_v19  ;;  %v997_v43 = vshll.u32 %v11122_v21, %v11145_v12  ;;  %v998_v62 = vshrl.u32 %v11107_v10, %v11148_v38  ;;  %v1714_v3 = vcvt.s32.f32 %v1707_v58 }
 0x15f   :  { %v1712_v0 = vand.u32 2147483647, %v1711_v26  ;;  %vm1006_vm13 = vcmp.lt.s32.totalorder %v11149_v44, 1  ;;  %vm1008_vm4 = vcmp.lt.s32.totalorder %v11149_v44, 3  ;;  %v996_v15 = vor.u32 %v995_v37, %v994_v34 }
 0x160   :  { %v911_v22 = vadd.s32 %v910_v40, %v901_v61  ;;  %v999_v35 = vor.u32 %v998_v62, %v997_v43  ;;  %vm1007_vm0 = vcmp.lt.s32.totalorder %v11149_v44, 2  ;;  %vm914_vm1 = vc.u32 %v6555_v4, %v6557_v53 }
 0x161   :  { %v1715_v42 = vmul.f32 %v1714_v3, %v1712_v0  ;;  %v1020_v24 = vsel %vm1008_vm4, %v11151_v31, %v11150_v1  ;;  %v6576_v50 = vshll.u32 %v982_v2, 8  ;;  %v912_v25 = vmul.u32 %v6483_v59, %v6531_v11 }
 0x162   :  { %v915_v57 = vadd.s32 1, %v911_v22  ;;  %v1014_v32 = vsel %vm1006_vm13, %v993_v14, %v996_v15  ;;  %v1016_v55 = vsel %vm1008_vm4, %v999_v35, %v11152_v17  ;;  %v1721_v12 = vsel %vm6543_vm3, 0, %v1719_v63 }
 0x163   :  { %v1716_v60 = vxor.u32 2147483648, %v1715_v42  ;;  %v1017_v29 = vsel %vm1007_vm0, %v1014_v32, %v1016_v55  ;;  %v1018_v19 = vsel %vm1006_vm13, %v996_v15, %v999_v35  ;;  %v6593_v59 = vshll.u32 %v11107_v10, %v6465_v8 }
 0x164   :  { %v916_v11 = vsel %vm914_vm1, %v915_v57, %v911_v22  ;;  %v1021_v33 = vsel %vm1007_vm0, %v1018_v19, %v1020_v24  ;;  %v1023_v58 = vand.u32 65535, %v6576_v50  ;;  %v1024_v23 = vshrl.u32 %v6576_v50, 16 }
 0x165   :  { %v1717_v48 = vsel %vm1596_vm2, %v1716_v60, %v1715_v42  ;;  %v917_v63 = vadd.s32 %v916_v11, %v912_v25  ;;  %v1025_v47 = vand.u32 65535, %v1021_v33  ;;  %v1738_v20 = vadd.s32 3, %v1721_v12 }
 0x166   :  { %v6604_v61 = vsel %vm6543_vm3, %v5707_v6, %v1717_v48  ;;  %v1026_v26 = vshrl.u32 %v1021_v33, 16  ;;  %v1048_v2 = vshrl.u32 %v1017_v29, 16  ;;  %v990_v37 = vshrl.u32 %v11119_v27, %v11148_v38 }
 0x167   :  { %v1722_v34 = vmul.f32 %v6604_v61, %v6604_v61  ;;  %v918_v40 = vadd.s32 536870912, %v917_v63  ;;  %v6610_v43 = vmul.u32 %v1025_v47, %v1024_v23  ;;  %v6614_v62 = vshll.u32 %v11108_v18, %v6465_v8 }
 0x168   :  { %v1011_v41 = vsel %vm1009_vm15, %v999_v35, 2102212464  ;;  %v1027_v0 = vmul.u32 %v1025_v47, %v1023_v58  ;;  %v1028_v3 = vmul.u32 %v1026_v26, %v1023_v58  ;;  %v1047_v31 = vand.u32 65535, %v1017_v29 }
 0x169   :  { %v1723_v22 = vmul.f32 -0.001358992, %v1722_v34  ;;  %v1730_v42 = vmul.f32 -0.00019511016, %v1722_v34  ;;  %v919_v1 = vshrl.u32 %v918_v40, 30  ;;  %v6618_v24 = vand.u32 3, %v1738_v20 }
 0x16a   :  { %v1031_v25 = vshll.u32 %v1028_v3, 16  ;;  %v1033_v38 = vshll.u32 %v6610_v43, 16  ;;  %v6621_v57 = vmul.u32 %v1048_v2, %v1023_v58  ;;  %vm821_vm12 = vcmp.lt.s32.totalorder %v5682_v36, 0 }
 0x16b   :  { %v1724_v32 = vadd.f32 0.041655596, %v1723_v22  ;;  %v1731_v17 = vadd.f32 0.008332121, %v1730_v42  ;;  %v920_v55 = vshll.u32 %v919_v1, 30  ;;  %v1010_v35 = vsel %vm1006_vm13, %v990_v37, %v993_v14 }
 0x16c   :  { %v1012_v60 = vsel %vm1008_vm4, %v996_v15, %v1011_v41  ;;  %v1030_v12 = vmul.u32 %v1026_v26, %v1024_v23  ;;  %vm1035_vm15 = vc.u32 %v1027_v0, %v1031_v25  ;;  %v1037_v29 = vadd.s32 %v1031_v25, %v1027_v0 }
 0x16d   :  { %v1725_v19 = vmul.f32 %v1724_v32, %v1722_v34  ;;  %v1732_v11 = vmul.f32 %v1731_v17, %v1722_v34  ;;  %v6628_v33 = vsub.s32 %v917_v63, %v920_v55  ;;  %v1049_v48 = vmul.u32 %v1047_v31, %v1023_v58 }
 0x16e   :  { %vm6632_vm5 = vcmp.le.f32.partialorder %v819_v5, 0.7853982  ;;  %v1036_v20 = vsel %vm1035_vm15, 1, %v11120_v46  ;;  %vm1039_vm6 = vc.u32 %v1037_v29, %v1033_v38  ;;  %v6637_v14 = vmul.u32 %v1047_v31, %v1024_v23 }
 0x16f   :  { %v1053_v15 = vshll.u32 %v6621_v57, 16  ;;  %v1726_v26 = vadd.f32 -0.4999988, %v1725_v19  ;;  %v1733_v40 = vadd.f32 -0.16666654, %v1732_v11  ;;  %vm922_vm7 = vcmp.lt.s32.totalorder %v6628_v33, 0 }
 0x170   :  { %v923_v63 = vsub.s32 0, %v6628_v33  ;;  %vm1741_vm2 = vcmp.eq.s32.totalorder %v6618_v24, 0  ;;  %v943_v58 = vsub.s32 4, %v919_v1  ;;  %v1032_v5 = vshrl.u32 %v1028_v3, 16 }
 0x171   :  { %v1038_v37 = vadd.s32 %v1036_v20, %v1030_v12  ;;  %v1040_v41 = vsel %vm1039_vm6, 1, %v11120_v46  ;;  %v1727_v0 = vmul.f32 %v1726_v26, %v1722_v34  ;;  %v1734_v22 = vmul.f32 %v1733_v40, %v1722_v34 }
 0x172   :  { %vm1740_vm14 = vcmp.lt.s32.totalorder %v6618_v24, 2  ;;  %v924_v42 = vsel %vm922_vm7, %v923_v63, %v6628_v33  ;;  %v1052_v31 = vmul.u32 %v1048_v2, %v1024_v23  ;;  %vm1737_vm10 = vweird.f32 %v5707_v6 }
 0x173   :  { %v925_v25 = vclz %v924_v42  ;;  %v1042_v38 = vadd.s32 %v1040_v41, %v1038_v37  ;;  %v1055_v32 = vshll.u32 %v6637_v14, 16  ;;  %vm1057_vm3 = vc.u32 %v1049_v48, %v1053_v15  ;;  %v11155_v41 = vld [vmem:[#allocation2_spill] sm:$0xff] }
 0x174   :  { %v1728_v17 = vadd.f32 1.0, %v1727_v0  ;;  %v1735_v55 = vadd.f32 1.0, %v1734_v22  ;;  %v1058_v3 = vsel %vm1057_vm3, 1, %v11120_v46  ;;  %v1059_v12 = vadd.s32 %v1053_v15, %v1049_v48 }
 0x175   :  { %vm1744_vm11 = vcmp.eq.s32.totalorder %v6618_v24, 2  ;;  %v913_v34 = vadd.s32 %v6557_v53, %v6555_v4  ;;  %v5456_v29 = vadd.s32 4294967294, %v925_v25  ;;  %v944_v23 = vsel %vm821_vm12, %v943_v58, %v919_v1 }
 0x176   :  { %v1736_v2 = vmul.f32 %v1735_v55, %v6604_v61  ;;  %v1745_v19 = vxor.u32 2147483648, %v1728_v17  ;;  %v1043_v11 = vadd.s32 %v1042_v38, %v1032_v5  ;;  %v1060_v20 = vadd.s32 %v1058_v3, %v1052_v31  ;;  %v11156_v3 = vld [vmem:[#allocation9_spill] sm:$0xff] }
 0x177   :  { %vm5457_vm13 = vcmp.lt.s32.totalorder %v5456_v29, 0  ;;  %v1013_v26 = vsel %vm1007_vm0, %v1010_v35, %v1012_v60  ;;  %v1034_v48 = vshrl.u32 %v6610_v43, 16  ;;  %vm1061_vm4 = vc.u32 %v1059_v12, %v1055_v32 }
 0x178   :  { %v1742_v15 = vxor.u32 2147483648, %v1736_v2  ;;  %v928_v40 = vsel %vm5457_vm13, 0, %v5456_v29  ;;  %v946_v4 = vsel %vm6632_vm5, 0, %v944_v23  ;;  %v1054_v53 = vshrl.u32 %v6621_v57, 16  ;;  %v11157_v29 = vld [vmem:[#allocation11_spill] sm:$0xff] }
 0x179   :  { %v1746_v61 = vsel %vm1744_vm11, %v1745_v19, %v1736_v2  ;;  %v929_v1 = vsub.s32 32, %v928_v40  ;;  %v933_v63 = vsub.s32 4294967266, %v928_v40  ;;  %v1062_v58 = vsel %vm1061_vm4, 1, %v11120_v46 }
 0x17a   :  { %v1743_v44 = vsel %vm1741_vm2, %v1728_v17, %v1742_v15  ;;  %v930_v43 = vshll.u32 %v6628_v33, %v928_v40  ;;  %v6667_v35 = vadd.s32 %v1043_v11, %v1034_v48  ;;  %v1064_v60 = vadd.s32 %v1062_v58, %v1060_v20  ;;  %v11158_v15 = vld [vmem:[#allocation12_spill] sm:$0xff]  ;;  %v11159_v58 = vld [vmem:[#allocation21_spill] sm:$0xff] }
 0x17b   :  { %v1747_v5 = vsel %vm1740_vm14, %v1743_v44, %v1746_v61  ;;  %v931_v37 = vshrl.u32 %v913_v34, %v929_v1  ;;  %v934_v57 = vadd.s32 127, %v933_v63  ;;  %v10873_v0 = vand.u32 2147483647, %v11155_v41  ;;  %v11160_v44 = vld [vmem:[#allocation17_spill] sm:$0xff] }
 0x17c   :  { %v1748_v22 = vsel %vm1737_vm10, nan, %v1747_v5  ;;  %v1056_v42 = vshrl.u32 %v6637_v14, 16  ;;  %v6675_v31 = vadd.s32 %v1059_v12, %v1055_v32  ;;  %v1065_v25 = vadd.s32 %v1064_v60, %v1054_v53 }
 0x17d   :  { %2762 = vmatpush.msrb.mxu1 %v1748_v22  ;;  %v932_v33 = vor.u32 %v931_v37, %v930_v43  ;;  %v935_v38 = vshll.u32 %v934_v57, 23  ;;  %v1067_v17 = vmul.u32 %v6576_v50, %v1013_v26  ;;  %v206_v24 = vand.u32 8388607, %v10873_v0 }
 0x17e   :  { %v1066_v55 = vadd.s32 %v1065_v25, %v1056_v42  ;;  %v216_v34 = vshll.u32 %v11119_v27, %v11156_v3  ;;  %v217_v6 = vshrl.u32 %v11121_v7, %v11157_v29  ;;  %v219_v14 = vshll.u32 %v11121_v7, %v11156_v3 }
 0x17f   :  { %v936_v32 = vor.u32 4788187, %v935_v38  ;;  %v939_v12 = vcvt.s32.f32 %v932_v33  ;;  %vm1069_vm0 = vc.u32 %v6667_v35, %v6675_v31  ;;  %v220_v50 = vshrl.u32 %v11122_v21, %v11157_v29  ;;  %v11161_v38 = vld [vmem:[#allocation20_spill] sm:$0xff] }
 0x180   :  { %v1070_v23 = vadd.s32 1, %v1066_v55  ;;  %v207_v2 = vor.u32 8388608, %v206_v24  ;;  %v222_v19 = vshll.u32 %v11122_v21, %v11156_v3  ;;  %v223_v11 = vshrl.u32 %v11107_v10, %v11157_v29 }
 0x181   :  { %v937_v20 = vand.u32 2147483647, %v936_v32  ;;  %v218_v26 = vor.u32 %v217_v6, %v216_v34  ;;  %v221_v48 = vor.u32 %v220_v50, %v219_v14  ;;  %vm231_vm1 = vcmp.lt.s32.totalorder %v11158_v15, 1 }
 0x182   :  { %v6696_v40 = vsub.s32 32, %v6492_v9  ;;  %v1071_v53 = vsel %vm1069_vm0, %v1070_v23, %v1066_v55  ;;  %v224_v61 = vor.u32 %v223_v11, %v222_v19  ;;  %vm233_vm15 = vcmp.lt.s32.totalorder %v11158_v15, 3 }
 0x183   :  { %v940_v1 = vmul.f32 %v939_v12, %v937_v20  ;;  %v1072_v63 = vadd.s32 %v1071_v53, %v1067_v17  ;;  %vm232_vm6 = vcmp.lt.s32.totalorder %v11158_v15, 2  ;;  %v245_v43 = vsel %vm233_vm15, %v11160_v44, %v11159_v58 }
 0x184   :  { %v6706_v60 = vshll.u32 %v11107_v10, %v6492_v9  ;;  %v963_v5 = vadd.s32 3, %v946_v4  ;;  %v243_v37 = vsel %vm231_vm1, %v221_v48, %v224_v61  ;;  %v6710_v57 = vshll.u32 %v207_v2, 8 }
 0x185   :  { %v941_v22 = vxor.u32 2147483648, %v940_v1  ;;  %v1073_v42 = vadd.s32 536870912, %v1072_v63  ;;  %v215_v25 = vshrl.u32 %v11119_v27, %v11157_v29  ;;  %v239_v33 = vsel %vm231_vm1, %v218_v26, %v221_v48 }
 0x186   :  { %v241_v17 = vsel %vm233_vm15, %v224_v61, %v11161_v38  ;;  %v246_v4 = vsel %vm232_vm6, %v243_v37, %v245_v43  ;;  %v248_v24 = vand.u32 65535, %v6710_v57  ;;  %v6723_v55 = vshrl.u32 %v6710_v57, 16 }
 0x187   :  { %v942_v3 = vsel %vm821_vm12, %v941_v22, %v940_v1  ;;  %v6727_v34 = vshrl.u32 %v1073_v42, 30  ;;  %v250_v29 = vand.u32 65535, %v246_v4  ;;  %v251_v6 = vshrl.u32 %v246_v4, 16 }
 0x188   :  { %v6731_v14 = vshrl.u32 %v11108_v18, %v6499_v30  ;;  %v11162_v32 = vmov 1326507024   ;;  %v6739_v50 = vshll.u32 %v11108_v18, %v6492_v9  ;;  %v945_v23 = vsel %vm6632_vm5, %v5682_v36, %v942_v3 }
 0x189   :  { %v6735_v12 = vshrl.u32 %v11162_v32, %v6499_v30  ;;  %v947_v2 = vmul.f32 %v945_v23, %v945_v23  ;;  %v6744_v19 = vand.u32 3, %v963_v5  ;;  %v1075_v11 = vshll.u32 %v6727_v34, 30 }
 0x18a   :  { %v242_v20 = vsel %vm232_vm6, %v239_v33, %v241_v17  ;;  %v235_v53 = vsel %vm231_vm1, %v215_v25, %v218_v26  ;;  %v252_v1 = vmul.u32 %v250_v29, %v248_v24  ;;  %v6751_v58 = vmul.u32 %v251_v6, %v248_v24 }
 0x18b   :  { %v6754_v44 = vmul.u32 %v250_v29, %v6723_v55  ;;  %v948_v43 = vmul.f32 -0.001358992, %v947_v2  ;;  %v955_v47 = vmul.f32 -0.00019511016, %v947_v2  ;;  %v6756_v37 = vsub.s32 %v1072_v63, %v1075_v11 }
 0x18c   :  { %v236_v5 = vsel %vm234_vm8, %v224_v61, 2102212464  ;;  %v255_v22 = vmul.u32 %v251_v6, %v6723_v55  ;;  %v256_v42 = vshll.u32 %v6751_v58, 16  ;;  %v273_v26 = vshrl.u32 %v242_v20, 16 }
 0x18d   :  { %v258_v33 = vshll.u32 %v6754_v44, 16  ;;  %v949_v25 = vadd.f32 0.041655596, %v948_v43  ;;  %v956_v38 = vadd.f32 0.008332121, %v955_v47  ;;  %vm1077_vm12 = vcmp.lt.s32.totalorder %v6756_v37, 0 }
 0x18e   :  { %v1078_v17 = vsub.s32 0, %v6756_v37  ;;  %v237_v63 = vsel %vm233_vm15, %v221_v48, %v236_v5  ;;  %vm260_vm5 = vc.u32 %v252_v1, %v256_v42  ;;  %v262_v4 = vadd.s32 %v256_v42, %v252_v1 }
 0x18f   :  { %v272_v3 = vand.u32 65535, %v242_v20  ;;  %v950_v61 = vmul.f32 %v949_v25, %v947_v2  ;;  %v957_v29 = vmul.f32 %v956_v38, %v947_v2  ;;  %v261_v11 = vsel %vm260_vm5, 1, %v11120_v46 }
 0x190   :  { %v1079_v6 = vsel %vm1077_vm12, %v1078_v17, %v6756_v37  ;;  %v6771_v43 = vshrl.u32 %v11108_v18, %v6696_v40  ;;  %v6775_v47 = vshrl.u32 %v11162_v32, %v6696_v40  ;;  %vm264_vm8 = vc.u32 %v262_v4, %v258_v33 }
 0x191   :  { %v1080_v0 = vclz %v1079_v6  ;;  %v951_v48 = vadd.f32 -0.4999988, %v950_v61  ;;  %v958_v5 = vadd.f32 -0.16666654, %v957_v29  ;;  %v263_v1 = vadd.s32 %v261_v11, %v255_v22 }
 0x192   :  { %v275_v20 = vmul.u32 %v273_v26, %v248_v24  ;;  %vm966_vm7 = vcmp.eq.s32.totalorder %v6744_v19, 0  ;;  %vm969_vm2 = vcmp.eq.s32.totalorder %v6744_v19, 2  ;;  %v1068_v42 = vadd.s32 %v6675_v31, %v6667_v35 }
 0x193   :  { %v5459_v25 = vadd.s32 4294967294, %v1080_v0  ;;  %v6783_v38 = vsel %vm232_vm6, %v235_v53, %v237_v63  ;;  %v265_v17 = vsel %vm264_vm8, 1, %v11120_v46  ;;  %v952_v6 = vmul.f32 %v951_v48, %v947_v2 }
 0x194   :  { %v959_v33 = vmul.f32 %v958_v5, %v947_v2  ;;  %vm965_vm14 = vcmp.lt.s32.totalorder %v6744_v19, 2  ;;  %v1098_v22 = vsub.s32 4, %v6727_v34  ;;  %v276_v4 = vmul.u32 %v272_v3, %v6723_v55 }
 0x195   :  { %vm962_vm10 = vweird.f32 %v5682_v36  ;;  %vm976_vm3 = vcmp.lt.s32.totalorder %v11144_v49, 0  ;;  %vm5460_vm11 = vcmp.lt.s32.totalorder %v5459_v25, 0  ;;  %v257_v35 = vshrl.u32 %v6751_v58, 16  ;;  %v11167_v36 = vld [vmem:[#allocation10_spill] sm:$0xff] }
 0x196   :  { %v274_v0 = vmul.u32 %v272_v3, %v248_v24  ;;  %v278_v31 = vshll.u32 %v275_v20, 16  ;;  %v953_v15 = vadd.f32 1.0, %v952_v6  ;;  %v960_v53 = vadd.f32 1.0, %v959_v33  ;;  %v11166_v33 = vld [vmem:[#allocation3_spill] sm:$0xff]  ;;  %v11172_v24 = vld [vmem:[#allocation22_spill] sm:$0xff] }
 0x197   :  { %v1083_v63 = vsel %vm5460_vm11, 0, %v5459_v25  ;;  %v267_v61 = vadd.s32 %v265_v17, %v263_v1  ;;  %v277_v11 = vmul.u32 %v273_v26, %v6723_v55  ;;  %v280_v48 = vshll.u32 %v276_v4, 16 }
 0x198   :  { %v1084_v2 = vsub.s32 32, %v1083_v63  ;;  %v1088_v29 = vsub.s32 4294967266, %v1083_v63  ;;  %v961_v5 = vmul.f32 %v960_v53, %v945_v23  ;;  %v970_v28 = vxor.u32 2147483648, %v953_v15 }
 0x199   :  { %v1085_v39 = vshll.u32 %v6756_v37, %v1083_v63  ;;  %v259_v52 = vshrl.u32 %v6754_v44, 16  ;;  %v11163_v54 = vand.u32 2147483647, %v11144_v49  ;;  %vm282_vm4 = vc.u32 %v274_v0, %v278_v31 }
 0x19a   :  { %v1086_v58 = vshrl.u32 %v1068_v42, %v1084_v2  ;;  %v1089_v3 = vadd.s32 127, %v1088_v29  ;;  %v284_v1 = vadd.s32 %v278_v31, %v274_v0  ;;  %v967_v25 = vxor.u32 2147483648, %v961_v5 }
 0x19b   :  { %vm6797_vm13 = vcmp.le.f32.partialorder %v11163_v54, 0.7853982  ;;  %v268_v17 = vadd.s32 %v267_v61, %v257_v35  ;;  %v279_v55 = vshrl.u32 %v275_v20, 16  ;;  %v283_v23 = vsel %vm282_vm4, 1, %v11120_v46 }
 0x19c   :  { %v1087_v26 = vor.u32 %v1086_v58, %v1085_v39  ;;  %v1090_v6 = vshll.u32 %v1089_v3, 23  ;;  %v285_v37 = vadd.s32 %v283_v23, %v277_v11  ;;  %vm286_vm0 = vc.u32 %v284_v1, %v280_v48 }
 0x19d   :  { %v968_v44 = vsel %vm966_vm7, %v953_v15, %v967_v25  ;;  %v971_v54 = vsel %vm969_vm2, %v970_v28, %v961_v5  ;;  %v287_v42 = vsel %vm286_vm0, 1, %v11120_v46  ;;  %v10877_v53 = vand.u32 2147483647, %v11166_v33  ;;  %v11168_v5 = vld [vmem:[#allocation13_spill] sm:$0xff] }
 0x19e   :  { %v972_v35 = vsel %vm965_vm14, %v968_v44, %v971_v54  ;;  %v1091_v20 = vor.u32 4788187, %v1090_v6  ;;  %v281_v0 = vshrl.u32 %v276_v4, 16  ;;  %v289_v31 = vadd.s32 %v287_v42, %v285_v37  ;;  %v11169_v6 = vld [vmem:[#allocation16_spill] sm:$0xff]  ;;  %v11170_v42 = vld [vmem:[#allocation23_spill] sm:$0xff] }
 0x19f   :  { %v973_v39 = vsel %vm962_vm10, nan, %v972_v35  ;;  %v1099_v15 = vsel %vm976_vm3, %v1098_v22, %v6727_v34  ;;  %v6815_v63 = vadd.s32 %v268_v17, %v259_v52  ;;  %v6817_v28 = vadd.s32 %v284_v1, %v280_v48  ;;  %v11171_v35 = vld [vmem:[#allocation18_spill] sm:$0xff] }
 0x1a0   :  { %2734 = vmatpush.msrb.mxu0 %v973_v39  ;;  %v1092_v61 = vand.u32 2147483647, %v1091_v20  ;;  %v1094_v2 = vcvt.s32.f32 %v1087_v26  ;;  %v290_v29 = vadd.s32 %v289_v31, %v279_v55  ;;  %v361_v19 = vand.u32 8388607, %v10877_v53 }
 0x1a1   :  { %v292_v4 = vmul.u32 %v6710_v57, %v6783_v38  ;;  %v371_v11 = vshll.u32 %v11119_v27, %v11167_v36  ;;  %v372_v34 = vshrl.u32 %v11121_v7, %v11168_v5  ;;  %v374_v52 = vshll.u32 %v11121_v7, %v11167_v36 }
 0x1a2   :  { %v1095_v22 = vmul.f32 %v1094_v2, %v1092_v61  ;;  %v291_v48 = vadd.s32 %v290_v29, %v281_v0  ;;  %v362_v58 = vor.u32 8388608, %v361_v19  ;;  %v375_v3 = vshrl.u32 %v11122_v21, %v11168_v5 }
 0x1a3   :  { %v1101_v1 = vsel %vm6797_vm13, 0, %v1099_v15  ;;  %vm294_vm1 = vc.u32 %v6815_v63, %v6817_v28  ;;  %v377_v57 = vshll.u32 %v11122_v21, %v11167_v36  ;;  %v378_v38 = vshrl.u32 %v11107_v10, %v11168_v5 }
 0x1a4   :  { %v1096_v25 = vxor.u32 2147483648, %v1095_v22  ;;  %v295_v17 = vadd.s32 1, %v291_v48  ;;  %v6839_v55 = vor.u32 %v372_v34, %v371_v11  ;;  %v6841_v23 = vor.u32 %v375_v3, %v374_v52 }
 0x1a5   :  { %vm2404_vm15 = vcmp.lt.s32.totalorder %v6376_v51, 4  ;;  %v379_v26 = vor.u32 %v378_v38, %v377_v57  ;;  %vm386_vm6 = vcmp.lt.s32.totalorder %v11169_v6, 1  ;;  %vm388_vm12 = vcmp.lt.s32.totalorder %v11169_v6, 3 }
 0x1a6   :  { %v6846_v37 = vshll.u32 %v362_v58, 8  ;;  %v1097_v44 = vsel %vm976_vm3, %v1096_v25, %v1095_v22  ;;  %v296_v54 = vsel %vm294_vm1, %v295_v17, %v291_v48  ;;  %vm387_vm5 = vcmp.lt.s32.totalorder %v11169_v6, 2 }
 0x1a7   :  { %v400_v20 = vsel %vm388_vm12, %v11171_v35, %v11170_v42  ;;  %v6857_v0 = vor.u32 %v6731_v14, %v6593_v59  ;;  %v6862_v31 = vsel %vm6797_vm13, %v11144_v49, %v1097_v44  ;;  %v1118_v39 = vadd.s32 3, %v1101_v1 }
 0x1a8   :  { %v297_v15 = vadd.s32 %v296_v54, %v292_v4  ;;  %v2400_v61 = vor.u32 %v6735_v12, %v6614_v62  ;;  %v1102_v2 = vmul.f32 %v6862_v31, %v6862_v31  ;;  %v394_v29 = vsel %vm386_vm6, %v6839_v55, %v6841_v23 }
 0x1a9   :  { %v398_v59 = vsel %vm386_vm6, %v6841_v23, %v379_v26  ;;  %v396_v19 = vsel %vm388_vm12, %v379_v26, %v11172_v24  ;;  %v403_v12 = vand.u32 65535, %v6846_v37  ;;  %v404_v11 = vshrl.u32 %v6846_v37, 16 }
 0x1aa   :  { %v298_v14 = vadd.s32 536870912, %v297_v15  ;;  %v401_v62 = vsel %vm387_vm5, %v398_v59, %v400_v20  ;;  %v1103_v4 = vmul.f32 -0.001358992, %v1102_v2  ;;  %v1110_v36 = vmul.f32 -0.00019511016, %v1102_v2 }
 0x1ab   :  { %v405_v34 = vand.u32 65535, %v401_v62  ;;  %v6884_v52 = vor.u32 %v6771_v43, %v6706_v60  ;;  %v6886_v22 = vand.u32 3, %v1118_v39  ;;  %v406_v58 = vshrl.u32 %v401_v62, 16 }
 0x1ac   :  { %v6888_v48 = vshrl.u32 %v298_v14, 30  ;;  %v1104_v3 = vadd.f32 0.041655596, %v1103_v4  ;;  %v1111_v1 = vadd.f32 0.008332121, %v1110_v36  ;;  %v397_v57 = vsel %vm387_vm5, %v394_v29, %v396_v19 }
 0x1ad   :  { %v6892_v38 = vmul.u32 %v405_v34, %v404_v11  ;;  %v2555_v25 = vor.u32 %v6775_v47, %v6739_v50  ;;  %v407_v44 = vmul.u32 %v405_v34, %v403_v12  ;;  %v408_v60 = vmul.u32 %v406_v58, %v403_v12 }
 0x1ae   :  { %v300_v17 = vshll.u32 %v6888_v48, 30  ;;  %v6900_v43 = vsel %vm2404_vm15, %v6857_v0, 920167782  ;;  %v6904_v54 = vsel %vm2404_vm15, %v2400_v61, 1326507024  ;;  %v1105_v42 = vmul.f32 %v1104_v3, %v1102_v2 }
 0x1af   :  { %v1112_v35 = vmul.f32 %v1111_v1, %v1102_v2  ;;  %v410_v39 = vmul.u32 %v406_v58, %v404_v11  ;;  %v411_v29 = vshll.u32 %v408_v60, 16  ;;  %v428_v59 = vshrl.u32 %v397_v57, 16 }
 0x1b0   :  { %v6906_v20 = vsub.s32 %v297_v15, %v300_v17  ;;  %v1106_v14 = vadd.f32 -0.4999988, %v1105_v42  ;;  %vm1124_vm8 = vcmp.eq.s32.totalorder %v6886_v22, 2  ;;  %v370_v19 = vshrl.u32 %v11119_v27, %v11168_v5 }
 0x1b1   :  { %v1113_v24 = vadd.f32 -0.16666654, %v1112_v35  ;;  %v413_v62 = vshll.u32 %v6892_v38, 16  ;;  %vm1121_vm7 = vcmp.eq.s32.totalorder %v6886_v22, 0  ;;  %vm415_vm14 = vc.u32 %v407_v44, %v411_v29 }
 0x1b2   :  { %vm302_vm2 = vcmp.lt.s32.totalorder %v6906_v20, 0  ;;  %v303_v61 = vsub.s32 0, %v6906_v20  ;;  %v427_v15 = vand.u32 65535, %v397_v57  ;;  %v1107_v4 = vmul.f32 %v1106_v14, %v1102_v2 }
 0x1b3   :  { %v1114_v36 = vmul.f32 %v1113_v24, %v1102_v2  ;;  %vm1120_vm10 = vcmp.lt.s32.totalorder %v6886_v22, 2  ;;  %v416_v34 = vsel %vm415_vm14, 1, %v11120_v46  ;;  %v417_v58 = vadd.s32 %v411_v29, %v407_v44 }
 0x1b4   :  { %vm1117_vm3 = vweird.f32 %v11144_v49  ;;  %v304_v5 = vsel %vm302_vm2, %v303_v61, %v6906_v20  ;;  %v391_v3 = vsel %vm389_vm9, %v379_v26, 2102212464  ;;  %v418_v1 = vadd.s32 %v416_v34, %v410_v39 }
 0x1b5   :  { %v430_v17 = vmul.u32 %v428_v59, %v403_v12  ;;  %v1108_v42 = vadd.f32 1.0, %v1107_v4  ;;  %v1115_v35 = vadd.f32 1.0, %v1114_v36  ;;  %v305_v53 = vclz %v304_v5 }
 0x1b6   :  { %vm419_vm11 = vc.u32 %v417_v58, %v413_v62  ;;  %v293_v2 = vadd.s32 %v6817_v28, %v6815_v63  ;;  %v412_v57 = vshrl.u32 %v408_v60, 16  ;;  %v429_v44 = vmul.u32 %v427_v15, %v403_v12 }
 0x1b7   :  { %v420_v14 = vsel %vm419_vm11, 1, %v11120_v46  ;;  %v1116_v29 = vmul.f32 %v1115_v35, %v6862_v31  ;;  %v1125_v24 = vxor.u32 2147483648, %v1108_v42  ;;  %vm201_vm13 = vcmp.lt.s32.totalorder %v11155_v41, 0 }
 0x1b8   :  { %v5444_v61 = vadd.s32 4294967294, %v305_v53  ;;  %v422_v26 = vadd.s32 %v420_v14, %v418_v1  ;;  %v390_v39 = vsel %vm386_vm6, %v370_v19, %v6839_v55  ;;  %v392_v62 = vsel %vm388_vm12, %v6841_v23, %v391_v3 }
 0x1b9   :  { %v431_v63 = vmul.u32 %v427_v15, %v404_v11  ;;  %v433_v28 = vshll.u32 %v430_v17, 16  ;;  %v1122_v60 = vxor.u32 2147483648, %v1116_v29  ;;  %v323_v12 = vsub.s32 4, %v6888_v48 }
 0x1ba   :  { %vm5445_vm9 = vcmp.lt.s32.totalorder %v5444_v61, 0  ;;  %v432_v31 = vmul.u32 %v428_v59, %v404_v11  ;;  %v1126_v4 = vsel %vm1124_vm8, %v1125_v24, %v1116_v29  ;;  %v423_v58 = vadd.s32 %v422_v26, %v412_v57 }
 0x1bb   :  { %v308_v53 = vsel %vm5445_vm9, 0, %v5444_v61  ;;  %v435_v36 = vshll.u32 %v431_v63, 16  ;;  %vm437_vm4 = vc.u32 %v429_v44, %v433_v28  ;;  %v1123_v55 = vsel %vm1121_vm7, %v1108_v42, %v1122_v60 }
 0x1bc   :  { %v309_v19 = vsub.s32 32, %v308_v53  ;;  %v313_v34 = vsub.s32 4294967266, %v308_v53  ;;  %v1127_v23 = vsel %vm1120_vm10, %v1123_v55, %v1126_v4  ;;  %v310_v15 = vshll.u32 %v6906_v20, %v308_v53 }
 0x1bd   :  { %v438_v5 = vsel %vm437_vm4, 1, %v11120_v46  ;;  %v439_v11 = vadd.s32 %v433_v28, %v429_v44  ;;  %v1128_v59 = vsel %vm1117_vm3, nan, %v1127_v23  ;;  %v11173_v42 = vand.u32 2147483647, %v11155_v41 }
 0x1be   :  { %v311_v3 = vshrl.u32 %v293_v2, %v309_v19  ;;  %v314_v1 = vadd.s32 127, %v313_v34  ;;  %v440_v35 = vadd.s32 %v438_v5, %v432_v31  ;;  %2763 = vmatpush.msrb.mxu1 %v1128_v59  ;;  %v414_v22 = vshrl.u32 %v6892_v38, 16 }
 0x1bf   :  { %vm6945_vm0 = vcmp.le.f32.partialorder %v11173_v42, 0.7853982  ;;  %v434_v57 = vshrl.u32 %v430_v17, 16  ;;  %vm441_vm1 = vc.u32 %v439_v11, %v435_v36  ;;  %v2369_v49 = vand.u32 2147483647, %v5943_v16 }
 0x1c0   :  { %v312_v20 = vor.u32 %v311_v3, %v310_v15  ;;  %v315_v29 = vshll.u32 %v314_v1, 23  ;;  %v442_v44 = vsel %vm441_vm1, 1, %v11120_v46  ;;  %v324_v2 = vsel %vm201_vm13, %v323_v12, %v6888_v48 }
 0x1c1   :  { %v393_v24 = vsel %vm387_vm5, %v390_v39, %v392_v62  ;;  %v436_v61 = vshrl.u32 %v431_v63, 16  ;;  %v444_v26 = vadd.s32 %v442_v44, %v440_v35  ;;  %v6957_v60 = vadd.s32 %v423_v58, %v414_v22 }
 0x1c2   :  { %v316_v28 = vor.u32 4788187, %v315_v29  ;;  %v6959_v38 = vadd.s32 %v439_v11, %v435_v36  ;;  %v2376_v17 = vand.u32 8388607, %v2369_v49  ;;  %v319_v31 = vcvt.s32.f32 %v312_v20 }
 0x1c3   :  { %v445_v4 = vadd.s32 %v444_v26, %v434_v57  ;;  %v2386_v53 = vshll.u32 %v11119_v27, %v6465_v8  ;;  %v2387_v48 = vshrl.u32 %v11121_v7, %v6499_v30  ;;  %v2389_v62 = vshll.u32 %v11121_v7, %v6465_v8 }
 0x1c4   :  { %v317_v6 = vand.u32 2147483647, %v316_v28  ;;  %v2377_v39 = vor.u32 8388608, %v2376_v17  ;;  %v2390_v63 = vshrl.u32 %v11122_v21, %v6499_v30  ;;  %v2392_v55 = vshll.u32 %v11122_v21, %v6465_v8 }
 0x1c5   :  { %v446_v12 = vadd.s32 %v445_v4, %v436_v61  ;;  %v6971_v36 = vor.u32 %v2387_v48, %v2386_v53  ;;  %v2393_v19 = vshrl.u32 %v11107_v10, %v6499_v30  ;;  %v326_v58 = vsel %vm6945_vm0, 0, %v324_v2 }
 0x1c6   :  { %v320_v34 = vmul.f32 %v319_v31, %v317_v6  ;;  %vm449_vm6 = vc.u32 %v6957_v60, %v6959_v38  ;;  %v6981_v23 = vor.u32 %v2390_v63, %v2389_v62  ;;  %vm2401_vm12 = vcmp.lt.s32.totalorder %v6376_v51, 1 }
 0x1c7   :  { %v450_v15 = vadd.s32 1, %v446_v12  ;;  %v2394_v5 = vor.u32 %v2393_v19, %v2392_v55  ;;  %vm2403_vm5 = vcmp.lt.s32.totalorder %v6376_v51, 3  ;;  %v447_v8 = vmul.u32 %v6846_v37, %v393_v24 }
 0x1c8   :  { %v321_v11 = vxor.u32 2147483648, %v320_v34  ;;  %v2409_v59 = vsel %vm2401_vm12, %v6971_v36, %v6981_v23  ;;  %v2415_v3 = vsel %vm2403_vm5, %v6857_v0, %v6904_v54  ;;  %v7000_v37 = vshll.u32 %v2377_v39, 8 }
 0x1c9   :  { %v451_v1 = vsel %vm449_vm6, %v450_v15, %v446_v12  ;;  %v2411_v35 = vsel %vm2403_vm5, %v2394_v5, %v6900_v43  ;;  %v2413_v42 = vsel %vm2401_vm12, %v6981_v23, %v2394_v5  ;;  %vm2559_vm8 = vcmp.lt.s32.totalorder %v6472_v56, 4 }
 0x1ca   :  { %v322_v22 = vsel %vm201_vm13, %v321_v11, %v320_v34  ;;  %v452_v57 = vadd.s32 %v451_v1, %v447_v8  ;;  %vm2402_vm7 = vcmp.lt.s32.totalorder %v6376_v51, 2  ;;  %v7009_v0 = vsel %vm2559_vm8, %v6884_v52, 920167782 }
 0x1cb   :  { %v325_v43 = vsel %vm6945_vm0, %v11155_v41, %v322_v22  ;;  %v343_v54 = vadd.s32 3, %v326_v58  ;;  %v2416_v20 = vsel %vm2402_vm7, %v2413_v42, %v2415_v3  ;;  %v7018_v2 = vsel %vm2402_vm7, %v2409_v59, %v2411_v35 }
 0x1cc   :  { %v327_v29 = vmul.f32 %v325_v43, %v325_v43  ;;  %v453_v44 = vadd.s32 536870912, %v452_v57  ;;  %v2420_v24 = vand.u32 65535, %v2416_v20  ;;  %v7025_v61 = vsel %vm2559_vm8, %v2555_v25, 1326507024 }
 0x1cd   :  { %v2418_v14 = vand.u32 65535, %v7000_v37  ;;  %v2419_v26 = vshrl.u32 %v7000_v37, 16  ;;  %v2421_v28 = vshrl.u32 %v2416_v20, 16  ;;  %v7031_v17 = vshrl.u32 %v11162_v32, %v6103_v45 }
 0x1ce   :  { %v328_v31 = vmul.f32 -0.001358992, %v327_v29  ;;  %v335_v4 = vmul.f32 -0.00019511016, %v327_v29  ;;  %v7033_v53 = vshrl.u32 %v453_v44, 30  ;;  %v7035_v48 = vand.u32 3, %v343_v54 }
 0x1cf   :  { %v2423_v50 = vmul.u32 %v2421_v28, %v2418_v14  ;;  %v7037_v47 = vmul.u32 %v2420_v24, %v2419_v26  ;;  %v2443_v25 = vshrl.u32 %v7018_v2, 16  ;;  %v2385_v63 = vshrl.u32 %v11119_v27, %v6499_v30 }
 0x1d0   :  { %v329_v6 = vadd.f32 0.041655596, %v328_v31  ;;  %v336_v39 = vadd.f32 0.008332121, %v335_v4  ;;  %v455_v62 = vshll.u32 %v7033_v53, 30  ;;  %v2422_v55 = vmul.u32 %v2420_v24, %v2418_v14 }
 0x1d1   :  { %v2406_v12 = vsel %vm2404_vm15, %v2394_v5, 2102212464  ;;  %v2426_v19 = vshll.u32 %v2423_v50, 16  ;;  %v2442_v34 = vand.u32 65535, %v7018_v2  ;;  %v2425_v8 = vmul.u32 %v2421_v28, %v2419_v26 }
 0x1d2   :  { %v330_v58 = vmul.f32 %v329_v6, %v327_v29  ;;  %v337_v15 = vmul.f32 %v336_v39, %v327_v29  ;;  %v7046_v11 = vsub.s32 %v452_v57, %v455_v62  ;;  %v2428_v59 = vshll.u32 %v7037_v47, 16 }
 0x1d3   :  { %vm2430_vm2 = vc.u32 %v2422_v55, %v2426_v19  ;;  %v2432_v3 = vadd.s32 %v2426_v19, %v2422_v55  ;;  %v7049_v1 = vmul.u32 %v2443_v25, %v2418_v14  ;;  %vm346_vm15 = vcmp.eq.s32.totalorder %v7035_v48, 0 }
 0x1d4   :  { %v331_v35 = vadd.f32 -0.4999988, %v330_v58  ;;  %v338_v30 = vadd.f32 -0.16666654, %v337_v15  ;;  %vm457_vm14 = vcmp.lt.s32.totalorder %v7046_v11, 0  ;;  %v458_v5 = vsub.s32 0, %v7046_v11 }
 0x1d5   :  { %v2405_v42 = vsel %vm2401_vm12, %v2385_v63, %v6971_v36  ;;  %v2431_v22 = vsel %vm2430_vm2, 1, %v11120_v46  ;;  %vm2434_vm10 = vc.u32 %v2432_v3, %v2428_v59  ;;  %vm345_vm3 = vcmp.lt.s32.totalorder %v7035_v48, 2 }
 0x1d6   :  { %v332_v57 = vmul.f32 %v331_v35, %v327_v29  ;;  %v339_v54 = vmul.f32 %v338_v30, %v327_v29  ;;  %v459_v20 = vsel %vm457_vm14, %v458_v5, %v7046_v11  ;;  %v2433_v44 = vadd.s32 %v2431_v22, %v2425_v8  ;;  %v11183_v5 = vld [vmem:[#allocation60_spill] sm:$0xff] }
 0x1d7   :  { %vm342_vm11 = vweird.f32 %v11155_v41  ;;  %vm356_vm13 = vcmp.lt.s32.totalorder %v11166_v33, 0  ;;  %v460_v2 = vclz %v459_v20  ;;  %v2407_v24 = vsel %vm2403_vm5, %v6981_v23, %v2406_v12 }
 0x1d8   :  { %v2435_v36 = vsel %vm2434_vm10, 1, %v11120_v46  ;;  %v2446_v28 = vmul.u32 %v2442_v34, %v2419_v26  ;;  %v333_v31 = vadd.f32 1.0, %v332_v57  ;;  %v340_v4 = vadd.f32 1.0, %v339_v54  ;;  %v11179_v57 = vld [vmem:[#allocation53_spill] sm:$0xff] }
 0x1d9   :  { %v2437_v29 = vadd.s32 %v2435_v36, %v2433_v44  ;;  %v2448_v6 = vshll.u32 %v7049_v1, 16  ;;  %vm349_vm9 = vcmp.eq.s32.totalorder %v7035_v48, 2  ;;  %v448_v39 = vadd.s32 %v6959_v38, %v6957_v60 }
 0x1da   :  { %v5447_v62 = vadd.s32 4294967294, %v460_v2  ;;  %v2444_v63 = vmul.u32 %v2442_v34, %v2418_v14  ;;  %v341_v55 = vmul.f32 %v340_v4, %v325_v43  ;;  %v350_v19 = vxor.u32 2147483648, %v333_v31 }
 0x1db   :  { %v7072_v23 = vsel %vm2402_vm7, %v2405_v42, %v2407_v24  ;;  %v2427_v12 = vshrl.u32 %v2423_v50, 16  ;;  %v478_v58 = vsub.s32 4, %v7033_v53  ;;  %v2447_v15 = vmul.u32 %v2443_v25, %v2419_v26 }
 0x1dc   :  { %vm5448_vm4 = vcmp.lt.s32.totalorder %v5447_v62, 0  ;;  %vm2452_vm0 = vc.u32 %v2444_v63, %v2448_v6  ;;  %v347_v8 = vxor.u32 2147483648, %v341_v55  ;;  %v2450_v35 = vshll.u32 %v2446_v28, 16 }
 0x1dd   :  { %v463_v59 = vsel %vm5448_vm4, 0, %v5447_v62  ;;  %v2438_v3 = vadd.s32 %v2437_v29, %v2427_v12  ;;  %v351_v60 = vsel %vm349_vm9, %v350_v19, %v341_v55  ;;  %v2453_v14 = vsel %vm2452_vm0, 1, %v11120_v46  ;;  %v11180_v19 = vld [vmem:[#allocation56_spill] sm:$0xff] }
 0x1de   :  { %v464_v38 = vsub.s32 32, %v463_v59  ;;  %v468_v43 = vsub.s32 4294967266, %v463_v59  ;;  %v348_v51 = vsel %vm346_vm15, %v333_v31, %v347_v8  ;;  %v465_v50 = vshll.u32 %v7046_v11, %v463_v59 }
 0x1df   :  { %v2454_v34 = vadd.s32 %v2448_v6, %v2444_v63  ;;  %v2455_v30 = vadd.s32 %v2453_v14, %v2447_v15  ;;  %v352_v26 = vsel %vm345_vm3, %v348_v51, %v351_v60  ;;  %v11176_v25 = vand.u32 2147483647, %v11166_v33 }
 0x1e0   :  { %v466_v42 = vshrl.u32 %v448_v39, %v464_v38  ;;  %v469_v22 = vadd.s32 127, %v468_v43  ;;  %v2524_v54 = vand.u32 2147483647, %v11179_v57  ;;  %v353_v20 = vsel %vm342_vm11, nan, %v352_v26 }
 0x1e1   :  { %vm7085_vm1 = vcmp.le.f32.partialorder %v11176_v25, 0.7853982  ;;  %v479_v11 = vsel %vm356_vm13, %v478_v58, %v7033_v53  ;;  %v2429_v48 = vshrl.u32 %v7037_v47, 16  ;;  %vm2456_vm6 = vc.u32 %v2454_v34, %v2450_v35  ;;  %2735 = vmatpush.msrb.mxu0 %v353_v20 }
 0x1e2   :  { %v467_v44 = vor.u32 %v466_v42, %v465_v50  ;;  %v470_v2 = vshll.u32 %v469_v22, 23  ;;  %v2449_v24 = vshrl.u32 %v7049_v1, 16  ;;  %v2457_v36 = vsel %vm2456_vm6, 1, %v11120_v46 }
 0x1e3   :  { %v7098_v31 = vadd.s32 %v2438_v3, %v2429_v48  ;;  %v2451_v4 = vshrl.u32 %v2446_v28, 16  ;;  %v2459_v29 = vadd.s32 %v2457_v36, %v2455_v30  ;;  %v2531_v41 = vand.u32 8388607, %v2524_v54 }
 0x1e4   :  { %v471_v6 = vor.u32 4788187, %v470_v2  ;;  %v474_v39 = vcvt.s32.f32 %v467_v44  ;;  %v2458_v53 = vadd.s32 %v2454_v34, %v2450_v35  ;;  %v2541_v47 = vshll.u32 %v11119_v27, %v6492_v9  ;;  %v11181_v34 = vld [vmem:[#allocation57_spill] sm:$0xff] }
 0x1e5   :  { %v2460_v62 = vadd.s32 %v2459_v29, %v2449_v24  ;;  %v2532_v63 = vor.u32 8388608, %v2531_v41  ;;  %v2542_v1 = vshrl.u32 %v11121_v7, %v6696_v40  ;;  %v2544_v55 = vshll.u32 %v11121_v7, %v6492_v9 }
 0x1e6   :  { %vm1784_vm12 = vcmp.lt.s32.totalorder %v11180_v19, 4  ;;  %v472_v28 = vand.u32 2147483647, %v471_v6  ;;  %v2545_v12 = vshrl.u32 %v11122_v21, %v6696_v40  ;;  %v2547_v58 = vshll.u32 %v11122_v21, %v6492_v9 }
 0x1e7   :  { %v2548_v15 = vshrl.u32 %v11107_v10, %v6696_v40  ;;  %v2461_v8 = vadd.s32 %v2460_v62, %v2451_v4  ;;  %v2462_v59 = vmul.u32 %v7000_v37, %v7072_v23  ;;  %vm2464_vm5 = vc.u32 %v7098_v31, %v2458_v53 }
 0x1e8   :  { %v7118_v3 = vor.u32 %v2542_v1, %v2541_v47  ;;  %v475_v35 = vmul.f32 %v474_v39, %v472_v28  ;;  %v7120_v60 = vor.u32 %v2545_v12, %v2544_v55  ;;  %vm2558_vm7 = vcmp.lt.s32.totalorder %v6472_v56, 3 }
 0x1e9   :  { %v2549_v38 = vor.u32 %v2548_v15, %v2547_v58  ;;  %v481_v9 = vsel %vm7085_vm1, 0, %v479_v11  ;;  %v2465_v43 = vadd.s32 1, %v2461_v8  ;;  %vm2556_vm2 = vcmp.lt.s32.totalorder %v6472_v56, 1 }
 0x1ea   :  { %v2570_v37 = vsel %vm2558_vm7, %v6884_v52, %v7025_v61  ;;  %v476_v23 = vxor.u32 2147483648, %v475_v35  ;;  %v2564_v14 = vsel %vm2556_vm2, %v7118_v3, %v7120_v60  ;;  %v7137_v50 = vshll.u32 %v2532_v63, 8  ;;  %v11182_v61 = vld [vmem:[#allocation59_spill] sm:$0xff] }
 0x1eb   :  { %v2566_v51 = vsel %vm2558_vm7, %v2549_v38, %v7009_v0  ;;  %v7141_v30 = vor.u32 %v6335_v13, %v11181_v34  ;;  %v2466_v26 = vsel %vm2464_vm5, %v2465_v43, %v2461_v8  ;;  %vm2557_vm14 = vcmp.lt.s32.totalorder %v6472_v56, 2 }
 0x1ec   :  { %v2568_v52 = vsel %vm2556_vm2, %v7120_v60, %v2549_v38  ;;  %v1780_v25 = vor.u32 %v7031_v17, %v11182_v61  ;;  %v477_v42 = vsel %vm356_vm13, %v476_v23, %v475_v35  ;;  %v2467_v0 = vadd.s32 %v2466_v26, %v2462_v59 }
 0x1ed   :  { %v2571_v22 = vsel %vm2557_vm14, %v2568_v52, %v2570_v37  ;;  %v7156_v13 = vsel %vm7085_vm1, %v11166_v33, %v477_v42  ;;  %v498_v20 = vadd.s32 3, %v481_v9  ;;  %v7160_v11 = vsel %vm2557_vm14, %v2564_v14, %v2566_v51 }
 0x1ee   :  { %v2575_v48 = vand.u32 65535, %v2571_v22  ;;  %v482_v17 = vmul.f32 %v7156_v13, %v7156_v13  ;;  %v2468_v44 = vadd.s32 536870912, %v2467_v0  ;;  %v2573_v2 = vand.u32 65535, %v7137_v50 }
 0x1ef   :  { %v2576_v24 = vshrl.u32 %v2571_v22, 16  ;;  %v7168_v36 = vsel %vm1784_vm12, %v7141_v30, 920167782  ;;  %v7172_v4 = vshrl.u32 %v11108_v18, %v11183_v5  ;;  %v7176_v29 = vshrl.u32 %v11162_v32, %v11183_v5 }
 0x1f0   :  { %v2574_v41 = vshrl.u32 %v7137_v50, 16  ;;  %v483_v6 = vmul.f32 -0.001358992, %v482_v17  ;;  %v490_v39 = vmul.f32 -0.00019511016, %v482_v17  ;;  %v7179_v47 = vshrl.u32 %v2468_v44, 30 }
 0x1f1   :  { %v2578_v62 = vmul.u32 %v2576_v24, %v2573_v2  ;;  %v7183_v63 = vsel %vm1784_vm12, %v1780_v25, 1326507024  ;;  %v7185_v1 = vand.u32 3, %v498_v20  ;;  %v2598_v28 = vshrl.u32 %v7160_v11, 16 }
 0x1f2   :  { %v7187_v55 = vmul.u32 %v2575_v48, %v2574_v41  ;;  %v484_v12 = vadd.f32 0.041655596, %v483_v6  ;;  %v491_v58 = vadd.f32 0.008332121, %v490_v39  ;;  %v7191_v15 = vadd.s32 %v2458_v53, %v7098_v31 }
 0x1f3   :  { %v2470_v8 = vshll.u32 %v7179_v47, 30  ;;  %v2540_v59 = vshrl.u32 %v11119_v27, %v6696_v40  ;;  %v2577_v35 = vmul.u32 %v2575_v48, %v2573_v2  ;;  %v2581_v9 = vshll.u32 %v2578_v62, 16 }
 0x1f4   :  { %v2597_v43 = vand.u32 65535, %v7160_v11  ;;  %v485_v37 = vmul.f32 %v484_v12, %v482_v17  ;;  %v492_v23 = vmul.f32 %v491_v58, %v482_v17  ;;  %v2580_v51 = vmul.u32 %v2576_v24, %v2574_v41 }
 0x1f5   :  { %v7197_v14 = vsub.s32 %v2467_v0, %v2470_v8  ;;  %vm504_vm15 = vcmp.eq.s32.totalorder %v7185_v1, 2  ;;  %v2583_v34 = vshll.u32 %v7187_v55, 16  ;;  %vm2585_vm10 = vc.u32 %v2577_v35, %v2581_v9 }
 0x1f6   :  { %v2587_v31 = vadd.s32 %v2581_v9, %v2577_v35  ;;  %v7201_v53 = vmul.u32 %v2598_v28, %v2573_v2  ;;  %v486_v26 = vadd.f32 -0.4999988, %v485_v37  ;;  %v493_v52 = vadd.f32 -0.16666654, %v492_v23 }
 0x1f7   :  { %vm2472_vm3 = vcmp.lt.s32.totalorder %v7197_v14, 0  ;;  %v2473_v40 = vsub.s32 0, %v7197_v14  ;;  %vm501_vm11 = vcmp.eq.s32.totalorder %v7185_v1, 0  ;;  %v2560_v61 = vsel %vm2556_vm2, %v2540_v59, %v7118_v3 }
 0x1f8   :  { %v2561_v25 = vsel %vm2559_vm8, %v2549_v38, 2102212464  ;;  %v2586_v42 = vsel %vm2585_vm10, 1, %v11120_v46  ;;  %vm2589_vm13 = vc.u32 %v2587_v31, %v2583_v34  ;;  %v487_v0 = vmul.f32 %v486_v26, %v482_v17 }
 0x1f9   :  { %v494_v22 = vmul.f32 %v493_v52, %v482_v17  ;;  %vm500_vm9 = vcmp.lt.s32.totalorder %v7185_v1, 2  ;;  %v2474_v20 = vsel %vm2472_vm3, %v2473_v40, %v7197_v14  ;;  %v2588_v11 = vadd.s32 %v2586_v42, %v2580_v51  ;;  %v11186_v1 = vld [vmem:[#allocation14_spill] sm:$0xff] }
 0x1fa   :  { %vm497_vm4 = vweird.f32 %v11166_v33  ;;  %v2475_v48 = vclz %v2474_v20  ;;  %v2582_v44 = vshrl.u32 %v2578_v62, 16  ;;  %v2590_v24 = vsel %vm2589_vm13, 1, %v11120_v46 }
 0x1fb   :  { %v2603_v3 = vshll.u32 %v7201_v53, 16  ;;  %v488_v6 = vadd.f32 1.0, %v487_v0  ;;  %v495_v38 = vadd.f32 1.0, %v494_v22  ;;  %v2592_v39 = vadd.s32 %v2590_v24, %v2588_v11 }
 0x1fc   :  { %v2601_v12 = vmul.u32 %v2597_v43, %v2574_v41  ;;  %v5486_v58 = vadd.s32 4294967294, %v2475_v48  ;;  %v2562_v17 = vsel %vm2558_vm7, %v7120_v60, %v2561_v25  ;;  %v2584_v8 = vshrl.u32 %v7187_v55, 16 }
 0x1fd   :  { %v2599_v59 = vmul.u32 %v2597_v43, %v2573_v2  ;;  %v496_v35 = vmul.f32 %v495_v38, %v7156_v13  ;;  %v505_v9 = vxor.u32 2147483648, %v488_v6  ;;  %vm2371_vm8 = vcmp.lt.s32.totalorder %v5943_v16, 0  ;;  %v11187_v38 = vld [vmem:[#allocation54_spill] sm:$0xff] }
 0x1fe   :  { %v2493_v62 = vsub.s32 4, %v7179_v47  ;;  %v2593_v37 = vadd.s32 %v2592_v39, %v2582_v44  ;;  %vm5487_vm0 = vcmp.lt.s32.totalorder %v5486_v58, 0  ;;  %v2602_v23 = vmul.u32 %v2598_v28, %v2574_v41 }
 0x1ff   :  { %vm2607_vm1 = vc.u32 %v2599_v59, %v2603_v3  ;;  %v2609_v51 = vadd.s32 %v2603_v3, %v2599_v59  ;;  %v502_v34 = vxor.u32 2147483648, %v496_v35  ;;  %v506_v31 = vsel %vm504_vm15, %v505_v9, %v496_v35 }
 0x200   :  { %v2478_v60 = vsel %vm5487_vm0, 0, %v5486_v58  ;;  %v2605_v26 = vshll.u32 %v2601_v12, 16  ;;  %vm7228_vm6 = vcmp.le.f32.partialorder %v2369_v49, 0.7853982  ;;  %v7232_v43 = vadd.s32 %v2593_v37, %v2584_v8 }
 0x201   :  { %v2479_v2 = vsub.s32 32, %v2478_v60  ;;  %v2483_v55 = vsub.s32 4294967266, %v2478_v60  ;;  %v2608_v41 = vsel %vm2607_vm1, 1, %v11120_v46  ;;  %v503_v28 = vsel %vm501_vm11, %v488_v6, %v502_v34 }
 0x202   :  { %v2480_v52 = vshll.u32 %v7197_v14, %v2478_v60  ;;  %v2610_v40 = vadd.s32 %v2608_v41, %v2602_v23  ;;  %vm2611_vm5 = vc.u32 %v2609_v51, %v2605_v26  ;;  %v507_v25 = vsel %vm500_vm9, %v503_v28, %v506_v31 }
 0x203   :  { %v2481_v49 = vshrl.u32 %v7191_v15, %v2479_v2  ;;  %v2484_v42 = vadd.s32 127, %v2483_v55  ;;  %v2612_v0 = vsel %vm2611_vm5, 1, %v11120_v46  ;;  %v508_v22 = vsel %vm497_vm4, nan, %v507_v25 }
 0x204   :  { %v2563_v20 = vsel %vm2557_vm14, %v2560_v61, %v2562_v17  ;;  %v2604_v11 = vshrl.u32 %v7201_v53, 16  ;;  %v2614_v48 = vadd.s32 %v2612_v0, %v2610_v40  ;;  %2764 = vmatpush.msrb.mxu1 %v508_v22  ;;  %v7247_v24 = vadd.s32 %v2609_v51, %v2605_v26  ;;  %v11188_v26 = vld [vmem:[#allocation62_spill] sm:$0xff] }
 0x205   :  { %v2482_v14 = vor.u32 %v2481_v49, %v2480_v52  ;;  %v2485_v44 = vshll.u32 %v2484_v42, 23  ;;  %v1749_v3 = vand.u32 2147483647, %v11186_v1  ;;  %v2606_v15 = vshrl.u32 %v2601_v12, 16 }
 0x206   :  { %v2615_v6 = vadd.s32 %v2614_v48, %v2604_v11  ;;  %v1766_v39 = vshll.u32 %v11119_v27, %v11187_v38  ;;  %v1767_v33 = vshrl.u32 %v11121_v7, %v6103_v45  ;;  %v2494_v53 = vsel %vm2371_vm8, %v2493_v62, %v7179_v47  ;;  %v11189_v48 = vld [vmem:[#allocation58_spill] sm:$0xff] }
 0x207   :  { %v2486_v56 = vor.u32 4788187, %v2485_v44  ;;  %vm2619_vm7 = vc.u32 %v7232_v43, %v7247_v24  ;;  %v1756_v61 = vand.u32 8388607, %v1749_v3  ;;  %v2489_v58 = vcvt.s32.f32 %v2482_v14 }
 0x208   :  { %v2616_v12 = vadd.s32 %v2615_v6, %v2606_v15  ;;  %v1769_v17 = vshll.u32 %v11121_v7, %v11187_v38  ;;  %v1770_v8 = vshrl.u32 %v11122_v21, %v6103_v45  ;;  %v1772_v9 = vshll.u32 %v11122_v21, %v11187_v38  ;;  %v11190_v6 = vld [vmem:[#allocation61_spill] sm:$0xff] }
 0x209   :  { %v2487_v59 = vand.u32 2147483647, %v2486_v56  ;;  %v1757_v35 = vor.u32 8388608, %v1756_v61  ;;  %v1773_v47 = vshrl.u32 %v11107_v10, %v6103_v45  ;;  %v2496_v62 = vsel %vm7228_vm6, 0, %v2494_v53 }
 0x20a   :  { %v2620_v37 = vadd.s32 1, %v2616_v12  ;;  %v7271_v23 = vor.u32 %v1767_v33, %v1766_v39  ;;  %v7273_v51 = vor.u32 %v1770_v8, %v1769_v17  ;;  %v2617_v31 = vmul.u32 %v7137_v50, %v2563_v20 }
 0x20b   :  { %v2490_v34 = vmul.f32 %v2489_v58, %v2487_v59  ;;  %v1774_v60 = vor.u32 %v1773_v47, %v1772_v9  ;;  %vm1783_vm2 = vcmp.lt.s32.totalorder %v11180_v19, 3  ;;  %v1935_v2 = vor.u32 %v7176_v29, %v11188_v26 }
 0x20c   :  { %v2621_v55 = vsel %vm2619_vm7, %v2620_v37, %v2616_v12  ;;  %v1795_v41 = vsel %vm1783_vm2, %v7141_v30, %v7183_v63  ;;  %v7286_v28 = vshll.u32 %v1757_v35, 8  ;;  %v2513_v40 = vadd.s32 3, %v2496_v62 }
 0x20d   :  { %v2491_v52 = vxor.u32 2147483648, %v2490_v34  ;;  %v2622_v50 = vadd.s32 %v2621_v55, %v2617_v31  ;;  %vm1781_vm14 = vcmp.lt.s32.totalorder %v11180_v19, 1  ;;  %vm1782_vm15 = vcmp.lt.s32.totalorder %v11180_v19, 2 }
 0x20e   :  { %v1789_v29 = vsel %vm1781_vm14, %v7271_v23, %v7273_v51  ;;  %v1791_v25 = vsel %vm1783_vm2, %v1774_v60, %v7168_v36  ;;  %v1793_v30 = vsel %vm1781_vm14, %v7273_v51, %v1774_v60  ;;  %v7305_v0 = vand.u32 65535, %v7286_v28 }
 0x20f   :  { %v2492_v63 = vsel %vm2371_vm8, %v2491_v52, %v2490_v34  ;;  %v2623_v49 = vadd.s32 536870912, %v2622_v50  ;;  %v1796_v42 = vsel %vm1782_vm15, %v1793_v30, %v1795_v41  ;;  %v7313_v36 = vshrl.u32 %v7286_v28, 16 }
 0x210   :  { %v7310_v22 = vsel %vm7228_vm6, %v5943_v16, %v2492_v63  ;;  %v1800_v20 = vand.u32 65535, %v1796_v42  ;;  %v1801_v11 = vshrl.u32 %v1796_v42, 16  ;;  %vm1939_vm10 = vcmp.lt.s32.totalorder %v11189_v48, 4 }
 0x211   :  { %v2497_v14 = vmul.f32 %v7310_v22, %v7310_v22  ;;  %v7318_v44 = vshrl.u32 %v2623_v49, 30  ;;  %v7322_v15 = vsel %vm1782_vm15, %v1789_v29, %v1791_v25  ;;  %v7326_v13 = vor.u32 %v7172_v4, %v11190_v6 }
 0x212   :  { %v7330_v38 = vsel %vm1939_vm10, %v1935_v2, 1326507024  ;;  %v1803_v39 = vmul.u32 %v1801_v11, %v7305_v0  ;;  %v7334_v33 = vmul.u32 %v1800_v20, %v7313_v36  ;;  %v7336_v61 = vand.u32 3, %v2513_v40 }
 0x213   :  { %v2498_v56 = vmul.f32 -0.001358992, %v2497_v14  ;;  %v2505_v53 = vmul.f32 -0.00019511016, %v2497_v14  ;;  %v2625_v58 = vshll.u32 %v7318_v44, 30  ;;  %v1765_v12 = vshrl.u32 %v11119_v27, %v6103_v45 }
 0x214   :  { %v1802_v4 = vmul.u32 %v1800_v20, %v7305_v0  ;;  %v1806_v17 = vshll.u32 %v1803_v39, 16  ;;  %v1823_v8 = vshrl.u32 %v7322_v15, 16  ;;  %v1786_v47 = vsel %vm1784_vm12, %v1774_v60, 2102212464 }
 0x215   :  { %v2499_v59 = vadd.f32 0.041655596, %v2498_v56  ;;  %v2506_v35 = vadd.f32 0.008332121, %v2505_v53  ;;  %v7343_v9 = vsub.s32 %v2622_v50, %v2625_v58  ;;  %v1805_v62 = vmul.u32 %v1801_v11, %v7313_v36 }
 0x216   :  { %v1808_v37 = vshll.u32 %v7334_v33, 16  ;;  %vm1810_vm3 = vc.u32 %v1802_v4, %v1806_v17  ;;  %v1812_v34 = vadd.s32 %v1806_v17, %v1802_v4  ;;  %v1822_v55 = vand.u32 65535, %v7322_v15 }
 0x217   :  { %v2500_v31 = vmul.f32 %v2499_v59, %v2497_v14  ;;  %v2507_v45 = vmul.f32 %v2506_v35, %v2497_v14  ;;  %vm2627_vm11 = vcmp.lt.s32.totalorder %v7343_v9, 0  ;;  %v2628_v26 = vsub.s32 0, %v7343_v9 }
 0x218   :  { %v1811_v2 = vsel %vm1810_vm3, 1, %v11120_v46  ;;  %vm1814_vm13 = vc.u32 %v1812_v34, %v1808_v37  ;;  %v7354_v41 = vmul.u32 %v1823_v8, %v7305_v0  ;;  %vm2516_vm12 = vcmp.eq.s32.totalorder %v7336_v61, 0 }
 0x219   :  { %v2501_v60 = vadd.f32 -0.4999988, %v2500_v31  ;;  %v2508_v52 = vadd.f32 -0.16666654, %v2507_v45  ;;  %v2629_v40 = vsel %vm2627_vm11, %v2628_v26, %v7343_v9  ;;  %v1813_v50 = vadd.s32 %v1811_v2, %v1805_v62 }
 0x21a   :  { %vm2519_vm9 = vcmp.eq.s32.totalorder %v7336_v61, 2  ;;  %v2630_v29 = vclz %v2629_v40  ;;  %v1815_v25 = vsel %vm1814_vm13, 1, %v11120_v46  ;;  %vm2515_vm4 = vcmp.lt.s32.totalorder %v7336_v61, 2 }
 0x21b   :  { %v2502_v30 = vmul.f32 %v2501_v60, %v2497_v14  ;;  %v2509_v63 = vmul.f32 %v2508_v52, %v2497_v14  ;;  %v2618_v49 = vadd.s32 %v7247_v24, %v7232_v43  ;;  %v1817_v42 = vadd.s32 %v1815_v25, %v1813_v50  ;;  %v2679_v52 = vld [vmem:[%s10780_s3] sm:$0xff] }
 0x21c   :  { %vm2512_vm8 = vweird.f32 %v5943_v16  ;;  %v5489_v20 = vadd.s32 4294967294, %v2630_v29  ;;  %v1785_v11 = vsel %vm1781_vm14, %v1765_v12, %v7271_v23  ;;  %v1787_v15 = vsel %vm1783_vm2, %v7273_v51, %v1786_v47 }
 0x21d   :  { %v1807_v6 = vshrl.u32 %v1803_v39, 16  ;;  %v2503_v56 = vadd.f32 1.0, %v2502_v30  ;;  %v2510_v14 = vadd.f32 1.0, %v2509_v63  ;;  %v1826_v53 = vmul.u32 %v1822_v55, %v7313_v36  ;;  %v11193_v30 = vld [vmem:[#allocation15_spill] sm:$0xff] }
 0x21e   :  { %v1828_v58 = vshll.u32 %v7354_v41, 16  ;;  %vm2526_vm0 = vcmp.lt.s32.totalorder %v11179_v57, 0  ;;  %vm5490_vm1 = vcmp.lt.s32.totalorder %v5489_v20, 0  ;;  %v2648_v43 = vsub.s32 4, %v7318_v44 }
 0x21f   :  { %v1809_v24 = vshrl.u32 %v7334_v33, 16  ;;  %v1824_v23 = vmul.u32 %v1822_v55, %v7305_v0  ;;  %v2511_v12 = vmul.f32 %v2510_v14, %v7310_v22  ;;  %v2520_v4 = vxor.u32 2147483648, %v2503_v56 }
 0x220   :  { %v2633_v51 = vsel %vm5490_vm1, 0, %v5489_v20  ;;  %v1818_v39 = vadd.s32 %v1817_v42, %v1807_v6  ;;  %v1827_v35 = vmul.u32 %v1823_v8, %v7313_v36  ;;  %v1830_v62 = vshll.u32 %v1826_v53, 16  ;;  %v11194_v6 = vld [vmem:[#allocation55_spill] sm:$0xff] }
 0x221   :  { %v2634_v17 = vsub.s32 32, %v2633_v51  ;;  %v2638_v59 = vsub.s32 4294967266, %v2633_v51  ;;  %vm1832_vm6 = vc.u32 %v1824_v23, %v1828_v58  ;;  %v2517_v47 = vxor.u32 2147483648, %v2511_v12 }
 0x222   :  { %v1833_v37 = vsel %vm1832_vm6, 1, %v11120_v46  ;;  %v1834_v34 = vadd.s32 %v1828_v58, %v1824_v23  ;;  %vm7381_vm5 = vcmp.le.f32.partialorder %v2524_v54, 0.7853982  ;;  %v2635_v0 = vshll.u32 %v7343_v9, %v2633_v51 }
 0x223   :  { %v2636_v22 = vshrl.u32 %v2618_v49, %v2634_v17  ;;  %v2639_v31 = vadd.s32 127, %v2638_v59  ;;  %v1835_v45 = vadd.s32 %v1833_v37, %v1827_v35  ;;  %v2518_v36 = vsel %vm2516_vm12, %v2503_v56, %v2517_v47 }
 0x224   :  { %v2521_v8 = vsel %vm2519_vm9, %v2520_v4, %v2511_v12  ;;  %v7390_v26 = vadd.s32 %v1818_v39, %v1809_v24  ;;  %vm1836_vm7 = vc.u32 %v1834_v34, %v1830_v62  ;;  %vm10936_vm2 = vcmask 261120  }
 0x225   :  { %v2522_v54 = vsel %vm2515_vm4, %v2518_v36, %v2521_v8  ;;  %v2637_v2 = vor.u32 %v2636_v22, %v2635_v0  ;;  %v2640_v55 = vshll.u32 %v2639_v31, 23  ;;  %v1837_v60 = vsel %vm1836_vm7, 1, %v11120_v46  ;;  %5491 = vmatmul.msk.f32.vlgmr.msrb.gmra.mxu0 %vm10936_vm2, %v2679_v52  ;;  %5495 = vmatmul.msk.f32.vlgmr.msrb.gmra.mxu1 %vm10936_vm2, %v2679_v52 }
 0x226   :  { %v2523_v9 = vsel %vm2512_vm8, nan, %v2522_v54  ;;  %v1829_v40 = vshrl.u32 %v7354_v41, 16  ;;  %v1839_v50 = vadd.s32 %v1837_v60, %v1835_v45  ;;  %v1788_v61 = vsel %vm1782_vm15, %v1785_v11, %v1787_v15 }
 0x227   :  { %2790 = vmatpush.msrb.mxu2 %v2523_v9  ;;  %v2641_v29 = vor.u32 4788187, %v2640_v55  ;;  %v7404_v25 = vadd.s32 %v1834_v34, %v1830_v62  ;;  %v1904_v16 = vand.u32 2147483647, %v11193_v30  ;;  %v2644_v63 = vcvt.s32.f32 %v2637_v2  ;;  %v11196_v9 = vld [vmem:[#allocation47_spill] sm:$0xff] }
 0x228   :  { %v2649_v49 = vsel %vm2526_vm0, %v2648_v43, %v7318_v44  ;;  %v1831_v41 = vshrl.u32 %v1826_v53, 16  ;;  %v1840_v42 = vadd.s32 %v1839_v50, %v1829_v40  ;;  %v1922_v11 = vshrl.u32 %v11121_v7, %v11183_v5  ;;  %v11195_v53 = vld [vmem:[#allocation44_spill] sm:$0xff] }
 0x229   :  { %v2642_v20 = vand.u32 2147483647, %v2641_v29  ;;  %vm1844_vm14 = vc.u32 %v7390_v26, %v7404_v25  ;;  %v1911_v19 = vand.u32 8388607, %v1904_v16  ;;  %v1921_v56 = vshll.u32 %v11119_v27, %v11194_v6 }
 0x22a   :  { %v1841_v15 = vadd.s32 %v1840_v42, %v1831_v41  ;;  %v1924_v44 = vshll.u32 %v11121_v7, %v11194_v6  ;;  %v1925_v14 = vshrl.u32 %v11122_v21, %v11183_v5  ;;  %vm1164_vm15 = vcmp.lt.s32.totalorder %v11195_v53, 4  ;;  %v11199_v41 = vld [vmem:[#allocation51_spill] sm:$0xff] }
 0x22b   :  { %v2645_v58 = vmul.f32 %v2644_v63, %v2642_v20  ;;  %v1912_v43 = vor.u32 8388608, %v1911_v19  ;;  %v1927_v24 = vshll.u32 %v11122_v21, %v11194_v6  ;;  %v1928_v23 = vshrl.u32 %v11107_v10, %v11183_v5 }
 0x22c   :  { %v2651_v12 = vsel %vm7381_vm5, 0, %v2649_v49  ;;  %v1845_v4 = vadd.s32 1, %v1841_v15  ;;  %v7430_v51 = vor.u32 %v1922_v11, %v1921_v56  ;;  %v7432_v39 = vor.u32 %v1925_v14, %v1924_v44  ;;  %v11198_v49 = vld [vmem:[#allocation49_spill] sm:$0xff]  ;;  %v11200_v44 = vld [vmem:[#allocation48_spill] sm:$0xff] }
 0x22d   :  { %v2646_v17 = vxor.u32 2147483648, %v2645_v58  ;;  %v1842_v59 = vmul.u32 %v7286_v28, %v1788_v61  ;;  %v1929_v35 = vor.u32 %v1928_v23, %v1927_v24  ;;  %vm1938_vm3 = vcmp.lt.s32.totalorder %v11189_v48, 3  ;;  %v11197_v61 = vld [vmem:[#allocation52_spill] sm:$0xff]  ;;  %v11201_v14 = vld [vmem:[#allocation45_spill] sm:$0xff] }
 0x22e   :  { %v1945_v47 = vsel %vm1939_vm10, %v7326_v13, 920167782  ;;  %v1846_v62 = vsel %vm1844_vm14, %v1845_v4, %v1841_v15  ;;  %v1950_v37 = vsel %vm1938_vm3, %v7326_v13, %v7330_v38  ;;  %v7446_v34 = vshll.u32 %v1912_v43, 8 }
 0x22f   :  { %v2647_v28 = vsel %vm2526_vm0, %v2646_v17, %v2645_v58  ;;  %v2668_v0 = vadd.s32 3, %v2651_v12  ;;  %v1847_v22 = vadd.s32 %v1846_v62, %v1842_v59  ;;  %vm1936_vm11 = vcmp.lt.s32.totalorder %v11189_v48, 1 }
 0x230   :  { %v7454_v31 = vsel %vm7381_vm5, %v11179_v57, %v2647_v28  ;;  %vm1937_vm13 = vcmp.lt.s32.totalorder %v11189_v48, 2  ;;  %v1944_v13 = vsel %vm1936_vm11, %v7430_v51, %v7432_v39  ;;  %v1948_v38 = vsel %vm1936_vm11, %v7432_v39, %v1929_v35 }
 0x231   :  { %v2652_v45 = vmul.f32 %v7454_v31, %v7454_v31  ;;  %v1848_v36 = vadd.s32 536870912, %v1847_v22  ;;  %v1946_v33 = vsel %vm1938_vm3, %v1929_v35, %v1945_v47  ;;  %v1951_v8 = vsel %vm1937_vm13, %v1948_v38, %v1950_v37 }
 0x232   :  { %v1953_v54 = vand.u32 65535, %v7446_v34  ;;  %v7472_v2 = vshrl.u32 %v7446_v34, 16  ;;  %v1955_v55 = vand.u32 65535, %v1951_v8  ;;  %v1956_v60 = vshrl.u32 %v1951_v8, 16 }
 0x233   :  { %v7476_v52 = vshrl.u32 %v11162_v32, %v11196_v9  ;;  %v2653_v40 = vmul.f32 -0.001358992, %v2652_v45  ;;  %v2660_v50 = vmul.f32 -0.00019511016, %v2652_v45  ;;  %v7478_v29 = vshrl.u32 %v1848_v36, 30 }
 0x234   :  { %v7483_v63 = vsel %vm1164_vm15, %v11197_v61, 920167782  ;;  %v7487_v42 = vor.u32 %v11199_v41, %v11198_v49  ;;  %v1958_v20 = vmul.u32 %v1956_v60, %v1953_v54  ;;  %v7490_v19 = vmul.u32 %v1955_v55, %v7472_v2 }
 0x235   :  { %v2654_v11 = vadd.f32 0.041655596, %v2653_v40  ;;  %v2661_v15 = vadd.f32 0.008332121, %v2660_v50  ;;  %v1850_v6 = vshll.u32 %v7478_v29, 30  ;;  %v1947_v56 = vsel %vm1937_vm13, %v1944_v13, %v1946_v33 }
 0x236   :  { %v11202_v58 = vor.u32 %v11200_v44, %v11201_v14  ;;  %v2669_v24 = vand.u32 3, %v2668_v0  ;;  %v1957_v23 = vmul.u32 %v1955_v55, %v1953_v54  ;;  %v1961_v12 = vshll.u32 %v1958_v20, 16 }
 0x237   :  { %v2655_v4 = vmul.f32 %v2654_v11, %v2652_v45  ;;  %v2662_v17 = vmul.f32 %v2661_v15, %v2652_v45  ;;  %v7502_v59 = vsub.s32 %v1847_v22, %v1850_v6  ;;  %v1960_v47 = vmul.u32 %v1956_v60, %v7472_v2 }
 0x238   :  { %v7500_v43 = vsel %vm1164_vm15, %v11202_v58, 1326507024  ;;  %v1963_v62 = vshll.u32 %v7490_v19, 16  ;;  %vm1965_vm12 = vc.u32 %v1957_v23, %v1961_v12  ;;  %v1967_v37 = vadd.s32 %v1961_v12, %v1957_v23 }
 0x239   :  { %v1978_v28 = vshrl.u32 %v1947_v56, 16  ;;  %v2656_v13 = vadd.f32 -0.4999988, %v2655_v4  ;;  %v2663_v38 = vadd.f32 -0.16666654, %v2662_v17  ;;  %vm1852_vm9 = vcmp.lt.s32.totalorder %v7502_v59, 0 }
 0x23a   :  { %v1853_v36 = vsub.s32 0, %v7502_v59  ;;  %vm2671_vm4 = vcmp.eq.s32.totalorder %v2669_v24, 0  ;;  %v1920_v0 = vshrl.u32 %v11119_v27, %v11183_v5  ;;  %v1966_v22 = vsel %vm1965_vm12, 1, %v11120_v46 }
 0x23b   :  { %vm1969_vm8 = vc.u32 %v1967_v37, %v1963_v62  ;;  %v1977_v33 = vand.u32 65535, %v1947_v56  ;;  %v2657_v8 = vmul.f32 %v2656_v13, %v2652_v45  ;;  %v2664_v55 = vmul.f32 %v2663_v38, %v2652_v45 }
 0x23c   :  { %vm2670_vm0 = vcmp.lt.s32.totalorder %v2669_v24, 2  ;;  %v1854_v60 = vsel %vm1852_vm9, %v1853_v36, %v7502_v59  ;;  %v1968_v40 = vadd.s32 %v1966_v22, %v1960_v47  ;;  %vm2667_vm1 = vweird.f32 %v11179_v57  ;;  %v11205_v57 = vld [vmem:[#allocation7_spill] sm:$0xff] }
 0x23d   :  { %v1855_v50 = vclz %v1854_v60  ;;  %v1941_v49 = vsel %vm1939_vm10, %v1929_v35, 2102212464  ;;  %v1970_v41 = vsel %vm1969_vm8, 1, %v11120_v46  ;;  %v1980_v11 = vmul.u32 %v1978_v28, %v1953_v54 }
 0x23e   :  { %v2658_v5 = vadd.f32 1.0, %v2657_v8  ;;  %v2665_v15 = vadd.f32 1.0, %v2664_v55  ;;  %vm2674_vm6 = vcmp.eq.s32.totalorder %v2669_v24, 2  ;;  %v1972_v6 = vadd.s32 %v1970_v41, %v1968_v40 }
 0x23f   :  { %vm1751_vm5 = vcmp.lt.s32.totalorder %v11186_v1, 0  ;;  %v1843_v45 = vadd.s32 %v7404_v25, %v7390_v26  ;;  %v5474_v56 = vadd.s32 4294967294, %v1855_v50  ;;  %v1940_v44 = vsel %vm1936_vm11, %v1920_v0, %v7430_v51 }
 0x240   :  { %v1981_v14 = vmul.u32 %v1977_v33, %v7472_v2  ;;  %v2666_v35 = vmul.f32 %v2665_v15, %v7454_v31  ;;  %v2675_v58 = vxor.u32 2147483648, %v2658_v5  ;;  %v1942_v23 = vsel %vm1938_vm3, %v7432_v39, %v1941_v49 }
 0x241   :  { %v1962_v12 = vshrl.u32 %v1958_v20, 16  ;;  %vm5475_vm10 = vcmp.lt.s32.totalorder %v5474_v56, 0  ;;  %v1873_v4 = vsub.s32 4, %v7478_v29  ;;  %v1979_v17 = vmul.u32 %v1977_v33, %v1953_v54 }
 0x242   :  { %v1983_v26 = vshll.u32 %v1980_v11, 16  ;;  %v2672_v25 = vxor.u32 2147483648, %v2666_v35  ;;  %v1858_v47 = vsel %vm5475_vm10, 0, %v5474_v56  ;;  %v1982_v51 = vmul.u32 %v1978_v28, %v7472_v2 }
 0x243   :  { %v1973_v62 = vadd.s32 %v1972_v6, %v1962_v12  ;;  %v2676_v37 = vsel %vm2674_vm6, %v2675_v58, %v2666_v35  ;;  %vm7532_vm7 = vcmp.le.f32.partialorder %v1749_v3, 0.7853982  ;;  %v1859_v39 = vsub.s32 32, %v1858_v47 }
 0x244   :  { %v1863_v20 = vsub.s32 4294967266, %v1858_v47  ;;  %v1985_v13 = vshll.u32 %v1981_v14, 16  ;;  %v2673_v38 = vsel %vm2671_vm4, %v2658_v5, %v2672_v25  ;;  %v1860_v54 = vshll.u32 %v7502_v59, %v1858_v47 }
 0x245   :  { %vm1987_vm14 = vc.u32 %v1979_v17, %v1983_v26  ;;  %v1989_v36 = vadd.s32 %v1983_v26, %v1979_v17  ;;  %v2677_v0 = vsel %vm2670_vm0, %v2673_v38, %v2676_v37  ;;  %v1861_v2 = vshrl.u32 %v1843_v45, %v1859_v39 }
 0x246   :  { %v1864_v28 = vadd.s32 127, %v1863_v20  ;;  %v1988_v22 = vsel %vm1987_vm14, 1, %v11120_v46  ;;  %v2678_v3 = vsel %vm2667_vm1, nan, %v2677_v0  ;;  %v1943_v33 = vsel %vm1937_vm13, %v1940_v44, %v1942_v23  ;;  %v11206_v44 = vld [vmem:[#allocation33_spill] sm:$0xff] }
 0x247   :  { %v1990_v8 = vadd.s32 %v1988_v22, %v1982_v51  ;;  %vm1991_vm3 = vc.u32 %v1989_v36, %v1985_v13  ;;  %2819 = vmatpush.msrb.mxu3 %v2678_v3  ;;  %v1862_v55 = vor.u32 %v1861_v2, %v1860_v54  ;;  %v1964_v59 = vshrl.u32 %v7490_v19, 16  ;;  %v11208_v54 = vld [vmem:[#allocation50_spill] sm:$0xff] }
 0x248   :  { %v1865_v60 = vshll.u32 %v1864_v28, 23  ;;  %v1992_v24 = vsel %vm1991_vm3, 1, %v11120_v46  ;;  %v1874_v40 = vsel %vm1751_vm5, %v1873_v4, %v7478_v29  ;;  %v1984_v50 = vshrl.u32 %v1980_v11, 16  ;;  %v11207_v29 = vld [vmem:[#allocation41_spill] sm:$0xff] }
 0x249   :  { %v1994_v49 = vadd.s32 %v1992_v24, %v1990_v8  ;;  %v1129_v41 = vand.u32 2147483647, %v11205_v57  ;;  %v7550_v48 = vadd.s32 %v1973_v62, %v1964_v59  ;;  %v1986_v15 = vshrl.u32 %v1981_v14, 16  ;;  %v11209_v24 = vld [vmem:[#allocation29_spill] sm:$0xff] }
 0x24a   :  { %v1866_v5 = vor.u32 4788187, %v1865_v60  ;;  %v7552_v6 = vadd.s32 %v1989_v36, %v1985_v13  ;;  %v1869_v45 = vcvt.s32.f32 %v1862_v55  ;;  %v1146_v35 = vshll.u32 %v11119_v27, %v11206_v44 }
 0x24b   :  { %v1995_v56 = vadd.s32 %v1994_v49, %v1984_v50  ;;  %v1136_v19 = vand.u32 8388607, %v1129_v41  ;;  %v1147_v11 = vshrl.u32 %v11121_v7, %v11207_v29  ;;  %v1149_v23 = vshll.u32 %v11121_v7, %v11206_v44  ;;  %v11211_v50 = vld [vmem:[#allocation46_spill] sm:$0xff] }
 0x24c   :  { %v1867_v58 = vand.u32 2147483647, %v1866_v5  ;;  %v1150_v14 = vshrl.u32 %v11122_v21, %v11207_v29  ;;  %v1876_v12 = vsel %vm7532_vm7, 0, %v1874_v40  ;;  %v1152_v17 = vshll.u32 %v11122_v21, %v11206_v44  ;;  %v11210_v40 = vld [vmem:[#allocation36_spill] sm:$0xff] }
 0x24d   :  { %v1996_v4 = vadd.s32 %v1995_v56, %v1986_v15  ;;  %v1153_v26 = vshrl.u32 %v11107_v10, %v11207_v29  ;;  %vm1999_vm11 = vc.u32 %v7550_v48, %v7552_v6  ;;  %v7572_v47 = vor.u32 %v1147_v11, %v1146_v35 }
 0x24e   :  { %v1870_v25 = vmul.f32 %v1869_v45, %v1867_v58  ;;  %v7574_v62 = vor.u32 %v1150_v14, %v1149_v23  ;;  %v1137_v37 = vor.u32 8388608, %v1136_v19  ;;  %vm1163_vm13 = vcmp.lt.s32.totalorder %v11195_v53, 3 }
 0x24f   :  { %v2000_v51 = vadd.s32 1, %v1996_v4  ;;  %v1154_v39 = vor.u32 %v1153_v26, %v1152_v17  ;;  %v1997_v13 = vmul.u32 %v7446_v34, %v1943_v33  ;;  %vm1161_vm12 = vcmp.lt.s32.totalorder %v11195_v53, 1 }
 0x250   :  { %v1871_v20 = vxor.u32 2147483648, %v1870_v25  ;;  %v1175_v38 = vsel %vm1163_vm13, %v11197_v61, %v7500_v43  ;;  %v1315_v36 = vor.u32 %v7476_v52, %v11208_v54  ;;  %v1893_v0 = vadd.s32 3, %v1876_v12 }
 0x251   :  { %v2001_v2 = vsel %vm1999_vm11, %v2000_v51, %v1996_v4  ;;  %v1173_v28 = vsel %vm1161_vm12, %v7574_v62, %v1154_v39  ;;  %vm1162_vm9 = vcmp.lt.s32.totalorder %v11195_v53, 2  ;;  %v1169_v61 = vsel %vm1161_vm12, %v7572_v47, %v7574_v62  ;;  %v11215_v53 = vld [vmem:[#allocation24_spill] sm:$0xff] }
 0x252   :  { %v1872_v22 = vsel %vm1751_vm5, %v1871_v20, %v1870_v25  ;;  %v2002_v34 = vadd.s32 %v2001_v2, %v1997_v13  ;;  %v1171_v43 = vsel %vm1163_vm13, %v1154_v39, %v7483_v63  ;;  %v1176_v3 = vsel %vm1162_vm9, %v1173_v28, %v1175_v38 }
 0x253   :  { %v7598_v52 = vsel %vm7532_vm7, %v11186_v1, %v1872_v22  ;;  %v7605_v33 = vshll.u32 %v1137_v37, 8  ;;  %v1180_v60 = vand.u32 65535, %v1176_v3  ;;  %v1181_v59 = vshrl.u32 %v1176_v3, 16 }
 0x254   :  { %v1877_v8 = vmul.f32 %v7598_v52, %v7598_v52  ;;  %v2003_v55 = vadd.s32 536870912, %v2002_v34  ;;  %v540_v31 = vor.u32 %v11210_v40, %v11209_v24  ;;  %vm1319_vm4 = vcmp.lt.s32.totalorder %v11211_v50, 4 }
 0x255   :  { %v1178_v49 = vand.u32 65535, %v7605_v33  ;;  %v1179_v63 = vshrl.u32 %v7605_v33, 16  ;;  %v1172_v56 = vsel %vm1162_vm9, %v1169_v61, %v1171_v43  ;;  %v7621_v19 = vsel %vm1319_vm4, %v7487_v42, 920167782 }
 0x256   :  { %v1878_v5 = vmul.f32 -0.001358992, %v1877_v8  ;;  %v1885_v15 = vmul.f32 -0.00019511016, %v1877_v8  ;;  %v7614_v45 = vshrl.u32 %v2003_v55, 30  ;;  %v7629_v14 = vand.u32 3, %v1893_v0 }
 0x257   :  { %v7625_v44 = vsel %vm1319_vm4, %v1315_v36, 1326507024  ;;  %v1183_v35 = vmul.u32 %v1181_v59, %v1178_v49  ;;  %v7627_v58 = vmul.u32 %v1180_v60, %v1179_v63  ;;  %v1145_v4 = vshrl.u32 %v11119_v27, %v11207_v29 }
 0x258   :  { %v1879_v11 = vadd.f32 0.041655596, %v1878_v5  ;;  %v1886_v23 = vadd.f32 0.008332121, %v1885_v15  ;;  %v2005_v12 = vshll.u32 %v7614_v45, 30  ;;  %v1182_v17 = vmul.u32 %v1180_v60, %v1178_v49 }
 0x259   :  { %v1186_v26 = vshll.u32 %v1183_v35, 16  ;;  %v1203_v25 = vshrl.u32 %v1172_v56, 16  ;;  %v1202_v13 = vand.u32 65535, %v1172_v56  ;;  %v1185_v38 = vmul.u32 %v1181_v59, %v1179_v63 }
 0x25a   :  { %v1880_v51 = vmul.f32 %v1879_v11, %v1877_v8  ;;  %v1887_v37 = vmul.f32 %v1886_v23, %v1877_v8  ;;  %v7634_v20 = vsub.s32 %v2002_v34, %v2005_v12  ;;  %v1188_v54 = vshll.u32 %v7627_v58, 16 }
 0x25b   :  { %vm1190_vm8 = vc.u32 %v1182_v17, %v1186_v26  ;;  %v1192_v36 = vadd.s32 %v1186_v26, %v1182_v17  ;;  %v1166_v29 = vsel %vm1164_vm15, %v1154_v39, 2102212464  ;;  %v7642_v34 = vmul.u32 %v1203_v25, %v1178_v49 }
 0x25c   :  { %v1881_v0 = vadd.f32 -0.4999988, %v1880_v51  ;;  %v1888_v2 = vadd.f32 -0.16666654, %v1887_v37  ;;  %vm2007_vm0 = vcmp.lt.s32.totalorder %v7634_v20, 0  ;;  %v2008_v28 = vsub.s32 0, %v7634_v20 }
 0x25d   :  { %v1191_v22 = vsel %vm1190_vm8, 1, %v11120_v46  ;;  %vm1194_vm1 = vc.u32 %v1192_v36, %v1188_v54  ;;  %vm1895_vm6 = vcmp.lt.s32.totalorder %v7629_v14, 2  ;;  %vm1892_vm5 = vweird.f32 %v11186_v1 }
 0x25e   :  { %v1882_v61 = vmul.f32 %v1881_v0, %v1877_v8  ;;  %v1889_v43 = vmul.f32 %v1888_v2, %v1877_v8  ;;  %v2009_v3 = vsel %vm2007_vm0, %v2008_v28, %v7634_v20  ;;  %v1193_v55 = vadd.s32 %v1191_v22, %v1185_v38 }
 0x25f   :  { %vm1896_vm10 = vcmp.eq.s32.totalorder %v7629_v14, 0  ;;  %vm1899_vm7 = vcmp.eq.s32.totalorder %v7629_v14, 2  ;;  %v2010_v60 = vclz %v2009_v3  ;;  %v1195_v39 = vsel %vm1194_vm1, 1, %v11120_v46 }
 0x260   :  { %v1883_v59 = vadd.f32 1.0, %v1882_v61  ;;  %v1890_v5 = vadd.f32 1.0, %v1889_v43  ;;  %v1197_v15 = vadd.s32 %v1195_v39, %v1193_v55  ;;  %v1206_v56 = vmul.u32 %v1202_v13, %v1179_v63  ;;  %v11214_v43 = vld [vmem:[#allocation8_spill] sm:$0xff] }
 0x261   :  { %vm1906_vm15 = vcmp.lt.s32.totalorder %v11193_v30, 0  ;;  %v1998_v8 = vadd.s32 %v7552_v6, %v7550_v48  ;;  %v5477_v11 = vadd.s32 4294967294, %v2010_v60  ;;  %v1165_v23 = vsel %vm1161_vm12, %v1145_v4, %v7572_v47 }
 0x262   :  { %v1167_v12 = vsel %vm1163_vm13, %v7574_v62, %v1166_v29  ;;  %v1891_v17 = vmul.f32 %v1890_v5, %v7598_v52  ;;  %v1900_v26 = vxor.u32 2147483648, %v1883_v59  ;;  %v1187_v51 = vshrl.u32 %v1183_v35, 16 }
 0x263   :  { %v1208_v37 = vshll.u32 %v7642_v34, 16  ;;  %vm5478_vm14 = vcmp.lt.s32.totalorder %v5477_v11, 0  ;;  %v2028_v38 = vsub.s32 4, %v7614_v45  ;;  %v1204_v54 = vmul.u32 %v1202_v13, %v1178_v49 }
 0x264   :  { %v1207_v48 = vmul.u32 %v1203_v25, %v1179_v63  ;;  %v1897_v6 = vxor.u32 2147483648, %v1891_v17  ;;  %v2013_v36 = vsel %vm5478_vm14, 0, %v5477_v11  ;;  %v1198_v0 = vadd.s32 %v1197_v15, %v1187_v51 }
 0x265   :  { %v1210_v2 = vshll.u32 %v1206_v56, 16  ;;  %v1901_v47 = vsel %vm1899_vm7, %v1900_v26, %v1891_v17  ;;  %v2014_v4 = vsub.s32 32, %v2013_v36  ;;  %v2018_v62 = vsub.s32 4294967266, %v2013_v36  ;;  %v11216_v17 = vld [vmem:[#allocation39_spill] sm:$0xff] }
 0x266   :  { %vm1212_vm3 = vc.u32 %v1204_v54, %v1208_v37  ;;  %v1898_v52 = vsel %vm1896_vm10, %v1883_v59, %v1897_v6  ;;  %v2015_v35 = vshll.u32 %v7634_v20, %v2013_v36  ;;  %v1214_v29 = vadd.s32 %v1208_v37, %v1204_v54 }
 0x267   :  { %v1213_v28 = vsel %vm1212_vm3, 1, %v11120_v46  ;;  %v1902_v49 = vsel %vm1895_vm6, %v1898_v52, %v1901_v47  ;;  %v2016_v63 = vshrl.u32 %v1998_v8, %v2014_v4  ;;  %v2019_v25 = vadd.s32 127, %v2018_v62 }
 0x268   :  { %v1215_v13 = vadd.s32 %v1213_v28, %v1207_v48  ;;  %v1903_v22 = vsel %vm1892_vm5, nan, %v1902_v49  ;;  %vm7674_vm11 = vcmp.le.f32.partialorder %v1904_v16, 0.7853982  ;;  %v1168_v20 = vsel %vm1162_vm9, %v1165_v23, %v1167_v12 }
 0x269   :  { %vm1216_vm13 = vc.u32 %v1214_v29, %v1210_v2  ;;  %v1284_v3 = vand.u32 2147483647, %v11214_v43  ;;  %2791 = vmatpush.msrb.mxu2 %v1903_v22  ;;  %v2017_v14 = vor.u32 %v2016_v63, %v2015_v35  ;;  %v2020_v55 = vshll.u32 %v2019_v25, 23  ;;  %v11217_v25 = vld [vmem:[#allocation28_spill] sm:$0xff] }
 0x26a   :  { %v1189_v60 = vshrl.u32 %v7627_v58, 16  ;;  %v1217_v1 = vsel %vm1216_vm13, 1, %v11120_v46  ;;  %v2029_v16 = vsel %vm1906_vm15, %v2028_v38, %v7614_v45  ;;  %v1209_v39 = vshrl.u32 %v7642_v34, 16 }
 0x26b   :  { %v1211_v59 = vshrl.u32 %v1206_v56, 16  ;;  %v1219_v5 = vadd.s32 %v1217_v1, %v1215_v13  ;;  %vm544_vm12 = vcmp.lt.s32.totalorder %v11215_v53, 4  ;;  %v2021_v15 = vor.u32 4788187, %v2020_v55 }
 0x26c   :  { %v1199_v8 = vadd.s32 %v1198_v0, %v1189_v60  ;;  %v1218_v11 = vadd.s32 %v1214_v29, %v1210_v2  ;;  %v1291_v23 = vand.u32 8388607, %v1284_v3  ;;  %v2024_v12 = vcvt.s32.f32 %v2017_v14 }
 0x26d   :  { %v1220_v58 = vadd.s32 %v1219_v5, %v1209_v39  ;;  %v1301_v26 = vshll.u32 %v11119_v27, %v11216_v17  ;;  %v1302_v45 = vshrl.u32 %v11121_v7, %v11196_v9  ;;  %v2022_v51 = vand.u32 2147483647, %v2021_v15 }
 0x26e   :  { %v1292_v34 = vor.u32 8388608, %v1291_v23  ;;  %v1304_v56 = vshll.u32 %v11121_v7, %v11216_v17  ;;  %v1305_v37 = vshrl.u32 %v11122_v21, %v11196_v9  ;;  %v1307_v48 = vshll.u32 %v11122_v21, %v11216_v17  ;;  %v11219_v23 = vld [vmem:[#allocation34_spill] sm:$0xff] }
 0x26f   :  { %v1221_v38 = vadd.s32 %v1220_v58, %v1211_v59  ;;  %v7698_v54 = vor.u32 %v1302_v45, %v1301_v26  ;;  %v1308_v6 = vshrl.u32 %v11107_v10, %v11196_v9  ;;  %v2025_v36 = vmul.f32 %v2024_v12, %v2022_v51 }
 0x270   :  { %v1222_v0 = vmul.u32 %v7605_v33, %v1168_v20  ;;  %vm1224_vm9 = vc.u32 %v1199_v8, %v1218_v11  ;;  %v7705_v2 = vor.u32 %v1305_v37, %v1304_v56  ;;  %vm1316_vm8 = vcmp.lt.s32.totalorder %v11211_v50, 1 }
 0x271   :  { %v1225_v47 = vadd.s32 1, %v1221_v38  ;;  %v1309_v4 = vor.u32 %v1308_v6, %v1307_v48  ;;  %vm1318_vm0 = vcmp.lt.s32.totalorder %v11211_v50, 3  ;;  %v2026_v62 = vxor.u32 2147483648, %v2025_v36 }
 0x272   :  { %v2031_v52 = vsel %vm7674_vm11, 0, %v2029_v16  ;;  %v1324_v35 = vsel %vm1316_vm8, %v7698_v54, %v7705_v2  ;;  %v1330_v33 = vsel %vm1318_vm0, %v7487_v42, %v7625_v44  ;;  %v7725_v63 = vshll.u32 %v1292_v34, 8  ;;  %v11218_v42 = vld [vmem:[#allocation37_spill] sm:$0xff] }
 0x273   :  { %v1226_v28 = vsel %vm1224_vm9, %v1225_v47, %v1221_v38  ;;  %v1326_v29 = vsel %vm1318_vm0, %v1309_v4, %v7621_v19  ;;  %v1328_v49 = vsel %vm1316_vm8, %v7705_v2, %v1309_v4  ;;  %v7729_v13 = vshll.u32 %v11108_v18, %v11217_v25 }
 0x274   :  { %v2027_v22 = vsel %vm1906_vm15, %v2026_v62, %v2025_v36  ;;  %v1227_v20 = vadd.s32 %v1226_v28, %v1222_v0  ;;  %vm1317_vm1 = vcmp.lt.s32.totalorder %v11211_v50, 2  ;;  %v7737_v19 = vsel %vm544_vm12, %v11218_v42, 920167782 }
 0x275   :  { %v7742_v44 = vsel %vm7674_vm11, %v11193_v30, %v2027_v22  ;;  %v2048_v14 = vadd.s32 3, %v2031_v52  ;;  %v1331_v55 = vsel %vm1317_vm1, %v1328_v49, %v1330_v33  ;;  %v7750_v16 = vsel %vm1317_vm1, %v1324_v35, %v1326_v29 }
 0x276   :  { %v2032_v60 = vmul.f32 %v7742_v44, %v7742_v44  ;;  %v1228_v1 = vadd.s32 536870912, %v1227_v20  ;;  %v1335_v39 = vand.u32 65535, %v1331_v55  ;;  %v7757_v61 = vsel %vm544_vm12, %v540_v31, 1326507024 }
 0x277   :  { %v1333_v59 = vand.u32 65535, %v7725_v63  ;;  %v1334_v5 = vshrl.u32 %v7725_v63, 16  ;;  %v1336_v15 = vshrl.u32 %v1331_v55, 16  ;;  %v7763_v12 = vshrl.u32 %v11108_v18, %v11219_v23 }
 0x278   :  { %v2033_v58 = vmul.f32 -0.001358992, %v2032_v60  ;;  %v2040_v17 = vmul.f32 -0.00019511016, %v2032_v60  ;;  %v7765_v26 = vshrl.u32 %v1228_v1, 30  ;;  %v7767_v45 = vand.u32 3, %v2048_v14 }
 0x279   :  { %v1338_v24 = vmul.u32 %v1336_v15, %v1333_v59  ;;  %v1339_v40 = vmul.u32 %v1335_v39, %v1334_v5  ;;  %v1358_v31 = vshrl.u32 %v7750_v16, 16  ;;  %v7772_v51 = vshrl.u32 %v11162_v32, %v11219_v23 }
 0x27a   :  { %v2034_v34 = vadd.f32 0.041655596, %v2033_v58  ;;  %v2041_v56 = vadd.f32 0.008332121, %v2040_v17  ;;  %v1230_v37 = vshll.u32 %v7765_v26, 30  ;;  %v7775_v38 = vadd.s32 %v1218_v11, %v1199_v8 }
 0x27b   :  { %v1337_v48 = vmul.u32 %v1335_v39, %v1333_v59  ;;  %v1341_v6 = vshll.u32 %v1338_v24, 16  ;;  %v1357_v36 = vand.u32 65535, %v7750_v16  ;;  %v1340_v52 = vmul.u32 %v1336_v15, %v1334_v5 }
 0x27c   :  { %v2035_v0 = vmul.f32 %v2034_v34, %v2032_v60  ;;  %v2042_v47 = vmul.f32 %v2041_v56, %v2032_v60  ;;  %v7778_v62 = vsub.s32 %v1227_v20, %v1230_v37  ;;  %vm2054_vm6 = vcmp.eq.s32.totalorder %v7767_v45, 2 }
 0x27d   :  { %v1343_v35 = vshll.u32 %v1339_v40, 16  ;;  %vm1345_vm5 = vc.u32 %v1337_v48, %v1341_v6  ;;  %v1347_v33 = vadd.s32 %v1341_v6, %v1337_v48  ;;  %v7781_v28 = vmul.u32 %v1358_v31, %v1333_v59 }
 0x27e   :  { %v2036_v29 = vadd.f32 -0.4999988, %v2035_v0  ;;  %v2043_v49 = vadd.f32 -0.16666654, %v2042_v47  ;;  %vm1232_vm10 = vcmp.lt.s32.totalorder %v7778_v62, 0  ;;  %v1233_v8 = vsub.s32 0, %v7778_v62 }
 0x27f   :  { %vm2051_vm7 = vcmp.eq.s32.totalorder %v7767_v45, 0  ;;  %v1300_v11 = vshrl.u32 %v11119_v27, %v11196_v9  ;;  %v1321_v22 = vsel %vm1319_vm4, %v1309_v4, 2102212464  ;;  %v1346_v20 = vsel %vm1345_vm5, 1, %v11120_v46 }
 0x280   :  { %vm1349_vm15 = vc.u32 %v1347_v33, %v1343_v35  ;;  %v2037_v14 = vmul.f32 %v2036_v29, %v2032_v60  ;;  %v2044_v55 = vmul.f32 %v2043_v49, %v2032_v60  ;;  %vm2050_vm14 = vcmp.lt.s32.totalorder %v7767_v45, 2  ;;  %v11225_v45 = vld [vmem:[#allocation27_spill] sm:$0xff] }
 0x281   :  { %v1234_v1 = vsel %vm1232_vm10, %v1233_v8, %v7778_v62  ;;  %v1348_v16 = vadd.s32 %v1346_v20, %v1340_v52  ;;  %vm2047_vm3 = vweird.f32 %v11193_v30  ;;  %v1342_v15 = vshrl.u32 %v1338_v24, 16 }
 0x282   :  { %v1235_v39 = vclz %v1234_v1  ;;  %v1350_v58 = vsel %vm1349_vm15, 1, %v11120_v46  ;;  %v1361_v9 = vmul.u32 %v1357_v36, %v1334_v5  ;;  %v2038_v17 = vadd.f32 1.0, %v2037_v14 }
 0x283   :  { %v2045_v34 = vadd.f32 1.0, %v2044_v55  ;;  %v1352_v4 = vadd.s32 %v1350_v58, %v1348_v16  ;;  %v1363_v56 = vshll.u32 %v7781_v28, 16  ;;  %vm1131_vm4 = vcmp.lt.s32.totalorder %v11205_v57, 0 }
 0x284   :  { %v5462_v60 = vadd.s32 4294967294, %v1235_v39  ;;  %v1320_v37 = vsel %vm1316_vm8, %v1300_v11, %v7698_v54  ;;  %v1322_v48 = vsel %vm1318_vm0, %v7705_v2, %v1321_v22  ;;  %v1359_v24 = vmul.u32 %v1357_v36, %v1333_v59 }
 0x285   :  { %v2046_v6 = vmul.f32 %v2045_v34, %v7742_v44  ;;  %v2055_v0 = vxor.u32 2147483648, %v2038_v17  ;;  %v1253_v47 = vsub.s32 4, %v7765_v26  ;;  %v1353_v52 = vadd.s32 %v1352_v4, %v1342_v15 }
 0x286   :  { %vm5463_vm11 = vcmp.lt.s32.totalorder %v5462_v60, 0  ;;  %v1344_v35 = vshrl.u32 %v1339_v40, 16  ;;  %v1362_v33 = vmul.u32 %v1358_v31, %v1334_v5  ;;  %vm1367_vm13 = vc.u32 %v1359_v24, %v1363_v56  ;;  %v11220_v40 = vld [vmem:[#allocation4_spill] sm:$0xff] }
 0x287   :  { %v2052_v29 = vxor.u32 2147483648, %v2046_v6  ;;  %v2056_v49 = vsel %vm2054_vm6, %v2055_v0, %v2046_v6  ;;  %v1238_v54 = vsel %vm5463_vm11, 0, %v5462_v60  ;;  %v1365_v8 = vshll.u32 %v1361_v9, 16  ;;  %v11223_v60 = vld [vmem:[#allocation19_spill] sm:$0xff] }
 0x288   :  { %v1239_v11 = vsub.s32 32, %v1238_v54  ;;  %v1243_v20 = vsub.s32 4294967266, %v1238_v54  ;;  %v7807_v2 = vadd.s32 %v1353_v52, %v1344_v35  ;;  %v1368_v44 = vsel %vm1367_vm13, 1, %v11120_v46 }
 0x289   :  { %v2053_v59 = vsel %vm2051_vm7, %v2038_v17, %v2052_v29  ;;  %v1369_v36 = vadd.s32 %v1363_v56, %v1359_v24  ;;  %v1370_v22 = vadd.s32 %v1368_v44, %v1362_v33  ;;  %v509_v5 = vand.u32 2147483647, %v11220_v40  ;;  %v11224_v24 = vld [vmem:[#allocation26_spill] sm:$0xff] }
 0x28a   :  { %v2057_v31 = vsel %vm2050_vm14, %v2053_v59, %v2056_v49  ;;  %v1240_v14 = vshll.u32 %v7778_v62, %v1238_v54  ;;  %v1241_v55 = vshrl.u32 %v7775_v38, %v1239_v11  ;;  %v1244_v1 = vadd.s32 127, %v1243_v20 }
 0x28b   :  { %v2058_v16 = vsel %vm2047_vm3, nan, %v2057_v31  ;;  %v1323_v39 = vsel %vm1317_vm1, %v1320_v37, %v1322_v48  ;;  %vm1371_vm9 = vc.u32 %v1369_v36, %v1365_v8  ;;  %v7821_v15 = vadd.s32 %v1369_v36, %v1365_v8 }
 0x28c   :  { %2820 = vmatpush.msrb.mxu3 %v2058_v16  ;;  %vm7825_vm8 = vcmp.le.f32.partialorder %v1129_v41, 0.7853982  ;;  %v1242_v62 = vor.u32 %v1241_v55, %v1240_v14  ;;  %v1245_v58 = vshll.u32 %v1244_v1, 23  ;;  %v1372_v38 = vsel %vm1371_vm9, 1, %v11120_v46 }
 0x28d   :  { %v516_v30 = vand.u32 8388607, %v509_v5  ;;  %v1254_v50 = vsel %vm1131_vm4, %v1253_v47, %v7765_v26  ;;  %v1364_v17 = vshrl.u32 %v7781_v28, 16  ;;  %v1366_v34 = vshrl.u32 %v1361_v9, 16 }
 0x28e   :  { %v1374_v4 = vadd.s32 %v1372_v38, %v1370_v22  ;;  %v1246_v56 = vor.u32 4788187, %v1245_v58  ;;  %vm1379_vm0 = vc.u32 %v7807_v2, %v7821_v15  ;;  %v526_v37 = vshll.u32 %v11119_v27, %v11223_v60 }
 0x28f   :  { %v517_v41 = vor.u32 8388608, %v516_v30  ;;  %v527_v6 = vshrl.u32 %v11121_v7, %v11224_v24  ;;  %v529_v0 = vshll.u32 %v11121_v7, %v11223_v60  ;;  %v530_v26 = vshrl.u32 %v11122_v21, %v11224_v24 }
 0x290   :  { %v1375_v48 = vadd.s32 %v1374_v4, %v1364_v17  ;;  %v1247_v28 = vand.u32 2147483647, %v1246_v56  ;;  %v1249_v9 = vcvt.s32.f32 %v1242_v62  ;;  %v532_v47 = vshll.u32 %v11122_v21, %v11223_v60 }
 0x291   :  { %v533_v52 = vshrl.u32 %v11107_v10, %v11224_v24  ;;  %v7850_v33 = vor.u32 %v527_v6, %v526_v37  ;;  %v7852_v29 = vor.u32 %v530_v26, %v529_v0  ;;  %vm541_vm1 = vcmp.lt.s32.totalorder %v11215_v53, 1 }
 0x292   :  { %v1376_v35 = vadd.s32 %v1375_v48, %v1366_v34  ;;  %v1250_v49 = vmul.f32 %v1249_v9, %v1247_v28  ;;  %vm543_vm6 = vcmp.lt.s32.totalorder %v11215_v53, 3  ;;  %v7856_v8 = vshll.u32 %v517_v41, 8 }
 0x293   :  { %v534_v54 = vor.u32 %v533_v52, %v532_v47  ;;  %v1377_v11 = vmul.u32 %v7725_v63, %v1323_v39  ;;  %v549_v44 = vsel %vm541_vm1, %v7850_v33, %v7852_v29  ;;  %v555_v59 = vsel %vm543_vm6, %v11218_v42, %v7757_v61 }
 0x294   :  { %v1380_v20 = vadd.s32 1, %v1376_v35  ;;  %v1251_v36 = vxor.u32 2147483648, %v1250_v49  ;;  %vm542_vm5 = vcmp.lt.s32.totalorder %v11215_v53, 2  ;;  %v695_v31 = vor.u32 %v7772_v51, %v7729_v13 }
 0x295   :  { %v551_v22 = vsel %vm543_vm6, %v534_v54, %v7737_v19  ;;  %v553_v63 = vsel %vm541_vm1, %v7852_v29, %v534_v54  ;;  %v1256_v14 = vsel %vm7825_vm8, 0, %v1254_v50  ;;  %v558_v13 = vand.u32 65535, %v7856_v8 }
 0x296   :  { %v1381_v42 = vsel %vm1379_vm0, %v1380_v20, %v1376_v35  ;;  %v556_v61 = vsel %vm542_vm5, %v553_v63, %v555_v59  ;;  %v1252_v19 = vsel %vm1131_vm4, %v1251_v36, %v1250_v49  ;;  %v7887_v1 = vsel %vm542_vm5, %v549_v44, %v551_v22 }
 0x297   :  { %v1382_v55 = vadd.s32 %v1381_v42, %v1377_v11  ;;  %v7893_v51 = vsel %vm7825_vm8, %v11205_v57, %v1252_v19  ;;  %v559_v16 = vshrl.u32 %v7856_v8, 16  ;;  %v560_v39 = vand.u32 65535, %v556_v61 }
 0x298   :  { %v561_v62 = vshrl.u32 %v556_v61, 16  ;;  %v1257_v58 = vmul.f32 %v7893_v51, %v7893_v51  ;;  %v1273_v38 = vadd.s32 3, %v1256_v14  ;;  %v690_v50 = vshll.u32 %v11107_v10, %v11217_v25 }
 0x299   :  { %v1383_v30 = vadd.s32 536870912, %v1382_v55  ;;  %v7900_v34 = vmul.u32 %v560_v39, %v559_v16  ;;  %v583_v4 = vshrl.u32 %v7887_v1, 16  ;;  %vm699_vm10 = vcmp.lt.s32.totalorder %v11225_v45, 4 }
 0x29a   :  { %v563_v17 = vmul.u32 %v561_v62, %v558_v13  ;;  %v1258_v56 = vmul.f32 -0.001358992, %v1257_v58  ;;  %v1265_v41 = vmul.f32 -0.00019511016, %v1257_v58  ;;  %v7907_v37 = vor.u32 %v7763_v12, %v690_v50 }
 0x29b   :  { %v7904_v60 = vshrl.u32 %v1383_v30, 30  ;;  %v7911_v48 = vsel %vm699_vm10, %v695_v31, 1326507024  ;;  %v562_v6 = vmul.u32 %v560_v39, %v558_v13  ;;  %v7913_v9 = vand.u32 3, %v1273_v38 }
 0x29c   :  { %v566_v0 = vshll.u32 %v563_v17, 16  ;;  %v1259_v26 = vadd.f32 0.041655596, %v1258_v56  ;;  %v1266_v28 = vadd.f32 0.008332121, %v1265_v41  ;;  %v568_v52 = vshll.u32 %v7900_v34, 16 }
 0x29d   :  { %v1385_v47 = vshll.u32 %v7904_v60, 30  ;;  %v7917_v49 = vmul.u32 %v583_v4, %v558_v13  ;;  %v582_v44 = vand.u32 65535, %v7887_v1  ;;  %v525_v59 = vshrl.u32 %v11119_v27, %v11224_v24 }
 0x29e   :  { %vm570_vm7 = vc.u32 %v562_v6, %v566_v0  ;;  %v572_v35 = vadd.s32 %v566_v0, %v562_v6  ;;  %v1260_v12 = vmul.f32 %v1259_v26, %v1257_v58  ;;  %v1267_v11 = vmul.f32 %v1266_v28, %v1257_v58 }
 0x29f   :  { %v7919_v20 = vsub.s32 %v1382_v55, %v1385_v47  ;;  %v565_v36 = vmul.u32 %v561_v62, %v559_v16  ;;  %v571_v22 = vsel %vm570_vm7, 1, %v11120_v46  ;;  %vm1279_vm14 = vcmp.eq.s32.totalorder %v7913_v9, 2 }
 0x2a0   :  { %vm574_vm15 = vc.u32 %v572_v35, %v568_v52  ;;  %v1261_v63 = vadd.f32 -0.4999988, %v1260_v12  ;;  %v1268_v31 = vadd.f32 -0.16666654, %v1267_v11  ;;  %vm1276_vm4 = vcmp.eq.s32.totalorder %v7913_v9, 0 }
 0x2a1   :  { %vm1387_vm3 = vcmp.lt.s32.totalorder %v7919_v20, 0  ;;  %v1388_v14 = vsub.s32 0, %v7919_v20  ;;  %v546_v42 = vsel %vm544_vm12, %v534_v54, 2102212464  ;;  %v573_v61 = vadd.s32 %v571_v22, %v565_v36 }
 0x2a2   :  { %v575_v24 = vsel %vm574_vm15, 1, %v11120_v46  ;;  %v588_v19 = vshll.u32 %v7917_v49, 16  ;;  %v1262_v55 = vmul.f32 %v1261_v63, %v1257_v58  ;;  %v1269_v1 = vmul.f32 %v1268_v31, %v1257_v58 }
 0x2a3   :  { %vm1275_vm11 = vcmp.lt.s32.totalorder %v7913_v9, 2  ;;  %v1389_v39 = vsel %vm1387_vm3, %v1388_v14, %v7919_v20  ;;  %v584_v62 = vmul.u32 %v582_v44, %v558_v13  ;;  %vm1272_vm13 = vweird.f32 %v11205_v57 }
 0x2a4   :  { %v1378_v38 = vadd.s32 %v7821_v15, %v7807_v2  ;;  %v1390_v30 = vclz %v1389_v39  ;;  %v577_v50 = vadd.s32 %v575_v24, %v573_v61  ;;  %v586_v54 = vmul.u32 %v582_v44, %v559_v16  ;;  %v11226_v61 = vld [vmem:[#allocation5_spill] sm:$0xff] }
 0x2a5   :  { %v1263_v56 = vadd.f32 1.0, %v1262_v55  ;;  %v1270_v41 = vadd.f32 1.0, %v1269_v1  ;;  %v567_v6 = vshrl.u32 %v563_v17, 16  ;;  %vm592_vm12 = vc.u32 %v584_v62, %v588_v19 }
 0x2a6   :  { %v5465_v0 = vadd.s32 4294967294, %v1390_v30  ;;  %v545_v58 = vsel %vm541_vm1, %v525_v59, %v7850_v33  ;;  %v547_v13 = vsel %vm543_vm6, %v7852_v29, %v546_v42  ;;  %v587_v26 = vmul.u32 %v583_v4, %v559_v16 }
 0x2a7   :  { %v1271_v28 = vmul.f32 %v1270_v41, %v7893_v51  ;;  %v1280_v2 = vxor.u32 2147483648, %v1263_v56  ;;  %v578_v15 = vadd.s32 %v577_v50, %v567_v6  ;;  %v593_v47 = vsel %vm592_vm12, 1, %v11120_v46 }
 0x2a8   :  { %vm5466_vm9 = vcmp.lt.s32.totalorder %v5465_v0, 0  ;;  %v590_v52 = vshll.u32 %v586_v54, 16  ;;  %v594_v17 = vadd.s32 %v588_v19, %v584_v62  ;;  %v595_v35 = vadd.s32 %v593_v47, %v587_v26 }
 0x2a9   :  { %v1277_v12 = vxor.u32 2147483648, %v1271_v28  ;;  %v1393_v11 = vsel %vm5466_vm9, 0, %v5465_v0  ;;  %v569_v44 = vshrl.u32 %v7900_v34, 16  ;;  %v589_v33 = vshrl.u32 %v7917_v49, 16 }
 0x2aa   :  { %v1281_v29 = vsel %vm1279_vm14, %v1280_v2, %v1271_v28  ;;  %v1394_v16 = vsub.s32 32, %v1393_v11  ;;  %v1398_v4 = vsub.s32 4294967266, %v1393_v11  ;;  %vm596_vm8 = vc.u32 %v594_v17, %v590_v52 }
 0x2ab   :  { %v1278_v51 = vsel %vm1276_vm4, %v1263_v56, %v1277_v12  ;;  %v1395_v59 = vshll.u32 %v7919_v20, %v1393_v11  ;;  %v7953_v36 = vadd.s32 %v578_v15, %v569_v44  ;;  %v597_v22 = vsel %vm596_vm8, 1, %v11120_v46 }
 0x2ac   :  { %v1282_v34 = vsel %vm1275_vm11, %v1278_v51, %v1281_v29  ;;  %v1396_v63 = vshrl.u32 %v1378_v38, %v1394_v16  ;;  %v1399_v49 = vadd.s32 127, %v1398_v4  ;;  %v599_v31 = vadd.s32 %v597_v22, %v595_v35 }
 0x2ad   :  { %v1283_v14 = vsel %vm1272_vm13, nan, %v1282_v34  ;;  %vm1286_vm0 = vcmp.lt.s32.totalorder %v11214_v43, 0  ;;  %v591_v42 = vshrl.u32 %v586_v54, 16  ;;  %v664_v24 = vand.u32 2147483647, %v11226_v61 }
 0x2ae   :  { %2792 = vmatpush.msrb.mxu2 %v1283_v14  ;;  %v1397_v20 = vor.u32 %v1396_v63, %v1395_v59  ;;  %v1400_v19 = vshll.u32 %v1399_v49, 23  ;;  %v7962_v55 = vadd.s32 %v594_v17, %v590_v52  ;;  %v600_v1 = vadd.s32 %v599_v31, %v589_v33 }
 0x2af   :  { %vm7966_vm1 = vcmp.le.f32.partialorder %v1284_v3, 0.7853982  ;;  %v1408_v57 = vsub.s32 4, %v7904_v60  ;;  %v548_v39 = vsel %vm542_vm5, %v545_v58, %v547_v13  ;;  %v671_v62 = vand.u32 8388607, %v664_v24 }
 0x2b0   :  { %v1401_v38 = vor.u32 4788187, %v1400_v19  ;;  %v1404_v30 = vcvt.s32.f32 %v1397_v20  ;;  %v601_v50 = vadd.s32 %v600_v1, %v591_v42  ;;  %vm604_vm6 = vc.u32 %v7953_v36, %v7962_v55 }
 0x2b1   :  { %v672_v54 = vor.u32 8388608, %v671_v62  ;;  %v682_v3 = vshrl.u32 %v11121_v7, %v11219_v23  ;;  %v684_v56 = vshll.u32 %v11121_v7, %v11217_v25  ;;  %v685_v53 = vshrl.u32 %v11122_v21, %v11219_v23 }
 0x2b2   :  { %v1402_v41 = vand.u32 2147483647, %v1401_v38  ;;  %v605_v6 = vadd.s32 1, %v601_v50  ;;  %v687_v0 = vshll.u32 %v11122_v21, %v11217_v25  ;;  %v688_v58 = vshrl.u32 %v11107_v10, %v11219_v23 }
 0x2b3   :  { %v1409_v13 = vsel %vm1286_vm0, %v1408_v57, %v7904_v60  ;;  %v602_v26 = vmul.u32 %v7856_v8, %v548_v39  ;;  %v681_v28 = vshll.u32 %v11119_v27, %v11217_v25  ;;  %v7993_v2 = vor.u32 %v685_v53, %v684_v56 }
 0x2b4   :  { %v1405_v15 = vmul.f32 %v1404_v30, %v1402_v41  ;;  %v606_v47 = vsel %vm604_vm6, %v605_v6, %v601_v50  ;;  %v7995_v52 = vor.u32 %v688_v58, %v687_v0  ;;  %vm698_vm5 = vcmp.lt.s32.totalorder %v11225_v45, 3 }
 0x2b5   :  { %v607_v17 = vadd.s32 %v606_v47, %v602_v26  ;;  %vm696_vm7 = vcmp.lt.s32.totalorder %v11225_v45, 1  ;;  %v710_v60 = vsel %vm698_vm5, %v7907_v37, %v7911_v48  ;;  %v8003_v8 = vshll.u32 %v672_v54, 8 }
 0x2b6   :  { %v1406_v35 = vxor.u32 2147483648, %v1405_v15  ;;  %v8005_v25 = vor.u32 %v682_v3, %v681_v28  ;;  %vm697_vm15 = vcmp.lt.s32.totalorder %v11225_v45, 2  ;;  %v708_v12 = vsel %vm696_vm7, %v7993_v2, %v7995_v52 }
 0x2b7   :  { %v1411_v11 = vsel %vm7966_vm1, 0, %v1409_v13  ;;  %v608_v44 = vadd.s32 536870912, %v607_v17  ;;  %v711_v33 = vsel %vm697_vm15, %v708_v12, %v710_v60  ;;  %v705_v48 = vsel %vm699_vm10, %v7907_v37, 920167782 }
 0x2b8   :  { %v1407_v29 = vsel %vm1286_vm0, %v1406_v35, %v1405_v15  ;;  %v713_v16 = vand.u32 65535, %v8003_v8  ;;  %v715_v59 = vand.u32 65535, %v711_v33  ;;  %v716_v22 = vshrl.u32 %v711_v33, 16 }
 0x2b9   :  { %v1410_v4 = vsel %vm7966_vm1, %v11214_v43, %v1407_v29  ;;  %v8025_v51 = vshrl.u32 %v608_v44, 30  ;;  %v1428_v63 = vadd.s32 3, %v1411_v11  ;;  %v704_v37 = vsel %vm696_vm7, %v8005_v25, %v7993_v2 }
 0x2ba   :  { %v1412_v34 = vmul.f32 %v1410_v4, %v1410_v4  ;;  %v706_v31 = vsel %vm698_vm5, %v7995_v52, %v705_v48  ;;  %v714_v14 = vshrl.u32 %v8003_v8, 16  ;;  %v8036_v42 = vmul.u32 %v716_v22, %v713_v16 }
 0x2bb   :  { %v610_v49 = vshll.u32 %v8025_v51, 30  ;;  %v707_v38 = vsel %vm697_vm15, %v704_v37, %v706_v31  ;;  %v717_v30 = vmul.u32 %v715_v59, %v713_v16  ;;  %v1429_v50 = vand.u32 3, %v1428_v63 }
 0x2bc   :  { %v1413_v20 = vmul.f32 -0.001358992, %v1412_v34  ;;  %v1420_v19 = vmul.f32 -0.00019511016, %v1412_v34  ;;  %v8040_v9 = vmul.u32 %v715_v59, %v714_v14  ;;  %v721_v57 = vshll.u32 %v8036_v42, 16 }
 0x2bd   :  { %v8038_v1 = vsub.s32 %v607_v17, %v610_v49  ;;  %v738_v58 = vshrl.u32 %v707_v38, 16  ;;  %v720_v15 = vmul.u32 %v716_v22, %v714_v14  ;;  %v737_v47 = vand.u32 65535, %v707_v38 }
 0x2be   :  { %v1414_v39 = vadd.f32 0.041655596, %v1413_v20  ;;  %v1421_v62 = vadd.f32 0.008332121, %v1420_v19  ;;  %vm725_vm3 = vc.u32 %v717_v30, %v721_v57  ;;  %v727_v53 = vadd.s32 %v721_v57, %v717_v30 }
 0x2bf   :  { %vm612_vm14 = vcmp.lt.s32.totalorder %v8038_v1, 0  ;;  %v613_v54 = vsub.s32 0, %v8038_v1  ;;  %v723_v6 = vshll.u32 %v8040_v9, 16  ;;  %v726_v0 = vsel %vm725_vm3, 1, %v11120_v46 }
 0x2c0   :  { %v1415_v3 = vmul.f32 %v1414_v39, %v1412_v34  ;;  %v1422_v56 = vmul.f32 %v1421_v62, %v1412_v34  ;;  %vm1430_vm11 = vcmp.lt.s32.totalorder %v1429_v50, 2  ;;  %v728_v12 = vadd.s32 %v726_v0, %v720_v15 }
 0x2c1   :  { %v614_v41 = vsel %vm612_vm14, %v613_v54, %v8038_v1  ;;  %vm729_vm4 = vc.u32 %v727_v53, %v723_v6  ;;  %vm1427_vm13 = vweird.f32 %v11214_v43  ;;  %vm1431_vm12 = vcmp.eq.s32.totalorder %v1429_v50, 0 }
 0x2c2   :  { %v1416_v13 = vadd.f32 -0.4999988, %v1415_v3  ;;  %v1423_v26 = vadd.f32 -0.16666654, %v1422_v56  ;;  %v615_v28 = vclz %v614_v41  ;;  %vm1434_vm9 = vcmp.eq.s32.totalorder %v1429_v50, 2 }
 0x2c3   :  { %v730_v11 = vsel %vm729_vm4, 1, %v11120_v46  ;;  %v740_v44 = vmul.u32 %v738_v58, %v713_v16  ;;  %v603_v29 = vadd.s32 %v7962_v55, %v7953_v36  ;;  %v739_v22 = vmul.u32 %v737_v47, %v713_v16 }
 0x2c4   :  { %v1417_v17 = vmul.f32 %v1416_v13, %v1412_v34  ;;  %v1424_v60 = vmul.f32 %v1423_v26, %v1412_v34  ;;  %v5450_v35 = vadd.s32 4294967294, %v615_v28  ;;  %v741_v63 = vmul.u32 %v737_v47, %v714_v14 }
 0x2c5   :  { %v743_v34 = vshll.u32 %v740_v44, 16  ;;  %v732_v20 = vadd.s32 %v730_v11, %v728_v12  ;;  %v701_v57 = vsel %vm699_vm10, %v7995_v52, 2102212464  ;;  %v722_v39 = vshrl.u32 %v8036_v42, 16 }
 0x2c6   :  { %v1418_v33 = vadd.f32 1.0, %v1417_v17  ;;  %v1425_v48 = vadd.f32 1.0, %v1424_v60  ;;  %vm5451_vm8 = vcmp.lt.s32.totalorder %v5450_v35, 0  ;;  %v742_v62 = vmul.u32 %v738_v58, %v714_v14 }
 0x2c7   :  { %v618_v59 = vsel %vm5451_vm8, 0, %v5450_v35  ;;  %vm747_vm0 = vc.u32 %v739_v22, %v743_v34  ;;  %v745_v30 = vshll.u32 %v741_v63, 16  ;;  %v749_v54 = vadd.s32 %v743_v34, %v739_v22 }
 0x2c8   :  { %v1426_v37 = vmul.f32 %v1425_v48, %v1410_v4  ;;  %v1435_v49 = vxor.u32 2147483648, %v1418_v33  ;;  %v619_v31 = vsub.s32 32, %v618_v59  ;;  %v623_v19 = vsub.s32 4294967266, %v618_v59 }
 0x2c9   :  { %v620_v36 = vshll.u32 %v8038_v1, %v618_v59  ;;  %v748_v4 = vsel %vm747_vm0, 1, %v11120_v46  ;;  %v733_v53 = vadd.s32 %v732_v20, %v722_v39  ;;  %vm751_vm10 = vc.u32 %v749_v54, %v745_v30 }
 0x2ca   :  { %v1432_v38 = vxor.u32 2147483648, %v1426_v37  ;;  %v621_v55 = vshrl.u32 %v603_v29, %v619_v31  ;;  %v624_v16 = vadd.s32 127, %v623_v19  ;;  %v1436_v56 = vsel %vm1434_vm9, %v1435_v49, %v1426_v37 }
 0x2cb   :  { %v750_v41 = vadd.s32 %v748_v4, %v742_v62  ;;  %v680_v6 = vshrl.u32 %v11119_v27, %v11219_v23  ;;  %v724_v0 = vshrl.u32 %v8040_v9, 16  ;;  %v752_v58 = vsel %vm751_vm10, 1, %v11120_v46 }
 0x2cc   :  { %v1433_v3 = vsel %vm1431_vm12, %v1418_v33, %v1432_v38  ;;  %v622_v42 = vor.u32 %v621_v55, %v620_v36  ;;  %v625_v14 = vshll.u32 %v624_v16, 23  ;;  %v744_v26 = vshrl.u32 %v740_v44, 16 }
 0x2cd   :  { %v1437_v52 = vsel %vm1430_vm11, %v1433_v3, %v1436_v56  ;;  %v754_v28 = vadd.s32 %v752_v58, %v750_v41  ;;  %v700_v50 = vsel %vm696_vm7, %v680_v6, %v8005_v25  ;;  %v702_v43 = vsel %vm698_vm5, %v7993_v2, %v701_v57 }
 0x2ce   :  { %v1438_v1 = vsel %vm1427_vm13, nan, %v1437_v52  ;;  %v626_v13 = vor.u32 4788187, %v625_v14  ;;  %v734_v15 = vadd.s32 %v733_v53, %v724_v0  ;;  %v629_v17 = vcvt.s32.f32 %v622_v42 }
 0x2cf   :  { %2821 = vmatpush.msrb.mxu3 %v1438_v1  ;;  %v746_v23 = vshrl.u32 %v741_v63, 16  ;;  %v755_v60 = vadd.s32 %v754_v28, %v744_v26  ;;  %v753_v9 = vadd.s32 %v749_v54, %v745_v30  ;;  %v703_v12 = vsel %vm697_vm15, %v700_v50, %v702_v43 }
 0x2d0   :  { %v627_v47 = vand.u32 2147483647, %v626_v13  ;;  %vm511_vm6 = vcmp.lt.s32.totalorder %v11220_v40, 0  ;;  %v757_v25 = vmul.u32 %v8003_v8, %v703_v12  ;;  %vm8081_vm5 = vcmp.le.f32.partialorder %v509_v5, 0.7853982  ;;  %v5569_v12 = vld [vmem:[%s10780_s3] sm:$0xff] }
 0x2d1   :  { %v756_v11 = vadd.s32 %v755_v60, %v746_v23  ;;  %vm759_vm1 = vc.u32 %v734_v15, %v753_v9  ;;  %v633_v29 = vsub.s32 4, %v8025_v51  ;;  %v758_v6 = vadd.s32 %v753_v9, %v734_v15  ;;  %v2680_v9 = vld [vmem:[%s10780_s3 + $0x8] sm:$0xff] }
 0x2d2   :  { %v630_v35 = vmul.f32 %v629_v17, %v627_v47  ;;  %vm652_vm11 = vweird.f32 %v11220_v40  ;;  %5492 = vmatmul.msk.f32.gmra.mxu0 %vm10936_vm2, %v2680_v9  ;;  %5496 = vmatmul.msk.f32.gmra.mxu1 %vm10936_vm2, %v2680_v9  ;;  %vm666_vm13 = vcmp.lt.s32.totalorder %v11226_v61, 0  ;;  %vm8109_vm12 = vcmp.le.f32.partialorder %v664_v24, 0.7853982 }
 0x2d3   :  { %v760_v33 = vadd.s32 1, %v756_v11  ;;  %v634_v37 = vsel %vm511_vm6, %v633_v29, %v8025_v51  ;;  %vm807_vm10 = vweird.f32 %v11226_v61 }
 0x2d4   :  { %v631_v44 = vxor.u32 2147483648, %v630_v35  ;;  %v636_v19 = vsel %vm8081_vm5, 0, %v634_v37 }
 0x2d5   :  { %v761_v59 = vsel %vm759_vm1, %v760_v33, %v756_v11  ;;  %v653_v16 = vadd.s32 3, %v636_v19 }
 0x2d6   :  { %v632_v48 = vsel %vm511_vm6, %v631_v44, %v630_v35  ;;  %v762_v22 = vadd.s32 %v761_v59, %v757_v25 }
 0x2d7   :  { %v635_v45 = vsel %vm8081_vm5, %v11220_v40, %v632_v48  ;;  %v654_v53 = vand.u32 3, %v653_v16  ;;  %v2681_v48 = vld [vmem:[%s10780_s3 + $0x10] sm:$0xff] }
 0x2d8   :  { %v637_v63 = vmul.f32 %v635_v45, %v635_v45  ;;  %v763_v34 = vadd.s32 536870912, %v762_v22 }
 0x2d9   :  { %vm655_vm15 = vcmp.lt.s32.totalorder %v654_v53, 2  ;;  %vm656_vm3 = vcmp.eq.s32.totalorder %v654_v53, 0  ;;  %vm659_vm4 = vcmp.eq.s32.totalorder %v654_v53, 2 }
 0x2da   :  { %v638_v8 = vmul.f32 -0.001358992, %v637_v63  ;;  %v645_v49 = vmul.f32 -0.00019511016, %v637_v63  ;;  %v8090_v31 = vshrl.u32 %v763_v34, 30  ;;  %5493 = vmatmul.msk.f32.gmra.mxu0 %vm10936_vm2, %v2681_v48  ;;  %5497 = vmatmul.msk.f32.gmra.mxu1 %vm10936_vm2, %v2681_v48 }
 0x2dc   :  { %v639_v5 = vadd.f32 0.041655596, %v638_v8  ;;  %v646_v20 = vadd.f32 0.008332121, %v645_v49  ;;  %v765_v57 = vshll.u32 %v8090_v31, 30  ;;  %v788_v29 = vsub.s32 4, %v8090_v31 }
 0x2de   :  { %v640_v39 = vmul.f32 %v639_v5, %v637_v63  ;;  %v647_v62 = vmul.f32 %v646_v20, %v637_v63  ;;  %v766_v38 = vsub.s32 %v762_v22, %v765_v57  ;;  %v2682_v20 = vld [vmem:[%s10780_s3 + $0x18] sm:$0xff] }
 0x2e0   :  { %v641_v36 = vadd.f32 -0.4999988, %v640_v39  ;;  %v648_v55 = vadd.f32 -0.16666654, %v647_v62  ;;  %vm767_vm7 = vcmp.lt.s32.totalorder %v766_v38, 0  ;;  %v768_v30 = vsub.s32 0, %v766_v38 }
 0x2e2   :  { %v642_v51 = vmul.f32 %v641_v36, %v637_v63  ;;  %v649_v4 = vmul.f32 %v648_v55, %v637_v63  ;;  %v769_v54 = vsel %vm767_vm7, %v768_v30, %v766_v38  ;;  %v789_v63 = vsel %vm666_vm13, %v788_v29, %v8090_v31  ;;  %5494 = vmatmul.msk.f32.gmra.mxu0 %vm10936_vm2, %v2682_v20 }
 0x2e3   :  { %v770_v41 = vclz %v769_v54  ;;  %v791_v8 = vsel %vm8109_vm12, 0, %v789_v63  ;;  %5498 = vmatmul.msk.f32.gmra.mxu1 %vm10936_vm2, %v2682_v20 }
 0x2e4   :  { %v643_v3 = vadd.f32 1.0, %v642_v51  ;;  %v650_v56 = vadd.f32 1.0, %v649_v4  ;;  %v808_v31 = vadd.s32 3, %v791_v8  ;;  %v2686_v51 = vld [vmem:[%s10779_s4 + $0x18] sm:$0xff] }
 0x2e5   :  { %v5453_v14 = vadd.s32 4294967294, %v770_v41  ;;  %2704 = vperm.xlu2 %5568, %v2686_v51   ;;  %v2685_v41 = vld [vmem:[%s10779_s4 + $0x10] sm:$0xff] }
 0x2e6   :  { %v651_v52 = vmul.f32 %v650_v56, %v635_v45  ;;  %v660_v42 = vxor.u32 2147483648, %v643_v3  ;;  %v809_v55 = vand.u32 3, %v808_v31 }
 0x2e7   :  { %vm5454_vm14 = vcmp.lt.s32.totalorder %v5453_v14, 0 }
 0x2e8   :  { %v657_v1 = vxor.u32 2147483648, %v651_v52  ;;  %v773_v0 = vsel %vm5454_vm14, 0, %v5453_v14  ;;  %v661_v13 = vsel %vm659_vm4, %v660_v42, %v651_v52  ;;  %vm811_vm9 = vcmp.eq.s32.totalorder %v809_v55, 0  ;;  %v5317_v52 = vld [vmem:[%s10781_s6] sm:$0x7]  ;;  %v8146_v42 = vpop.permute.xlu1 %2689 }
 0x2e9   :  { %v774_v26 = vsub.s32 32, %v773_v0  ;;  %v778_v28 = vsub.s32 4294967266, %v773_v0  ;;  %v775_v47 = vshll.u32 %v766_v38, %v773_v0  ;;  %vm814_vm8 = vcmp.eq.s32.totalorder %v809_v55, 2 }
 0x2ea   :  { %v658_v58 = vsel %vm656_vm3, %v643_v3, %v657_v1  ;;  %vm810_vm0 = vcmp.lt.s32.totalorder %v809_v55, 2  ;;  %v2766_v1 = vpop.f32.mrf.mxu1 }
 0x2eb   :  { %v662_v50 = vsel %vm655_vm15, %v658_v58, %v661_v13  ;;  %v776_v17 = vshrl.u32 %v758_v6, %v774_v26  ;;  %v779_v23 = vadd.s32 127, %v778_v28  ;;  %v8153_v0 = vadd.f32 %v2766_v1, %v8146_v42 }
 0x2ec   :  { %v663_v43 = vsel %vm652_vm11, nan, %v662_v50 }
 0x2ed   :  { %2793 = vmatpush.msrb.mxu2 %v663_v43  ;;  %v777_v60 = vor.u32 %v776_v17, %v775_v47  ;;  %v780_v35 = vshll.u32 %v779_v23, 23  ;;  %2699 = vperm.xlu2 %5568, %v2685_v41   ;;  %11234 = vst [vmem:[#allocation32_spill] sm:$0xff] %v8153_v0  ;;  %v2994_v13 = vand.u32 2139095040, %v8153_v0  ;;  %v10879_v47 = vand.u32 2147483647, %v8153_v0  ;;  %v8158_v23 = vpop.permute.xlu0 %2694 }
 0x2ee   :  { %5499 = vmatmul.msk.f32.vlgmr.msrb.gmra.mxu2 %vm10936_vm2, %v5569_v12 }
 0x2ef   :  { %v781_v15 = vor.u32 4788187, %v780_v35  ;;  %v784_v11 = vcvt.s32.f32 %v777_v60  ;;  %v2995_v28 = vshrl.u32 %v2994_v13, 23 }
 0x2f1   :  { %v782_v40 = vand.u32 2147483647, %v781_v15  ;;  %v5510_v60 = vadd.s32 4294967169, %v2995_v28  ;;  %v2998_v15 = vand.u32 8388607, %v10879_v47 }
 0x2f3   :  { %v785_v44 = vmul.f32 %v784_v11, %v782_v40  ;;  %v2999_v25 = vor.u32 8388608, %v2998_v15 }
 0x2f5   :  { %v786_v33 = vxor.u32 2147483648, %v785_v44  ;;  %5320 = vperm.xlu2 %5568, %v5317_v52  }
 0x2f6   :  { %5500 = vmatmul.msk.f32.gmra.mxu2 %vm10936_vm2, %v2680_v9 }
 0x2f7   :  { %v787_v2 = vsel %vm666_vm13, %v786_v33, %v785_v44 }
 0x2f8   :  { %v790_v59 = vsel %vm8109_vm12, %v11226_v61, %v787_v2  ;;  %v2737_v61 = vpop.f32.mrf.mxu0 }
 0x2f9   :  { %v792_v45 = vmul.f32 %v790_v59, %v790_v59  ;;  %v8149_v14 = vadd.f32 %v2737_v61, %v8146_v42 }
 0x2fb   :  { %v793_v24 = vmul.f32 -0.001358992, %v792_v45  ;;  %v800_v22 = vmul.f32 -0.00019511016, %v792_v45  ;;  %11233 = vst [vmem:[#allocation40_spill] sm:$0xff] %v8149_v14  ;;  %v2839_v6 = vand.u32 2139095040, %v8149_v14 }
 0x2fc   :  { %v10880_v50 = vand.u32 2147483647, %v8149_v14 }
 0x2fd   :  { %v794_v34 = vadd.f32 0.041655596, %v793_v24  ;;  %v801_v37 = vadd.f32 0.008332121, %v800_v22  ;;  %v2840_v58 = vshrl.u32 %v2839_v6, 23 }
 0x2fe   :  { %5501 = vmatmul.msk.f32.gmra.mxu2 %vm10936_vm2, %v2681_v48  ;;  %v2843_v35 = vand.u32 8388607, %v10880_v50 }
 0x2ff   :  { %v795_v49 = vmul.f32 %v794_v34, %v792_v45  ;;  %v802_v5 = vmul.f32 %v801_v37, %v792_v45  ;;  %v5507_v26 = vadd.s32 4294967169, %v2840_v58 }
 0x300   :  { %v2844_v40 = vor.u32 8388608, %v2843_v35 }
 0x301   :  { %v796_v19 = vadd.f32 -0.4999988, %v795_v49  ;;  %v803_v57 = vadd.f32 -0.16666654, %v802_v5  ;;  %v2846_v43 = vadd.s32 1, %v5507_v26 }
 0x302   :  { %v8171_v29 = vshll.u32 %v2844_v40, 8 }
 0x303   :  { %v797_v39 = vmul.f32 %v796_v19, %v792_v45  ;;  %v804_v62 = vmul.f32 %v803_v57, %v792_v45  ;;  %vm2847_vm1 = vcmp.gt.s32.totalorder %v2846_v43, 0  ;;  %v8173_v45 = vshll.u32 %v2999_v25, 8 }
 0x304   :  { %v2848_v11 = vsel %vm2847_vm1, %v2846_v43, 0  ;;  %11237 = vst [vmem:[#allocation25_spill] sm:$0xff] %v8171_v29  ;;  %v8179_v34 = vand.u32 65535, %v8171_v29  ;;  %v8182_v8 = vshrl.u32 %v8171_v29, 16 }
 0x305   :  { %v798_v38 = vadd.f32 1.0, %v797_v39  ;;  %v805_v36 = vadd.f32 1.0, %v804_v62  ;;  %v2850_v2 = vand.u32 31, %v2848_v11  ;;  %11238 = vst [vmem:[#allocation30_spill] sm:$0xff] %v8173_v45  ;;  %v8185_v5 = vand.u32 65535, %v8173_v45 }
 0x306   :  { %5502 = vmatmul.msk.f32.gmra.mxu2 %vm10936_vm2, %v2682_v20  ;;  %11240 = vst [vmem:[#allocation43_spill] sm:$0xff] %v8179_v34  ;;  %v8190_v57 = vshrl.u32 %v2848_v11, 5 }
 0x307   :  { %v806_v16 = vmul.f32 %v805_v36, %v790_v59  ;;  %v815_v30 = vxor.u32 2147483648, %v798_v38  ;;  %v8175_v22 = vsub.s32 32, %v2850_v2  ;;  %11241 = vst [vmem:[#allocation35_spill] sm:$0xff] %v8182_v8  ;;  %v2853_v31 = vshll.u32 %v11119_v27, %v2850_v2 }
 0x308   :  { %11242 = vst [vmem:[#allocation42_spill] sm:$0xff] %v8185_v5  ;;  %v2856_v39 = vshll.u32 %v11121_v7, %v2850_v2  ;;  %v2859_v55 = vshll.u32 %v11122_v21, %v2850_v2  ;;  %v2865_v52 = vshll.u32 %v11108_v18, %v2850_v2  ;;  %vm10974_vm5 = vcmp.lt.s32.totalorder %v8190_v57, 1 }
 0x309   :  { %v812_v4 = vxor.u32 2147483648, %v806_v16  ;;  %v816_v3 = vsel %vm814_vm8, %v815_v30, %v806_v16  ;;  %11239 = vst [vmem:[#allocation31_spill] sm:$0xff] %v8175_v22  ;;  %v2857_v36 = vshrl.u32 %v11122_v21, %v8175_v22  ;;  %v2860_v30 = vshrl.u32 %v11107_v10, %v8175_v22 }
 0x30a   :  { %11244 = vst [vmem:[#allocation9_spill] sm:$0xff] %v8190_v57  ;;  %v2863_v51 = vshrl.u32 %v11108_v18, %v8175_v22  ;;  %vm10975_vm7 = vcmp.lt.s32.totalorder %v8190_v57, 4  ;;  %vm10963_vm15 = vcmp.lt.s32.totalorder %v8190_v57, 3 }
 0x30b   :  { %v813_v54 = vsel %vm811_vm9, %v798_v38, %v812_v4  ;;  %v2854_v38 = vshrl.u32 %v11121_v7, %v8175_v22  ;;  %v8222_v58 = vor.u32 %v2857_v36, %v2856_v39  ;;  %v8225_v28 = vor.u32 %v2860_v30, %v2859_v55 }
 0x30c   :  { %v817_v56 = vsel %vm810_vm0, %v813_v54, %v816_v3  ;;  %v2862_v3 = vshll.u32 %v11107_v10, %v2850_v2 }
 0x30d   :  { %v818_v53 = vsel %vm807_vm10, nan, %v817_v56  ;;  %v2866_v56 = vshrl.u32 %v11162_v32, %v8175_v22  ;;  %v8220_v6 = vor.u32 %v2854_v38, %v2853_v31  ;;  %11249 = vst [vmem:[#allocation20_spill] sm:$0xff] %v8222_v58  ;;  %v8259_v38 = vsel %vm10974_vm5, %v8222_v58, %v8225_v28 }
 0x30e   :  { %2822 = vmatpush.msrb.mxu3 %v818_v53  ;;  %11250 = vst [vmem:[#allocation3_spill] sm:$0xff] %v8225_v28  ;;  %v2864_v43 = vor.u32 %v2863_v51, %v2862_v3 }
 0x30f   :  { %5503 = vmatmul.msk.f32.vlgmr.msrb.gmra.mxu3 %vm10936_vm2, %v5569_v12  ;;  %11248 = vst [vmem:[#allocation17_spill] sm:$0xff] %v8220_v6  ;;  %v8246_v25 = vsel %vm10974_vm5, %v8220_v6, %v8222_v58 }
 0x310   :  { %11251 = vst [vmem:[#allocation10_spill] sm:$0xff] %v8246_v25  ;;  %v2877_v39 = vsel %vm10975_vm7, %v2864_v43, 920167782 }
 0x311   :  { %11252 = vst [vmem:[#allocation13_spill] sm:$0xff] %v8259_v38 }
 0x317   :  { %5504 = vmatmul.msk.f32.gmra.mxu3 %vm10936_vm2, %v2680_v9  ;;  %v3001_v9 = vadd.s32 1, %v5510_v60  ;;  %v2867_v60 = vor.u32 %v2866_v56, %v2865_v52 }
 0x319   :  { %vm3002_vm6 = vcmp.gt.s32.totalorder %v3001_v9, 0  ;;  %v2881_v3 = vsel %vm10975_vm7, %v2867_v60, 1326507024  ;;  %v8278_v60 = vsel %vm10963_vm15, %v8225_v28, %v2877_v39 }
 0x31a   :  { %v3003_v24 = vsel %vm3002_vm6, %v3001_v9, 0  ;;  %11256 = vst [vmem:[#allocation22_spill] sm:$0xff] %v8278_v60 }
 0x31b   :  { %v3005_v49 = vand.u32 31, %v3003_v24  ;;  %v8194_v62 = vshrl.u32 %v3003_v24, 5 }
 0x31d   :  { %11245 = vst [vmem:[#allocation11_spill] sm:$0xff] %v8194_v62  ;;  %v8211_v53 = vsub.s32 32, %v3005_v49  ;;  %v3008_v13 = vshll.u32 %v11119_v27, %v3005_v49  ;;  %v3011_v40 = vshll.u32 %v11121_v7, %v3005_v49  ;;  %v3017_v2 = vshll.u32 %v11107_v10, %v3005_v49 }
 0x31e   :  { %vm10959_vm4 = vcmp.lt.s32.totalorder %v8194_v62, 4  ;;  %vm10938_vm11 = vcmp.lt.s32.totalorder %v8194_v62, 1  ;;  %vm10937_vm13 = vcmp.lt.s32.totalorder %v8194_v62, 3 }
 0x31f   :  { %5505 = vmatmul.msk.f32.gmra.mxu3 %vm10936_vm2, %v2681_v48  ;;  %11247 = vst [vmem:[#allocation21_spill] sm:$0xff] %v8211_v53  ;;  %v3009_v35 = vshrl.u32 %v11121_v7, %v8211_v53  ;;  %v3018_v15 = vshrl.u32 %v11108_v18, %v8211_v53  ;;  %v3012_v11 = vshrl.u32 %v11122_v21, %v8211_v53 }
 0x321   :  { %v3019_v36 = vor.u32 %v3018_v15, %v3017_v2  ;;  %v8264_v56 = vor.u32 %v3009_v35, %v3008_v13  ;;  %v8266_v52 = vor.u32 %v3012_v11, %v3011_v40  ;;  %v8293_v2 = vsel %vm10963_vm15, %v2864_v43, %v2881_v3 }
 0x322   :  { %11260 = vst [vmem:[#allocation59_spill] sm:$0xff] %v8293_v2 }
 0x323   :  { %11253 = vst [vmem:[#allocation16_spill] sm:$0xff] %v8264_v56  ;;  %v3032_v13 = vsel %vm10959_vm4, %v3019_v36, 920167782 }
 0x324   :  { %11254 = vst [vmem:[#allocation23_spill] sm:$0xff] %v8266_v52 }
 0x327   :  { %5506 = vmatmul.msk.f32.gmra.mxu3 %vm10936_vm2, %v2682_v20  ;;  %v8188_v20 = vshrl.u32 %v8173_v45, 16 }
 0x329   :  { %11243 = vst [vmem:[#allocation2_spill] sm:$0xff] %v8188_v20 }
 0x33f   :  { %v8217_v61 = vpop.permute.xlu2 %2704 }
 0x34f   :  { %v2740_v17 = vpop.f32.mrf.mxu0  ;;  %v2769_v33 = vpop.f32.mrf.mxu1 }
 0x350   :  { %v8163_v12 = vadd.f32 %v2740_v17, %v8158_v23  ;;  %v8169_v48 = vadd.f32 %v2769_v33, %v8158_v23 }
 0x352   :  { %11235 = vst [vmem:[#allocation38_spill] sm:$0xff] %v8163_v12  ;;  %v3459_v44 = vand.u32 2139095040, %v8163_v12  ;;  %v3614_v63 = vand.u32 2139095040, %v8169_v48  ;;  %v10882_v41 = vand.u32 2147483647, %v8163_v12 }
 0x353   :  { %11236 = vst [vmem:[#allocation6_spill] sm:$0xff] %v8169_v48  ;;  %v10881_v1 = vand.u32 2147483647, %v8169_v48 }
 0x354   :  { %v3460_v59 = vshrl.u32 %v3459_v44, 23  ;;  %v3615_v16 = vshrl.u32 %v3614_v63, 23  ;;  %v3463_v9 = vand.u32 8388607, %v10882_v41  ;;  %v3021_v44 = vshrl.u32 %v11162_v32, %v8211_v53 }
 0x355   :  { %v3618_v33 = vand.u32 8388607, %v10881_v1  ;;  %v3015_v63 = vshrl.u32 %v11107_v10, %v8211_v53 }
 0x356   :  { %v5519_v37 = vadd.s32 4294967169, %v3460_v59  ;;  %v5522_v26 = vadd.s32 4294967169, %v3615_v16  ;;  %v3464_v55 = vor.u32 8388608, %v3463_v9  ;;  %v3014_v16 = vshll.u32 %v11122_v21, %v3005_v49 }
 0x357   :  { %v2743_v9 = vpop.f32.mrf.mxu0 }
 0x358   :  { %v3466_v4 = vadd.s32 1, %v5519_v37  ;;  %v3621_v24 = vadd.s32 1, %v5522_v26  ;;  %v3020_v37 = vshll.u32 %v11108_v18, %v3005_v49  ;;  %v8268_v26 = vor.u32 %v3015_v63, %v3014_v16  ;;  %v8273_v49 = vpop.permute.xlu2 %2699 }
 0x359   :  { %v8283_v35 = vshll.u32 %v3464_v55, 8  ;;  %v8300_v63 = vsel %vm10938_vm11, %v8264_v56, %v8266_v52 }
 0x35a   :  { %vm3467_vm14 = vcmp.gt.s32.totalorder %v3466_v4, 0  ;;  %v3022_v30 = vor.u32 %v3021_v44, %v3020_v37  ;;  %vm3622_vm3 = vcmp.gt.s32.totalorder %v3621_v24, 0  ;;  %11255 = vst [vmem:[#allocation18_spill] sm:$0xff] %v8268_v26  ;;  %v8303_v37 = vadd.f32 %v2743_v9, %v8273_v49 }
 0x35b   :  { %v3468_v59 = vsel %vm3467_vm14, %v3466_v4, 0  ;;  %v3619_v4 = vor.u32 8388608, %v3618_v33  ;;  %11257 = vst [vmem:[#allocation53_spill] sm:$0xff] %v8283_v35  ;;  %v3623_v44 = vsel %vm3622_vm3, %v3621_v24, 0  ;;  %v8308_v24 = vsel %vm10937_vm13, %v8268_v26, %v3032_v13 }
 0x35c   :  { %v3470_v51 = vand.u32 31, %v3468_v59  ;;  %v3036_v40 = vsel %vm10959_vm4, %v3022_v30, 1326507024  ;;  %11261 = vst [vmem:[#allocation60_spill] sm:$0xff] %v8300_v63  ;;  %v8314_v43 = vsel %vm10938_vm11, %v8266_v52, %v8268_v26  ;;  %v8321_v16 = vand.u32 65535, %v8283_v35 }
 0x35d   :  { %v8289_v33 = vshll.u32 %v3619_v4, 8  ;;  %11262 = vst [vmem:[#allocation14_spill] sm:$0xff] %v8303_v37  ;;  %v8318_v55 = vsel %vm10937_vm13, %v3019_v36, %v3036_v40  ;;  %v8324_v30 = vshrl.u32 %v8283_v35, 16  ;;  %v3625_v4 = vand.u32 31, %v3623_v44 }
 0x35e   :  { %v8287_v11 = vsub.s32 32, %v3470_v51  ;;  %11263 = vst [vmem:[#allocation54_spill] sm:$0xff] %v8308_v24  ;;  %v8326_v13 = vshrl.u32 %v3468_v59, 5  ;;  %v4079_v47 = vand.u32 2139095040, %v8303_v37  ;;  %v3476_v0 = vshll.u32 %v11121_v7, %v3470_v51 }
 0x35f   :  { %11259 = vst [vmem:[#allocation57_spill] sm:$0xff] %v8289_v33  ;;  %v8334_v36 = vshrl.u32 %v8289_v33, 16  ;;  %v3482_v45 = vshll.u32 %v11107_v10, %v3470_v51  ;;  %v8354_v14 = vsub.s32 32, %v3625_v4  ;;  %v3485_v56 = vshll.u32 %v11108_v18, %v3470_v51 }
 0x360   :  { %11258 = vst [vmem:[#allocation56_spill] sm:$0xff] %v8287_v11  ;;  %v3483_v40 = vshrl.u32 %v11108_v18, %v8287_v11  ;;  %v3486_v50 = vshrl.u32 %v11162_v32, %v8287_v11  ;;  %v3480_v52 = vshrl.u32 %v11107_v10, %v8287_v11  ;;  %v4080_v53 = vshrl.u32 %v4079_v47, 23 }
 0x361   :  { %11264 = vst [vmem:[#allocation62_spill] sm:$0xff] %v8314_v43  ;;  %vm3488_vm9 = vcmp.lt.s32.totalorder %v8326_v13, 1  ;;  %vm3490_vm8 = vcmp.lt.s32.totalorder %v8326_v13, 3  ;;  %vm3491_vm0 = vcmp.lt.s32.totalorder %v8326_v13, 4  ;;  %v3631_v47 = vshll.u32 %v11121_v7, %v3625_v4 }
 0x362   :  { %11265 = vst [vmem:[#allocation58_spill] sm:$0xff] %v8318_v55  ;;  %v3487_v20 = vor.u32 %v3486_v50, %v3485_v56  ;;  %v3628_v50 = vshll.u32 %v11119_v27, %v3625_v4  ;;  %v3635_v62 = vshrl.u32 %v11107_v10, %v8354_v14  ;;  %v3641_v29 = vshrl.u32 %v11162_v32, %v8354_v14 }
 0x363   :  { %11266 = vst [vmem:[#allocation61_spill] sm:$0xff] %v8321_v16 }
 0x364   :  { %11267 = vst [vmem:[#allocation15_spill] sm:$0xff] %v8324_v30 }
 0x365   :  { %11268 = vst [vmem:[#allocation55_spill] sm:$0xff] %v8326_v13 }
 0x366   :  { %11270 = vst [vmem:[#allocation47_spill] sm:$0xff] %v8334_v36 }
 0x367   :  { %11274 = vst [vmem:[#allocation48_spill] sm:$0xff] %v8354_v14 }
 0x371   :  { %v2795_v19 = vpop.f32.mrf.mxu2 }
 0x372   :  { %v8206_v54 = vadd.f32 %v2795_v19, %v8146_v42 }
 0x374   :  { %11246 = vst [vmem:[#allocation12_spill] sm:$0xff] %v8206_v54  ;;  %v3149_v17 = vand.u32 2139095040, %v8206_v54  ;;  %v10878_v19 = vand.u32 2147483647, %v8206_v54  ;;  %v3473_v54 = vshll.u32 %v11119_v27, %v3470_v51 }
 0x376   :  { %v3150_v31 = vshrl.u32 %v3149_v17, 23  ;;  %v3153_v15 = vand.u32 8388607, %v10878_v19  ;;  %v3474_v19 = vshrl.u32 %v11121_v7, %v8287_v11 }
 0x378   :  { %v5513_v17 = vadd.s32 4294967169, %v3150_v31  ;;  %v3154_v31 = vor.u32 8388608, %v3153_v15  ;;  %v3477_v15 = vshrl.u32 %v11122_v21, %v8287_v11  ;;  %v8362_v26 = vor.u32 %v3474_v19, %v3473_v54  ;;  %v2772_v54 = vpop.f32.mrf.mxu1 }
 0x379   :  { %v2798_v9 = vpop.f32.mrf.mxu2  ;;  %v3638_v19 = vshrl.u32 %v11108_v18, %v8354_v14  ;;  %v8393_v24 = vadd.f32 %v2772_v54, %v8273_v49 }
 0x37a   :  { %v3156_v39 = vadd.s32 1, %v5513_v17  ;;  %v8331_v17 = vand.u32 65535, %v8289_v33  ;;  %v8342_v59 = vadd.f32 %v2798_v9, %v8158_v23  ;;  %v8346_v1 = vshll.u32 %v3154_v31, 8  ;;  %11276 = vst [vmem:[#allocation7_spill] sm:$0xff] %v8362_v26 }
 0x37b   :  { %v3479_v9 = vshll.u32 %v11122_v21, %v3470_v51  ;;  %v8360_v31 = vshrl.u32 %v3623_v44, 5  ;;  %v3629_v51 = vshrl.u32 %v11121_v7, %v8354_v14  ;;  %11280 = vst [vmem:[#allocation29_spill] sm:$0xff] %v8393_v24  ;;  %v4234_v58 = vand.u32 2139095040, %v8393_v24 }
 0x37c   :  { %11269 = vst [vmem:[#allocation44_spill] sm:$0xff] %v8331_v17  ;;  %vm3157_vm12 = vcmp.gt.s32.totalorder %v3156_v39, 0 }
 0x37d   :  { %11271 = vst [vmem:[#allocation52_spill] sm:$0xff] %v8342_v59  ;;  %v3158_v5 = vsel %vm3157_vm12, %v3156_v39, 0  ;;  %v8395_v43 = vor.u32 %v3629_v51, %v3628_v50  ;;  %v10910_v50 = vand.u32 2147483647, %v8303_v37  ;;  %vm10995_vm10 = vcmp.lt.s32.totalorder %v8360_v31, 1 }
 0x37e   :  { %11272 = vst [vmem:[#allocation49_spill] sm:$0xff] %v8346_v1  ;;  %v3160_v39 = vand.u32 31, %v3158_v5  ;;  %vm11000_vm1 = vcmp.lt.s32.totalorder %v8360_v31, 4  ;;  %vm10994_vm6 = vcmp.lt.s32.totalorder %v8360_v31, 3 }
 0x37f   :  { %11275 = vst [vmem:[#allocation45_spill] sm:$0xff] %v8360_v31 }
 0x380   :  { %11281 = vst [vmem:[#allocation36_spill] sm:$0xff] %v8395_v43  ;;  %v8416_v54 = vsub.s32 32, %v3160_v39 }
 0x382   :  { %11285 = vst [vmem:[#allocation39_spill] sm:$0xff] %v8416_v54  ;;  %v3164_v34 = vshrl.u32 %v11121_v7, %v8416_v54 }
 0x392   :  { %v2824_v3 = vpop.f32.mrf.mxu3 }
 0x393   :  { %v8349_v41 = vadd.f32 %v2824_v3, %v8146_v42  ;;  %v8364_v42 = vor.u32 %v3477_v15, %v3476_v0  ;;  %v3484_v3 = vor.u32 %v3483_v40, %v3482_v45  ;;  %v3632_v0 = vshrl.u32 %v11122_v21, %v8354_v14 }
 0x394   :  { %v8375_v45 = vor.u32 %v3480_v52, %v3479_v9  ;;  %v5531_v15 = vadd.s32 4294967169, %v4080_v53  ;;  %v3501_v52 = vsel %vm3491_vm0, %v3487_v20, 1326507024  ;;  %v3637_v40 = vshll.u32 %v11107_v10, %v3625_v4 }
 0x395   :  { %11273 = vst [vmem:[#allocation51_spill] sm:$0xff] %v8349_v41  ;;  %v3304_v63 = vand.u32 2139095040, %v8349_v41  ;;  %v8385_v56 = vsel %vm3488_vm9, %v8362_v26, %v8364_v42  ;;  %v3497_v44 = vsel %vm3491_vm0, %v3484_v3, 920167782  ;;  %v8397_v55 = vor.u32 %v3632_v0, %v3631_v47 }
 0x396   :  { %11277 = vst [vmem:[#allocation33_spill] sm:$0xff] %v8364_v42  ;;  %v8406_v20 = vsel %vm3490_vm8, %v8375_v45, %v3497_v44  ;;  %v8412_v53 = vsel %vm3488_vm9, %v8364_v42, %v8375_v45  ;;  %v3639_v51 = vor.u32 %v3638_v19, %v3637_v40  ;;  %v3640_v0 = vshll.u32 %v11108_v18, %v3625_v4 }
 0x397   :  { %11278 = vst [vmem:[#allocation41_spill] sm:$0xff] %v8375_v45  ;;  %v3305_v9 = vshrl.u32 %v3304_v63, 23  ;;  %v3634_v63 = vshll.u32 %v11122_v21, %v3625_v4  ;;  %v4086_v47 = vadd.s32 1, %v5531_v15  ;;  %v8421_v44 = vsel %vm3490_vm8, %v3484_v3, %v3501_v52 }
 0x398   :  { %11279 = vst [vmem:[#allocation50_spill] sm:$0xff] %v8385_v56  ;;  %v3642_v28 = vor.u32 %v3641_v29, %v3640_v0  ;;  %v8432_v4 = vsel %vm10995_vm10, %v8395_v43, %v8397_v55  ;;  %v3652_v3 = vsel %vm11000_vm1, %v3639_v51, 920167782  ;;  %v8437_v19 = vshrl.u32 %v3158_v5, 5 }
 0x399   :  { %11282 = vst [vmem:[#allocation46_spill] sm:$0xff] %v8397_v55  ;;  %v5516_v48 = vadd.s32 4294967169, %v3305_v9  ;;  %v8425_v6 = vor.u32 %v3635_v62, %v3634_v63  ;;  %v8440_v15 = vand.u32 65535, %v8346_v1  ;;  %v8443_v29 = vshrl.u32 %v8346_v1, 16 }
 0x39a   :  { %11283 = vst [vmem:[#allocation8_spill] sm:$0xff] %v8406_v20  ;;  %v3173_v62 = vshrl.u32 %v11108_v18, %v8416_v54  ;;  %v3176_v52 = vshrl.u32 %v11162_v32, %v8416_v54  ;;  %v4083_v40 = vand.u32 8388607, %v10910_v50  ;;  %vm4087_vm14 = vcmp.gt.s32.totalorder %v4086_v47, 0  ;;  %v2827_v8 = vpop.f32.mrf.mxu3 }
 0x39b   :  { %11284 = vst [vmem:[#allocation24_spill] sm:$0xff] %v8412_v53  ;;  %v3163_v9 = vshll.u32 %v11119_v27, %v3160_v39  ;;  %v3311_v63 = vadd.s32 1, %v5516_v48  ;;  %v4235_v0 = vshrl.u32 %v4234_v58, 23  ;;  %v3172_v1 = vshll.u32 %v11107_v10, %v3160_v39 }
 0x39c   :  { %11286 = vst [vmem:[#allocation28_spill] sm:$0xff] %v8421_v44  ;;  %v3167_v50 = vshrl.u32 %v11122_v21, %v8416_v54  ;;  %v3170_v5 = vshrl.u32 %v11107_v10, %v8416_v54  ;;  %v4088_v48 = vsel %vm4087_vm14, %v4086_v47, 0  ;;  %v3169_v58 = vshll.u32 %v11122_v21, %v3160_v39  ;;  %v2801_v44 = vpop.f32.mrf.mxu2 }
 0x39d   :  { %11287 = vst [vmem:[#allocation37_spill] sm:$0xff] %v8425_v6  ;;  %v3174_v38 = vor.u32 %v3173_v62, %v3172_v1  ;;  %v4084_v25 = vor.u32 8388608, %v4083_v40  ;;  %v11292_v60 = vand.u32 2147483647, %v8349_v41  ;;  %vm3312_vm3 = vcmp.gt.s32.totalorder %v3311_v63, 0  ;;  %v2746_v41 = vpop.f32.mrf.mxu0 }
 0x39e   :  { %11288 = vst [vmem:[#allocation34_spill] sm:$0xff] %v8432_v4  ;;  %v5534_v22 = vadd.s32 4294967169, %v4235_v0  ;;  %v8467_v33 = vadd.f32 %v2827_v8, %v8158_v23  ;;  %v8473_v43 = vsel %vm10995_vm10, %v8397_v55, %v8425_v6  ;;  %v4090_v1 = vand.u32 31, %v4088_v48 }
 0x39f   :  { %11289 = vst [vmem:[#allocation4_spill] sm:$0xff] %v8437_v19  ;;  %v3308_v57 = vand.u32 8388607, %v11292_v60  ;;  %v11295_v47 = vand.u32 2147483647, %v8393_v24  ;;  %v8479_v62 = vor.u32 %v3164_v34, %v3163_v9  ;;  %vm10915_vm12 = vcmp.lt.s32.totalorder %v8437_v19, 4 }
 0x3a0   :  { %11290 = vst [vmem:[#allocation19_spill] sm:$0xff] %v8440_v15  ;;  %v3166_v15 = vshll.u32 %v11121_v7, %v3160_v39  ;;  %v8489_v23 = vsel %vm10994_vm6, %v8425_v6, %v3652_v3  ;;  %v3187_v8 = vsel %vm10915_vm12, %v3174_v38, 920167782  ;;  %v8493_v40 = vshll.u32 %v4084_v25, 8 }
 0x3a1   :  { %11291 = vst [vmem:[#allocation26_spill] sm:$0xff] %v8443_v29  ;;  %v3175_v29 = vshll.u32 %v11108_v18, %v3160_v39  ;;  %v3656_v39 = vsel %vm11000_vm1, %v3642_v28, 1326507024  ;;  %v3313_v28 = vsel %vm3312_vm3, %v3311_v63, 0  ;;  %v3769_v9 = vand.u32 2139095040, %v8342_v59 }
 0x3a2   :  { %11293 = vst [vmem:[#allocation27_spill] sm:$0xff] %v8467_v33  ;;  %v8481_v60 = vor.u32 %v3167_v50, %v3166_v15  ;;  %v3309_v50 = vor.u32 8388608, %v3308_v57  ;;  %v4241_v15 = vadd.s32 1, %v5534_v22  ;;  %vm10934_vm14 = vcmp.lt.s32.totalorder %v8437_v19, 1 }
 0x3a3   :  { %v3177_v2 = vor.u32 %v3176_v52, %v3175_v29  ;;  %11294 = vst [vmem:[#allocation5_spill] sm:$0xff] %v8473_v43  ;;  %v4238_v29 = vand.u32 8388607, %v11295_v47  ;;  %v8483_v52 = vor.u32 %v3170_v5, %v3169_v58  ;;  %v8500_v5 = vsel %vm10994_vm6, %v3639_v51, %v3656_v39 }
 0x3a4   :  { %11296 = vst [vmem:[#allocation63_spill] sm:$0xff] %v8479_v62  ;;  %v8503_v3 = vsub.s32 32, %v4090_v1  ;;  %vm10933_vm3 = vcmp.lt.s32.totalorder %v8437_v19, 3  ;;  %v8510_v25 = vsel %vm10934_vm14, %v8479_v62, %v8481_v60  ;;  %v3315_v57 = vand.u32 31, %v3313_v28 }
 0x3a5   :  { %11297 = vst [vmem:[#allocation64_spill] sm:$0xff] %v8481_v60  ;;  %v3191_v34 = vsel %vm10915_vm12, %v3177_v2, 1326507024  ;;  %v4239_v0 = vor.u32 8388608, %v4238_v29  ;;  %v8516_v22 = vsel %vm10934_vm14, %v8481_v60, %v8483_v52  ;;  %v8521_v2 = vsel %vm10933_vm3, %v8483_v52, %v3187_v8 }
 0x3a6   :  { %11298 = vst [vmem:[#allocation65_spill] sm:$0xff] %v8483_v52  ;;  %v8525_v51 = vsel %vm10933_vm3, %v3174_v38, %v3191_v34  ;;  %v8528_v63 = vand.u32 65535, %v8493_v40  ;;  %v8531_v58 = vshrl.u32 %v8493_v40, 16  ;;  %v8533_v39 = vshll.u32 %v3309_v50, 8 }
 0x3a7   :  { %11299 = vst [vmem:[#allocation66_spill] sm:$0xff] %v8489_v23  ;;  %v8535_v47 = vshrl.u32 %v4088_v48, 5  ;;  %vm4242_vm12 = vcmp.gt.s32.totalorder %v4241_v15, 0  ;;  %v3770_v29 = vshrl.u32 %v3769_v9, 23  ;;  %v4093_v8 = vshll.u32 %v11119_v27, %v4090_v1 }
 0x3a8   :  { %11300 = vst [vmem:[#allocation67_spill] sm:$0xff] %v8493_v40  ;;  %v4094_v60 = vshrl.u32 %v11121_v7, %v8503_v3  ;;  %v4096_v38 = vshll.u32 %v11121_v7, %v4090_v1  ;;  %v8541_v34 = vshll.u32 %v4239_v0, 8  ;;  %v8543_v52 = vsub.s32 32, %v3315_v57 }
 0x3a9   :  { %11301 = vst [vmem:[#allocation68_spill] sm:$0xff] %v8500_v5  ;;  %v4097_v50 = vshrl.u32 %v11122_v21, %v8503_v3  ;;  %v4099_v48 = vshll.u32 %v11122_v21, %v4090_v1  ;;  %v4100_v9 = vshrl.u32 %v11107_v10, %v8503_v3  ;;  %v4102_v62 = vshll.u32 %v11107_v10, %v4090_v1 }
 0x3aa   :  { %11302 = vst [vmem:[#allocation69_spill] sm:$0xff] %v8503_v3  ;;  %v8555_v0 = vadd.f32 %v2746_v41, %v8217_v61  ;;  %v8558_v54 = vand.u32 65535, %v8533_v39  ;;  %v5525_v19 = vadd.s32 4294967169, %v3770_v29  ;;  %v8564_v55 = vshrl.u32 %v3313_v28, 5 }
 0x3ab   :  { %11303 = vst [vmem:[#allocation70_spill] sm:$0xff] %v8510_v25  ;;  %v4103_v25 = vshrl.u32 %v11108_v18, %v8503_v3  ;;  %v8567_v6 = vshrl.u32 %v8533_v39, 16  ;;  %v8569_v12 = vor.u32 %v4094_v60, %v4093_v8  ;;  %v4106_v41 = vshrl.u32 %v11162_v32, %v8503_v3 }
 0x3ac   :  { %11304 = vst [vmem:[#allocation71_spill] sm:$0xff] %v8516_v22  ;;  %v8561_v22 = vshll.u32 %v11108_v18, %v4090_v1  ;;  %v3322_v1 = vshrl.u32 %v11122_v21, %v8543_v52  ;;  %v4699_v60 = vand.u32 2139095040, %v8555_v0  ;;  %v3318_v8 = vshll.u32 %v11119_v27, %v3315_v57 }
 0x3ad   :  { %11305 = vst [vmem:[#allocation72_spill] sm:$0xff] %v8521_v2  ;;  %v3319_v2 = vshrl.u32 %v11121_v7, %v8543_v52  ;;  %v8581_v28 = vor.u32 %v4103_v25, %v4102_v62  ;;  %v3776_v14 = vadd.s32 1, %v5525_v19  ;;  %v3328_v62 = vshrl.u32 %v11108_v18, %v8543_v52 }
 0x3ae   :  { %11306 = vst [vmem:[#allocation73_spill] sm:$0xff] %v8525_v51  ;;  %v4243_v51 = vsel %vm4242_vm12, %v4241_v15, 0  ;;  %v8579_v15 = vor.u32 %v4100_v9, %v4099_v48  ;;  %vm4108_vm12 = vcmp.lt.s32.totalorder %v8535_v47, 1  ;;  %v8595_v25 = vshrl.u32 %v11162_v32, %v8543_v52 }
 0x3af   :  { %11307 = vst [vmem:[#allocation74_spill] sm:$0xff] %v8528_v63  ;;  %v4245_v29 = vand.u32 31, %v4243_v51  ;;  %v8597_v48 = vor.u32 %v3319_v2, %v3318_v8  ;;  %v8602_v36 = vshll.u32 %v11108_v18, %v3315_v57  ;;  %vm10958_vm3 = vcmp.lt.s32.totalorder %v8564_v55, 1 }
 0x3b0   :  { %11308 = vst [vmem:[#allocation75_spill] sm:$0xff] %v8531_v58  ;;  %vm10957_vm14 = vcmp.lt.s32.totalorder %v8564_v55, 4  ;;  %v4107_v19 = vor.u32 %v4106_v41, %v8561_v22  ;;  %v4700_v43 = vshrl.u32 %v4699_v60, 23  ;;  %vm4110_vm2 = vcmp.lt.s32.totalorder %v8535_v47, 3 }
 0x3b1   :  { %11309 = vst [vmem:[#allocation76_spill] sm:$0xff] %v8533_v39  ;;  %v3321_v39 = vshll.u32 %v11121_v7, %v3315_v57  ;;  %v8607_v17 = vsub.s32 32, %v4245_v29  ;;  %vm3777_vm13 = vcmp.gt.s32.totalorder %v3776_v14, 0  ;;  %v3924_v2 = vand.u32 2139095040, %v8467_v33 }
 0x3b2   :  { %11310 = vst [vmem:[#allocation77_spill] sm:$0xff] %v8541_v34  ;;  %vm4111_vm11 = vcmp.lt.s32.totalorder %v8535_v47, 4  ;;  %v11328_v60 = vand.u32 2147483647, %v8342_v59  ;;  %v10960_v31 = vand.u32 2147483647, %v8467_v33 }
 0x3b3   :  { %11311 = vst [vmem:[#allocation78_spill] sm:$0xff] %v8543_v52  ;;  %v8599_v9 = vor.u32 %v3322_v1, %v3321_v39  ;;  %v8636_v1 = vshrl.u32 %v4243_v51, 5  ;;  %v4249_v51 = vshrl.u32 %v11121_v7, %v8607_v17  ;;  %v4117_v4 = vsel %vm4111_vm11, %v8581_v28, 920167782 }
 0x3b4   :  { %11312 = vst [vmem:[#allocation79_spill] sm:$0xff] %v8555_v0  ;;  %v3773_v8 = vand.u32 8388607, %v11328_v60  ;;  %v4252_v60 = vshrl.u32 %v11122_v21, %v8607_v17  ;;  %v4121_v35 = vsel %vm4111_vm11, %v4107_v19, 1326507024 }
 0x3b5   :  { %11313 = vst [vmem:[#allocation80_spill] sm:$0xff] %v8558_v54  ;;  %v8577_v54 = vor.u32 %v4097_v50, %v4096_v38  ;;  %v3324_v38 = vshll.u32 %v11122_v21, %v3315_v57  ;;  %v3327_v50 = vshll.u32 %v11107_v10, %v3315_v57  ;;  %v3778_v57 = vsel %vm3777_vm13, %v3776_v14, 0 }
 0x3b6   :  { %11314 = vst [vmem:[#allocation81_spill] sm:$0xff] %v8564_v55  ;;  %v3780_v59 = vand.u32 31, %v3778_v57  ;;  %vm4266_vm13 = vcmp.lt.s32.totalorder %v8636_v1, 4  ;;  %v8733_v26 = vshrl.u32 %v3778_v57, 5 }
 0x3b7   :  { %11315 = vst [vmem:[#allocation82_spill] sm:$0xff] %v8567_v6  ;;  %v3325_v6 = vshrl.u32 %v11107_v10, %v8543_v52  ;;  %v8613_v39 = vor.u32 %v3328_v62, %v3327_v50  ;;  %v8622_v22 = vsel %vm4108_vm12, %v8569_v12, %v8577_v54  ;;  %v8634_v41 = vsel %vm4108_vm12, %v8577_v54, %v8579_v15 }
 0x3b8   :  { %11316 = vst [vmem:[#allocation83_spill] sm:$0xff] %v8569_v12  ;;  %v4257_v50 = vshll.u32 %v11107_v10, %v4245_v29  ;;  %v4258_v62 = vshrl.u32 %v11108_v18, %v8607_v17  ;;  %v4248_v52 = vshll.u32 %v11119_v27, %v4245_v29  ;;  %v8683_v19 = vsub.s32 32, %v3780_v59 }
 0x3b9   :  { %11317 = vst [vmem:[#allocation84_spill] sm:$0xff] %v8577_v54  ;;  %v8609_v5 = vor.u32 %v3325_v6, %v3324_v38  ;;  %v8628_v6 = vsel %vm10958_vm3, %v8597_v48, %v8599_v9  ;;  %v2775_v38 = vpop.f32.mrf.mxu1  ;;  %v8658_v14 = vsel %vm10957_vm14, %v8613_v39, 920167782  ;;  %vm4263_vm14 = vcmp.lt.s32.totalorder %v8636_v1, 1 }
 0x3ba   :  { %11318 = vst [vmem:[#allocation85_spill] sm:$0xff] %v8579_v15  ;;  %v4259_v23 = vor.u32 %v4258_v62, %v4257_v50  ;;  %v8680_v50 = vsel %vm4110_vm2, %v8579_v15, %v4117_v4  ;;  %vm4265_vm3 = vcmp.lt.s32.totalorder %v8636_v1, 3  ;;  %v8696_v4 = vand.u32 65535, %v8541_v34 }
 0x3bb   :  { %11319 = vst [vmem:[#allocation86_spill] sm:$0xff] %v8595_v25  ;;  %v3925_v25 = vshrl.u32 %v3924_v2, 23  ;;  %v4261_v2 = vshrl.u32 %v11162_v32, %v8607_v17  ;;  %v3789_v30 = vshll.u32 %v11122_v21, %v3780_v59  ;;  %vm10987_vm5 = vcmp.lt.s32.totalorder %v8733_v26, 3 }
 0x3bc   :  { %11320 = vst [vmem:[#allocation87_spill] sm:$0xff] %v8597_v48  ;;  %v5543_v48 = vadd.s32 4294967169, %v4700_v43  ;;  %v4260_v43 = vshll.u32 %v11108_v18, %v4245_v29 }
 0x3bd   :  { %11321 = vst [vmem:[#allocation88_spill] sm:$0xff] %v8599_v9  ;;  %v4255_v9 = vshrl.u32 %v11107_v10, %v8607_v17 }
 0x3be   :  { %11322 = vst [vmem:[#allocation89_spill] sm:$0xff] %v8602_v36  ;;  %v4254_v36 = vshll.u32 %v11122_v21, %v4245_v29 }
 0x3bf   :  { %11323 = vst [vmem:[#allocation90_spill] sm:$0xff] %v8607_v17 }
 0x3c0   :  { %11324 = vst [vmem:[#allocation91_spill] sm:$0xff] %v8609_v5  ;;  %v8653_v5 = vadd.f32 %v2775_v38, %v8217_v61  ;;  %v4706_v38 = vadd.s32 1, %v5543_v48  ;;  %v8674_v42 = vor.u32 %v4255_v9, %v4254_v36  ;;  %v4262_v48 = vor.u32 %v4261_v2, %v4260_v43 }
 0x3c1   :  { %11325 = vst [vmem:[#allocation92_spill] sm:$0xff] %v8613_v39  ;;  %v3774_v39 = vor.u32 8388608, %v3773_v8  ;;  %v3928_v36 = vand.u32 8388607, %v10960_v31  ;;  %v8699_v9 = vshrl.u32 %v8541_v34, 16  ;;  %v3792_v2 = vshll.u32 %v11107_v10, %v3780_v59 }
 0x3c2   :  { %11326 = vst [vmem:[#allocation93_spill] sm:$0xff] %v8628_v6  ;;  %v4251_v6 = vshll.u32 %v11121_v7, %v4245_v29  ;;  %v8670_v29 = vor.u32 %v4249_v51, %v4248_v52  ;;  %v4854_v24 = vand.u32 2139095040, %v8653_v5  ;;  %v4272_v52 = vsel %vm4266_vm13, %v4259_v23, 920167782 }
 0x3c3   :  { %11327 = vst [vmem:[#allocation94_spill] sm:$0xff] %v8636_v1  ;;  %vm4707_vm4 = vcmp.gt.s32.totalorder %v4706_v38, 0  ;;  %v8718_v51 = vsel %vm4265_vm3, %v8674_v42, %v4272_v52  ;;  %v3796_v31 = vshrl.u32 %v11162_v32, %v8683_v19  ;;  %v3787_v52 = vshrl.u32 %v11122_v21, %v8683_v19 }
 0x3c4   :  { %11329 = vst [vmem:[#allocation95_spill] sm:$0xff] %v8653_v5  ;;  %v8672_v55 = vor.u32 %v4252_v60, %v4251_v6  ;;  %v4276_v60 = vsel %vm4266_vm13, %v4262_v48, 1326507024  ;;  %v4708_v43 = vsel %vm4707_vm4, %v4706_v38, 0  ;;  %v3790_v48 = vshrl.u32 %v11107_v10, %v8683_v19 }
 0x3c5   :  { %11330 = vst [vmem:[#allocation96_spill] sm:$0xff] %v8658_v14  ;;  %v5528_v14 = vadd.s32 4294967169, %v3925_v25  ;;  %v8693_v25 = vsel %vm4110_vm2, %v8581_v28, %v4121_v35  ;;  %v8713_v35 = vshll.u32 %v3774_v39, 8  ;;  %v4855_v28 = vshrl.u32 %v4854_v24, 23 }
 0x3c6   :  { %11331 = vst [vmem:[#allocation97_spill] sm:$0xff] %v8670_v29  ;;  %v8705_v8 = vsel %vm4263_vm14, %v8670_v29, %v8672_v55  ;;  %v8711_v62 = vsel %vm4263_vm14, %v8672_v55, %v8674_v42  ;;  %v3929_v39 = vor.u32 8388608, %v3928_v36  ;;  %v3784_v24 = vshrl.u32 %v11121_v7, %v8683_v19 }
 0x3c7   :  { %11332 = vst [vmem:[#allocation98_spill] sm:$0xff] %v8672_v55  ;;  %v3931_v6 = vadd.s32 1, %v5528_v14  ;;  %v3793_v14 = vshrl.u32 %v11108_v18, %v8683_v19  ;;  %v5546_v33 = vadd.s32 4294967169, %v4855_v28  ;;  %v3795_v38 = vshll.u32 %v11108_v18, %v3780_v59 }
 0x3c8   :  { %11333 = vst [vmem:[#allocation99_spill] sm:$0xff] %v8674_v42  ;;  %v8737_v11 = vand.u32 31, %v4708_v43  ;;  %v3783_v36 = vshll.u32 %v11119_v27, %v3780_v59  ;;  %v3786_v28 = vshll.u32 %v11121_v7, %v3780_v59  ;;  %v8743_v53 = vand.u32 65535, %v8713_v35 }
 0x3c9   :  { %11334 = vst [vmem:[#allocation100_spill] sm:$0xff] %v8683_v19  ;;  %vm3932_vm15 = vcmp.gt.s32.totalorder %v3931_v6, 0  ;;  %v3794_v16 = vor.u32 %v3793_v14, %v3792_v2  ;;  %v3797_v34 = vor.u32 %v3796_v31, %v3795_v38  ;;  %v4861_v57 = vadd.s32 1, %v5546_v33 }
 0x3ca   :  { %11335 = vst [vmem:[#allocation101_spill] sm:$0xff] %v8696_v4  ;;  %v3933_v19 = vsel %vm3932_vm15, %v3931_v6, 0  ;;  %v8745_v56 = vor.u32 %v3784_v24, %v3783_v36  ;;  %v8747_v20 = vor.u32 %v3787_v52, %v3786_v28  ;;  %v8749_v45 = vor.u32 %v3790_v48, %v3789_v30 }
 0x3cb   :  { %11336 = vst [vmem:[#allocation102_spill] sm:$0xff] %v8699_v9  ;;  %v8751_v13 = vshll.u32 %v3929_v39, 8  ;;  %v8755_v55 = vsel %vm4265_vm3, %v4259_v23, %v4276_v60  ;;  %vm10993_vm4 = vcmp.lt.s32.totalorder %v8733_v26, 4  ;;  %v8759_v59 = vshrl.u32 %v8713_v35, 16 }
 0x3cc   :  { %11337 = vst [vmem:[#allocation103_spill] sm:$0xff] %v8705_v8  ;;  %v8762_v33 = vsub.s32 32, %v8737_v11  ;;  %v3807_v31 = vsel %vm10993_vm4, %v3794_v16, 920167782  ;;  %v3935_v6 = vand.u32 31, %v3933_v19  ;;  %v8769_v2 = vadd.f32 %v2801_v44, %v8273_v49 }
 0x3cd   :  { %11338 = vst [vmem:[#allocation104_spill] sm:$0xff] %v8711_v62  ;;  %v11349_v30 = vand.u32 2147483647, %v8555_v0  ;;  %vm10988_vm15 = vcmp.lt.s32.totalorder %v8733_v26, 1  ;;  %v3811_v23 = vsel %vm10993_vm4, %v3797_v34, 1326507024  ;;  %v8796_v34 = vsel %vm10987_vm5, %v8749_v45, %v3807_v31 }
 0x3ce   :  { %11339 = vst [vmem:[#allocation105_spill] sm:$0xff] %v8713_v35  ;;  %vm4862_vm7 = vcmp.gt.s32.totalorder %v4861_v57, 0  ;;  %v8779_v60 = vsel %vm10988_vm15, %v8745_v56, %v8747_v20  ;;  %v8785_v44 = vsel %vm10988_vm15, %v8747_v20, %v8749_v45  ;;  %v8788_v39 = vand.u32 65535, %v8751_v13 }
 0x3cf   :  { %11340 = vst [vmem:[#allocation106_spill] sm:$0xff] %v8718_v51  ;;  %v4703_v14 = vand.u32 8388607, %v11349_v30  ;;  %v8791_v24 = vshrl.u32 %v8751_v13, 16  ;;  %v8798_v52 = vshrl.u32 %v3933_v19, 5  ;;  %v4725_v48 = vshll.u32 %v11108_v18, %v8737_v11 }
 0x3d0   :  { %11341 = vst [vmem:[#allocation107_spill] sm:$0xff] %v8733_v26  ;;  %v4726_v38 = vshrl.u32 %v11162_v32, %v8762_v33  ;;  %v8806_v36 = vsel %vm10987_vm5, %v3794_v16, %v3811_v23  ;;  %v8808_v28 = vsub.s32 32, %v3935_v6  ;;  %v8810_v30 = vshrl.u32 %v4708_v43, 5 }
 0x3d1   :  { %11342 = vst [vmem:[#allocation108_spill] sm:$0xff] %v8743_v53  ;;  %v4716_v19 = vshll.u32 %v11121_v7, %v8737_v11  ;;  %v4719_v31 = vshll.u32 %v11122_v21, %v8737_v11  ;;  %v4717_v35 = vshrl.u32 %v11122_v21, %v8762_v33  ;;  %v4720_v16 = vshrl.u32 %v11107_v10, %v8762_v33 }
 0x3d2   :  { %11343 = vst [vmem:[#allocation109_spill] sm:$0xff] %v8745_v56  ;;  %v4722_v43 = vshll.u32 %v11107_v10, %v8737_v11  ;;  %v3941_v23 = vshll.u32 %v11121_v7, %v3935_v6  ;;  %v3942_v53 = vshrl.u32 %v11122_v21, %v8808_v28  ;;  %vm4728_vm5 = vcmp.lt.s32.totalorder %v8810_v30, 1 }
 0x3d3   :  { %11344 = vst [vmem:[#allocation110_spill] sm:$0xff] %v8747_v20  ;;  %v4727_v20 = vor.u32 %v4726_v38, %v4725_v48  ;;  %v8840_v48 = vshrl.u32 %v11162_v32, %v8808_v28  ;;  %v4718_v38 = vor.u32 %v4717_v35, %v4716_v19  ;;  %vm4730_vm15 = vcmp.lt.s32.totalorder %v8810_v30, 3 }
 0x3d4   :  { %11345 = vst [vmem:[#allocation111_spill] sm:$0xff] %v8749_v45  ;;  %v3944_v45 = vshll.u32 %v11122_v21, %v3935_v6  ;;  %v8851_v37 = vshll.u32 %v11108_v18, %v3935_v6  ;;  %vm11006_vm4 = vcmp.lt.s32.totalorder %v8798_v52, 1  ;;  %v4713_v35 = vshll.u32 %v11119_v27, %v8737_v11 }
 0x3d5   :  { %11346 = vst [vmem:[#allocation112_spill] sm:$0xff] %v8751_v13  ;;  %v4863_v13 = vsel %vm4862_vm7, %v4861_v57, 0  ;;  %v4723_v57 = vshrl.u32 %v11108_v18, %v8762_v33  ;;  %vm4731_vm7 = vcmp.lt.s32.totalorder %v8810_v30, 4  ;;  %vm11041_vm6 = vcmp.lt.s32.totalorder %v8798_v52, 4 }
 0x3d6   :  { %11347 = vst [vmem:[#allocation113_spill] sm:$0xff] %v8755_v55  ;;  %v4865_v56 = vand.u32 31, %v4863_v13  ;;  %v4741_v42 = vsel %vm4731_vm7, %v4727_v20, 1326507024  ;;  %v4389_v20 = vand.u32 2139095040, %v8769_v2  ;;  %vm4729_vm10 = vcmp.lt.s32.totalorder %v8810_v30, 2 }
 0x3d7   :  { %11348 = vst [vmem:[#allocation114_spill] sm:$0xff] %v8759_v59  ;;  %v3947_v59 = vshll.u32 %v11107_v10, %v3935_v6 }
 0x3d8   :  { %11350 = vst [vmem:[#allocation115_spill] sm:$0xff] %v8769_v2  ;;  %v8848_v29 = vsub.s32 32, %v4865_v56  ;;  %v4868_v8 = vshll.u32 %v11119_v27, %v4865_v56 }
 0x3d9   :  { %11351 = vst [vmem:[#allocation116_spill] sm:$0xff] %v8779_v60  ;;  %v3945_v60 = vshrl.u32 %v11107_v10, %v8808_v28 }
 0x3da   :  { %11352 = vst [vmem:[#allocation117_spill] sm:$0xff] %v8785_v44  ;;  %v4721_v44 = vor.u32 %v4720_v16, %v4719_v31  ;;  %v8860_v31 = vor.u32 %v3942_v53, %v3941_v23  ;;  %v4871_v23 = vshll.u32 %v11121_v7, %v4865_v56  ;;  %v4869_v51 = vshrl.u32 %v11121_v7, %v8848_v29 }
 0x3db   :  { %11353 = vst [vmem:[#allocation118_spill] sm:$0xff] %v8788_v39  ;;  %v3939_v39 = vshrl.u32 %v11121_v7, %v8808_v28  ;;  %v8862_v16 = vor.u32 %v3945_v60, %v3944_v45  ;;  %v4880_v60 = vshll.u32 %v11108_v18, %v4865_v56 }
 0x3dc   :  { %11354 = vst [vmem:[#allocation119_spill] sm:$0xff] %v8791_v24  ;;  %v4704_v24 = vor.u32 8388608, %v4703_v14  ;;  %v3938_v14 = vshll.u32 %v11119_v27, %v3935_v6  ;;  %v4740_v11 = vsel %vm4728_vm5, %v4718_v38, %v4721_v44  ;;  %v4733_v17 = vsel %vm4731_vm7, %v4721_v44, 2102212464 }
 0x3dd   :  { %11355 = vst [vmem:[#allocation120_spill] sm:$0xff] %v8796_v34  ;;  %v3948_v34 = vshrl.u32 %v11108_v18, %v8808_v28 }
 0x3de   :  { %11356 = vst [vmem:[#allocation121_spill] sm:$0xff] %v8798_v52  ;;  %v8842_v26 = vshll.u32 %v4704_v24, 8  ;;  %v4714_v24 = vshrl.u32 %v11121_v7, %v8762_v33  ;;  %v8858_v19 = vor.u32 %v3939_v39, %v3938_v14  ;;  %v8886_v14 = vshrl.u32 %v4863_v13, 5 }
 0x3df   :  { %11357 = vst [vmem:[#allocation122_spill] sm:$0xff] %v8806_v36  ;;  %v4724_v36 = vor.u32 %v4723_v57, %v4722_v43  ;;  %v8866_v6 = vor.u32 %v3948_v34, %v3947_v59  ;;  %v4881_v59 = vshrl.u32 %v11162_v32, %v8848_v29  ;;  %v4874_v43 = vshll.u32 %v11122_v21, %v4865_v56 }
 0x3e0   :  { %11358 = vst [vmem:[#allocation123_spill] sm:$0xff] %v8808_v28  ;;  %v8875_v53 = vand.u32 65535, %v8842_v26  ;;  %v8878_v45 = vshrl.u32 %v8842_v26, 16  ;;  %v4715_v34 = vor.u32 %v4714_v24, %v4713_v35  ;;  %v4390_v28 = vshrl.u32 %v4389_v20, 23 }
 0x3e1   :  { %11359 = vst [vmem:[#allocation124_spill] sm:$0xff] %v8840_v48  ;;  %v4742_v39 = vsel %vm4730_vm15, %v4724_v36, %v4741_v42  ;;  %v4737_v57 = vsel %vm4731_vm7, %v4724_v36, 920167782  ;;  %v4875_v35 = vshrl.u32 %v11107_v10, %v8848_v29  ;;  %v4877_v24 = vshll.u32 %v11107_v10, %v4865_v56 }
 0x3e2   :  { %11360 = vst [vmem:[#allocation125_spill] sm:$0xff] %v8851_v37  ;;  %v4743_v42 = vsel %vm4729_vm10, %v4740_v11, %v4742_v39  ;;  %v4872_v37 = vshrl.u32 %v11122_v21, %v8848_v29  ;;  %v4878_v13 = vshrl.u32 %v11108_v18, %v8848_v29  ;;  %v8903_v36 = vsel %vm11006_vm4, %v8858_v19, %v8860_v31 }
 0x3e3   :  { %11361 = vst [vmem:[#allocation126_spill] sm:$0xff] %v8858_v19  ;;  %v4712_v20 = vshrl.u32 %v11119_v27, %v8762_v33  ;;  %v11366_v11 = vand.u32 2147483647, %v8653_v5  ;;  %v4882_v48 = vor.u32 %v4881_v59, %v4880_v60  ;;  %vm4886_vm1 = vcmp.lt.s32.totalorder %v8886_v14, 4 }
 0x3e4   :  { %11362 = vst [vmem:[#allocation127_spill] sm:$0xff] %v8860_v31  ;;  %v4736_v19 = vsel %vm4728_vm5, %v4715_v34, %v4718_v38  ;;  %v4738_v33 = vsel %vm4730_vm15, %v4721_v44, %v4737_v57  ;;  %v8922_v60 = vsel %vm11041_vm6, %v8866_v6, 920167782  ;;  %v4873_v56 = vor.u32 %v4872_v37, %v4871_v23  ;;  %v2830_v31 = vpop.f32.mrf.mxu3 }
 0x3e5   :  { %11363 = vst [vmem:[#allocation128_spill] sm:$0xff] %v8862_v16  ;;  %v4858_v39 = vand.u32 8388607, %v11366_v11  ;;  %v4748_v16 = vshrl.u32 %v4743_v42, 16  ;;  %v4876_v59 = vor.u32 %v4875_v35, %v4874_v43  ;;  %v4879_v11 = vor.u32 %v4878_v13, %v4877_v24 }
 0x3e6   :  { %11364 = vst [vmem:[#allocation129_spill] sm:$0xff] %v8866_v6  ;;  %v4732_v9 = vsel %vm4728_vm5, %v4712_v20, %v4715_v34  ;;  %vm4883_vm7 = vcmp.lt.s32.totalorder %v8886_v14, 1  ;;  %vm4885_vm4 = vcmp.lt.s32.totalorder %v8886_v14, 3  ;;  %v4896_v44 = vsel %vm4886_vm1, %v4882_v48, 1326507024 }
 0x3e7   :  { %11365 = vst [vmem:[#allocation130_spill] sm:$0xff] %v8903_v36  ;;  %v5537_v36 = vadd.s32 4294967169, %v4390_v28  ;;  %v2804_v28 = vpop.f32.mrf.mxu2  ;;  %v4734_v57 = vsel %vm4730_vm15, %v4718_v38, %v4733_v17  ;;  %v4739_v37 = vsel %vm4729_vm10, %v4736_v19, %v4738_v33  ;;  %v8935_v43 = vmul.u32 %v4748_v16, %v8875_v53 }
 0x3e8   :  { %11367 = vst [vmem:[#allocation131_spill] sm:$0xff] %v8922_v60  ;;  %v4870_v23 = vor.u32 %v4869_v51, %v4868_v8  ;;  %v4747_v35 = vand.u32 65535, %v4743_v42  ;;  %v4859_v34 = vor.u32 8388608, %v4858_v39  ;;  %v8938_v13 = vadd.f32 %v2830_v31, %v8273_v49 }
 0x3e9   :  { %v4396_v24 = vadd.s32 1, %v5537_v36  ;;  %v4892_v48 = vsel %vm4886_vm1, %v4879_v11, 920167782  ;;  %v4895_v20 = vsel %vm4883_vm7, %v4873_v56, %v4876_v59  ;;  %v4897_v17 = vsel %vm4885_vm4, %v4879_v11, %v4896_v44 }
 0x3ea   :  { %11368 = vst [vmem:[#allocation132_spill] sm:$0xff] %v8938_v13  ;;  %v8947_v38 = vadd.f32 %v2804_v28, %v8217_v61  ;;  %v8951_v8 = vsel %vm4729_vm10, %v4732_v9, %v4734_v57  ;;  %v4769_v51 = vand.u32 65535, %v4739_v37  ;;  %v4770_v19 = vshrl.u32 %v4739_v37, 16 }
 0x3eb   :  { %v4753_v31 = vshll.u32 %v8935_v43, 16  ;;  %v4867_v42 = vshrl.u32 %v11119_v27, %v8848_v29  ;;  %vm4884_vm5 = vcmp.lt.s32.totalorder %v8886_v14, 2  ;;  %v4891_v36 = vsel %vm4883_vm7, %v4870_v23, %v4873_v56 }
 0x3ec   :  { %11369 = vst [vmem:[#allocation133_spill] sm:$0xff] %v8947_v38  ;;  %v4893_v39 = vsel %vm4885_vm4, %v4876_v59, %v4892_v48  ;;  %v4898_v9 = vsel %vm4884_vm5, %v4895_v20, %v4897_v17  ;;  %vm4397_vm10 = vcmp.gt.s32.totalorder %v4396_v24, 0  ;;  %v4544_v30 = vand.u32 2139095040, %v8938_v13 }
 0x3ed   :  { %v4749_v33 = vmul.u32 %v4747_v35, %v8875_v53  ;;  %v4888_v11 = vsel %vm4886_vm1, %v4876_v59, 2102212464  ;;  %v8968_v29 = vshll.u32 %v4859_v34, 8  ;;  %v5009_v44 = vand.u32 2139095040, %v8947_v38 }
 0x3ee   :  { %v8972_v28 = vmul.u32 %v4747_v35, %v8878_v45  ;;  %v4752_v57 = vmul.u32 %v4748_v16, %v8878_v45  ;;  %v8976_v37 = vmul.u32 %v4769_v51, %v8875_v53  ;;  %v4894_v20 = vsel %vm4884_vm5, %v4891_v36, %v4893_v39 }
 0x3ef   :  { %11370 = vst [vmem:[#allocation134_spill] sm:$0xff] %v8968_v29  ;;  %vm4757_vm15 = vc.u32 %v4749_v33, %v4753_v31  ;;  %v4903_v59 = vshrl.u32 %v4898_v9, 16  ;;  %v4398_v34 = vsel %vm4397_vm10, %v4396_v24, 0  ;;  %v8983_v17 = vmul.u32 %v4770_v19, %v8875_v53 }
 0x3f0   :  { %v4887_v35 = vsel %vm4883_vm7, %v4867_v42, %v4870_v23  ;;  %v4889_v16 = vsel %vm4885_vm4, %v4873_v56, %v4888_v11  ;;  %v4545_v49 = vshrl.u32 %v4544_v30, 23  ;;  %v8990_v6 = vmul.u32 %v4769_v51, %v8878_v45 }
 0x3f1   :  { %v4900_v48 = vand.u32 65535, %v8968_v29  ;;  %v11371_v60 = vand.u32 2147483647, %v8769_v2  ;;  %v5010_v39 = vshrl.u32 %v5009_v44, 23  ;;  %v4758_v24 = vsel %vm4757_vm15, 1, %v11120_v46 }
 0x3f2   :  { %v4924_v53 = vand.u32 65535, %v4894_v20  ;;  %v4925_v52 = vshrl.u32 %v4894_v20, 16  ;;  %v4400_v4 = vand.u32 31, %v4398_v34  ;;  %v8997_v23 = vmul.u32 %v4770_v19, %v8878_v45 }
 0x3f3   :  { %v4393_v36 = vand.u32 8388607, %v11371_v60  ;;  %v9001_v56 = vsel %vm4884_vm5, %v4887_v35, %v4889_v16  ;;  %v9003_v51 = vmul.u32 %v4903_v59, %v4900_v48  ;;  %v11014_v42 = vand.u32 2147483647, %v8938_v13 }
 0x3f4   :  { %11372 = vst [vmem:[#allocation135_spill] sm:$0xff] %v9001_v56  ;;  %v9007_v60 = vadd.s32 %v4753_v31, %v4749_v33  ;;  %v4902_v11 = vand.u32 65535, %v4898_v9  ;;  %v5540_v44 = vadd.s32 4294967169, %v4545_v49  ;;  %v9009_v2 = vadd.s32 %v4758_v24, %v4752_v57 }
 0x3f5   :  { %v4901_v20 = vshrl.u32 %v8968_v29, 16  ;;  %v4394_v45 = vor.u32 8388608, %v4393_v36  ;;  %v5549_v19 = vadd.s32 4294967169, %v5010_v39  ;;  %v9012_v62 = vmul.u32 %v4924_v53, %v4900_v48 }
 0x3f6   :  { %v9014_v14 = vmul.u32 %v4925_v52, %v4900_v48  ;;  %v9018_v16 = vsub.s32 32, %v4400_v4  ;;  %v4908_v31 = vshll.u32 %v9003_v51, 16  ;;  %v4548_v49 = vand.u32 8388607, %v11014_v42 }
 0x3f7   :  { %v9021_v33 = vmul.u32 %v4924_v53, %v4901_v20  ;;  %v5016_v9 = vadd.s32 1, %v5549_v19  ;;  %v4904_v57 = vmul.u32 %v4902_v11, %v4900_v48  ;;  %v9025_v36 = vmul.u32 %v4902_v11, %v4901_v20 }
 0x3f8   :  { %11373 = vst [vmem:[#allocation136_spill] sm:$0xff] %v9018_v16  ;;  %v9027_v39 = vmul.u32 %v4925_v52, %v4901_v20  ;;  %v4551_v24 = vadd.s32 1, %v5540_v44  ;;  %v4907_v30 = vmul.u32 %v4903_v59, %v4901_v20  ;;  %v4412_v55 = vshll.u32 %v11107_v10, %v4400_v4  ;;  %v2833_v20 = vpop.f32.mrf.mxu3 }
 0x3f9   :  { %v9030_v35 = vshll.u32 %v4394_v45, 8  ;;  %vm5017_vm1 = vcmp.gt.s32.totalorder %v5016_v9, 0  ;;  %v4413_v53 = vshrl.u32 %v11108_v18, %v9018_v16  ;;  %v4415_v40 = vshll.u32 %v11108_v18, %v4400_v4 }
 0x3fa   :  { %v4416_v19 = vshrl.u32 %v11162_v32, %v9018_v16  ;;  %v5018_v48 = vsel %vm5017_vm1, %v5016_v9, 0  ;;  %vm9037_vm4 = vc.u32 %v4904_v57, %v4908_v31  ;;  %v4403_v52 = vshll.u32 %v11119_v27, %v4400_v4 }
 0x3fb   :  { %11374 = vst [vmem:[#allocation137_spill] sm:$0xff] %v9030_v35  ;;  %v4406_v59 = vshll.u32 %v11121_v7, %v4400_v4  ;;  %v4549_v44 = vor.u32 8388608, %v4548_v49  ;;  %v4404_v45 = vshrl.u32 %v11121_v7, %v9018_v16  ;;  %v4407_v42 = vshrl.u32 %v11122_v21, %v9018_v16 }
 0x3fc   :  { %vm4552_vm7 = vcmp.gt.s32.totalorder %v4551_v24, 0  ;;  %v5020_v13 = vand.u32 31, %v5018_v48  ;;  %v9047_v1 = vshrl.u32 %v4398_v34, 5  ;;  %v4409_v9 = vshll.u32 %v11122_v21, %v4400_v4 }
 0x3fd   :  { %v4410_v54 = vshrl.u32 %v11107_v10, %v9018_v16  ;;  %v4414_v5 = vor.u32 %v4413_v53, %v4412_v55  ;;  %v4417_v15 = vor.u32 %v4416_v19, %v4415_v40  ;;  %v9055_v3 = vadd.f32 %v2833_v20, %v8217_v61 }
 0x3fe   :  { %11377 = vst [vmem:[#allocation138_spill] sm:$0xff] %v9047_v1  ;;  %v4913_v56 = vsel %vm9037_vm4, 1, %v11120_v46  ;;  %v9060_v34 = vadd.s32 %v4908_v31, %v4904_v57  ;;  %v9063_v4 = vand.u32 65535, %v9030_v35  ;;  %v4553_v29 = vsel %vm4552_vm7, %v4551_v24, 0 }
 0x3ff   :  { %11378 = vst [vmem:[#allocation139_spill] sm:$0xff] %v9055_v3  ;;  %v9065_v16 = vor.u32 %v4404_v45, %v4403_v52  ;;  %v9067_v12 = vor.u32 %v4407_v42, %v4406_v59  ;;  %v9069_v49 = vshll.u32 %v4549_v44, 8  ;;  %v5021_v55 = vsub.s32 32, %v5020_v13 }
 0x400   :  { %11379 = vst [vmem:[#allocation140_spill] sm:$0xff] %v9063_v4  ;;  %v9071_v40 = vor.u32 %v4410_v54, %v4409_v9  ;;  %vm11052_vm5 = vcmp.lt.s32.totalorder %v9047_v1, 4  ;;  %v9075_v61 = vshrl.u32 %v9030_v35, 16  ;;  %v11385_v31 = vand.u32 2147483647, %v8947_v38 }
 0x401   :  { %11380 = vst [vmem:[#allocation141_spill] sm:$0xff] %v9065_v16  ;;  %v4427_v24 = vsel %vm11052_vm5, %v4414_v5, 920167782  ;;  %v4431_v42 = vsel %vm11052_vm5, %v4417_v15, 1326507024  ;;  %v4555_v53 = vand.u32 31, %v4553_v29  ;;  %v9084_v11 = vadd.s32 %v4913_v56, %v4907_v30 }
 0x402   :  { %11381 = vst [vmem:[#allocation142_spill] sm:$0xff] %v9067_v12  ;;  %v5013_v57 = vand.u32 8388607, %v11385_v31  ;;  %v5164_v19 = vand.u32 2139095040, %v9055_v3  ;;  %vm11048_vm10 = vcmp.lt.s32.totalorder %v9047_v1, 1  ;;  %vm11047_vm15 = vcmp.lt.s32.totalorder %v9047_v1, 3 }
 0x403   :  { %11382 = vst [vmem:[#allocation143_spill] sm:$0xff] %v9069_v49  ;;  %v9093_v52 = vsel %vm11048_vm10, %v9065_v16, %v9067_v12  ;;  %v9096_v59 = vand.u32 65535, %v9069_v49  ;;  %v9099_v15 = vshrl.u32 %v9069_v49, 16  ;;  %v5036_v56 = vshrl.u32 %v11162_v32, %v5021_v55 }
 0x404   :  { %11383 = vst [vmem:[#allocation144_spill] sm:$0xff] %v9071_v40  ;;  %v9105_v30 = vsel %vm11047_vm15, %v9071_v40, %v4427_v24  ;;  %v9111_v44 = vsel %vm11048_vm10, %v9067_v12, %v9071_v40  ;;  %v9115_v20 = vsel %vm11047_vm15, %v4414_v5, %v4431_v42  ;;  %v9117_v45 = vshrl.u32 %v4553_v29, 5 }
 0x405   :  { %11384 = vst [vmem:[#allocation145_spill] sm:$0xff] %v9075_v61  ;;  %v9119_v9 = vsub.s32 32, %v4555_v53  ;;  %v5014_v31 = vor.u32 8388608, %v5013_v57  ;;  %v5035_v54 = vshll.u32 %v11108_v18, %v5020_v13  ;;  %v5165_v49 = vshrl.u32 %v5164_v19, 23 }
 0x406   :  { %11386 = vst [vmem:[#allocation146_spill] sm:$0xff] %v9093_v52  ;;  %v5019_v24 = vshrl.u32 %v5018_v48, 5  ;;  %v5033_v35 = vshrl.u32 %v11108_v18, %v5021_v55  ;;  %v4558_v38 = vshll.u32 %v11119_v27, %v4555_v53  ;;  %v4561_v5 = vshll.u32 %v11121_v7, %v4555_v53 }
 0x407   :  { %11387 = vst [vmem:[#allocation147_spill] sm:$0xff] %v9096_v59  ;;  %v5030_v59 = vshrl.u32 %v11107_v10, %v5021_v55  ;;  %v4564_v29 = vshll.u32 %v11122_v21, %v4555_v53  ;;  %v5037_v42 = vor.u32 %v5036_v56, %v5035_v54  ;;  %v5024_v61 = vshrl.u32 %v11121_v7, %v5021_v55 }
 0x408   :  { %11388 = vst [vmem:[#allocation148_spill] sm:$0xff] %v9099_v15  ;;  %v5027_v15 = vshrl.u32 %v11122_v21, %v5021_v55  ;;  %v5026_v57 = vshll.u32 %v11121_v7, %v5020_v13  ;;  %v5029_v19 = vshll.u32 %v11122_v21, %v5020_v13  ;;  %v5032_v48 = vshll.u32 %v11107_v10, %v5020_v13 }
 0x409   :  { %11389 = vst [vmem:[#allocation149_spill] sm:$0xff] %v9105_v30  ;;  %v4567_v4 = vshll.u32 %v11107_v10, %v4555_v53  ;;  %v4570_v52 = vshll.u32 %v11108_v18, %v4555_v53  ;;  %v5023_v30 = vshll.u32 %v11119_v27, %v5020_v13  ;;  %v5552_v12 = vadd.s32 4294967169, %v5165_v49 }
 0x40a   :  { %11390 = vst [vmem:[#allocation150_spill] sm:$0xff] %v9111_v44  ;;  %v5028_v16 = vor.u32 %v5027_v15, %v5026_v57  ;;  %v5031_v44 = vor.u32 %v5030_v59, %v5029_v19  ;;  %vm5041_vm1 = vcmp.lt.s32.totalorder %v5019_v24, 4  ;;  %v4559_v54 = vshrl.u32 %v11121_v7, %v9119_v9 }
 0x40b   :  { %11391 = vst [vmem:[#allocation151_spill] sm:$0xff] %v9115_v20  ;;  %v5034_v20 = vor.u32 %v5033_v35, %v5032_v48  ;;  %v4562_v56 = vshrl.u32 %v11122_v21, %v9119_v9  ;;  %v4565_v40 = vshrl.u32 %v11107_v10, %v9119_v9  ;;  %v5051_v1 = vsel %vm5041_vm1, %v5037_v42, 1326507024 }
 0x40c   :  { %11392 = vst [vmem:[#allocation152_spill] sm:$0xff] %v9117_v45  ;;  %v4568_v53 = vshrl.u32 %v11108_v18, %v9119_v9  ;;  %v4571_v13 = vshrl.u32 %v11162_v32, %v9119_v9  ;;  %vm4573_vm4 = vcmp.lt.s32.totalorder %v9117_v45, 1  ;;  %v5025_v35 = vor.u32 %v5024_v61, %v5023_v30 }
 0x40d   :  { %11393 = vst [vmem:[#allocation153_spill] sm:$0xff] %v9119_v9  ;;  %v11394_v49 = vand.u32 2147483647, %v9055_v3  ;;  %v5022_v15 = vshrl.u32 %v11119_v27, %v5021_v55  ;;  %vm5038_vm7 = vcmp.lt.s32.totalorder %v5019_v24, 1  ;;  %vm5040_vm6 = vcmp.lt.s32.totalorder %v5019_v24, 3 }
 0x40e   :  { %v5171_v57 = vadd.s32 1, %v5552_v12  ;;  %v5043_v19 = vsel %vm5041_vm1, %v5031_v44, 2102212464  ;;  %v5047_v48 = vsel %vm5041_vm1, %v5034_v20, 920167782  ;;  %v5050_v42 = vsel %vm5038_vm7, %v5028_v16, %v5031_v44 }
 0x40f   :  { %v5168_v59 = vand.u32 8388607, %v11394_v49  ;;  %v5052_v0 = vsel %vm5040_vm6, %v5034_v20, %v5051_v1  ;;  %v9149_v58 = vor.u32 %v4562_v56, %v4561_v5  ;;  %v9151_v63 = vor.u32 %v4565_v40, %v4564_v29 }
 0x410   :  { %v9153_v9 = vshll.u32 %v5014_v31, 8  ;;  %v11397_v61 = vshll.u32 %v8972_v28, 16  ;;  %v9158_v30 = vor.u32 %v4568_v53, %v4567_v4  ;;  %vm5039_vm10 = vcmp.lt.s32.totalorder %v5019_v24, 2 }
 0x411   :  { %11395 = vst [vmem:[#allocation154_spill] sm:$0xff] %v9149_v58  ;;  %v5042_v55 = vsel %vm5038_vm7, %v5022_v15, %v5025_v35  ;;  %v5046_v49 = vsel %vm5038_vm7, %v5025_v35, %v5028_v16  ;;  %v5044_v12 = vsel %vm5040_vm6, %v5028_v16, %v5043_v19  ;;  %v5048_v3 = vsel %vm5040_vm6, %v5031_v44, %v5047_v48 }
 0x412   :  { %11396 = vst [vmem:[#allocation155_spill] sm:$0xff] %v9151_v63  ;;  %vm4761_vm15 = vc.u32 %v9007_v60, %v11397_v61  ;;  %v5053_v32 = vsel %vm5039_vm10, %v5050_v42, %v5052_v0  ;;  %vm5172_vm1 = vcmp.gt.s32.totalorder %v5171_v57, 0  ;;  %v4572_v1 = vor.u32 %v4571_v13, %v4570_v52 }
 0x413   :  { %11398 = vst [vmem:[#allocation156_spill] sm:$0xff] %v9158_v30  ;;  %vm11057_vm5 = vcmp.lt.s32.totalorder %v9117_v45, 4  ;;  %v5169_v40 = vor.u32 8388608, %v5168_v59  ;;  %v4762_v20 = vsel %vm4761_vm15, 1, %v11120_v46  ;;  %v9163_v31 = vor.u32 %v4559_v54, %v4558_v38 }
 0x414   :  { %v5055_v60 = vand.u32 65535, %v9153_v9  ;;  %v9167_v4 = vshrl.u32 %v9153_v9, 16  ;;  %v4775_v5 = vshll.u32 %v8983_v17, 16  ;;  %v9171_v16 = vsel %vm5039_vm10, %v5042_v55, %v5044_v12 }
 0x415   :  { %11399 = vst [vmem:[#allocation157_spill] sm:$0xff] %v9163_v31  ;;  %v9174_v0 = vsel %vm5039_vm10, %v5046_v49, %v5048_v3  ;;  %v5058_v52 = vshrl.u32 %v5053_v32, 16  ;;  %v5173_v44 = vsel %vm5172_vm1, %v5171_v57, 0  ;;  %v9179_v38 = vsel %vm11057_vm5, %v9158_v30, 920167782 }
 0x416   :  { %11400 = vst [vmem:[#allocation158_spill] sm:$0xff] %v9179_v38  ;;  %v9185_v29 = vsel %vm4573_vm4, %v9149_v58, %v9151_v63  ;;  %v5057_v54 = vand.u32 65535, %v5053_v32  ;;  %v4764_v56 = vadd.s32 %v4762_v20, %v9009_v2  ;;  %v9190_v3 = vsel %vm11057_vm5, %v4572_v1, 1326507024 }
 0x417   :  { %11401 = vst [vmem:[#allocation159_spill] sm:$0xff] %v9185_v29  ;;  %v9192_v24 = vshll.u32 %v5169_v40, 8  ;;  %v4754_v53 = vshrl.u32 %v8935_v43, 16  ;;  %v4756_v13 = vshrl.u32 %v8972_v28, 16  ;;  %v5079_v35 = vand.u32 65535, %v9174_v0 }
 0x418   :  { %11402 = vst [vmem:[#allocation160_spill] sm:$0xff] %v9190_v3  ;;  %v11053_v59 = vshrl.u32 %v9174_v0, 16  ;;  %v5175_v32 = vand.u32 31, %v5173_v44  ;;  %v9200_v57 = vmul.u32 %v5058_v52, %v5055_v60  ;;  %v4777_v2 = vshll.u32 %v8990_v6, 16 }
 0x419   :  { %vm4779_vm6 = vc.u32 %v8976_v37, %v4775_v5  ;;  %v4781_v19 = vadd.s32 %v4775_v5, %v8976_v37  ;;  %v9205_v48 = vmul.u32 %v5057_v54, %v5055_v60  ;;  %v9207_v43 = vshrl.u32 %v5173_v44, 5 }
 0x41a   :  { %v4765_v28 = vadd.s32 %v4764_v56, %v4754_v53  ;;  %v4780_v42 = vsel %vm4779_vm6, 1, %v11120_v46  ;;  %v9211_v61 = vmul.u32 %v5057_v54, %v9167_v4  ;;  %v9214_v55 = vmul.u32 %v5058_v52, %v9167_v4 }
 0x41b   :  { %v4782_v49 = vadd.s32 %v4780_v42, %v8997_v23  ;;  %vm4783_vm10 = vc.u32 %v4781_v19, %v4777_v2  ;;  %v9217_v12 = vmul.u32 %v5079_v35, %v5055_v60  ;;  %v9221_v37 = vmul.u32 %v11053_v59, %v5055_v60  ;;  %v11409_v59 = vld [vmem:[#allocation135_spill] sm:$0xff] }
 0x41c   :  { %v9224_v1 = vmul.u32 %v5079_v35, %v9167_v4  ;;  %v4784_v40 = vsel %vm4783_vm10, 1, %v11120_v46  ;;  %v9228_v5 = vsub.s32 32, %v5175_v32  ;;  %v4776_v52 = vshrl.u32 %v8983_v17, 16 }
 0x41d   :  { %v4786_v44 = vadd.s32 %v4784_v40, %v4782_v49  ;;  %v9231_v23 = vadd.s32 %v4765_v28, %v4756_v13  ;;  %v4778_v54 = vshrl.u32 %v8990_v6, 16  ;;  %v11403_v56 = vshll.u32 %v9025_v36, 16 }
 0x41e   :  { %v4930_v60 = vshll.u32 %v9014_v14, 16  ;;  %v9238_v53 = vadd.s32 %v4781_v19, %v4777_v2  ;;  %v4909_v42 = vshrl.u32 %v9003_v51, 16  ;;  %v4932_v13 = vshll.u32 %v9021_v33, 16 }
 0x41f   :  { %vm4916_vm15 = vc.u32 %v9060_v34, %v11403_v56  ;;  %v4787_v35 = vadd.s32 %v4786_v44, %v4776_v52  ;;  %v5178_v28 = vshll.u32 %v11119_v27, %v5175_v32  ;;  %v5181_v34 = vshll.u32 %v11121_v7, %v5175_v32 }
 0x420   :  { %v4917_v15 = vsel %vm4916_vm15, 1, %v11120_v46  ;;  %vm4934_vm7 = vc.u32 %v9012_v62, %v4930_v60  ;;  %v4936_v6 = vadd.s32 %v4930_v60, %v9012_v62  ;;  %vm4791_vm1 = vc.u32 %v9231_v23, %v9238_v53 }
 0x421   :  { %v4919_v17 = vadd.s32 %v4917_v15, %v9084_v11  ;;  %v4788_v49 = vadd.s32 %v4787_v35, %v4778_v54  ;;  %v4935_v2 = vsel %vm4934_vm7, 1, %v11120_v46  ;;  %v4911_v15 = vshrl.u32 %v9025_v36, 16 }
 0x422   :  { %v4937_v19 = vadd.s32 %v4935_v2, %v9027_v39  ;;  %vm4938_vm6 = vc.u32 %v4936_v6, %v4932_v13  ;;  %vm4109_vm10 = vcmp.lt.s32.totalorder %v8535_v47, 2  ;;  %v5184_v62 = vshll.u32 %v11122_v21, %v5175_v32 }
 0x423   :  { %v4920_v51 = vadd.s32 %v4919_v17, %v4909_v42  ;;  %v4792_v11 = vadd.s32 1, %v4788_v49  ;;  %v4939_v40 = vsel %vm4938_vm6, 1, %v11120_v46  ;;  %v4931_v52 = vshrl.u32 %v9014_v14, 16 }
 0x424   :  { %v4941_v44 = vadd.s32 %v4939_v40, %v4937_v19  ;;  %v9261_v54 = vsel %vm4109_vm10, %v8622_v22, %v8680_v50  ;;  %v5187_v39 = vshll.u32 %v11107_v10, %v5175_v32  ;;  %v4123_v36 = vsel %vm4109_vm10, %v8634_v41, %v8693_v25 }
 0x425   :  { %v4793_v56 = vsel %vm4791_vm1, %v4792_v11, %v4788_v49  ;;  %v9264_v60 = vadd.s32 %v4920_v51, %v4911_v15  ;;  %v9271_v35 = vshll.u32 %v11108_v18, %v5175_v32  ;;  %v11404_v14 = vmul.u32 %v8842_v26, %v8951_v8  ;;  %v11405_v26 = vld [vmem:[#allocation74_spill] sm:$0xff] }
 0x426   :  { %v4933_v22 = vshrl.u32 %v9021_v33, 16  ;;  %v4942_v50 = vadd.s32 %v4941_v44, %v4931_v52  ;;  %v9277_v17 = vadd.s32 %v4936_v6, %v4932_v13  ;;  %v4127_v49 = vand.u32 65535, %v4123_v36  ;;  %v11406_v13 = vld [vmem:[#allocation75_spill] sm:$0xff] }
 0x427   :  { %v4794_v42 = vadd.s32 %v4793_v56, %v11404_v14  ;;  %v4128_v2 = vshrl.u32 %v4123_v36, 16  ;;  %v4150_v51 = vshrl.u32 %v9261_v54, 16  ;;  %v9282_v19 = vshrl.u32 %v11119_v27, %v9228_v5 }
 0x428   :  { %v4943_v25 = vadd.s32 %v4942_v50, %v4933_v22  ;;  %v4149_v32 = vand.u32 65535, %v9261_v54  ;;  %vm4946_vm15 = vc.u32 %v9264_v60, %v9277_v17  ;;  %v4129_v8 = vmul.u32 %v4127_v49, %v11405_v26 }
 0x429   :  { %v4795_v41 = vadd.s32 536870912, %v4794_v42  ;;  %v9289_v33 = vmul.u32 %v4128_v2, %v11405_v26  ;;  %v9292_v6 = vmul.u32 %v4127_v49, %v11406_v13  ;;  %v5179_v11 = vshrl.u32 %v11121_v7, %v9228_v5  ;;  %v11407_v49 = vld [vmem:[#allocation79_spill] sm:$0xff] }
 0x42a   :  { %v4947_v40 = vadd.s32 1, %v4943_v25  ;;  %v9297_v52 = vmul.u32 %v4150_v51, %v11405_v26  ;;  %v5182_v44 = vshrl.u32 %v11122_v21, %v9228_v5  ;;  %v5185_v54 = vshrl.u32 %v11107_v10, %v9228_v5 }
 0x42b   :  { %v4796_v15 = vshrl.u32 %v4795_v41, 30  ;;  %v4133_v56 = vshll.u32 %v9289_v33, 16  ;;  %v4135_v36 = vshll.u32 %v9292_v6, 16  ;;  %v5188_v14 = vshrl.u32 %v11108_v18, %v9228_v5  ;;  %v11408_v41 = vld [vmem:[#allocation134_spill] sm:$0xff] }
 0x42c   :  { %v4948_v7 = vsel %vm4946_vm15, %v4947_v40, %v4943_v25  ;;  %v4151_v50 = vmul.u32 %v4149_v32, %v11405_v26  ;;  %vm4698_vm7 = vcmp.lt.s32.totalorder %v11407_v49, 0  ;;  %v11410_v20 = vmul.u32 %v11408_v41, %v11409_v59 }
 0x42d   :  { %v4797_v22 = vshll.u32 %v4796_v15, 30  ;;  %vm4137_vm1 = vc.u32 %v4129_v8, %v4133_v56  ;;  %v4139_v29 = vadd.s32 %v4133_v56, %v4129_v8  ;;  %v4155_v10 = vshll.u32 %v9297_v52, 16 }
 0x42e   :  { %v4949_v21 = vadd.s32 %v4948_v7, %v11410_v20  ;;  %v4132_v38 = vmul.u32 %v4128_v2, %v11406_v13  ;;  %v4138_v18 = vsel %vm4137_vm1, 1, %v11120_v46  ;;  %v9318_v25 = vmul.u32 %v4149_v32, %v11406_v13 }
 0x42f   :  { %v9313_v63 = vsub.s32 %v4794_v42, %v4797_v22  ;;  %v9320_v26 = vor.u32 %v5179_v11, %v5178_v28  ;;  %v11411_v40 = vmov 1326507024   ;;  %vm4141_vm6 = vc.u32 %v4139_v29, %v4135_v36  ;;  %v11415_v11 = vld [vmem:[#allocation69_spill] sm:$0xff] }
 0x430   :  { %v9324_v31 = vshrl.u32 %v11411_v40, %v9228_v5  ;;  %v4950_v59 = vadd.s32 536870912, %v4949_v21  ;;  %v9326_v20 = vor.u32 %v5182_v44, %v5181_v34  ;;  %v11412_v42 = vand.u32 2147483647, %v11407_v49 }
 0x431   :  { %vm4799_vm1 = vcmp.lt.s32.totalorder %v9313_v63, 0  ;;  %v4800_v2 = vsub.s32 0, %v9313_v63  ;;  %v4140_v28 = vadd.s32 %v4138_v18, %v4132_v38  ;;  %v4092_v5 = vshrl.u32 %v11119_v27, %v11415_v11  ;;  %v11416_v18 = vld [vmem:[#allocation85_spill] sm:$0xff] }
 0x432   :  { %vm9330_vm15 = vcmp.le.f32.partialorder %v11412_v42, 0.7853982  ;;  %v4951_v32 = vshrl.u32 %v4950_v59, 30  ;;  %v4142_v56 = vsel %vm4141_vm6, 1, %v11120_v46  ;;  %vm4159_vm5 = vc.u32 %v4151_v50, %v4155_v10 }
 0x433   :  { %v4801_v29 = vsel %vm4799_vm1, %v4800_v2, %v9313_v63  ;;  %v4820_v34 = vsub.s32 4, %v4796_v15  ;;  %v4157_v44 = vshll.u32 %v9318_v25, 16  ;;  %v4161_v36 = vadd.s32 %v4155_v10, %v4151_v50  ;;  %v11417_v2 = vld [vmem:[#allocation95_spill] sm:$0xff] }
 0x434   :  { %v9341_v22 = vor.u32 %v5185_v54, %v5184_v62  ;;  %v4802_v7 = vclz %v4801_v29  ;;  %v4952_v41 = vshll.u32 %v4951_v32, 30  ;;  %v4160_v40 = vsel %vm4159_vm5, 1, %v11120_v46  ;;  %v11418_v10 = vld [vmem:[#allocation83_spill] sm:$0xff] }
 0x435   :  { %v9344_v38 = vor.u32 %v5188_v14, %v5187_v39  ;;  %v4113_v59 = vsel %vm4111_vm11, %v11416_v18, 2102212464  ;;  %v4144_v42 = vadd.s32 %v4142_v56, %v4140_v28  ;;  %v4154_v11 = vmul.u32 %v4150_v51, %v11406_v13  ;;  %v11419_v13 = vld [vmem:[#allocation84_spill] sm:$0xff] }
 0x436   :  { %vm4853_vm6 = vcmp.lt.s32.totalorder %v11417_v2, 0  ;;  %v4790_v50 = vadd.s32 %v9238_v53, %v9231_v23  ;;  %v5544_v62 = vadd.s32 4294967294, %v4802_v7  ;;  %v4953_v54 = vsub.s32 %v4949_v21, %v4952_v41 }
 0x437   :  { %v4112_v29 = vsel %vm4108_vm12, %v4092_v5, %v11418_v10  ;;  %v4821_v39 = vsel %vm4698_vm7, %v4820_v34, %v4796_v15  ;;  %v4134_v14 = vshrl.u32 %v9289_v33, 16  ;;  %v4162_v18 = vadd.s32 %v4160_v40, %v4154_v11 }
 0x438   :  { %vm4163_vm11 = vc.u32 %v4161_v36, %v4157_v44  ;;  %vm5545_vm5 = vcmp.lt.s32.totalorder %v5544_v62, 0  ;;  %vm4954_vm1 = vcmp.lt.s32.totalorder %v4953_v54, 0  ;;  %v4955_v51 = vsub.s32 0, %v4953_v54 }
 0x439   :  { %v4114_v23 = vsel %vm4110_vm2, %v11419_v13, %v4113_v59  ;;  %v4805_v53 = vsel %vm5545_vm5, 0, %v5544_v62  ;;  %v4945_v21 = vadd.s32 %v9277_v17, %v9264_v60  ;;  %v4145_v28 = vadd.s32 %v4144_v42, %v4134_v14 }
 0x43a   :  { %v4164_v5 = vsel %vm4163_vm11, 1, %v11120_v46  ;;  %v4806_v56 = vsub.s32 32, %v4805_v53  ;;  %v4810_v15 = vsub.s32 4294967266, %v4805_v53  ;;  %v4823_v33 = vsel %vm9330_vm15, 0, %v4821_v39 }
 0x43b   :  { %v4956_v34 = vsel %vm4954_vm1, %v4955_v51, %v4953_v54  ;;  %v11420_v7 = vand.u32 2147483647, %v11417_v2  ;;  %v4975_v59 = vsub.s32 4, %v4951_v32  ;;  %v4136_v11 = vshrl.u32 %v9292_v6, 16 }
 0x43c   :  { %v4957_v40 = vclz %v4956_v34  ;;  %v4166_v60 = vadd.s32 %v4164_v5, %v4162_v18  ;;  %v4807_v17 = vshll.u32 %v9313_v63, %v4805_v53  ;;  %v4808_v42 = vshrl.u32 %v4790_v50, %v4806_v56  ;;  %v11423_v50 = vld [vmem:[#allocation94_spill] sm:$0xff]  ;;  %v11424_v5 = vld [vmem:[#allocation67_spill] sm:$0xff] }
 0x43d   :  { %vm9369_vm12 = vcmp.le.f32.partialorder %v11420_v7, 0.7853982  ;;  %v4811_v62 = vadd.s32 127, %v4810_v15  ;;  %v4156_v10 = vshrl.u32 %v9297_v52, 16  ;;  %v4840_v14 = vadd.s32 3, %v4823_v33  ;;  %v11425_v33 = vld [vmem:[#allocation113_spill] sm:$0xff] }
 0x43e   :  { %v5547_v39 = vadd.s32 4294967294, %v4957_v40  ;;  %v4115_v51 = vsel %vm4109_vm10, %v4112_v29, %v4114_v23  ;;  %v4146_v13 = vadd.s32 %v4145_v28, %v4136_v11  ;;  %v4809_v7 = vor.u32 %v4808_v42, %v4807_v17  ;;  %v11426_v40 = vld [vmem:[#allocation104_spill] sm:$0xff] }
 0x43f   :  { %v4812_v58 = vshll.u32 %v4811_v62, 23  ;;  %v4158_v34 = vshrl.u32 %v9318_v25, 16  ;;  %v4167_v30 = vadd.s32 %v4166_v60, %v4156_v10  ;;  %v4976_v6 = vsel %vm4853_vm6, %v4975_v59, %v4951_v32 }
 0x440   :  { %vm5548_vm2 = vcmp.lt.s32.totalorder %v5547_v39, 0  ;;  %v4165_v63 = vadd.s32 %v4161_v36, %v4157_v44  ;;  %vm4264_vm11 = vcmp.lt.s32.totalorder %v11423_v50, 2  ;;  %v4169_v56 = vmul.u32 %v11424_v5, %v4115_v51  ;;  %v11427_v51 = vld [vmem:[#allocation101_spill] sm:$0xff]  ;;  %v11441_v50 = vld [vmem:[#allocation50_spill] sm:$0xff] }
 0x441   :  { %v4813_v18 = vor.u32 4788187, %v4812_v58  ;;  %v4960_v52 = vsel %vm5548_vm2, 0, %v5547_v39  ;;  %v4168_v53 = vadd.s32 %v4167_v30, %v4158_v34  ;;  %v4816_v47 = vcvt.s32.f32 %v4809_v7  ;;  %v11428_v34 = vld [vmem:[#allocation102_spill] sm:$0xff] }
 0x442   :  { %v4961_v29 = vsub.s32 32, %v4960_v52  ;;  %v4965_v23 = vsub.s32 4294967266, %v4960_v52  ;;  %vm4171_vm10 = vc.u32 %v4146_v13, %v4165_v63  ;;  %v4962_v15 = vshll.u32 %v4953_v54, %v4960_v52 }
 0x443   :  { %v4814_v28 = vand.u32 2147483647, %v4813_v18  ;;  %v4172_v25 = vadd.s32 1, %v4168_v53  ;;  %v4278_v32 = vsel %vm4264_vm11, %v11426_v40, %v11425_v33  ;;  %v9388_v30 = vand.u32 65535, %v9192_v24  ;;  %v11430_v33 = vld [vmem:[#allocation106_spill] sm:$0xff]  ;;  %v11431_v40 = vld [vmem:[#allocation103_spill] sm:$0xff] }
 0x444   :  { %v4963_v44 = vshrl.u32 %v4945_v21, %v4961_v29  ;;  %v4966_v36 = vadd.s32 127, %v4965_v23  ;;  %v4282_v59 = vand.u32 65535, %v4278_v32  ;;  %v4283_v58 = vshrl.u32 %v4278_v32, 16 }
 0x445   :  { %v4817_v11 = vmul.f32 %v4816_v47, %v4814_v28  ;;  %v4978_v60 = vsel %vm9369_vm12, 0, %v4976_v6  ;;  %v4173_v17 = vsel %vm4171_vm10, %v4172_v25, %v4168_v53  ;;  %v9392_v42 = vand.u32 3, %v4840_v14  ;;  %v11429_v53 = vld [vmem:[#allocation90_spill] sm:$0xff] }
 0x446   :  { %v4964_v54 = vor.u32 %v4963_v44, %v4962_v15  ;;  %v4967_v62 = vshll.u32 %v4966_v36, 23  ;;  %v4174_v10 = vadd.s32 %v4173_v17, %v4169_v56  ;;  %v4284_v7 = vmul.u32 %v4282_v59, %v11427_v51 }
 0x447   :  { %v4818_v39 = vxor.u32 2147483648, %v4817_v11  ;;  %v9396_v21 = vmul.u32 %v4283_v58, %v11427_v51  ;;  %v9399_v18 = vmul.u32 %v4282_v59, %v11428_v34  ;;  %v4995_v5 = vadd.s32 3, %v4978_v60  ;;  %v11432_v60 = vld [vmem:[#allocation14_spill] sm:$0xff] }
 0x448   :  { %v4968_v52 = vor.u32 4788187, %v4967_v62  ;;  %v9401_v47 = vadd.s32 %v4165_v63, %v4146_v13  ;;  %v4175_v6 = vadd.s32 536870912, %v4174_v10  ;;  %v4247_v56 = vshrl.u32 %v11119_v27, %v11429_v53 }
 0x449   :  { %v4819_v14 = vsel %vm4698_vm7, %v4818_v39, %v4817_v11  ;;  %v4288_v29 = vshll.u32 %v9396_v21, 16  ;;  %v4290_v23 = vshll.u32 %v9399_v18, 16  ;;  %v4971_v25 = vcvt.s32.f32 %v4964_v54 }
 0x44a   :  { %v9412_v28 = vsel %vm9330_vm15, %v11407_v49, %v4819_v14  ;;  %v4969_v15 = vand.u32 2147483647, %v4968_v52  ;;  %v4176_v13 = vshrl.u32 %v4175_v6, 30  ;;  %v4274_v32 = vsel %vm4264_vm11, %v11431_v40, %v11430_v33  ;;  %v11433_v6 = vld [vmem:[#allocation97_spill] sm:$0xff]  ;;  %v11434_v40 = vld [vmem:[#allocation99_spill] sm:$0xff] }
 0x44b   :  { %v4824_v63 = vmul.f32 %v9412_v28, %v9412_v28  ;;  %vm4292_vm7 = vc.u32 %v4284_v7, %v4288_v29  ;;  %v4294_v44 = vadd.s32 %v4288_v29, %v4284_v7  ;;  %v4287_v11 = vmul.u32 %v4283_v58, %v11428_v34 }
 0x44c   :  { %v4972_v36 = vmul.f32 %v4971_v25, %v4969_v15  ;;  %v4177_v59 = vshll.u32 %v4176_v13, 30  ;;  %v4293_v8 = vsel %vm4292_vm7, 1, %v11120_v46  ;;  %vm4078_vm15 = vcmp.lt.s32.totalorder %v11432_v60, 0 }
 0x44d   :  { %v4825_v17 = vmul.f32 -0.001358992, %v4824_v63  ;;  %v4832_v54 = vmul.f32 -0.00019511016, %v4824_v63  ;;  %v9423_v62 = vand.u32 3, %v4995_v5  ;;  %vm4296_vm5 = vc.u32 %v4294_v44, %v4290_v23 }
 0x44e   :  { %v4973_v39 = vxor.u32 2147483648, %v4972_v36  ;;  %v9425_v52 = vsub.s32 %v4174_v10, %v4177_v59  ;;  %v9430_v7 = vsel %vm4263_vm14, %v4247_v56, %v11433_v6  ;;  %v4295_v14 = vadd.s32 %v4293_v8, %v4287_v11 }
 0x44f   :  { %v4826_v53 = vadd.f32 0.041655596, %v4825_v17  ;;  %v4833_v58 = vadd.f32 0.008332121, %v4832_v54  ;;  %v4297_v29 = vsel %vm4296_vm5, 1, %v11120_v46  ;;  %v4305_v15 = vshrl.u32 %v4274_v32, 16 }
 0x450   :  { %v4974_v25 = vsel %vm4853_vm6, %v4973_v39, %v4972_v36  ;;  %vm4179_vm1 = vcmp.lt.s32.totalorder %v9425_v52, 0  ;;  %v4180_v5 = vsub.s32 0, %v9425_v52  ;;  %v4304_v10 = vand.u32 65535, %v4274_v32 }
 0x451   :  { %v4827_v23 = vmul.f32 %v4826_v53, %v4824_v63  ;;  %v4834_v33 = vmul.f32 %v4833_v58, %v4824_v63  ;;  %v9440_v56 = vsel %vm9369_vm12, %v11417_v2, %v4974_v25  ;;  %v9445_v44 = vsel %vm4266_vm13, %v11434_v40, 2102212464 }
 0x452   :  { %vm4846_vm14 = vcmp.eq.s32.totalorder %v9392_v42, 2  ;;  %v4979_v36 = vmul.f32 %v9440_v56, %v9440_v56  ;;  %v4181_v59 = vsel %vm4179_vm1, %v4180_v5, %v9425_v52  ;;  %v4200_v32 = vsub.s32 4, %v4176_v13 }
 0x453   :  { %v4299_v11 = vadd.s32 %v4297_v29, %v4295_v14  ;;  %v4828_v8 = vadd.f32 -0.4999988, %v4827_v23  ;;  %v4835_v17 = vadd.f32 -0.16666654, %v4834_v33  ;;  %v4182_v54 = vclz %v4181_v59 }
 0x454   :  { %v9452_v41 = vmul.u32 %v4305_v15, %v11427_v51  ;;  %vm4843_vm6 = vcmp.eq.s32.totalorder %v9392_v42, 0  ;;  %v4980_v39 = vmul.f32 -0.001358992, %v4979_v36  ;;  %v4987_v6 = vmul.f32 -0.00019511016, %v4979_v36 }
 0x455   :  { %v4289_v53 = vshrl.u32 %v9396_v21, 16  ;;  %v4306_v58 = vmul.u32 %v4304_v10, %v11427_v51  ;;  %v4829_v25 = vmul.f32 %v4828_v8, %v4824_v63  ;;  %v4836_v40 = vmul.f32 %v4835_v17, %v4824_v63 }
 0x456   :  { %vm4842_vm13 = vcmp.lt.s32.totalorder %v9392_v42, 2  ;;  %v5532_v5 = vadd.s32 4294967294, %v4182_v54  ;;  %v9459_v14 = vmul.u32 %v4304_v10, %v11428_v34  ;;  %vm4839_vm12 = vweird.f32 %v11407_v49 }
 0x457   :  { %v4981_v29 = vadd.f32 0.041655596, %v4980_v39  ;;  %v4988_v23 = vadd.f32 0.008332121, %v4987_v6  ;;  %v9464_v33 = vsel %vm4078_vm15, %v4200_v32, %v4176_v13  ;;  %v4300_v59 = vadd.s32 %v4299_v11, %v4289_v53 }
 0x458   :  { %v4830_v21 = vadd.f32 1.0, %v4829_v25  ;;  %v4837_v3 = vadd.f32 1.0, %v4836_v40  ;;  %vm5533_vm2 = vcmp.lt.s32.totalorder %v5532_v5, 0  ;;  %v4310_v51 = vshll.u32 %v9452_v41, 16 }
 0x459   :  { %v4982_v63 = vmul.f32 %v4981_v29, %v4979_v36  ;;  %v4989_v8 = vmul.f32 %v4988_v23, %v4979_v36  ;;  %v11435_v17 = vand.u32 2147483647, %v11432_v60  ;;  %v4185_v54 = vsel %vm5533_vm2, 0, %v5532_v5 }
 0x45a   :  { %v4309_v39 = vmul.u32 %v4305_v15, %v11428_v34  ;;  %v4838_v13 = vmul.f32 %v4837_v3, %v9412_v28  ;;  %v4847_v32 = vxor.u32 2147483648, %v4830_v21  ;;  %v4186_v11 = vsub.s32 32, %v4185_v54 }
 0x45b   :  { %vm9469_vm10 = vcmp.le.f32.partialorder %v11435_v17, 0.7853982  ;;  %v4312_v6 = vshll.u32 %v9459_v14, 16  ;;  %v4983_v53 = vadd.f32 -0.4999988, %v4982_v63  ;;  %v4187_v40 = vshll.u32 %v9425_v52, %v4185_v54 }
 0x45c   :  { %v4990_v25 = vadd.f32 -0.16666654, %v4989_v8  ;;  %v4190_v29 = vsub.s32 4294967266, %v4185_v54  ;;  %v4844_v23 = vxor.u32 2147483648, %v4838_v13  ;;  %v4848_v17 = vsel %vm4846_vm14, %v4847_v32, %v4838_v13 }
 0x45d   :  { %vm4998_vm7 = vcmp.eq.s32.totalorder %v9423_v62, 0  ;;  %v4188_v5 = vshrl.u32 %v9401_v47, %v4186_v11  ;;  %vm4314_vm5 = vc.u32 %v4306_v58, %v4310_v51  ;;  %v4984_v34 = vmul.f32 %v4983_v53, %v4979_v36  ;;  %v11438_v53 = vld [vmem:[#allocation98_spill] sm:$0xff] }
 0x45e   :  { %v4991_v3 = vmul.f32 %v4990_v25, %v4979_v36  ;;  %vm4997_vm1 = vcmp.lt.s32.totalorder %v9423_v62, 2  ;;  %v4191_v28 = vadd.s32 127, %v4190_v29  ;;  %v4315_v15 = vsel %vm4314_vm5, 1, %v11120_v46 }
 0x45f   :  { %v4845_v52 = vsel %vm4843_vm6, %v4830_v21, %v4844_v23  ;;  %vm4994_vm2 = vweird.f32 %v11417_v2  ;;  %v4189_v63 = vor.u32 %v4188_v5, %v4187_v40  ;;  %v4316_v8 = vadd.s32 %v4310_v51, %v4306_v58 }
 0x460   :  { %v4317_v54 = vadd.s32 %v4315_v15, %v4309_v39  ;;  %v4849_v13 = vsel %vm4842_vm13, %v4845_v52, %v4848_v17  ;;  %v4985_v47 = vadd.f32 1.0, %v4984_v34  ;;  %v4992_v32 = vadd.f32 1.0, %v4991_v3  ;;  %v11439_v15 = vld [vmem:[#allocation55_spill] sm:$0xff] }
 0x461   :  { %v4192_v11 = vshll.u32 %v4191_v28, 23  ;;  %vm5193_vm14 = vcmp.lt.s32.totalorder %v9207_v43, 1  ;;  %v4850_v36 = vsel %vm4839_vm12, nan, %v4849_v13  ;;  %v4269_v21 = vsel %vm4265_vm3, %v11438_v53, %v9445_v44  ;;  %v11443_v13 = vld [vmem:[#allocation24_spill] sm:$0xff] }
 0x462   :  { %v4291_v25 = vshrl.u32 %v9399_v18, 16  ;;  %vm4318_vm6 = vc.u32 %v4316_v8, %v4312_v6  ;;  %vm5196_vm5 = vcmp.lt.s32.totalorder %v9207_v43, 4  ;;  %5338 = vmatpush.msra.mxu0 %v4850_v36  ;;  %v4993_v42 = vmul.f32 %v4992_v32, %v9440_v56 }
 0x463   :  { %v5002_v58 = vxor.u32 2147483648, %v4985_v47  ;;  %v4193_v51 = vor.u32 4788187, %v4192_v11  ;;  %v4319_v39 = vsel %vm4318_vm6, 1, %v11120_v46  ;;  %vm5001_vm13 = vcmp.eq.s32.totalorder %v9423_v62, 2 }
 0x464   :  { %v4203_v49 = vsel %vm9469_vm10, 0, %v9464_v33  ;;  %v4311_v44 = vshrl.u32 %v9452_v41, 16  ;;  %v4321_v40 = vadd.s32 %v4319_v39, %v4317_v54  ;;  %v4999_v18 = vxor.u32 2147483648, %v4993_v42  ;;  %v11440_v54 = vld [vmem:[#allocation8_spill] sm:$0xff] }
 0x465   :  { %v4194_v29 = vand.u32 2147483647, %v4193_v51  ;;  %v4196_v23 = vcvt.s32.f32 %v4189_v63  ;;  %v9504_v17 = vadd.s32 %v4300_v59, %v4291_v25  ;;  %v4270_v56 = vsel %vm4264_vm11, %v9430_v7, %v4269_v21  ;;  %v11444_v21 = vld [vmem:[#allocation77_spill] sm:$0xff] }
 0x466   :  { %v4313_v5 = vshrl.u32 %v9459_v14, 16  ;;  %v9510_v34 = vadd.s32 %v4316_v8, %v4312_v6  ;;  %v4322_v3 = vadd.s32 %v4321_v40, %v4311_v44  ;;  %v5000_v33 = vsel %vm4998_vm7, %v4985_v47, %v4999_v18  ;;  %v11442_v8 = vld [vmem:[#allocation28_spill] sm:$0xff] }
 0x467   :  { %v5003_v28 = vsel %vm5001_vm13, %v5002_v58, %v4993_v42  ;;  %v4197_v41 = vmul.f32 %v4196_v23, %v4194_v29  ;;  %vm3489_vm3 = vcmp.lt.s32.totalorder %v11439_v15, 2  ;;  %v4220_v52 = vadd.s32 3, %v4203_v49  ;;  %v11445_v49 = vld [vmem:[#allocation61_spill] sm:$0xff]  ;;  %v11446_v29 = vld [vmem:[#allocation15_spill] sm:$0xff] }
 0x468   :  { %v5004_v59 = vsel %vm4997_vm1, %v5000_v33, %v5003_v28  ;;  %v4323_v63 = vadd.s32 %v4322_v3, %v4313_v5  ;;  %v3499_v7 = vsel %vm3489_vm3, %v11441_v50, %v11440_v54  ;;  %vm4326_vm11 = vc.u32 %v9504_v17, %v9510_v34 }
 0x469   :  { %v5005_v14 = vsel %vm4994_vm2, nan, %v5004_v59  ;;  %v4198_v6 = vxor.u32 2147483648, %v4197_v41  ;;  %v3503_v62 = vsel %vm3489_vm3, %v11443_v13, %v11442_v8  ;;  %v9535_v2 = vsel %vm5193_vm14, %v9282_v19, %v9320_v26  ;;  %v11447_v59 = vld [vmem:[#allocation56_spill] sm:$0xff] }
 0x46a   :  { %5358 = vmatpush.msra.mxu1 %v5005_v14  ;;  %v4327_v32 = vadd.s32 1, %v4323_v63  ;;  %v3507_v11 = vand.u32 65535, %v3503_v62  ;;  %v3508_v36 = vshrl.u32 %v3503_v62, 16  ;;  %v4324_v25 = vmul.u32 %v11444_v21, %v4270_v56 }
 0x46b   :  { %v4199_v53 = vsel %vm4078_vm15, %v4198_v6, %v4197_v41  ;;  %v3530_v42 = vshrl.u32 %v3499_v7, 16  ;;  %v9543_v58 = vsel %vm5196_vm5, %v9341_v22, 2102212464  ;;  %v9553_v40 = vand.u32 3, %v4220_v52 }
 0x46c   :  { %v9548_v51 = vsel %vm9469_vm10, %v11432_v60, %v4199_v53  ;;  %v4328_v39 = vsel %vm4326_vm11, %v4327_v32, %v4323_v63  ;;  %v3510_v19 = vmul.u32 %v3508_v36, %v11445_v49  ;;  %v9556_v23 = vmul.u32 %v3507_v11, %v11446_v29 }
 0x46d   :  { %v4204_v44 = vmul.f32 %v9548_v51, %v9548_v51  ;;  %v4329_v18 = vadd.s32 %v4328_v39, %v4324_v25  ;;  %v3509_v56 = vmul.u32 %v3507_v11, %v11445_v49  ;;  %v3529_v3 = vand.u32 65535, %v3499_v7  ;;  %v11448_v25 = vld [vmem:[#allocation41_spill] sm:$0xff]  ;;  %v11449_v39 = vld [vmem:[#allocation7_spill] sm:$0xff] }
 0x46e   :  { %v3513_v5 = vshll.u32 %v3510_v19, 16  ;;  %v9560_v10 = vmul.u32 %v3530_v42, %v11445_v49  ;;  %v3472_v63 = vshrl.u32 %v11119_v27, %v11447_v59  ;;  %v3512_v52 = vmul.u32 %v3508_v36, %v11446_v29 }
 0x46f   :  { %v4205_v33 = vmul.f32 -0.001358992, %v4204_v44  ;;  %v4212_v28 = vmul.f32 -0.00019511016, %v4204_v44  ;;  %v4330_v41 = vadd.s32 536870912, %v4329_v18  ;;  %v3515_v54 = vshll.u32 %v9556_v23, 16 }
 0x470   :  { %vm3517_vm15 = vc.u32 %v3509_v56, %v3513_v5  ;;  %v3519_v50 = vadd.s32 %v3513_v5, %v3509_v56  ;;  %v3533_v62 = vmul.u32 %v3529_v3, %v11446_v29  ;;  %v3535_v32 = vshll.u32 %v9560_v10, 16 }
 0x471   :  { %v4206_v14 = vadd.f32 0.041655596, %v4205_v33  ;;  %v4213_v6 = vadd.f32 0.008332121, %v4212_v28  ;;  %v4331_v8 = vshrl.u32 %v4330_v41, 30  ;;  %v3518_v7 = vsel %vm3517_vm15, 1, %v11120_v46 }
 0x472   :  { %v3520_v13 = vadd.s32 %v3518_v7, %v3512_v52  ;;  %vm3521_vm12 = vc.u32 %v3519_v50, %v3515_v54  ;;  %v3493_v36 = vsel %vm3491_vm0, %v11448_v25, 2102212464  ;;  %v3492_v56 = vsel %vm3488_vm9, %v3472_v63, %v11449_v39  ;;  %v11450_v41 = vld [vmem:[#allocation29_spill] sm:$0xff] }
 0x473   :  { %v4207_v11 = vmul.f32 %v4206_v14, %v4204_v44  ;;  %v4214_v53 = vmul.f32 %v4213_v6, %v4204_v44  ;;  %v4332_v21 = vshll.u32 %v4331_v8, 30  ;;  %v3514_v5 = vshrl.u32 %v3510_v19, 16  ;;  %v11451_v19 = vld [vmem:[#allocation33_spill] sm:$0xff] }
 0x474   :  { %v3522_v33 = vsel %vm3521_vm12, 1, %v11120_v46  ;;  %v3531_v28 = vmul.u32 %v3529_v3, %v11445_v49  ;;  %vm4233_vm10 = vcmp.lt.s32.totalorder %v11450_v41, 0  ;;  %v3534_v50 = vmul.u32 %v3530_v42, %v11446_v29 }
 0x475   :  { %v4208_v59 = vadd.f32 -0.4999988, %v4207_v11  ;;  %v4215_v52 = vadd.f32 -0.16666654, %v4214_v53  ;;  %v9578_v54 = vsub.s32 %v4329_v18, %v4332_v21  ;;  %v3524_v14 = vadd.s32 %v3522_v33, %v3520_v13 }
 0x476   :  { %v3537_v6 = vshll.u32 %v3533_v62, 16  ;;  %vm3539_vm0 = vc.u32 %v3531_v28, %v3535_v32  ;;  %v3541_v7 = vadd.s32 %v3535_v32, %v3531_v28  ;;  %vm4222_vm9 = vcmp.lt.s32.totalorder %v9553_v40, 2 }
 0x477   :  { %v4209_v25 = vmul.f32 %v4208_v59, %v4204_v44  ;;  %v4216_v47 = vmul.f32 %v4215_v52, %v4204_v44  ;;  %vm4334_vm7 = vcmp.lt.s32.totalorder %v9578_v54, 0  ;;  %v4335_v49 = vsub.s32 0, %v9578_v54 }
 0x478   :  { %vm4219_vm1 = vweird.f32 %v11432_v60  ;;  %v3494_v18 = vsel %vm3490_vm8, %v11451_v19, %v3493_v36  ;;  %v3525_v3 = vadd.s32 %v3524_v14, %v3514_v5  ;;  %v3540_v42 = vsel %vm3539_vm0, 1, %v11120_v46 }
 0x479   :  { %vm3543_vm2 = vc.u32 %v3541_v7, %v3537_v6  ;;  %v4210_v29 = vadd.f32 1.0, %v4209_v25  ;;  %v4217_v63 = vadd.f32 1.0, %v4216_v47  ;;  %v4336_v44 = vsel %vm4334_vm7, %v4335_v49, %v9578_v54 }
 0x47a   :  { %v3542_v13 = vadd.s32 %v3540_v42, %v3534_v50  ;;  %v11452_v32 = vand.u32 2147483647, %v11450_v41  ;;  %v4337_v53 = vclz %v4336_v44  ;;  %v4355_v21 = vsub.s32 4, %v4331_v8 }
 0x47b   :  { %v3516_v39 = vshrl.u32 %v9556_v23, 16  ;;  %v3544_v36 = vsel %vm3543_vm2, 1, %v11120_v46  ;;  %v4218_v5 = vmul.f32 %v4217_v63, %v9548_v51  ;;  %v4227_v33 = vxor.u32 2147483648, %v4210_v29 }
 0x47c   :  { %vm9592_vm6 = vcmp.le.f32.partialorder %v11452_v32, 0.7853982  ;;  %v3536_v47 = vshrl.u32 %v9560_v10, 16  ;;  %v3546_v28 = vadd.s32 %v3544_v36, %v3542_v13  ;;  %vm4223_vm8 = vcmp.eq.s32.totalorder %v9553_v40, 0  ;;  %v11460_v36 = vld [vmem:[#allocation5_spill] sm:$0xff] }
 0x47d   :  { %vm4226_vm13 = vcmp.eq.s32.totalorder %v9553_v40, 2  ;;  %v5535_v59 = vadd.s32 4294967294, %v4337_v53  ;;  %v3526_v52 = vadd.s32 %v3525_v3, %v3516_v39  ;;  %v4224_v50 = vxor.u32 2147483648, %v4218_v5  ;;  %v11456_v53 = vld [vmem:[#allocation45_spill] sm:$0xff]  ;;  %v11459_v39 = vld [vmem:[#allocation68_spill] sm:$0xff] }
 0x47e   :  { %v4325_v14 = vadd.s32 %v9510_v34, %v9504_v17  ;;  %v3538_v25 = vshrl.u32 %v3533_v62, 16  ;;  %v3547_v23 = vadd.s32 %v3546_v28, %v3536_v47  ;;  %v4356_v51 = vsel %vm4233_vm10, %v4355_v21, %v4331_v8  ;;  %v11455_v34 = vld [vmem:[#allocation53_spill] sm:$0xff] }
 0x47f   :  { %vm5536_vm11 = vcmp.lt.s32.totalorder %v5535_v59, 0  ;;  %v3495_v10 = vsel %vm3489_vm3, %v3492_v56, %v3494_v18  ;;  %v3545_v49 = vadd.s32 %v3541_v7, %v3537_v6  ;;  %v4225_v19 = vsel %vm4223_vm8, %v4210_v29, %v4224_v50  ;;  %v11457_v7 = vld [vmem:[#allocation66_spill] sm:$0xff] }
 0x480   :  { %v4228_v42 = vsel %vm4226_vm13, %v4227_v33, %v4218_v5  ;;  %v4340_v63 = vsel %vm5536_vm11, 0, %v5535_v59  ;;  %v3548_v44 = vadd.s32 %v3547_v23, %v3538_v25  ;;  %v3549_v62 = vmul.u32 %v11455_v34, %v3495_v10  ;;  %v11458_v18 = vld [vmem:[#allocation34_spill] sm:$0xff] }
 0x481   :  { %v4229_v3 = vsel %vm4222_vm9, %v4225_v19, %v4228_v42  ;;  %v4341_v13 = vsub.s32 32, %v4340_v63  ;;  %v4345_v32 = vsub.s32 4294967266, %v4340_v63  ;;  %vm3551_vm15 = vc.u32 %v3526_v52, %v3545_v49 }
 0x482   :  { %v4230_v17 = vsel %vm4219_vm1, nan, %v4229_v3  ;;  %v3552_v8 = vadd.s32 1, %v3548_v44  ;;  %vm3644_vm12 = vcmp.lt.s32.totalorder %v11456_v53, 2  ;;  %v4342_v15 = vshll.u32 %v9578_v54, %v4340_v63  ;;  %v11462_v63 = vld [vmem:[#allocation44_spill] sm:$0xff]  ;;  %v11463_v3 = vld [vmem:[#allocation47_spill] sm:$0xff] }
 0x483   :  { %5339 = vmatpush.msra.mxu0 %v4230_v17  ;;  %v4343_v56 = vshrl.u32 %v4325_v14, %v4341_v13  ;;  %v4346_v6 = vadd.s32 127, %v4345_v32  ;;  %v3654_v40 = vsel %vm3644_vm12, %v11458_v18, %v11457_v7  ;;  %v9623_v60 = vsel %vm5193_vm14, %v9320_v26, %v9326_v20 }
 0x484   :  { %v4358_v29 = vsel %vm9592_vm6, 0, %v4356_v51  ;;  %v3553_v21 = vsel %vm3551_vm15, %v3552_v8, %v3548_v44  ;;  %v3658_v54 = vsel %vm3644_vm12, %v11460_v36, %v11459_v39  ;;  %v9634_v59 = vsel %vm5196_vm5, %v9344_v38, 920167782 }
 0x485   :  { %v4344_v5 = vor.u32 %v4343_v56, %v4342_v15  ;;  %v4347_v33 = vshll.u32 %v4346_v6, 23  ;;  %v3554_v47 = vadd.s32 %v3553_v21, %v3549_v62  ;;  %v3662_v28 = vand.u32 65535, %v3658_v54 }
 0x486   :  { %v3663_v26 = vshrl.u32 %v3658_v54, 16  ;;  %v3684_v50 = vand.u32 65535, %v3654_v40  ;;  %v3685_v14 = vshrl.u32 %v3654_v40, 16  ;;  %v9640_v25 = vsel %vm5193_vm14, %v9326_v20, %v9341_v22 }
 0x487   :  { %v11461_v23 = vor.u32 %v9324_v31, %v9271_v35  ;;  %v4348_v10 = vor.u32 4788187, %v4347_v33  ;;  %v3555_v19 = vadd.s32 536870912, %v3554_v47  ;;  %v9649_v42 = vadd.s32 3, %v4358_v29  ;;  %v11464_v35 = vld [vmem:[#allocation48_spill] sm:$0xff] }
 0x488   :  { %v3665_v44 = vmul.u32 %v3663_v26, %v11462_v63  ;;  %v3666_v13 = vmul.u32 %v3662_v28, %v11463_v3  ;;  %v9654_v32 = vmul.u32 %v3685_v14, %v11462_v63  ;;  %v4351_v34 = vcvt.s32.f32 %v4344_v5  ;;  %v11466_v5 = vld [vmem:[#allocation37_spill] sm:$0xff] }
 0x489   :  { %v9647_v51 = vsel %vm5196_vm5, %v11461_v23, 1326507024  ;;  %v4349_v17 = vand.u32 2147483647, %v4348_v10  ;;  %v9656_v62 = vadd.s32 %v3545_v49, %v3526_v52  ;;  %v3556_v31 = vshrl.u32 %v3555_v19, 30  ;;  %v11465_v49 = vld [vmem:[#allocation38_spill] sm:$0xff] }
 0x48a   :  { %v3627_v8 = vshrl.u32 %v11119_v27, %v11464_v35  ;;  %v3664_v15 = vmul.u32 %v3662_v28, %v11462_v63  ;;  %v3668_v56 = vshll.u32 %v3665_v44, 16  ;;  %v3686_v6 = vmul.u32 %v3684_v50, %v11462_v63 }
 0x48b   :  { %v4352_v7 = vmul.f32 %v4351_v34, %v4349_v17  ;;  %v3557_v18 = vshll.u32 %v3556_v31, 30  ;;  %v3688_v40 = vmul.u32 %v3684_v50, %v11463_v3  ;;  %v3690_v29 = vshll.u32 %v9654_v32, 16 }
 0x48c   :  { %v3667_v21 = vmul.u32 %v3663_v26, %v11463_v3  ;;  %v3670_v39 = vshll.u32 %v3666_v13, 16  ;;  %vm3672_vm14 = vc.u32 %v3664_v15, %v3668_v56  ;;  %v3674_v52 = vadd.s32 %v3668_v56, %v3664_v15 }
 0x48d   :  { %vm3458_vm5 = vcmp.lt.s32.totalorder %v11465_v49, 0  ;;  %v4353_v36 = vxor.u32 2147483648, %v4352_v7  ;;  %v9666_v54 = vsub.s32 %v3554_v47, %v3557_v18  ;;  %vm11467_vm3 = vcmp.lt.s32.totalorder %v11456_v53, 4 }
 0x48e   :  { %v3648_v33 = vsel %vm11467_vm3, %v11466_v5, 2102212464  ;;  %v3673_v28 = vsel %vm3672_vm14, 1, %v11120_v46  ;;  %vm3676_vm0 = vc.u32 %v3674_v52, %v3670_v39  ;;  %v3689_v50 = vmul.u32 %v3685_v14, %v11463_v3 }
 0x48f   :  { %v3675_v23 = vadd.s32 %v3673_v28, %v3667_v21  ;;  %vm3694_vm9 = vc.u32 %v3686_v6, %v3690_v29  ;;  %v4354_v26 = vsel %vm4233_vm10, %v4353_v36, %v4352_v7  ;;  %vm3559_vm7 = vcmp.lt.s32.totalorder %v9666_v54, 0  ;;  %v11471_v36 = vld [vmem:[#allocation36_spill] sm:$0xff] }
 0x490   :  { %v3560_v10 = vsub.s32 0, %v9666_v54  ;;  %v3692_v47 = vshll.u32 %v3688_v40, 16  ;;  %v9680_v19 = vsel %vm9592_vm6, %v11450_v41, %v4354_v26  ;;  %v11468_v63 = vand.u32 2147483647, %v11465_v49 }
 0x491   :  { %v3677_v14 = vsel %vm3676_vm0, 1, %v11120_v46  ;;  %v3695_v3 = vsel %vm3694_vm9, 1, %v11120_v46  ;;  %v3696_v34 = vadd.s32 %v3690_v29, %v3686_v6  ;;  %v4359_v35 = vmul.f32 %v9680_v19, %v9680_v19  ;;  %v11473_v6 = vld [vmem:[#allocation46_spill] sm:$0xff] }
 0x492   :  { %vm9684_vm1 = vcmp.le.f32.partialorder %v11468_v63, 0.7853982  ;;  %v3561_v15 = vsel %vm3559_vm7, %v3560_v10, %v9666_v54  ;;  %v3669_v56 = vshrl.u32 %v3665_v44, 16  ;;  %v3679_v11 = vadd.s32 %v3677_v14, %v3675_v23 }
 0x493   :  { %vm5195_vm10 = vcmp.lt.s32.totalorder %v9207_v43, 3  ;;  %v3562_v7 = vclz %v3561_v15  ;;  %v3580_v18 = vsub.s32 4, %v3556_v31  ;;  %v3697_v21 = vadd.s32 %v3695_v3, %v3689_v50 }
 0x494   :  { %vm3698_vm2 = vc.u32 %v3696_v34, %v3692_v47  ;;  %v4360_v39 = vmul.f32 -0.001358992, %v4359_v35  ;;  %v4367_v52 = vmul.f32 -0.00019511016, %v4359_v35  ;;  %vm11472_vm6 = vcmp.lt.s32.totalorder %v11456_v53, 1 }
 0x495   :  { %v3647_v5 = vsel %vm11472_vm6, %v3627_v8, %v11471_v36  ;;  %vm11474_vm8 = vcmp.lt.s32.totalorder %v11456_v53, 3  ;;  %v5520_v28 = vadd.s32 4294967294, %v3562_v7  ;;  %v3671_v26 = vshrl.u32 %v3666_v13, 16 }
 0x496   :  { %v3649_v29 = vsel %vm11474_vm8, %v11473_v6, %v3648_v33  ;;  %v3680_v44 = vadd.s32 %v3679_v11, %v3669_v56  ;;  %v3699_v23 = vsel %vm3698_vm2, 1, %v11120_v46  ;;  %v4361_v10 = vadd.f32 0.041655596, %v4360_v39 }
 0x497   :  { %v4368_v63 = vadd.f32 0.008332121, %v4367_v52  ;;  %v3691_v50 = vshrl.u32 %v9654_v32, 16  ;;  %v3701_v14 = vadd.s32 %v3699_v23, %v3697_v21  ;;  %vm5521_vm13 = vcmp.lt.s32.totalorder %v5520_v28, 0 }
 0x498   :  { %v3581_v3 = vsel %vm3458_vm5, %v3580_v18, %v3556_v31  ;;  %v9704_v15 = vadd.s32 %v3680_v44, %v3671_v26  ;;  %v3693_v8 = vshrl.u32 %v3688_v40, 16  ;;  %v4362_v36 = vmul.f32 %v4361_v10, %v4359_v35 }
 0x499   :  { %v4369_v45 = vmul.f32 %v4368_v63, %v4359_v35  ;;  %v3565_v33 = vsel %vm5521_vm13, 0, %v5520_v28  ;;  %v3702_v7 = vadd.s32 %v3701_v14, %v3691_v50  ;;  %v3650_v11 = vsel %vm3644_vm12, %v3647_v5, %v3649_v29 }
 0x49a   :  { %v3566_v13 = vsub.s32 32, %v3565_v33  ;;  %v3570_v56 = vsub.s32 4294967266, %v3565_v33  ;;  %v9708_v39 = vadd.s32 %v3696_v34, %v3692_v47  ;;  %v4363_v32 = vadd.f32 -0.4999988, %v4362_v36  ;;  %v11479_v36 = vld [vmem:[#allocation59_spill] sm:$0xff] }
 0x49b   :  { %v4370_v21 = vadd.f32 -0.16666654, %v4369_v45  ;;  %v3583_v52 = vsel %vm9684_vm1, 0, %v3581_v3  ;;  %v3703_v31 = vadd.s32 %v3702_v7, %v3693_v8  ;;  %v3567_v18 = vshll.u32 %v9666_v54, %v3565_v33  ;;  %v11477_v3 = vld [vmem:[#allocation22_spill] sm:$0xff]  ;;  %v11480_v33 = vld [vmem:[#allocation13_spill] sm:$0xff] }
 0x49c   :  { %v3568_v40 = vshrl.u32 %v9656_v62, %v3566_v13  ;;  %v3571_v6 = vadd.s32 127, %v3570_v56  ;;  %vm3706_vm11 = vc.u32 %v9704_v15, %v9708_v39  ;;  %v9720_v53 = vsel %vm5195_vm10, %v9344_v38, %v9647_v51  ;;  %v11475_v62 = vld [vmem:[#allocation57_spill] sm:$0xff]  ;;  %v11478_v8 = vld [vmem:[#allocation10_spill] sm:$0xff] }
 0x49d   :  { %v4364_v47 = vmul.f32 %v4363_v32, %v4359_v35  ;;  %v4371_v45 = vmul.f32 %v4370_v21, %v4359_v35  ;;  %v3707_v34 = vadd.s32 1, %v3703_v31  ;;  %vm4374_vm15 = vweird.f32 %v11450_v41  ;;  %v11476_v38 = vld [vmem:[#allocation9_spill] sm:$0xff] }
 0x49e   :  { %v4376_v5 = vand.u32 3, %v9649_v42  ;;  %v3569_v54 = vor.u32 %v3568_v40, %v3567_v18  ;;  %v3572_v29 = vshll.u32 %v3571_v6, 23  ;;  %v3704_v28 = vmul.u32 %v11475_v62, %v3650_v11 }
 0x49f   :  { %v4365_v26 = vadd.f32 1.0, %v4364_v47  ;;  %v4372_v44 = vadd.f32 1.0, %v4371_v45  ;;  %v3600_v23 = vadd.s32 3, %v3583_v52  ;;  %v3708_v10 = vsel %vm3706_vm11, %v3707_v34, %v3703_v31  ;;  %v11481_v31 = vld [vmem:[#allocation43_spill] sm:$0xff] }
 0x4a0   :  { %v3573_v63 = vor.u32 4788187, %v3572_v29  ;;  %v3576_v50 = vcvt.s32.f32 %v3569_v54  ;;  %v3709_v14 = vadd.s32 %v3708_v10, %v3704_v28  ;;  %vm2869_vm12 = vcmp.lt.s32.totalorder %v11476_v38, 2  ;;  %v11482_v34 = vld [vmem:[#allocation35_spill] sm:$0xff] }
 0x4a1   :  { %v4373_v51 = vmul.f32 %v4372_v44, %v9680_v19  ;;  %v4382_v35 = vxor.u32 2147483648, %v4365_v26  ;;  %v9731_v42 = vsel %vm2869_vm12, %v11478_v8, %v11477_v3  ;;  %v2883_v7 = vsel %vm2869_vm12, %v11480_v33, %v11479_v36 }
 0x4a2   :  { %v3574_v13 = vand.u32 2147483647, %v3573_v63  ;;  %v3710_v56 = vadd.s32 536870912, %v3709_v14  ;;  %v2887_v11 = vand.u32 65535, %v2883_v7  ;;  %v2888_v32 = vshrl.u32 %v2883_v7, 16  ;;  %v11484_v63 = vld [vmem:[#allocation3_spill] sm:$0xff] }
 0x4a3   :  { %vm4377_vm14 = vcmp.lt.s32.totalorder %v4376_v5, 2  ;;  %vm4378_vm3 = vcmp.eq.s32.totalorder %v4376_v5, 0  ;;  %v4379_v21 = vxor.u32 2147483648, %v4373_v51  ;;  %vm4381_vm0 = vcmp.eq.s32.totalorder %v4376_v5, 2  ;;  %v11483_v5 = vld [vmem:[#allocation31_spill] sm:$0xff] }
 0x4a4   :  { %v3577_v19 = vmul.f32 %v3576_v50, %v3574_v13  ;;  %v9737_v52 = vshrl.u32 %v3710_v56, 30  ;;  %v9740_v18 = vmul.u32 %v2888_v32, %v11481_v31  ;;  %v2910_v40 = vshrl.u32 %v9731_v42, 16  ;;  %v11488_v56 = vld [vmem:[#allocation20_spill] sm:$0xff] }
 0x4a5   :  { %v4380_v6 = vsel %vm4378_vm3, %v4365_v26, %v4379_v21  ;;  %v4383_v47 = vsel %vm4381_vm0, %v4382_v35, %v4373_v51  ;;  %v9743_v45 = vand.u32 3, %v3600_v23  ;;  %v9746_v54 = vmul.u32 %v2887_v11, %v11482_v34 }
 0x4a6   :  { %v4384_v29 = vsel %vm4377_vm14, %v4380_v6, %v4383_v47  ;;  %v3578_v62 = vxor.u32 2147483648, %v3577_v19  ;;  %v3712_v28 = vshll.u32 %v9737_v52, 30  ;;  %v2852_v44 = vshrl.u32 %v11119_v27, %v11483_v5 }
 0x4a7   :  { %v4385_v10 = vsel %vm4374_vm15, nan, %v4384_v29  ;;  %vm11485_vm9 = vcmp.lt.s32.totalorder %v11476_v38, 4  ;;  %v2889_v23 = vmul.u32 %v2887_v11, %v11481_v31  ;;  %v2893_v50 = vshll.u32 %v9740_v18, 16 }
 0x4a8   :  { %v2873_v26 = vsel %vm11485_vm9, %v11484_v63, 2102212464  ;;  %5359 = vmatpush.msra.mxu1 %v4385_v10  ;;  %v3579_v51 = vsel %vm3458_vm5, %v3578_v62, %v3577_v19  ;;  %v9760_v35 = vsub.s32 %v3709_v14, %v3712_v28  ;;  %v2909_v3 = vand.u32 65535, %v9731_v42  ;;  %v11486_v42 = vld [vmem:[#allocation17_spill] sm:$0xff]  ;;  %v11490_v10 = vld [vmem:[#allocation6_spill] sm:$0xff] }
 0x4a9   :  { %v9764_v8 = vmul.u32 %v2910_v40, %v11481_v31  ;;  %v9769_v41 = vsel %vm9684_vm1, %v11465_v49, %v3579_v51  ;;  %v2895_v36 = vshll.u32 %v9746_v54, 16  ;;  %vm2897_vm7 = vc.u32 %v2889_v23, %v2893_v50 }
 0x4aa   :  { %v2899_v33 = vadd.s32 %v2893_v50, %v2889_v23  ;;  %v3584_v7 = vmul.f32 %v9769_v41, %v9769_v41  ;;  %vm3714_vm5 = vcmp.lt.s32.totalorder %v9760_v35, 0  ;;  %v3715_v14 = vsub.s32 0, %v9760_v35 }
 0x4ab   :  { %vm11487_vm2 = vcmp.lt.s32.totalorder %v11476_v38, 1  ;;  %vm11489_vm6 = vcmp.lt.s32.totalorder %v11476_v38, 3  ;;  %v2892_v11 = vmul.u32 %v2888_v32, %v11482_v34  ;;  %v2898_v21 = vsel %vm2897_vm7, 1, %v11120_v46 }
 0x4ac   :  { %v2872_v13 = vsel %vm11487_vm2, %v2852_v44, %v11486_v42  ;;  %v2874_v17 = vsel %vm11489_vm6, %v11488_v56, %v2873_v26  ;;  %vm2901_vm1 = vc.u32 %v2899_v33, %v2895_v36  ;;  %v3585_v19 = vmul.f32 -0.001358992, %v3584_v7 }
 0x4ad   :  { %v3592_v6 = vmul.f32 -0.00019511016, %v3584_v7  ;;  %v3716_v47 = vsel %vm3714_vm5, %v3715_v14, %v9760_v35  ;;  %v2913_v29 = vmul.u32 %v2909_v3, %v11482_v34  ;;  %v2900_v28 = vadd.s32 %v2898_v21, %v2892_v11 }
 0x4ae   :  { %v3717_v62 = vclz %v3716_v47  ;;  %v2902_v5 = vsel %vm2901_vm1, 1, %v11120_v46  ;;  %v2915_v44 = vshll.u32 %v9764_v8, 16  ;;  %vm3613_vm8 = vcmp.lt.s32.totalorder %v11490_v10, 0 }
 0x4af   :  { %v3586_v63 = vadd.f32 0.041655596, %v3585_v19  ;;  %v3593_v26 = vadd.f32 0.008332121, %v3592_v6  ;;  %v3705_v32 = vadd.s32 %v9708_v39, %v9704_v15  ;;  %v9793_v23 = vsel %vm2869_vm12, %v2872_v13, %v2874_v17 }
 0x4b0   :  { %v5523_v50 = vadd.s32 4294967294, %v3717_v62  ;;  %v3735_v51 = vsub.s32 4, %v9737_v52  ;;  %v2904_v36 = vadd.s32 %v2902_v5, %v2900_v28  ;;  %v2911_v33 = vmul.u32 %v2909_v3, %v11481_v31 }
 0x4b1   :  { %v3587_v14 = vmul.f32 %v3586_v63, %v3584_v7  ;;  %v3594_v42 = vmul.f32 %v3593_v26, %v3584_v7  ;;  %v2894_v56 = vshrl.u32 %v9740_v18, 16  ;;  %v2914_v11 = vmul.u32 %v2910_v40, %v11482_v34 }
 0x4b2   :  { %v11491_v21 = vand.u32 2147483647, %v11490_v10  ;;  %vm5524_vm11 = vcmp.lt.s32.totalorder %v5523_v50, 0  ;;  %v2917_v39 = vshll.u32 %v2913_v29, 16  ;;  %vm2919_vm15 = vc.u32 %v2911_v33, %v2915_v44 }
 0x4b3   :  { %v2921_v38 = vadd.s32 %v2915_v44, %v2911_v33  ;;  %v3588_v13 = vadd.f32 -0.4999988, %v3587_v14  ;;  %v3595_v17 = vadd.f32 -0.16666654, %v3594_v42  ;;  %v3720_v19 = vsel %vm5524_vm11, 0, %v5523_v50 }
 0x4b4   :  { %vm9801_vm13 = vcmp.le.f32.partialorder %v11491_v21, 0.7853982  ;;  %v2920_v31 = vsel %vm2919_vm15, 1, %v11120_v46  ;;  %v3721_v3 = vsub.s32 32, %v3720_v19  ;;  %v3725_v6 = vsub.s32 4294967266, %v3720_v19 }
 0x4b5   :  { %v2896_v18 = vshrl.u32 %v9746_v54, 16  ;;  %v2905_v40 = vadd.s32 %v2904_v36, %v2894_v56  ;;  %v3589_v34 = vmul.f32 %v3588_v13, %v3584_v7  ;;  %v3596_v47 = vmul.f32 %v3595_v17, %v3584_v7 }
 0x4b6   :  { %vm3602_vm12 = vcmp.lt.s32.totalorder %v9743_v45, 2  ;;  %v2922_v62 = vadd.s32 %v2920_v31, %v2914_v11  ;;  %vm2923_vm14 = vc.u32 %v2921_v38, %v2917_v39  ;;  %vm3599_vm3 = vweird.f32 %v11465_v49 }
 0x4b7   :  { %v3722_v28 = vshll.u32 %v9760_v35, %v3720_v19  ;;  %v3723_v5 = vshrl.u32 %v3705_v32, %v3721_v3  ;;  %v3726_v44 = vadd.s32 127, %v3725_v6  ;;  %v2924_v63 = vsel %vm2923_vm14, 1, %v11120_v46 }
 0x4b8   :  { %v3590_v26 = vadd.f32 1.0, %v3589_v34  ;;  %v3597_v50 = vadd.f32 1.0, %v3596_v47  ;;  %v2916_v33 = vshrl.u32 %v9764_v8, 16  ;;  %v2926_v54 = vadd.s32 %v2924_v63, %v2922_v62  ;;  %v11499_v62 = vld [vmem:[#allocation60_spill] sm:$0xff] }
 0x4b9   :  { %vm5194_vm0 = vcmp.lt.s32.totalorder %v9207_v43, 2  ;;  %v3724_v7 = vor.u32 %v3723_v5, %v3722_v28  ;;  %v3727_v36 = vshll.u32 %v3726_v44, 23  ;;  %v3736_v14 = vsel %vm3613_vm8, %v3735_v51, %v9737_v52  ;;  %v11494_v52 = vld [vmem:[#allocation25_spill] sm:$0xff] }
 0x4ba   :  { %v9816_v42 = vadd.s32 %v2905_v40, %v2896_v18  ;;  %v3598_v35 = vmul.f32 %v3597_v50, %v9769_v41  ;;  %v3607_v32 = vxor.u32 2147483648, %v3590_v26  ;;  %v2918_v56 = vshrl.u32 %v2913_v29, 16  ;;  %v11495_v29 = vld [vmem:[#allocation11_spill] sm:$0xff] }
 0x4bb   :  { %v2927_v11 = vadd.s32 %v2926_v54, %v2916_v33  ;;  %vm3603_vm9 = vcmp.eq.s32.totalorder %v9743_v45, 0  ;;  %vm3606_vm7 = vcmp.eq.s32.totalorder %v9743_v45, 2  ;;  %v3728_v8 = vor.u32 4788187, %v3727_v36  ;;  %v11501_v36 = vld [vmem:[#allocation2_spill] sm:$0xff] }
 0x4bc   :  { %v9821_v21 = vadd.s32 %v2921_v38, %v2917_v39  ;;  %v3604_v13 = vxor.u32 2147483648, %v3598_v35  ;;  %v3738_v17 = vsel %vm9801_vm13, 0, %v3736_v14  ;;  %v2929_v51 = vmul.u32 %v11494_v52, %v9793_v23  ;;  %v11496_v39 = vld [vmem:[#allocation58_spill] sm:$0xff] }
 0x4bd   :  { %v2928_v19 = vadd.s32 %v2927_v11, %v2918_v56  ;;  %v3729_v31 = vand.u32 2147483647, %v3728_v8  ;;  %v3731_v41 = vcvt.s32.f32 %v3724_v7  ;;  %vm3024_vm2 = vcmp.lt.s32.totalorder %v11495_v29, 2  ;;  %v11497_v38 = vld [vmem:[#allocation62_spill] sm:$0xff] }
 0x4be   :  { %vm2931_vm5 = vc.u32 %v9816_v42, %v9821_v21  ;;  %v3605_v3 = vsel %vm3603_vm9, %v3590_v26, %v3604_v13  ;;  %v3608_v6 = vsel %vm3606_vm7, %v3607_v32, %v3598_v35  ;;  %v3038_v40 = vsel %vm3024_vm2, %v11497_v38, %v11496_v39  ;;  %v11498_v23 = vld [vmem:[#allocation54_spill] sm:$0xff] }
 0x4bf   :  { %v2932_v18 = vadd.s32 1, %v2928_v19  ;;  %v3609_v34 = vsel %vm3602_vm12, %v3605_v3, %v3608_v6  ;;  %v3732_v47 = vmul.f32 %v3731_v41, %v3729_v31  ;;  %v3034_v28 = vsel %vm3024_vm2, %v11499_v62, %v11498_v23 }
 0x4c0   :  { %v3042_v5 = vand.u32 65535, %v3038_v40  ;;  %v5203_v44 = vsel %vm5195_vm10, %v9341_v22, %v9634_v59  ;;  %v3610_v63 = vsel %vm3599_vm3, nan, %v3609_v34  ;;  %v3043_v50 = vshrl.u32 %v3038_v40, 16  ;;  %v11500_v59 = vld [vmem:[#allocation42_spill] sm:$0xff] }
 0x4c1   :  { %v2933_v26 = vsel %vm2931_vm5, %v2932_v18, %v2928_v19  ;;  %v9850_v45 = vsel %vm5195_vm10, %v9326_v20, %v9543_v58  ;;  %5340 = vmatpush.msra.mxu0 %v3610_v63  ;;  %v3733_v33 = vxor.u32 2147483648, %v3732_v47  ;;  %v3755_v54 = vadd.s32 3, %v3738_v17 }
 0x4c2   :  { %v2934_v7 = vadd.s32 %v2933_v26, %v2929_v51  ;;  %v9856_v22 = vsel %vm5194_vm0, %v9640_v25, %v9720_v53  ;;  %v3045_v49 = vmul.u32 %v3043_v50, %v11500_v59  ;;  %v9860_v14 = vmul.u32 %v3042_v5, %v11501_v36 }
 0x4c3   :  { %v3065_v35 = vshrl.u32 %v3034_v28, 16  ;;  %v9865_v20 = vsel %vm5194_vm0, %v9623_v60, %v5203_v44  ;;  %v3734_v58 = vsel %vm3613_vm8, %v3733_v33, %v3732_v47  ;;  %v3064_v56 = vand.u32 65535, %v3034_v28 }
 0x4c4   :  { %v2935_v32 = vadd.s32 536870912, %v2934_v7  ;;  %v3737_v25 = vsel %vm9801_vm13, %v11490_v10, %v3734_v58  ;;  %v3044_v53 = vmul.u32 %v3042_v5, %v11500_v59  ;;  %v3048_v11 = vshll.u32 %v3045_v49, 16 }
 0x4c5   :  { %v9874_v8 = vmul.u32 %v3065_v35, %v11500_v59  ;;  %v5213_v13 = vshrl.u32 %v9856_v22, 16  ;;  %v3739_v17 = vmul.f32 %v3737_v25, %v3737_v25  ;;  %v9877_v60 = vand.u32 3, %v3755_v54 }
 0x4c6   :  { %v9879_v19 = vshrl.u32 %v2935_v32, 30  ;;  %v3050_v52 = vshll.u32 %v9860_v14, 16  ;;  %vm3052_vm10 = vc.u32 %v3044_v53, %v3048_v11  ;;  %v3054_v51 = vadd.s32 %v3048_v11, %v3044_v53  ;;  %v11505_v53 = vld [vmem:[#allocation21_spill] sm:$0xff] }
 0x4c7   :  { %v3070_v15 = vshll.u32 %v9874_v8, 16  ;;  %v3740_v31 = vmul.f32 -0.001358992, %v3739_v17  ;;  %v3747_v41 = vmul.f32 -0.00019511016, %v3739_v17  ;;  %v3047_v6 = vmul.u32 %v3043_v50, %v11501_v36 }
 0x4c8   :  { %v2937_v3 = vshll.u32 %v9879_v19, 30  ;;  %v3053_v18 = vsel %vm3052_vm10, 1, %v11120_v46  ;;  %vm3056_vm6 = vc.u32 %v3054_v51, %v3050_v52  ;;  %v3066_v39 = vmul.u32 %v3064_v56, %v11500_v59 }
 0x4c9   :  { %v3068_v38 = vmul.u32 %v3064_v56, %v11501_v36  ;;  %v3741_v40 = vadd.f32 0.041655596, %v3740_v31  ;;  %v3748_v34 = vadd.f32 0.008332121, %v3747_v41  ;;  %v3049_v23 = vshrl.u32 %v3045_v49, 16  ;;  %v11506_v31 = vld [vmem:[#allocation18_spill] sm:$0xff] }
 0x4ca   :  { %v9888_v47 = vsub.s32 %v2934_v7, %v2937_v3  ;;  %v3055_v62 = vadd.s32 %v3053_v18, %v3047_v6  ;;  %v3057_v28 = vsel %vm3056_vm6, 1, %v11120_v46  ;;  %v3069_v5 = vmul.u32 %v3065_v35, %v11501_v36  ;;  %v11508_v18 = vld [vmem:[#allocation16_spill] sm:$0xff] }
 0x4cb   :  { %vm3074_vm1 = vc.u32 %v3066_v39, %v3070_v15  ;;  %v3742_v44 = vmul.f32 %v3741_v40, %v3739_v17  ;;  %v3749_v63 = vmul.f32 %v3748_v34, %v3739_v17  ;;  %v3072_v33 = vshll.u32 %v3068_v38, 16 }
 0x4cc   :  { %vm2939_vm8 = vcmp.lt.s32.totalorder %v9888_v47, 0  ;;  %v2940_v26 = vsub.s32 0, %v9888_v47  ;;  %v3059_v50 = vadd.s32 %v3057_v28, %v3055_v62  ;;  %v3075_v54 = vsel %vm3074_vm1, 1, %v11120_v46  ;;  %v11510_v28 = vld [vmem:[#allocation23_spill] sm:$0xff] }
 0x4cd   :  { %v3076_v59 = vadd.s32 %v3070_v15, %v3066_v39  ;;  %v3743_v7 = vadd.f32 -0.4999988, %v3742_v44  ;;  %v3750_v58 = vadd.f32 -0.16666654, %v3749_v63  ;;  %v3077_v32 = vadd.s32 %v3075_v54, %v3069_v5 }
 0x4ce   :  { %v2941_v49 = vsel %vm2939_vm8, %v2940_v26, %v9888_v47  ;;  %v11502_v56 = vshll.u32 %v9200_v57, 16  ;;  %v3007_v11 = vshrl.u32 %v11119_v27, %v11505_v53  ;;  %v3060_v52 = vadd.s32 %v3059_v50, %v3049_v23  ;;  %v11512_v53 = vld [vmem:[#allocation40_spill] sm:$0xff] }
 0x4cf   :  { %v2942_v35 = vclz %v2941_v49  ;;  %vm3078_vm11 = vc.u32 %v3076_v59, %v3072_v33  ;;  %v3744_v51 = vmul.f32 %v3743_v7, %v3739_v17  ;;  %v3751_v15 = vmul.f32 %v3750_v58, %v3739_v17 }
 0x4d0   :  { %vm9899_vm13 = vc.u32 %v9205_v48, %v11502_v56  ;;  %vm11507_vm15 = vcmp.lt.s32.totalorder %v11495_v29, 4  ;;  %v3079_v3 = vsel %vm3078_vm11, 1, %v11120_v46  ;;  %vm3754_vm12 = vweird.f32 %v11490_v10 }
 0x4d1   :  { %v3028_v41 = vsel %vm11507_vm15, %v11506_v31, 2102212464  ;;  %vm3758_vm14 = vcmp.eq.s32.totalorder %v9877_v60, 0  ;;  %v5508_v6 = vadd.s32 4294967294, %v2942_v35  ;;  %vm11509_vm3 = vcmp.lt.s32.totalorder %v11495_v29, 1 }
 0x4d2   :  { %v3027_v39 = vsel %vm11509_vm3, %v3007_v11, %v11508_v18  ;;  %v3051_v40 = vshrl.u32 %v9860_v14, 16  ;;  %v3745_v34 = vadd.f32 1.0, %v3744_v51  ;;  %v3752_v23 = vadd.f32 1.0, %v3751_v15  ;;  %v11513_v51 = vld [vmem:[#allocation30_spill] sm:$0xff] }
 0x4d3   :  { %v3071_v17 = vshrl.u32 %v9874_v8, 16  ;;  %v3081_v62 = vadd.s32 %v3079_v3, %v3077_v32  ;;  %vm5509_vm9 = vcmp.lt.s32.totalorder %v5508_v6, 0  ;;  %vm11511_vm7 = vcmp.lt.s32.totalorder %v11495_v29, 3 }
 0x4d4   :  { %v3029_v5 = vsel %vm11511_vm7, %v11510_v28, %v3028_v41  ;;  %v9919_v44 = vadd.s32 %v3060_v52, %v3051_v40  ;;  %v3073_v63 = vshrl.u32 %v3068_v38, 16  ;;  %v3753_v26 = vmul.f32 %v3752_v23, %v3737_v25 }
 0x4d5   :  { %v3762_v50 = vxor.u32 2147483648, %v3745_v34  ;;  %v2945_v54 = vsel %vm5509_vm9, 0, %v5508_v6  ;;  %v3082_v7 = vadd.s32 %v3081_v62, %v3071_v17  ;;  %v2930_v14 = vadd.s32 %v9821_v21, %v9816_v42  ;;  %v11514_v6 = vld [vmem:[#allocation32_spill] sm:$0xff] }
 0x4d6   :  { %v2946_v58 = vsub.s32 32, %v2945_v54  ;;  %v2950_v49 = vsub.s32 4294967266, %v2945_v54  ;;  %v9923_v56 = vadd.s32 %v3076_v59, %v3072_v33  ;;  %v3759_v8 = vxor.u32 2147483648, %v3753_v26 }
 0x4d7   :  { %vm3761_vm5 = vcmp.eq.s32.totalorder %v9877_v60, 2  ;;  %v3030_v32 = vsel %vm3024_vm2, %v3027_v39, %v3029_v5  ;;  %v3083_v35 = vadd.s32 %v3082_v7, %v3073_v63  ;;  %vm2838_vm10 = vcmp.lt.s32.totalorder %v11512_v53, 0 }
 0x4d8   :  { %v2947_v25 = vshll.u32 %v9888_v47, %v2945_v54  ;;  %v2948_v38 = vshrl.u32 %v2930_v14, %v2946_v58  ;;  %v2951_v11 = vadd.s32 127, %v2950_v49  ;;  %vm3086_vm6 = vc.u32 %v9919_v44, %v9923_v56 }
 0x4d9   :  { %vm3757_vm1 = vcmp.lt.s32.totalorder %v9877_v60, 2  ;;  %v3760_v42 = vsel %vm3758_vm14, %v3745_v34, %v3759_v8  ;;  %v3763_v21 = vsel %vm3761_vm5, %v3762_v50, %v3753_v26  ;;  %v3087_v33 = vadd.s32 1, %v3083_v35 }
 0x4da   :  { %v3764_v59 = vsel %vm3757_vm1, %v3760_v42, %v3763_v21  ;;  %v2949_v29 = vor.u32 %v2948_v38, %v2947_v25  ;;  %v2952_v52 = vshll.u32 %v2951_v11, 23  ;;  %v3084_v15 = vmul.u32 %v11513_v51, %v3030_v32 }
 0x4db   :  { %v5068_v47 = vsel %vm9899_vm13, 1, %v11120_v46  ;;  %v5212_v31 = vand.u32 65535, %v9856_v22  ;;  %v3765_v41 = vsel %vm3754_vm12, nan, %v3764_v59  ;;  %v3088_v3 = vsel %vm3086_vm6, %v3087_v33, %v3083_v35  ;;  %v11520_v59 = vld [vmem:[#allocation136_spill] sm:$0xff] }
 0x4dc   :  { %vm2993_vm2 = vcmp.lt.s32.totalorder %v11514_v6, 0  ;;  %v5211_v60 = vshrl.u32 %v9192_v24, 16  ;;  %v9947_v18 = vmul.u32 %v5213_v13, %v9388_v30  ;;  %5360 = vmatpush.msra.mxu1 %v3765_v41  ;;  %v2953_v39 = vor.u32 4788187, %v2952_v52 }
 0x4dd   :  { %v3089_v40 = vadd.s32 %v3088_v3, %v3084_v15  ;;  %v9953_v36 = vsel %vm5194_vm0, %v9535_v2, %v9850_v45  ;;  %v5234_v10 = vand.u32 65535, %v9865_v20  ;;  %v5235_v34 = vshrl.u32 %v9865_v20, 16  ;;  %v11521_v15 = vld [vmem:[#allocation138_spill] sm:$0xff]  ;;  %v11525_v3 = vld [vmem:[#allocation144_spill] sm:$0xff] }
 0x4de   :  { %v2960_v23 = vsub.s32 4, %v9879_v19  ;;  %v11515_v17 = vshrl.u32 %v9174_v0, 16  ;;  %v2954_v28 = vand.u32 2147483647, %v2953_v39  ;;  %v2956_v5 = vcvt.s32.f32 %v2949_v29  ;;  %v11527_v39 = vld [vmem:[#allocation151_spill] sm:$0xff] }
 0x4df   :  { %v3090_v63 = vadd.s32 536870912, %v3089_v40  ;;  %v5065_v26 = vshll.u32 %v9211_v61, 16  ;;  %v11516_v43 = vshll.u32 %v9200_v57, 16  ;;  %v9970_v45 = vadd.s32 %v5068_v47, %v9214_v55 }
 0x4e0   :  { %v9961_v62 = vmul.u32 %v11515_v17, %v9167_v4  ;;  %v9972_v20 = vmul.u32 %v5212_v31, %v5211_v60  ;;  %v5218_v50 = vshll.u32 %v9947_v18, 16  ;;  %v5254_v4 = vmul.u32 %v9192_v24, %v9953_v36 }
 0x4e1   :  { %v9967_v2 = vadd.s32 %v11516_v43, %v9205_v48  ;;  %v2957_v0 = vmul.f32 %v2956_v5, %v2954_v28  ;;  %v3091_v54 = vshrl.u32 %v3090_v63, 30  ;;  %v9978_v7 = vmul.u32 %v5234_v10, %v9388_v30  ;;  %v11529_v43 = vld [vmem:[#allocation141_spill] sm:$0xff] }
 0x4e2   :  { %v9981_v14 = vmul.u32 %v5235_v34, %v9388_v30  ;;  %v9983_v48 = vmul.u32 %v5234_v10, %v5211_v60  ;;  %v2961_v55 = vsel %vm2838_vm10, %v2960_v23, %v9879_v19  ;;  %v5214_v58 = vmul.u32 %v5212_v31, %v9388_v30 }
 0x4e3   :  { %v2958_v49 = vxor.u32 2147483648, %v2957_v0  ;;  %v3092_v8 = vshll.u32 %v3091_v54, 30  ;;  %v3115_v32 = vsub.s32 4, %v3091_v54  ;;  %v5217_v35 = vmul.u32 %v5213_v13, %v5211_v60 }
 0x4e4   :  { %v5220_v25 = vshll.u32 %v9972_v20, 16  ;;  %v9992_v38 = vmul.u32 %v5235_v34, %v5211_v60  ;;  %v11517_v11 = vand.u32 2147483647, %v11512_v53  ;;  %vm9996_vm8 = vc.u32 %v5214_v58, %v5218_v50 }
 0x4e5   :  { %v2959_v30 = vsel %vm2838_vm10, %v2958_v49, %v2957_v0  ;;  %v3093_v21 = vsub.s32 %v3089_v40, %v3092_v8  ;;  %v10002_v33 = vadd.s32 %v5218_v50, %v5214_v58  ;;  %v3116_v13 = vsel %vm2993_vm2, %v3115_v32, %v3091_v54  ;;  %v11528_v40 = vld [vmem:[#allocation150_spill] sm:$0xff]  ;;  %v11533_v8 = vld [vmem:[#allocation149_spill] sm:$0xff] }
 0x4e6   :  { %vm2837_vm0 = vcmp.le.f32.partialorder %v11517_v11, 0.7853982  ;;  %v4402_v29 = vshrl.u32 %v11119_v27, %v11520_v59  ;;  %vm4419_vm11 = vcmp.lt.s32.totalorder %v11521_v15, 2  ;;  %v11522_v31 = vand.u32 2147483647, %v11514_v6  ;;  %v11531_v58 = vld [vmem:[#allocation142_spill] sm:$0xff] }
 0x4e7   :  { %v2963_v19 = vsel %vm2837_vm0, 0, %v2961_v55  ;;  %v10005_v22 = vsel %vm2837_vm0, %v11512_v53, %v2959_v30  ;;  %vm3094_vm13 = vcmp.lt.s32.totalorder %v3093_v21, 0  ;;  %v3095_v51 = vsub.s32 0, %v3093_v21  ;;  %v11534_v32 = vld [vmem:[#allocation146_spill] sm:$0xff] }
 0x4e8   :  { %v2964_v52 = vmul.f32 %v10005_v22, %v10005_v22  ;;  %v2980_v47 = vadd.s32 3, %v2963_v19  ;;  %vm10016_vm15 = vcmp.le.f32.partialorder %v11522_v31, 0.7853982  ;;  %vm11526_vm12 = vcmp.lt.s32.totalorder %v11521_v15, 4 }
 0x4e9   :  { %v4423_v60 = vsel %vm11526_vm12, %v11525_v3, 2102212464  ;;  %v4433_v10 = vsel %vm4419_vm11, %v11528_v40, %v11527_v39  ;;  %v3096_v17 = vsel %vm3094_vm13, %v3095_v51, %v3093_v21  ;;  %v3118_v28 = vsel %vm10016_vm15, 0, %v3116_v13 }
 0x4ea   :  { %v2965_v34 = vmul.f32 -0.001358992, %v2964_v52  ;;  %v2972_v23 = vmul.f32 -0.00019511016, %v2964_v52  ;;  %v5223_v5 = vsel %vm9996_vm8, 1, %v11120_v46  ;;  %v3097_v63 = vclz %v3096_v17 }
 0x4eb   :  { %vm11530_vm14 = vcmp.lt.s32.totalorder %v11521_v15, 1  ;;  %v4438_v0 = vshrl.u32 %v4433_v10, 16  ;;  %vm11532_vm3 = vcmp.lt.s32.totalorder %v11521_v15, 3  ;;  %v10042_v11 = vsel %vm4419_vm11, %v11534_v32, %v11533_v8 }
 0x4ec   :  { %v4422_v50 = vsel %vm11530_vm14, %v4402_v29, %v11529_v43  ;;  %v2966_v54 = vadd.f32 0.041655596, %v2965_v34  ;;  %v2973_v55 = vadd.f32 0.008332121, %v2972_v23  ;;  %v4424_v49 = vsel %vm11532_vm3, %v11531_v58, %v4423_v60  ;;  %v11535_v60 = vld [vmem:[#allocation140_spill] sm:$0xff] }
 0x4ed   :  { %v10044_v42 = vand.u32 3, %v2980_v47  ;;  %v5511_v30 = vadd.s32 4294967294, %v3097_v63  ;;  %v3135_v19 = vadd.s32 3, %v3118_v28  ;;  %v4437_v13 = vand.u32 65535, %v4433_v10 }
 0x4ee   :  { %v10046_v59 = vadd.s32 %v5223_v5, %v5217_v35  ;;  %v2967_v29 = vmul.f32 %v2966_v54, %v2964_v52  ;;  %v2974_v51 = vmul.f32 %v2973_v55, %v2964_v52  ;;  %v3085_v31 = vadd.s32 %v9923_v56, %v9919_v44  ;;  %v11536_v5 = vld [vmem:[#allocation145_spill] sm:$0xff] }
 0x4ef   :  { %vm5512_vm9 = vcmp.lt.s32.totalorder %v5511_v30, 0  ;;  %v10052_v3 = vsel %vm4419_vm11, %v4422_v50, %v4424_v49  ;;  %v10055_v39 = vmul.u32 %v4438_v0, %v11535_v60  ;;  %v4459_v47 = vand.u32 65535, %v10042_v11 }
 0x4f0   :  { %v2968_v40 = vadd.f32 -0.4999988, %v2967_v29  ;;  %v2975_v34 = vadd.f32 -0.16666654, %v2974_v51  ;;  %v3100_v10 = vsel %vm5512_vm9, 0, %v5511_v30  ;;  %v4460_v35 = vshrl.u32 %v10042_v11, 16 }
 0x4f1   :  { %vm2983_vm7 = vcmp.eq.s32.totalorder %v10044_v42, 0  ;;  %vm2986_vm5 = vcmp.eq.s32.totalorder %v10044_v42, 2  ;;  %v3101_v44 = vsub.s32 32, %v3100_v10  ;;  %v3105_v56 = vsub.s32 4294967266, %v3100_v10 }
 0x4f2   :  { %v10061_v23 = vand.u32 3, %v3135_v19  ;;  %v10064_v15 = vmul.u32 %v4437_v13, %v11535_v60  ;;  %v2969_v17 = vmul.f32 %v2968_v40, %v2964_v52  ;;  %v2976_v28 = vmul.f32 %v2975_v34, %v2964_v52 }
 0x4f3   :  { %vm2982_vm10 = vcmp.lt.s32.totalorder %v10044_v42, 2  ;;  %v10068_v63 = vmul.u32 %v4437_v13, %v11536_v5  ;;  %v10071_v43 = vmul.u32 %v4438_v0, %v11536_v5  ;;  %vm2979_vm6 = vweird.f32 %v11512_v53 }
 0x4f4   :  { %v3102_v50 = vshll.u32 %v3093_v21, %v3100_v10  ;;  %v3103_v54 = vshrl.u32 %v3085_v31, %v3101_v44  ;;  %v3106_v55 = vadd.s32 127, %v3105_v56  ;;  %v4443_v58 = vshll.u32 %v10055_v39, 16 }
 0x4f5   :  { %v2970_v49 = vadd.f32 1.0, %v2969_v17  ;;  %v2977_v8 = vadd.f32 1.0, %v2976_v28  ;;  %v5085_v32 = vshll.u32 %v9221_v37, 16  ;;  %v10079_v52 = vmul.u32 %v4460_v35, %v11535_v60 }
 0x4f6   :  { %v3104_v30 = vor.u32 %v3103_v54, %v3102_v50  ;;  %v3107_v19 = vshll.u32 %v3106_v55, 23  ;;  %v5064_v0 = vshrl.u32 %v9200_v57, 16  ;;  %v5066_v13 = vshrl.u32 %v9211_v61, 16 }
 0x4f7   :  { %v2978_v21 = vmul.f32 %v2977_v8, %v10005_v22  ;;  %v2987_v29 = vxor.u32 2147483648, %v2970_v49  ;;  %vm5089_vm1 = vc.u32 %v9217_v12, %v5085_v32  ;;  %v5091_v51 = vadd.s32 %v5085_v32, %v9217_v12 }
 0x4f8   :  { %v3108_v31 = vor.u32 4788187, %v3107_v19  ;;  %vm5071_vm0 = vc.u32 %v9967_v2, %v5065_v26  ;;  %v5087_v40 = vshll.u32 %v9224_v1, 16  ;;  %v5090_v34 = vsel %vm5089_vm1, 1, %v11120_v46 }
 0x4f9   :  { %v2984_v10 = vxor.u32 2147483648, %v2978_v21  ;;  %v5072_v57 = vsel %vm5071_vm0, 1, %v11120_v46  ;;  %v5086_v44 = vshrl.u32 %v9221_v37, 16  ;;  %v5092_v22 = vadd.s32 %v5090_v34, %v9961_v62  ;;  %v10106_v62 = vld [vmem:[%s10782_s5] sm:$0x7] }
 0x4fa   :  { %v3109_v56 = vand.u32 2147483647, %v3108_v31  ;;  %v3111_v17 = vcvt.s32.f32 %v3104_v30  ;;  %v5074_v12 = vadd.s32 %v5072_v57, %v9970_v45  ;;  %vm5093_vm8 = vc.u32 %v5091_v51, %v5087_v40 }
 0x4fb   :  { %v2985_v61 = vsel %vm2983_vm7, %v2970_v49, %v2984_v10  ;;  %v2988_v26 = vsel %vm2986_vm5, %v2987_v29, %v2978_v21  ;;  %v5088_v2 = vshrl.u32 %v9224_v1, 16  ;;  %v5094_v28 = vsel %vm5093_vm8, 1, %v11120_v46 }
 0x4fc   :  { %v2989_v37 = vsel %vm2982_vm10, %v2985_v61, %v2988_v26  ;;  %v3112_v50 = vmul.f32 %v3111_v17, %v3109_v56  ;;  %v5075_v45 = vadd.s32 %v5074_v12, %v5064_v0  ;;  %v5096_v54 = vadd.s32 %v5094_v28, %v5092_v22 }
 0x4fd   :  { %v2990_v55 = vsel %vm2979_vm6, nan, %v2989_v37  ;;  %v10110_v49 = vadd.s32 %v5091_v51, %v5087_v40  ;;  %vm5226_vm13 = vc.u32 %v10002_v33, %v5220_v25  ;;  %v5240_v1 = vshll.u32 %v9981_v14, 16 }
 0x4fe   :  { %5341 = vmatpush.msra.mxu0 %v2990_v55  ;;  %v3113_v42 = vxor.u32 2147483648, %v3112_v50  ;;  %v10116_v8 = vadd.s32 %v5075_v45, %v5066_v13  ;;  %v5097_v32 = vadd.s32 %v5096_v54, %v5086_v44  ;;  %v5227_v30 = vsel %vm5226_vm13, 1, %v11120_v46 }
 0x4ff   :  { %vm11537_vm11 = vcmask 261120   ;;  %v5219_v53 = vshrl.u32 %v9947_v18, 16  ;;  %v5229_v19 = vadd.s32 %v5227_v30, %v10046_v59  ;;  %vm5244_vm12 = vc.u32 %v9978_v7, %v5240_v1 }
 0x500   :  { %5555 = vmatmul.msk.f32.vlgmr.msra.gmra.mxu0 %vm11537_vm11, %v10106_v62  ;;  %vm10125_vm14 = vc.u32 %v10064_v15, %v4443_v58  ;;  %v3114_v33 = vsel %vm2993_vm2, %v3113_v42, %v3112_v50  ;;  %v5098_v0 = vadd.s32 %v5097_v32, %v5088_v2  ;;  %vm5101_vm3 = vc.u32 %v10116_v8, %v10110_v49 }
 0x501   :  { %v5242_v13 = vshll.u32 %v9983_v48, 16  ;;  %v10137_v18 = vsel %vm10016_vm15, %v11514_v6, %v3114_v33  ;;  %v5230_v59 = vadd.s32 %v5229_v19, %v5219_v53  ;;  %v5245_v21 = vsel %vm5244_vm12, 1, %v11120_v46 }
 0x502   :  { %v5246_v29 = vadd.s32 %v5240_v1, %v9978_v7  ;;  %v3119_v51 = vmul.f32 %v10137_v18, %v10137_v18  ;;  %v5102_v31 = vadd.s32 1, %v5098_v0  ;;  %v5247_v40 = vadd.s32 %v5245_v21, %v9992_v38 }
 0x503   :  { %v4449_v34 = vadd.s32 %v4443_v58, %v10064_v15  ;;  %v5221_v10 = vshrl.u32 %v9972_v20, 16  ;;  %v4445_v41 = vshll.u32 %v10068_v63, 16  ;;  %v4448_v57 = vsel %vm10125_vm14, 1, %v11120_v46 }
 0x504   :  { %vm5248_vm2 = vc.u32 %v5246_v29, %v5242_v13  ;;  %v3120_v44 = vmul.f32 -0.001358992, %v3119_v51  ;;  %v3127_v22 = vmul.f32 -0.00019511016, %v3119_v51  ;;  %v5103_v7 = vsel %vm5101_vm3, %v5102_v31, %v5098_v0 }
 0x505   :  { %v5249_v56 = vsel %vm5248_vm2, 1, %v11120_v46  ;;  %v11540_v38 = vmul.u32 %v9153_v9, %v9171_v16  ;;  %v10157_v20 = vadd.s32 %v5230_v59, %v5221_v10  ;;  %v5241_v58 = vshrl.u32 %v9981_v14, 16 }
 0x506   :  { %v5251_v17 = vadd.s32 %v5249_v56, %v5247_v40  ;;  %v3121_v12 = vadd.f32 0.041655596, %v3120_v44  ;;  %v3128_v61 = vadd.f32 0.008332121, %v3127_v22  ;;  %v4450_v26 = vadd.s32 %v4448_v57, %v10071_v43 }
 0x507   :  { %v5104_v15 = vadd.s32 %v5103_v7, %v11540_v38  ;;  %vm4451_vm15 = vc.u32 %v4449_v34, %v4445_v41  ;;  %v5243_v28 = vshrl.u32 %v9983_v48, 16  ;;  %v10163_v9 = vadd.s32 %v5246_v29, %v5242_v13  ;;  %v11541_v48 = vld [vmem:[#allocation133_spill] sm:$0xff]  ;;  %v11545_v41 = vld [vmem:[#allocation152_spill] sm:$0xff] }
 0x508   :  { %v5252_v37 = vadd.s32 %v5251_v17, %v5241_v58  ;;  %v4452_v50 = vsel %vm4451_vm15, 1, %v11120_v46  ;;  %v3122_v45 = vmul.f32 %v3121_v12, %v3119_v51  ;;  %v3129_v54 = vmul.f32 %v3128_v61, %v3119_v51 }
 0x509   :  { %v5105_v2 = vadd.s32 536870912, %v5104_v15  ;;  %v4465_v16 = vshll.u32 %v10079_v52, 16  ;;  %v4461_v1 = vmul.u32 %v4459_v47, %v11535_v60  ;;  %v10172_v43 = vmul.u32 %v4459_v47, %v11536_v5 }
 0x50a   :  { %v5253_v14 = vadd.s32 %v5252_v37, %v5243_v28  ;;  %vm5008_vm9 = vcmp.lt.s32.totalorder %v11541_v48, 0  ;;  %v3123_v42 = vadd.f32 -0.4999988, %v3122_v45  ;;  %v3130_v32 = vadd.f32 -0.16666654, %v3129_v54 }
 0x50b   :  { %v5106_v55 = vshrl.u32 %v5105_v2, 30  ;;  %vm5256_vm7 = vc.u32 %v10157_v20, %v10163_v9  ;;  %v4454_v30 = vadd.s32 %v4452_v50, %v4450_v26  ;;  %v4444_v25 = vshrl.u32 %v10055_v39, 16 }
 0x50c   :  { %v5257_v19 = vadd.s32 1, %v5253_v14  ;;  %vm4469_vm5 = vc.u32 %v4461_v1, %v4465_v16  ;;  %v3124_v33 = vmul.f32 %v3123_v42, %v3119_v51  ;;  %v3131_v60 = vmul.f32 %v3130_v32, %v3119_v51 }
 0x50d   :  { %v5107_v53 = vshll.u32 %v5106_v55, 30  ;;  %vm3137_vm10 = vcmp.lt.s32.totalorder %v10061_v23, 2  ;;  %v4464_v47 = vmul.u32 %v4460_v35, %v11536_v5  ;;  %v4470_v0 = vsel %vm4469_vm5, 1, %v11120_v46 }
 0x50e   :  { %vm3134_vm6 = vweird.f32 %v11514_v6  ;;  %v5258_v59 = vsel %vm5256_vm7, %v5257_v19, %v5253_v14  ;;  %v4467_v21 = vshll.u32 %v10172_v43, 16  ;;  %v4471_v29 = vadd.s32 %v4465_v16, %v4461_v1  ;;  %v11548_v6 = vld [vmem:[#allocation160_spill] sm:$0xff] }
 0x50f   :  { %v10184_v13 = vsub.s32 %v5104_v15, %v5107_v53  ;;  %v3125_v39 = vadd.f32 1.0, %v3124_v33  ;;  %v3132_v31 = vadd.f32 1.0, %v3131_v60  ;;  %v11542_v51 = vand.u32 2147483647, %v11541_v48 }
 0x510   :  { %v5259_v11 = vadd.s32 %v5258_v59, %v5254_v4  ;;  %v4455_v35 = vadd.s32 %v4454_v30, %v4444_v25  ;;  %v5130_v34 = vsub.s32 4, %v5106_v55  ;;  %v4472_v10 = vadd.s32 %v4470_v0, %v4464_v47  ;;  %v11546_v4 = vld [vmem:[#allocation139_spill] sm:$0xff]  ;;  %v11550_v25 = vld [vmem:[#allocation137_spill] sm:$0xff] }
 0x511   :  { %vm10189_vm1 = vcmp.le.f32.partialorder %v11542_v51, 0.7853982  ;;  %vm5109_vm0 = vcmp.lt.s32.totalorder %v10184_v13, 0  ;;  %v5110_v5 = vsub.s32 0, %v10184_v13  ;;  %vm4575_vm8 = vcmp.lt.s32.totalorder %v11545_v41, 3  ;;  %v11551_v51 = vld [vmem:[#allocation154_spill] sm:$0xff] }
 0x512   :  { %v3133_v57 = vmul.f32 %v3132_v31, %v10137_v18  ;;  %v3142_v44 = vxor.u32 2147483648, %v3125_v39  ;;  %v5260_v22 = vadd.s32 536870912, %v5259_v11  ;;  %vm4473_vm13 = vc.u32 %v4471_v29, %v4467_v21 }
 0x513   :  { %vm3138_vm11 = vcmp.eq.s32.totalorder %v10061_v23, 0  ;;  %v5111_v7 = vsel %vm5109_vm0, %v5110_v5, %v10184_v13  ;;  %v4446_v24 = vshrl.u32 %v10068_v63, 16  ;;  %v4474_v36 = vsel %vm4473_vm13, 1, %v11120_v46  ;;  %v11554_v5 = vld [vmem:[#allocation155_spill] sm:$0xff] }
 0x514   :  { %vm5163_vm12 = vcmp.lt.s32.totalorder %v11546_v4, 0  ;;  %v3139_v56 = vxor.u32 2147483648, %v3133_v57  ;;  %vm3141_vm14 = vcmp.eq.s32.totalorder %v10061_v23, 2  ;;  %v5112_v38 = vclz %v5111_v7 }
 0x515   :  { %v5261_v15 = vshrl.u32 %v5260_v22, 30  ;;  %v5131_v18 = vsel %vm5008_vm9, %v5130_v34, %v5106_v55  ;;  %v10208_v58 = vadd.s32 %v4455_v35, %v4446_v24  ;;  %v4466_v17 = vshrl.u32 %v10079_v52, 16  ;;  %v11553_v35 = vld [vmem:[#allocation158_spill] sm:$0xff] }
 0x516   :  { %v4476_v12 = vadd.s32 %v4474_v36, %v4472_v10  ;;  %v3140_v61 = vsel %vm3138_vm11, %v3125_v39, %v3139_v56  ;;  %v3143_v26 = vsel %vm3141_vm14, %v3142_v44, %v3133_v57  ;;  %v5550_v63 = vadd.s32 4294967294, %v5112_v38  ;;  %v11558_v57 = vld [vmem:[#allocation159_spill] sm:$0xff] }
 0x517   :  { %v5262_v2 = vshll.u32 %v5261_v15, 30  ;;  %v3144_v28 = vsel %vm3137_vm10, %v3140_v61, %v3143_v26  ;;  %v5100_v37 = vadd.s32 %v10110_v49, %v10116_v8  ;;  %v4468_v50 = vshrl.u32 %v10172_v43, 16  ;;  %v11549_v43 = vld [vmem:[#allocation156_spill] sm:$0xff] }
 0x518   :  { %v4477_v45 = vadd.s32 %v4476_v12, %v4466_v17  ;;  %v3145_v54 = vsel %vm3134_vm6, nan, %v3144_v28  ;;  %vm5551_vm3 = vcmp.lt.s32.totalorder %v5550_v63, 0  ;;  %v4475_v52 = vadd.s32 %v4471_v29, %v4467_v21 }
 0x519   :  { %v10218_v16 = vsub.s32 %v5259_v11, %v5262_v2  ;;  %5361 = vmatpush.msra.mxu1 %v3145_v54  ;;  %v5115_v55 = vsel %vm5551_vm3, 0, %v5550_v63  ;;  %v5133_v14 = vsel %vm10189_vm1, 0, %v5131_v18  ;;  %v5285_v23 = vsub.s32 4, %v5261_v15  ;;  %v11552_v11 = vld [vmem:[#allocation157_spill] sm:$0xff] }
 0x51a   :  { %v4478_v1 = vadd.s32 %v4477_v45, %v4468_v50  ;;  %vm11547_vm2 = vcmask 261120   ;;  %v5116_v49 = vsub.s32 32, %v5115_v55  ;;  %v5120_v8 = vsub.s32 4294967266, %v5115_v55 }
 0x51b   :  { %5556 = vmatmul.msk.f32.vlgmr.msra.gmra.mxu1 %vm11547_vm2, %v10106_v62  ;;  %vm5264_vm15 = vcmp.lt.s32.totalorder %v10218_v16, 0  ;;  %vm4481_vm7 = vc.u32 %v10208_v58, %v4475_v52  ;;  %v4587_v42 = vsel %vm4575_vm8, %v11549_v43, %v11548_v6  ;;  %v5265_v32 = vsub.s32 0, %v10218_v16 }
 0x51c   :  { %v4482_v30 = vadd.s32 1, %v4478_v1  ;;  %vm4574_vm5 = vcmp.lt.s32.totalorder %v11545_v41, 2  ;;  %v5117_v53 = vshll.u32 %v10184_v13, %v5115_v55  ;;  %v5118_v19 = vshrl.u32 %v5100_v37, %v5116_v49  ;;  %v11561_v37 = vld [vmem:[#allocation147_spill] sm:$0xff] }
 0x51d   :  { %v5121_v62 = vadd.s32 127, %v5120_v8  ;;  %v4479_v33 = vmul.u32 %v11550_v25, %v10052_v3  ;;  %v5150_v60 = vadd.s32 3, %v5133_v14  ;;  %v5266_v47 = vsel %vm5264_vm15, %v5265_v32, %v10218_v16  ;;  %v11562_v49 = vld [vmem:[#allocation115_spill] sm:$0xff] }
 0x51e   :  { %v5286_v0 = vsel %vm5163_vm12, %v5285_v23, %v5261_v15  ;;  %v4483_v59 = vsel %vm4481_vm7, %v4482_v30, %v4478_v1  ;;  %v5119_v21 = vor.u32 %v5118_v19, %v5117_v53  ;;  %v5267_v39 = vclz %v5266_v47  ;;  %v11559_v15 = vld [vmem:[#allocation153_spill] sm:$0xff] }
 0x51f   :  { %v5122_v29 = vshll.u32 %v5121_v62, 23  ;;  %v4484_v31 = vadd.s32 %v4483_v59, %v4479_v33  ;;  %v4581_v13 = vsel %vm4573_vm4, %v11552_v11, %v11551_v51  ;;  %v4583_v3 = vsel %vm4575_vm8, %v11554_v5, %v11553_v35 }
 0x520   :  { %v11555_v34 = vand.u32 2147483647, %v11546_v4  ;;  %v4588_v44 = vsel %vm4574_vm5, %v11558_v57, %v4587_v42  ;;  %v5553_v7 = vadd.s32 4294967294, %v5267_v39  ;;  %v10257_v56 = vand.u32 3, %v5150_v60  ;;  %v11563_v60 = vld [vmem:[#allocation148_spill] sm:$0xff] }
 0x521   :  { %v5123_v22 = vor.u32 4788187, %v5122_v29  ;;  %v4485_v36 = vadd.s32 536870912, %v4484_v31  ;;  %v5255_v38 = vadd.s32 %v10163_v9, %v10157_v20  ;;  %v4557_v18 = vshrl.u32 %v11119_v27, %v11559_v15 }
 0x522   :  { %vm10248_vm10 = vcmp.le.f32.partialorder %v11555_v34, 0.7853982  ;;  %v4593_v17 = vshrl.u32 %v4588_v44, 16  ;;  %v5126_v61 = vcvt.s32.f32 %v5119_v21  ;;  %vm5554_vm6 = vcmp.lt.s32.totalorder %v5553_v7, 0 }
 0x523   :  { %v5288_v24 = vsel %vm10248_vm10, 0, %v5286_v0  ;;  %v5124_v12 = vand.u32 2147483647, %v5123_v22  ;;  %v4486_v26 = vshrl.u32 %v4485_v36, 30  ;;  %v5270_v63 = vsel %vm5554_vm6, 0, %v5553_v7 }
 0x524   :  { %v5305_v2 = vadd.s32 3, %v5288_v24  ;;  %vm11560_vm0 = vcmp.lt.s32.totalorder %v11545_v41, 4  ;;  %v10267_v50 = vmul.u32 %v4593_v17, %v11561_v37  ;;  %v5271_v54 = vsub.s32 32, %v5270_v63 }
 0x525   :  { %v4578_v28 = vsel %vm11560_vm0, %v11554_v5, 2102212464  ;;  %v5127_v45 = vmul.f32 %v5126_v61, %v5124_v12  ;;  %v5275_v20 = vsub.s32 4294967266, %v5270_v63  ;;  %v4592_v9 = vand.u32 65535, %v4588_v44 }
 0x526   :  { %v5272_v55 = vshll.u32 %v10218_v16, %v5270_v63  ;;  %v10271_v14 = vadd.s32 %v4475_v52, %v10208_v58  ;;  %v4487_v23 = vshll.u32 %v4486_v26, 30  ;;  %v10276_v1 = vsel %vm4573_vm4, %v4557_v18, %v11552_v11 }
 0x527   :  { %vm4388_vm13 = vcmp.lt.s32.totalorder %v11562_v49, 0  ;;  %v5128_v8 = vxor.u32 2147483648, %v5127_v45  ;;  %v5273_v6 = vshrl.u32 %v5255_v38, %v5271_v54  ;;  %v5276_v43 = vadd.s32 127, %v5275_v20 }
 0x528   :  { %v4598_v42 = vshll.u32 %v10267_v50, 16  ;;  %v10280_v32 = vand.u32 3, %v5305_v2  ;;  %v10282_v30 = vsub.s32 %v4484_v31, %v4487_v23  ;;  %v10287_v58 = vsel %vm4575_vm8, %v11551_v51, %v4578_v28 }
 0x529   :  { %v10291_v16 = vsel %vm4574_vm5, %v4581_v13, %v4583_v3  ;;  %v5129_v52 = vsel %vm5008_vm9, %v5128_v8, %v5127_v45  ;;  %v5274_v53 = vor.u32 %v5273_v6, %v5272_v55  ;;  %v5277_v19 = vshll.u32 %v5276_v43, 23 }
 0x52a   :  { %v4594_v62 = vmul.u32 %v4592_v9, %v11561_v37  ;;  %v10299_v25 = vsel %vm10189_vm1, %v11541_v48, %v5129_v52  ;;  %vm4489_vm4 = vcmp.lt.s32.totalorder %v10282_v30, 0  ;;  %v4490_v33 = vsub.s32 0, %v10282_v30 }
 0x52b   :  { %v10304_v47 = vmul.u32 %v4592_v9, %v11563_v60  ;;  %v5134_v0 = vmul.f32 %v10299_v25, %v10299_v25  ;;  %v5278_v59 = vor.u32 4788187, %v5277_v19  ;;  %v4510_v21 = vsub.s32 4, %v4486_v26 }
 0x52c   :  { %vm4602_vm9 = vc.u32 %v4594_v62, %v4598_v42  ;;  %v5281_v29 = vcvt.s32.f32 %v5274_v53  ;;  %v4491_v39 = vsel %vm4489_vm4, %v4490_v33, %v10282_v30  ;;  %v4604_v31 = vadd.s32 %v4598_v42, %v4594_v62 }
 0x52d   :  { %v4603_v40 = vsel %vm4602_vm9, 1, %v11120_v46  ;;  %v5135_v51 = vmul.f32 -0.001358992, %v5134_v0  ;;  %v5142_v11 = vmul.f32 -0.00019511016, %v5134_v0  ;;  %v4492_v35 = vclz %v4491_v39 }
 0x52e   :  { %v5279_v13 = vand.u32 2147483647, %v5278_v59  ;;  %v4597_v5 = vmul.u32 %v4593_v17, %v11563_v60  ;;  %v4600_v3 = vshll.u32 %v10304_v47, 16  ;;  %v4614_v34 = vand.u32 65535, %v10291_v16 }
 0x52f   :  { %v4615_v57 = vshrl.u32 %v10291_v16, 16  ;;  %v5136_v44 = vadd.f32 0.041655596, %v5135_v51  ;;  %v5143_v22 = vadd.f32 0.008332121, %v5142_v11  ;;  %v5538_v24 = vadd.s32 4294967294, %v4492_v35 }
 0x530   :  { %v5282_v7 = vmul.f32 %v5281_v29, %v5279_v13  ;;  %v10316_v36 = vsel %vm4388_vm13, %v4510_v21, %v4486_v26  ;;  %v4599_v38 = vshrl.u32 %v10267_v50, 16  ;;  %v4605_v15 = vadd.s32 %v4603_v40, %v4597_v5 }
 0x531   :  { %vm4606_vm1 = vc.u32 %v4604_v31, %v4600_v3  ;;  %v5137_v18 = vmul.f32 %v5136_v44, %v5134_v0  ;;  %v5144_v17 = vmul.f32 %v5143_v22, %v5134_v0  ;;  %vm5539_vm8 = vcmp.lt.s32.totalorder %v5538_v24, 0 }
 0x532   :  { %v5283_v12 = vxor.u32 2147483648, %v5282_v7  ;;  %v4495_v61 = vsel %vm5539_vm8, 0, %v5538_v24  ;;  %v4601_v63 = vshrl.u32 %v10304_v47, 16  ;;  %v4607_v2 = vsel %vm4606_vm1, 1, %v11120_v46 }
 0x533   :  { %v10322_v28 = vmul.u32 %v4615_v57, %v11561_v37  ;;  %v5138_v45 = vadd.f32 -0.4999988, %v5137_v18  ;;  %v5145_v54 = vadd.f32 -0.16666654, %v5144_v17  ;;  %vm5156_vm11 = vcmp.eq.s32.totalorder %v10257_v56, 2 }
 0x534   :  { %v5284_v26 = vsel %vm5163_vm12, %v5283_v12, %v5282_v7  ;;  %v4496_v50 = vsub.s32 32, %v4495_v61  ;;  %vm5153_vm14 = vcmp.eq.s32.totalorder %v10257_v56, 0  ;;  %v4500_v9 = vsub.s32 4294967266, %v4495_v61 }
 0x535   :  { %v10331_v20 = vsel %vm10248_vm10, %v11546_v4, %v5284_v26  ;;  %v4609_v55 = vadd.s32 %v4607_v2, %v4605_v15  ;;  %v4616_v23 = vmul.u32 %v4614_v34, %v11561_v37  ;;  %v5139_v8 = vmul.f32 %v5138_v45, %v5134_v0 }
 0x536   :  { %v5146_v6 = vmul.f32 %v5145_v54, %v5134_v0  ;;  %vm5152_vm3 = vcmp.lt.s32.totalorder %v10257_v56, 2  ;;  %v5289_v43 = vmul.f32 %v10331_v20, %v10331_v20  ;;  %v4498_v42 = vshrl.u32 %v10271_v14, %v4496_v50 }
 0x537   :  { %vm5149_vm12 = vweird.f32 %v11541_v48  ;;  %v4497_v16 = vshll.u32 %v10282_v30, %v4495_v61  ;;  %v4501_v10 = vadd.s32 127, %v4500_v9  ;;  %v4618_v52 = vmul.u32 %v4614_v34, %v11563_v60 }
 0x538   :  { %v4620_v53 = vshll.u32 %v10322_v28, 16  ;;  %v5140_v19 = vadd.f32 1.0, %v5139_v8  ;;  %v5147_v37 = vadd.f32 1.0, %v5146_v6  ;;  %v5290_v62 = vmul.f32 -0.001358992, %v5289_v43 }
 0x539   :  { %v5297_v33 = vmul.f32 -0.00019511016, %v5289_v43  ;;  %v4499_v0 = vor.u32 %v4498_v42, %v4497_v16  ;;  %v4502_v59 = vshll.u32 %v4501_v10, 23  ;;  %v4610_v21 = vadd.s32 %v4609_v55, %v4599_v38  ;;  %v11568_v42 = vld [vmem:[#allocation143_spill] sm:$0xff] }
 0x53a   :  { %v4619_v29 = vmul.u32 %v4615_v57, %v11563_v60  ;;  %v5148_v14 = vmul.f32 %v5147_v37, %v10299_v25  ;;  %v5157_v39 = vxor.u32 2147483648, %v5140_v19  ;;  %v5291_v40 = vadd.f32 0.041655596, %v5290_v62  ;;  %v11570_v62 = vld [vmem:[#allocation122_spill] sm:$0xff] }
 0x53b   :  { %v5298_v31 = vadd.f32 0.008332121, %v5297_v33  ;;  %v11564_v30 = vand.u32 2147483647, %v11562_v49  ;;  %v4503_v11 = vor.u32 4788187, %v4502_v59  ;;  %vm4624_vm15 = vc.u32 %v4616_v23, %v4620_v53 }
 0x53c   :  { %v4622_v13 = vshll.u32 %v4618_v52, 16  ;;  %v4626_v35 = vadd.s32 %v4620_v53, %v4616_v23  ;;  %v5154_v5 = vxor.u32 2147483648, %v5148_v14  ;;  %v5292_v3 = vmul.f32 %v5291_v40, %v5289_v43  ;;  %v11567_v23 = vld [vmem:[#allocation121_spill] sm:$0xff]  ;;  %v11569_v53 = vld [vmem:[#allocation107_spill] sm:$0xff] }
 0x53d   :  { %vm10346_vm2 = vcmp.le.f32.partialorder %v11564_v30, 0.7853982  ;;  %v5299_v34 = vmul.f32 %v5298_v31, %v5289_v43  ;;  %v4506_v44 = vcvt.s32.f32 %v4499_v0  ;;  %v5158_v25 = vsel %vm5156_vm11, %v5157_v39, %v5148_v14  ;;  %v11571_v33 = vld [vmem:[#allocation117_spill] sm:$0xff] }
 0x53e   :  { %v4504_v60 = vand.u32 2147483647, %v4503_v11  ;;  %v4625_v57 = vsel %vm4624_vm15, 1, %v11120_v46  ;;  %vm4628_vm7 = vc.u32 %v4626_v35, %v4622_v13  ;;  %v5155_v22 = vsel %vm5153_vm14, %v5140_v19, %v5154_v5  ;;  %v11572_v11 = vld [vmem:[#allocation120_spill] sm:$0xff] }
 0x53f   :  { %v5293_v7 = vadd.f32 -0.4999988, %v5292_v3  ;;  %v5300_v24 = vadd.f32 -0.16666654, %v5299_v34  ;;  %v4627_v38 = vadd.s32 %v4625_v57, %v4619_v29  ;;  %v5159_v15 = vsel %vm5152_vm3, %v5155_v22, %v5158_v25  ;;  %v11574_v5 = vld [vmem:[#allocation108_spill] sm:$0xff]  ;;  %v11575_v34 = vld [vmem:[#allocation114_spill] sm:$0xff] }
 0x540   :  { %v4507_v18 = vmul.f32 %v4506_v44, %v4504_v60  ;;  %v4621_v17 = vshrl.u32 %v10322_v28, 16  ;;  %v4629_v12 = vsel %vm4628_vm7, 1, %v11120_v46  ;;  %v5160_v61 = vsel %vm5149_vm12, nan, %v5159_v15  ;;  %v11576_v22 = vld [vmem:[#allocation131_spill] sm:$0xff] }
 0x541   :  { %v5294_v2 = vmul.f32 %v5293_v7, %v5289_v43  ;;  %v5301_v45 = vmul.f32 %v5300_v24, %v5289_v43  ;;  %v4631_v54 = vadd.s32 %v4629_v12, %v4627_v38  ;;  %5378 = vmatpush.msra.mxu2 %v5160_v61  ;;  %vm5304_vm10 = vweird.f32 %v11546_v4  ;;  %v11577_v7 = vld [vmem:[#allocation128_spill] sm:$0xff]  ;;  %v11578_v24 = vld [vmem:[#allocation127_spill] sm:$0xff] }
 0x542   :  { %vm5307_vm6 = vcmp.lt.s32.totalorder %v10280_v32, 2  ;;  %v4508_v26 = vxor.u32 2147483648, %v4507_v18  ;;  %v4580_v56 = vsel %vm4574_vm5, %v10276_v1, %v10287_v58  ;;  %v10369_v28 = vadd.s32 %v4610_v21, %v4601_v63 }
 0x543   :  { %v5295_v48 = vadd.f32 1.0, %v5294_v2  ;;  %v5302_v50 = vadd.f32 1.0, %v5301_v45  ;;  %v4623_v9 = vshrl.u32 %v4618_v52, 16  ;;  %v4632_v55 = vadd.s32 %v4631_v54, %v4621_v17  ;;  %v11580_v45 = vld [vmem:[#allocation124_spill] sm:$0xff]  ;;  %v11581_v54 = vld [vmem:[#allocation125_spill] sm:$0xff] }
 0x544   :  { %vm3955_vm0 = vcmp.lt.s32.totalorder %v11567_v23, 3  ;;  %vm5308_vm4 = vcmp.eq.s32.totalorder %v10280_v32, 0  ;;  %v4509_v8 = vsel %vm4388_vm13, %v4508_v26, %v4507_v18  ;;  %v4513_v41 = vsel %vm10346_vm2, 0, %v10316_v36 }
 0x545   :  { %v10378_v1 = vadd.s32 %v4626_v35, %v4622_v13  ;;  %v5303_v58 = vmul.f32 %v5302_v50, %v10331_v20  ;;  %v5312_v47 = vxor.u32 2147483648, %v5295_v48  ;;  %v4512_v63 = vsel %vm10346_vm2, %v11562_v49, %v4509_v8  ;;  %v11573_v13 = vld [vmem:[#allocation116_spill] sm:$0xff] }
 0x546   :  { %v4633_v6 = vadd.s32 %v4632_v55, %v4623_v9  ;;  %vm5311_vm5 = vcmp.eq.s32.totalorder %v10280_v32, 2  ;;  %v4514_v43 = vmul.f32 %v4512_v63, %v4512_v63  ;;  %v4634_v16 = vmul.u32 %v11568_v42, %v4580_v56 }
 0x547   :  { %vm4636_vm13 = vc.u32 %v10369_v28, %v10378_v1  ;;  %v5309_v10 = vxor.u32 2147483648, %v5303_v58  ;;  %v4530_v36 = vadd.s32 3, %v4513_v41  ;;  %vm3799_vm9 = vcmp.lt.s32.totalorder %v11569_v53, 2 }
 0x548   :  { %v4637_v52 = vadd.s32 1, %v4633_v6  ;;  %v5313_v20 = vsel %vm5311_vm5, %v5312_v47, %v5303_v58  ;;  %v4515_v19 = vmul.f32 -0.001358992, %v4514_v43  ;;  %v4522_v37 = vmul.f32 -0.00019511016, %v4514_v43 }
 0x549   :  { %v3813_v0 = vsel %vm3799_vm9, %v11571_v33, %v11570_v62  ;;  %v5310_v59 = vsel %vm5308_vm4, %v5295_v48, %v5309_v10  ;;  %v3809_v35 = vsel %vm3799_vm9, %v11573_v13, %v11572_v11  ;;  %v4531_v60 = vand.u32 3, %v4530_v36  ;;  %v11584_v36 = vld [vmem:[#allocation100_spill] sm:$0xff] }
 0x54a   :  { %v4638_v21 = vsel %vm4636_vm13, %v4637_v52, %v4633_v6  ;;  %v3817_v29 = vand.u32 65535, %v3813_v0  ;;  %v3818_v14 = vshrl.u32 %v3813_v0, 16  ;;  %v5314_v39 = vsel %vm5307_vm6, %v5310_v59, %v5313_v20  ;;  %v11585_v0 = vld [vmem:[#allocation111_spill] sm:$0xff] }
 0x54b   :  { %v4516_v40 = vadd.f32 0.041655596, %v4515_v19  ;;  %v4523_v31 = vadd.f32 0.008332121, %v4522_v37  ;;  %v4639_v30 = vadd.s32 %v4638_v21, %v4634_v16  ;;  %v5315_v51 = vsel %vm5304_vm10, nan, %v5314_v39 }
 0x54c   :  { %v10404_v3 = vmul.u32 %v3818_v14, %v11574_v5  ;;  %v10407_v44 = vmul.u32 %v3817_v29, %v11575_v34  ;;  %5398 = vmatpush.msra.mxu3 %v5315_v51  ;;  %v10413_v4 = vsel %vm3955_vm0, %v11577_v7, %v11576_v22  ;;  %vm11579_vm1 = vcmp.lt.s32.totalorder %v11567_v23, 1  ;;  %v11589_v22 = vld [vmem:[#allocation110_spill] sm:$0xff] }
 0x54d   :  { %v4517_v32 = vmul.f32 %v4516_v40, %v4514_v43  ;;  %v4524_v25 = vmul.f32 %v4523_v31, %v4514_v43  ;;  %v4640_v57 = vadd.s32 536870912, %v4639_v30  ;;  %v10419_v38 = vsel %vm11579_vm1, %v11578_v24, %v11577_v7  ;;  %v11587_v40 = vld [vmem:[#allocation109_spill] sm:$0xff] }
 0x54e   :  { %v3819_v15 = vmul.u32 %v3817_v29, %v11574_v5  ;;  %v3823_v18 = vshll.u32 %v10404_v3, 16  ;;  %v3840_v2 = vshrl.u32 %v3809_v35, 16  ;;  %v11582_v26 = vor.u32 %v11580_v45, %v11581_v54  ;;  %v11592_v45 = vld [vmem:[#allocation132_spill] sm:$0xff] }
 0x54f   :  { %v4518_v17 = vadd.f32 -0.4999988, %v4517_v32  ;;  %v4525_v12 = vadd.f32 -0.16666654, %v4524_v25  ;;  %v10423_v61 = vshrl.u32 %v4640_v57, 30  ;;  %vm11583_vm8 = vcmp.lt.s32.totalorder %v11567_v23, 4 }
 0x550   :  { %v3966_v56 = vsel %vm11583_vm8, %v11582_v26, 1326507024  ;;  %v3825_v48 = vshll.u32 %v10407_v44, 16  ;;  %vm3827_vm11 = vc.u32 %v3819_v15, %v3823_v18  ;;  %v3829_v50 = vadd.s32 %v3823_v18, %v3819_v15 }
 0x551   :  { %v4519_v9 = vmul.f32 %v4518_v17, %v4514_v43  ;;  %v4526_v55 = vmul.f32 %v4525_v12, %v4514_v43  ;;  %vm4532_vm14 = vcmp.lt.s32.totalorder %v4531_v60, 2  ;;  %v4642_v8 = vshll.u32 %v10423_v61, 30  ;;  %v11591_v17 = vld [vmem:[#allocation129_spill] sm:$0xff] }
 0x552   :  { %v3839_v41 = vand.u32 65535, %v3809_v35  ;;  %vm4529_vm3 = vweird.f32 %v11562_v49  ;;  %v3822_v58 = vmul.u32 %v3818_v14, %v11575_v34  ;;  %v3828_v47 = vsel %vm3827_vm11, 1, %v11120_v46 }
 0x553   :  { %vm3831_vm12 = vc.u32 %v3829_v50, %v3825_v48  ;;  %v3842_v6 = vmul.u32 %v3840_v2, %v11574_v5  ;;  %v4520_v42 = vadd.f32 1.0, %v4519_v9  ;;  %v4527_v16 = vadd.f32 1.0, %v4526_v55 }
 0x554   :  { %vm4533_vm2 = vcmp.eq.s32.totalorder %v4531_v60, 0  ;;  %v4643_v10 = vsub.s32 %v4639_v30, %v4642_v8  ;;  %v3782_v43 = vshrl.u32 %v11119_v27, %v11584_v36  ;;  %v3830_v52 = vadd.s32 %v3828_v47, %v3822_v58  ;;  %v11594_v36 = vld [vmem:[#allocation130_spill] sm:$0xff] }
 0x555   :  { %v3832_v20 = vsel %vm3831_vm12, 1, %v11120_v46  ;;  %v3845_v19 = vshll.u32 %v3842_v6, 16  ;;  %v4528_v37 = vmul.f32 %v4527_v16, %v4512_v63  ;;  %v4537_v62 = vxor.u32 2147483648, %v4520_v42 }
 0x556   :  { %vm4644_vm15 = vcmp.lt.s32.totalorder %v4643_v10, 0  ;;  %v4645_v33 = vsub.s32 0, %v4643_v10  ;;  %vm4536_vm7 = vcmp.eq.s32.totalorder %v4531_v60, 2  ;;  %vm11586_vm10 = vcmp.lt.s32.totalorder %v11569_v53, 4 }
 0x557   :  { %v3803_v59 = vsel %vm11586_vm10, %v11585_v0, 2102212464  ;;  %v3841_v21 = vmul.u32 %v3839_v41, %v11574_v5  ;;  %v3843_v29 = vmul.u32 %v3839_v41, %v11575_v34  ;;  %v4534_v14 = vxor.u32 2147483648, %v4528_v37 }
 0x558   :  { %v4646_v39 = vsel %vm4644_vm15, %v4645_v33, %v4643_v10  ;;  %vm11588_vm6 = vcmp.lt.s32.totalorder %v11569_v53, 1  ;;  %v3834_v30 = vadd.s32 %v3832_v20, %v3830_v52  ;;  %v3824_v51 = vshrl.u32 %v10404_v3, 16 }
 0x559   :  { %v3802_v31 = vsel %vm11588_vm6, %v3782_v43, %v11587_v40  ;;  %v4647_v63 = vclz %v4646_v39  ;;  %v3844_v11 = vmul.u32 %v3840_v2, %v11575_v34  ;;  %vm3849_vm4 = vc.u32 %v3841_v21, %v3845_v19  ;;  %v11599_v40 = vld [vmem:[#allocation126_spill] sm:$0xff] }
 0x55a   :  { %v4535_v13 = vsel %vm4533_vm2, %v4520_v42, %v4534_v14  ;;  %v4538_v35 = vsel %vm4536_vm7, %v4537_v62, %v4528_v37  ;;  %v3850_v5 = vsel %vm3849_vm4, 1, %v11120_v46  ;;  %v3851_v32 = vadd.s32 %v3845_v19, %v3841_v21  ;;  %v11598_v21 = vld [vmem:[#allocation105_spill] sm:$0xff] }
 0x55b   :  { %v4539_v25 = vsel %vm4532_vm14, %v4535_v13, %v4538_v35  ;;  %v5541_v57 = vadd.s32 4294967294, %v4647_v63  ;;  %vm11590_vm5 = vcmp.lt.s32.totalorder %v11569_v53, 3  ;;  %v3847_v18 = vshll.u32 %v3843_v29, 16 }
 0x55c   :  { %v3804_v15 = vsel %vm11590_vm5, %v11589_v22, %v3803_v59  ;;  %v3967_v3 = vsel %vm3955_vm0, %v11591_v17, %v3966_v56  ;;  %v4540_v34 = vsel %vm4529_vm3, nan, %v4539_v25  ;;  %v3835_v12 = vadd.s32 %v3834_v30, %v3824_v51  ;;  %v11601_v30 = vld [vmem:[#allocation118_spill] sm:$0xff]  ;;  %v11602_v51 = vld [vmem:[#allocation119_spill] sm:$0xff] }
 0x55d   :  { %v3852_v2 = vadd.s32 %v3850_v5, %v3844_v11  ;;  %vm4543_vm13 = vcmp.lt.s32.totalorder %v11592_v45, 0  ;;  %5379 = vmatpush.msra.mxu2 %v4540_v34  ;;  %v4635_v60 = vadd.s32 %v10378_v1, %v10369_v28  ;;  %vm5542_vm1 = vcmp.lt.s32.totalorder %v5541_v57, 0 }
 0x55e   :  { %vm3853_vm8 = vc.u32 %v3851_v32, %v3847_v18  ;;  %v4650_v54 = vsel %vm5542_vm1, 0, %v5541_v57  ;;  %v3805_v26 = vsel %vm3799_vm9, %v3802_v31, %v3804_v15  ;;  %v3826_v48 = vshrl.u32 %v10407_v44, 16  ;;  %v11593_v44 = vld [vmem:[#allocation123_spill] sm:$0xff] }
 0x55f   :  { %v3854_v56 = vsel %vm3853_vm8, 1, %v11120_v46  ;;  %v4651_v49 = vsub.s32 32, %v4650_v54  ;;  %v4655_v50 = vsub.s32 4294967266, %v4650_v54  ;;  %v3846_v9 = vshrl.u32 %v3842_v6, 16 }
 0x560   :  { %v3856_v55 = vadd.s32 %v3854_v56, %v3852_v2  ;;  %v4665_v8 = vsub.s32 4, %v10423_v61  ;;  %v10468_v41 = vadd.s32 %v3835_v12, %v3826_v48  ;;  %v3848_v58 = vshrl.u32 %v3843_v29, 16 }
 0x561   :  { %vm3954_vm11 = vcmp.lt.s32.totalorder %v11567_v23, 2  ;;  %v4652_v28 = vshll.u32 %v4643_v10, %v4650_v54  ;;  %v4653_v1 = vshrl.u32 %v4635_v60, %v4651_v49  ;;  %v4656_v47 = vadd.s32 127, %v4655_v50  ;;  %v11604_v49 = vld [vmem:[#allocation81_spill] sm:$0xff] }
 0x562   :  { %v3857_v53 = vadd.s32 %v3856_v55, %v3846_v9  ;;  %v10471_v42 = vadd.s32 %v3851_v32, %v3847_v18  ;;  %v3937_v16 = vshrl.u32 %v11119_v27, %v11593_v44  ;;  %v3964_v6 = vsel %vm3954_vm11, %v11594_v36, %v10413_v4 }
 0x563   :  { %v3968_v43 = vsel %vm3954_vm11, %v10419_v38, %v3967_v3  ;;  %v4654_v52 = vor.u32 %v4653_v1, %v4652_v28  ;;  %v4657_v20 = vshll.u32 %v4656_v47, 23  ;;  %v3994_v62 = vand.u32 65535, %v3964_v6 }
 0x564   :  { %v3858_v10 = vadd.s32 %v3857_v53, %v3848_v58  ;;  %v3972_v19 = vand.u32 65535, %v3968_v43  ;;  %vm3861_vm9 = vc.u32 %v10468_v41, %v10471_v42  ;;  %v3973_v37 = vshrl.u32 %v3968_v43, 16  ;;  %v11605_v53 = vld [vmem:[#allocation52_spill] sm:$0xff] }
 0x565   :  { %v3995_v33 = vshrl.u32 %v3964_v6, 16  ;;  %v11595_v0 = vand.u32 2147483647, %v11592_v45  ;;  %v4658_v4 = vor.u32 4788187, %v4657_v20  ;;  %v10493_v38 = vsel %vm4543_vm13, %v4665_v8, %v10423_v61 }
 0x566   :  { %v3859_v29 = vmul.u32 %v11598_v21, %v3805_v26  ;;  %v3862_v14 = vadd.s32 1, %v3858_v10  ;;  %v4661_v39 = vcvt.s32.f32 %v4654_v52  ;;  %vm11600_vm3 = vcmp.lt.s32.totalorder %v11567_v23, 1 }
 0x567   :  { %vm10486_vm14 = vcmp.le.f32.partialorder %v11595_v0, 0.7853982  ;;  %v3957_v31 = vsel %vm11600_vm3, %v3937_v16, %v11599_v40  ;;  %v3975_v63 = vmul.u32 %v3973_v37, %v11601_v30  ;;  %v3976_v11 = vmul.u32 %v3972_v19, %v11602_v51 }
 0x568   :  { %v4659_v13 = vand.u32 2147483647, %v4658_v4  ;;  %v3863_v35 = vsel %vm3861_vm9, %v3862_v14, %v3858_v10  ;;  %v3997_v5 = vmul.u32 %v3995_v33, %v11601_v30  ;;  %v3998_v32 = vmul.u32 %v3994_v62, %v11602_v51 }
 0x569   :  { %v3864_v61 = vadd.s32 %v3863_v35, %v3859_v29  ;;  %vm11603_vm12 = vcmp.lt.s32.totalorder %v11567_v23, 4  ;;  %v3974_v57 = vmul.u32 %v3972_v19, %v11601_v30  ;;  %v3978_v22 = vshll.u32 %v3975_v63, 16  ;;  %v11607_v35 = vld [vmem:[#allocation91_spill] sm:$0xff] }
 0x56a   :  { %v3958_v25 = vsel %vm11603_vm12, %v11577_v7, 2102212464  ;;  %v4662_v15 = vmul.f32 %v4661_v39, %v4659_v13  ;;  %v3977_v18 = vmul.u32 %v3973_v37, %v11602_v51  ;;  %v3996_v17 = vmul.u32 %v3994_v62, %v11601_v30  ;;  %v11606_v13 = vld [vmem:[#allocation96_spill] sm:$0xff] }
 0x56b   :  { %v4000_v3 = vshll.u32 %v3997_v5, 16  ;;  %v3865_v34 = vadd.s32 536870912, %v3864_v61  ;;  %v3980_v12 = vshll.u32 %v3976_v11, 16  ;;  %vm3982_vm2 = vc.u32 %v3974_v57, %v3978_v22 }
 0x56c   :  { %v3984_v2 = vadd.s32 %v3978_v22, %v3974_v57  ;;  %v4663_v60 = vxor.u32 2147483648, %v4662_v15  ;;  %v3983_v54 = vsel %vm3982_vm2, 1, %v11120_v46  ;;  %v3999_v26 = vmul.u32 %v3995_v33, %v11602_v51 }
 0x56d   :  { %v4002_v48 = vshll.u32 %v3998_v32, 16  ;;  %v3866_v7 = vshrl.u32 %v3865_v34, 30  ;;  %v3985_v56 = vadd.s32 %v3983_v54, %v3977_v18  ;;  %vm4004_vm7 = vc.u32 %v3996_v17, %v4000_v3  ;;  %v11611_v18 = vld [vmem:[#allocation89_spill] sm:$0xff] }
 0x56e   :  { %vm3986_vm15 = vc.u32 %v3984_v2, %v3980_v12  ;;  %vm3335_vm10 = vcmp.lt.s32.totalorder %v11604_v49, 3  ;;  %v4664_v50 = vsel %vm4543_vm13, %v4663_v60, %v4662_v15  ;;  %v4005_v55 = vsel %vm4004_vm7, 1, %v11120_v46  ;;  %v11610_v15 = vld [vmem:[#allocation86_spill] sm:$0xff]  ;;  %v11617_v60 = vld [vmem:[#allocation112_spill] sm:$0xff] }
 0x56f   :  { %v3987_v9 = vsel %vm3986_vm15, 1, %v11120_v46  ;;  %v4006_v8 = vadd.s32 %v4000_v3, %v3996_v17  ;;  %v10519_v58 = vsel %vm10486_vm14, %v11592_v45, %v4664_v50  ;;  %v3867_v28 = vshll.u32 %v3866_v7, 30 }
 0x570   :  { %v3979_v1 = vshrl.u32 %v3975_v63, 16  ;;  %v3989_v47 = vadd.s32 %v3987_v9, %v3985_v56  ;;  %vm3768_vm6 = vcmp.lt.s32.totalorder %v11605_v53, 0  ;;  %v4669_v44 = vmul.f32 %v10519_v58, %v10519_v58 }
 0x571   :  { %v3959_v16 = vsel %vm3955_vm0, %v11578_v24, %v3958_v25  ;;  %v4007_v36 = vadd.s32 %v4005_v55, %v3999_v26  ;;  %vm4008_vm4 = vc.u32 %v4006_v8, %v4002_v48  ;;  %v10527_v6 = vsub.s32 %v3864_v61, %v3867_v28 }
 0x572   :  { %v3981_v43 = vshrl.u32 %v3976_v11, 16  ;;  %v3990_v52 = vadd.s32 %v3989_v47, %v3979_v1  ;;  %v4009_v20 = vsel %vm4008_vm4, 1, %v11120_v46  ;;  %v4670_v10 = vmul.f32 -0.001358992, %v4669_v44 }
 0x573   :  { %v4677_v19 = vmul.f32 -0.00019511016, %v4669_v44  ;;  %v4001_v37 = vshrl.u32 %v3997_v5, 16  ;;  %v4011_v62 = vadd.s32 %v4009_v20, %v4007_v36  ;;  %v4668_v33 = vsel %vm10486_vm14, 0, %v10493_v38 }
 0x574   :  { %vm3869_vm5 = vcmp.lt.s32.totalorder %v10527_v6, 0  ;;  %v3870_v24 = vsub.s32 0, %v10527_v6  ;;  %v10535_v0 = vadd.s32 %v3990_v52, %v3981_v43  ;;  %v4671_v4 = vadd.f32 0.041655596, %v4670_v10  ;;  %v11619_v43 = vld [vmem:[#allocation73_spill] sm:$0xff]  ;;  %v11620_v52 = vld [vmem:[#allocation71_spill] sm:$0xff] }
 0x575   :  { %v4678_v21 = vadd.f32 0.008332121, %v4677_v19  ;;  %v4003_v29 = vshrl.u32 %v3998_v32, 16  ;;  %v4012_v14 = vadd.s32 %v4011_v62, %v4001_v37  ;;  %v3890_v40 = vsub.s32 4, %v3866_v7  ;;  %v11608_v32 = vld [vmem:[#allocation88_spill] sm:$0xff] }
 0x576   :  { %v3871_v39 = vsel %vm3869_vm5, %v3870_v24, %v10527_v6  ;;  %v3960_v30 = vsel %vm3954_vm11, %v3957_v31, %v3959_v16  ;;  %v10540_v63 = vadd.s32 %v4006_v8, %v4002_v48  ;;  %v4672_v59 = vmul.f32 %v4671_v4, %v4669_v44  ;;  %v11618_v16 = vld [vmem:[#allocation4_spill] sm:$0xff] }
 0x577   :  { %v4679_v38 = vmul.f32 %v4678_v21, %v4669_v44  ;;  %v3872_v51 = vclz %v3871_v39  ;;  %v4013_v11 = vadd.s32 %v4012_v14, %v4003_v29  ;;  %v10546_v5 = vsel %vm3335_vm10, %v11607_v35, %v11606_v13  ;;  %v11621_v39 = vld [vmem:[#allocation19_spill] sm:$0xff] }
 0x578   :  { %vm11609_vm0 = vcmp.lt.s32.totalorder %v11604_v49, 1  ;;  %v4685_v23 = vadd.s32 3, %v4668_v33  ;;  %vm4016_vm13 = vc.u32 %v10535_v0, %v10540_v63  ;;  %v4673_v31 = vadd.f32 -0.4999988, %v4672_v59 }
 0x579   :  { %v10552_v61 = vsel %vm11609_vm0, %v11608_v32, %v11607_v35  ;;  %v4680_v25 = vadd.f32 -0.16666654, %v4679_v38  ;;  %v5526_v57 = vadd.s32 4294967294, %v3872_v51  ;;  %v4017_v22 = vadd.s32 1, %v4013_v11  ;;  %v11622_v38 = vld [vmem:[#allocation26_spill] sm:$0xff] }
 0x57a   :  { %v11612_v17 = vor.u32 %v11610_v15, %v11611_v18  ;;  %vm11613_vm1 = vcmp.lt.s32.totalorder %v11604_v49, 4  ;;  %v11614_v34 = vand.u32 2147483647, %v11605_v53  ;;  %v3891_v2 = vsel %vm3768_vm6, %v3890_v40, %v3866_v7 }
 0x57b   :  { %v4014_v54 = vmul.u32 %v11617_v60, %v3960_v30  ;;  %v4674_v26 = vmul.f32 %v4673_v31, %v4669_v44  ;;  %v4681_v48 = vmul.f32 %v4680_v25, %v4669_v44  ;;  %vm5527_vm11 = vcmp.lt.s32.totalorder %v5526_v57, 0 }
 0x57c   :  { %v10561_v3 = vsel %vm11613_vm1, %v11612_v17, 1326507024  ;;  %vm10565_vm8 = vcmp.le.f32.partialorder %v11614_v34, 0.7853982  ;;  %v4018_v56 = vsel %vm4016_vm13, %v4017_v22, %v4013_v11  ;;  %vm4684_vm9 = vweird.f32 %v11592_v45  ;;  %v11625_v22 = vld [vmem:[#allocation70_spill] sm:$0xff] }
 0x57d   :  { %v4686_v50 = vand.u32 3, %v4685_v23  ;;  %v3860_v9 = vadd.s32 %v10471_v42, %v10468_v41  ;;  %v3875_v55 = vsel %vm5527_vm11, 0, %v5526_v57  ;;  %v4019_v8 = vadd.s32 %v4018_v56, %v4014_v54  ;;  %v11623_v23 = vld [vmem:[#allocation39_spill] sm:$0xff]  ;;  %v11624_v57 = vld [vmem:[#allocation72_spill] sm:$0xff] }
 0x57e   :  { %v4675_v28 = vadd.f32 1.0, %v4674_v26  ;;  %v4682_v1 = vadd.f32 1.0, %v4681_v48  ;;  %v3876_v47 = vsub.s32 32, %v3875_v55  ;;  %vm3179_vm14 = vcmp.lt.s32.totalorder %v11618_v16, 2 }
 0x57f   :  { %v3880_v7 = vsub.s32 4294967266, %v3875_v55  ;;  %v3893_v36 = vsel %vm10565_vm8, 0, %v3891_v2  ;;  %v4020_v44 = vadd.s32 536870912, %v4019_v8  ;;  %v3193_v20 = vsel %vm3179_vm14, %v11620_v52, %v11619_v43  ;;  %v11627_v52 = vld [vmem:[#allocation63_spill] sm:$0xff] }
 0x580   :  { %v4683_v10 = vmul.f32 %v4682_v1, %v10519_v58  ;;  %v4692_v41 = vxor.u32 2147483648, %v4675_v28  ;;  %v3878_v42 = vshrl.u32 %v3860_v9, %v3876_v47  ;;  %v3197_v19 = vand.u32 65535, %v3193_v20  ;;  %v11626_v1 = vld [vmem:[#allocation92_spill] sm:$0xff] }
 0x581   :  { %v3877_v37 = vshll.u32 %v10527_v6, %v3875_v55  ;;  %v3881_v62 = vadd.s32 127, %v3880_v7  ;;  %v10584_v33 = vshrl.u32 %v4020_v44, 30  ;;  %v3198_v24 = vshrl.u32 %v3193_v20, 16 }
 0x582   :  { %vm4687_vm3 = vcmp.lt.s32.totalorder %v4686_v50, 2  ;;  %vm4688_vm12 = vcmp.eq.s32.totalorder %v4686_v50, 0  ;;  %v4689_v4 = vxor.u32 2147483648, %v4683_v10  ;;  %vm4691_vm2 = vcmp.eq.s32.totalorder %v4686_v50, 2 }
 0x583   :  { %v3879_v21 = vor.u32 %v3878_v42, %v3877_v37  ;;  %v3882_v29 = vshll.u32 %v3881_v62, 23  ;;  %v4022_v14 = vshll.u32 %v10584_v33, 30  ;;  %v3200_v40 = vmul.u32 %v3198_v24, %v11621_v39 }
 0x584   :  { %v4690_v58 = vsel %vm4688_vm12, %v4675_v28, %v4689_v4  ;;  %v4693_v30 = vsel %vm4691_vm2, %v4692_v41, %v4683_v10  ;;  %v3910_v59 = vadd.s32 3, %v3893_v36  ;;  %v10589_v51 = vmul.u32 %v3197_v19, %v11622_v38 }
 0x585   :  { %v4694_v6 = vsel %vm4687_vm3, %v4690_v58, %v4693_v30  ;;  %v3883_v11 = vor.u32 4788187, %v3882_v29  ;;  %v4023_v13 = vsub.s32 %v4019_v8, %v4022_v14  ;;  %v3162_v31 = vshrl.u32 %v11119_v27, %v11623_v23 }
 0x586   :  { %v4695_v25 = vsel %vm4684_vm9, nan, %v4694_v6  ;;  %v3189_v15 = vsel %vm3179_vm14, %v11625_v22, %v11624_v57  ;;  %v3199_v18 = vmul.u32 %v3197_v19, %v11621_v39  ;;  %v3203_v17 = vshll.u32 %v3200_v40, 16 }
 0x587   :  { %5399 = vmatpush.msra.mxu3 %v4695_v25  ;;  %v3884_v34 = vand.u32 2147483647, %v3883_v11  ;;  %v3886_v2 = vcvt.s32.f32 %v3879_v21  ;;  %vm4024_vm15 = vcmp.lt.s32.totalorder %v4023_v13, 0  ;;  %v4025_v60 = vsub.s32 0, %v4023_v13 }
 0x588   :  { %v3202_v54 = vmul.u32 %v3198_v24, %v11622_v38  ;;  %v3205_v26 = vshll.u32 %v10589_v51, 16  ;;  %vm3207_vm7 = vc.u32 %v3199_v18, %v3203_v17  ;;  %v3209_v45 = vadd.s32 %v3203_v17, %v3199_v18  ;;  %v11631_v18 = vld [vmem:[#allocation64_spill] sm:$0xff]  ;;  %v11633_v17 = vld [vmem:[#allocation27_spill] sm:$0xff] }
 0x589   :  { %v3887_v48 = vmul.f32 %v3886_v2, %v3884_v34  ;;  %v4026_v56 = vsel %vm4024_vm15, %v4025_v60, %v4023_v13  ;;  %v3208_v50 = vsel %vm3207_vm7, 1, %v11120_v46  ;;  %v3219_v9 = vand.u32 65535, %v3189_v15 }
 0x58a   :  { %v4027_v55 = vclz %v4026_v56  ;;  %v3210_v8 = vadd.s32 %v3208_v50, %v3202_v54  ;;  %vm3211_vm4 = vc.u32 %v3209_v45, %v3205_v26  ;;  %v3220_v28 = vshrl.u32 %v3189_v15, 16 }
 0x58b   :  { %v10607_v47 = vsel %vm3335_vm10, %v11626_v1, %v10561_v3  ;;  %v3888_v7 = vxor.u32 2147483648, %v3887_v48  ;;  %v10609_v36 = vand.u32 3, %v3910_v59  ;;  %v4015_v44 = vadd.s32 %v10540_v63, %v10535_v0  ;;  %v11629_v3 = vld [vmem:[#allocation65_spill] sm:$0xff] }
 0x58c   :  { %v5529_v43 = vadd.s32 4294967294, %v4027_v55  ;;  %vm11628_vm5 = vcmp.lt.s32.totalorder %v11618_v16, 1  ;;  %v3212_v10 = vsel %vm3211_vm4, 1, %v11120_v46  ;;  %v3222_v41 = vmul.u32 %v3220_v28, %v11621_v39 }
 0x58d   :  { %v3182_v20 = vsel %vm11628_vm5, %v3162_v31, %v11627_v52  ;;  %v3889_v42 = vsel %vm3768_vm6, %v3888_v7, %v3887_v48  ;;  %vm11630_vm0 = vcmp.lt.s32.totalorder %v11618_v16, 4  ;;  %v3214_v37 = vadd.s32 %v3212_v10, %v3210_v8 }
 0x58e   :  { %v3183_v19 = vsel %vm11630_vm0, %v11629_v3, 2102212464  ;;  %v3223_v62 = vmul.u32 %v3219_v9, %v11622_v38  ;;  %v10627_v0 = vsel %vm10565_vm8, %v11605_v53, %v3889_v42  ;;  %vm5530_vm13 = vcmp.lt.s32.totalorder %v5529_v43, 0 }
 0x58f   :  { %v3204_v63 = vshrl.u32 %v3200_v40, 16  ;;  %v3225_v24 = vshll.u32 %v3222_v41, 16  ;;  %v3894_v4 = vmul.f32 %v10627_v0, %v10627_v0  ;;  %v4030_v21 = vsel %vm5530_vm13, 0, %v5529_v43 }
 0x590   :  { %v3221_v29 = vmul.u32 %v3219_v9, %v11621_v39  ;;  %v3224_v14 = vmul.u32 %v3220_v28, %v11622_v38  ;;  %v4031_v58 = vsub.s32 32, %v4030_v21  ;;  %v4035_v30 = vsub.s32 4294967266, %v4030_v21 }
 0x591   :  { %v3215_v59 = vadd.s32 %v3214_v37, %v3204_v63  ;;  %v3227_v6 = vshll.u32 %v3223_v62, 16  ;;  %v3895_v11 = vmul.f32 -0.001358992, %v3894_v4  ;;  %v3902_v23 = vmul.f32 -0.00019511016, %v3894_v4 }
 0x592   :  { %v4032_v12 = vshll.u32 %v4023_v13, %v4030_v21  ;;  %vm3229_vm6 = vc.u32 %v3221_v29, %v3225_v24  ;;  %v4033_v31 = vshrl.u32 %v4015_v44, %v4031_v58  ;;  %v4036_v25 = vadd.s32 127, %v4035_v30 }
 0x593   :  { %v3230_v40 = vsel %vm3229_vm6, 1, %v11120_v46  ;;  %v3231_v57 = vadd.s32 %v3225_v24, %v3221_v29  ;;  %v3896_v22 = vadd.f32 0.041655596, %v3895_v11  ;;  %v3903_v15 = vadd.f32 0.008332121, %v3902_v23  ;;  %v11637_v24 = vld [vmem:[#allocation93_spill] sm:$0xff] }
 0x594   :  { %vm11632_vm1 = vcmp.lt.s32.totalorder %v11618_v16, 3  ;;  %v3232_v38 = vadd.s32 %v3230_v40, %v3224_v14  ;;  %v11634_v34 = vand.u32 2147483647, %v11633_v17  ;;  %v4034_v13 = vor.u32 %v4033_v31, %v4032_v12  ;;  %v11639_v23 = vld [vmem:[#allocation80_spill] sm:$0xff] }
 0x595   :  { %v3184_v39 = vsel %vm11632_vm1, %v11631_v18, %v3183_v19  ;;  %v4037_v60 = vshll.u32 %v4036_v25, 23  ;;  %v3206_v54 = vshrl.u32 %v10589_v51, 16  ;;  %vm3233_vm11 = vc.u32 %v3231_v57, %v3227_v6 }
 0x596   :  { %vm10639_vm8 = vcmp.le.f32.partialorder %v11634_v34, 0.7853982  ;;  %v3897_v26 = vmul.f32 %v3896_v22, %v3894_v4  ;;  %v3904_v45 = vmul.f32 %v3903_v15, %v3894_v4  ;;  %v4045_v48 = vsub.s32 4, %v10584_v33 }
 0x597   :  { %v3234_v56 = vsel %vm3233_vm11, 1, %v11120_v46  ;;  %v4038_v50 = vor.u32 4788187, %v4037_v60  ;;  %v10646_v9 = vadd.s32 %v3215_v59, %v3206_v54  ;;  %v3226_v55 = vshrl.u32 %v3222_v41, 16  ;;  %v11638_v59 = vld [vmem:[#allocation49_spill] sm:$0xff] }
 0x598   :  { %v3236_v8 = vadd.s32 %v3234_v56, %v3232_v38  ;;  %vm3923_vm9 = vcmp.lt.s32.totalorder %v11633_v17, 0  ;;  %v3898_v28 = vadd.f32 -0.4999988, %v3897_v26  ;;  %v3905_v1 = vadd.f32 -0.16666654, %v3904_v45 }
 0x599   :  { %v3228_v7 = vshrl.u32 %v3223_v62, 16  ;;  %vm3913_vm3 = vcmp.eq.s32.totalorder %v10609_v36, 0  ;;  %v4039_v51 = vand.u32 2147483647, %v4038_v50  ;;  %v4041_v44 = vcvt.s32.f32 %v4034_v13 }
 0x59a   :  { %v10650_v43 = vadd.s32 %v3231_v57, %v3227_v6  ;;  %v3237_v52 = vadd.s32 %v3236_v8, %v3226_v55  ;;  %v3899_v10 = vmul.f32 %v3898_v28, %v3894_v4  ;;  %v3906_v42 = vmul.f32 %v3905_v1, %v3894_v4  ;;  %v11640_v57 = vld [vmem:[#allocation82_spill] sm:$0xff] }
 0x59b   :  { %vm3912_vm12 = vcmp.lt.s32.totalorder %v10609_v36, 2  ;;  %v4046_v41 = vsel %vm3923_vm9, %v4045_v48, %v10584_v33  ;;  %v3185_v3 = vsel %vm3179_vm14, %v3182_v20, %v3184_v39  ;;  %vm3909_vm2 = vweird.f32 %v11605_v53 }
 0x59c   :  { %v4042_v19 = vmul.f32 %v4041_v44, %v4039_v51  ;;  %v3238_v37 = vadd.s32 %v3237_v52, %v3228_v7  ;;  %vm3241_vm15 = vc.u32 %v10646_v9, %v10650_v43  ;;  %vm3334_vm7 = vcmp.lt.s32.totalorder %v11604_v49, 2 }
 0x59d   :  { %v3900_v62 = vadd.f32 1.0, %v3899_v10  ;;  %v3907_v63 = vadd.f32 1.0, %v3906_v42  ;;  %v10666_v4 = vsel %vm3334_vm7, %v11637_v24, %v10546_v5  ;;  %v3348_v16 = vsel %vm3334_vm7, %v10552_v61, %v10607_v47 }
 0x59e   :  { %v4043_v33 = vxor.u32 2147483648, %v4042_v19  ;;  %v3242_v20 = vadd.s32 1, %v3238_v37  ;;  %v3352_v21 = vand.u32 65535, %v3348_v16  ;;  %v3353_v29 = vshrl.u32 %v3348_v16, 16  ;;  %v11641_v16 = vld [vmem:[#allocation78_spill] sm:$0xff] }
 0x59f   :  { %v3908_v14 = vmul.f32 %v3907_v63, %v10627_v0  ;;  %v3917_v58 = vxor.u32 2147483648, %v3900_v62  ;;  %v4048_v30 = vsel %vm10639_vm8, 0, %v4046_v41  ;;  %v3239_v6 = vmul.u32 %v11638_v59, %v3185_v3 }
 0x5a0   :  { %v4044_v5 = vsel %vm3923_vm9, %v4043_v33, %v4042_v19  ;;  %v3243_v11 = vsel %vm3241_vm15, %v3242_v20, %v3238_v37  ;;  %v10679_v12 = vmul.u32 %v3353_v29, %v11639_v23  ;;  %v3375_v61 = vshrl.u32 %v10666_v4, 16 }
 0x5a1   :  { %v3914_v47 = vxor.u32 2147483648, %v3908_v14  ;;  %vm3916_vm14 = vcmp.eq.s32.totalorder %v10609_v36, 2  ;;  %v4047_v0 = vsel %vm10639_vm8, %v11633_v17, %v4044_v5  ;;  %v3244_v31 = vadd.s32 %v3243_v11, %v3239_v6 }
 0x5a2   :  { %v4049_v25 = vmul.f32 %v4047_v0, %v4047_v0  ;;  %v4065_v40 = vadd.s32 3, %v4048_v30  ;;  %v10687_v22 = vmul.u32 %v3352_v21, %v11640_v57  ;;  %v3358_v15 = vshll.u32 %v10679_v12, 16 }
 0x5a3   :  { %v3915_v18 = vsel %vm3913_vm3, %v3900_v62, %v3914_v47  ;;  %v3918_v39 = vsel %vm3916_vm14, %v3917_v58, %v3908_v14  ;;  %v3245_v38 = vadd.s32 536870912, %v3244_v31  ;;  %v3354_v34 = vmul.u32 %v3352_v21, %v11639_v23 }
 0x5a4   :  { %v3919_v13 = vsel %vm3912_vm12, %v3915_v18, %v3918_v39  ;;  %v4050_v2 = vmul.f32 -0.001358992, %v4049_v25  ;;  %v4057_v60 = vmul.f32 -0.00019511016, %v4049_v25  ;;  %v10696_v54 = vmul.u32 %v3375_v61, %v11639_v23 }
 0x5a5   :  { %v3920_v26 = vsel %vm3909_vm2, nan, %v3919_v13  ;;  %v10700_v45 = vshrl.u32 %v3245_v38, 30  ;;  %v3360_v48 = vshll.u32 %v10687_v22, 16  ;;  %vm3362_vm4 = vc.u32 %v3354_v34, %v3358_v15 }
 0x5a6   :  { %5380 = vmatpush.msra.mxu2 %v3920_v26  ;;  %v4051_v56 = vadd.f32 0.041655596, %v4050_v2  ;;  %v4058_v50 = vadd.f32 0.008332121, %v4057_v60  ;;  %v3363_v55 = vsel %vm3362_vm4, 1, %v11120_v46  ;;  %v3364_v36 = vadd.s32 %v3358_v15, %v3354_v34 }
 0x5a7   :  { %v3247_v8 = vshll.u32 %v10700_v45, 30  ;;  %v3357_v28 = vmul.u32 %v3353_v29, %v11640_v57  ;;  %v3374_v1 = vand.u32 65535, %v10666_v4  ;;  %v4066_v51 = vand.u32 3, %v4065_v40 }
 0x5a8   :  { %v4052_v7 = vmul.f32 %v4051_v56, %v4049_v25  ;;  %v4059_v53 = vmul.f32 %v4058_v50, %v4049_v25  ;;  %vm3366_vm5 = vc.u32 %v3364_v36, %v3360_v48  ;;  %v3380_v10 = vshll.u32 %v10696_v54, 16 }
 0x5a9   :  { %v3248_v44 = vsub.s32 %v3244_v31, %v3247_v8  ;;  %v3365_v52 = vadd.s32 %v3363_v55, %v3357_v28  ;;  %v3367_v3 = vsel %vm3366_vm5, 1, %v11120_v46  ;;  %v3376_v37 = vmul.u32 %v3374_v1, %v11639_v23 }
 0x5aa   :  { %v4053_v42 = vadd.f32 -0.4999988, %v4052_v7  ;;  %v4060_v41 = vadd.f32 -0.16666654, %v4059_v53  ;;  %v3378_v62 = vmul.u32 %v3374_v1, %v11640_v57  ;;  %vm4067_vm13 = vcmp.lt.s32.totalorder %v4066_v51, 2 }
 0x5ab   :  { %vm3249_vm0 = vcmp.lt.s32.totalorder %v3248_v44, 0  ;;  %v3250_v19 = vsub.s32 0, %v3248_v44  ;;  %vm4068_vm6 = vcmp.eq.s32.totalorder %v4066_v51, 0  ;;  %vm4064_vm1 = vweird.f32 %v11633_v17  ;;  %v11645_v17 = vld [vmem:[#allocation76_spill] sm:$0xff] }
 0x5ac   :  { %v4054_v63 = vmul.f32 %v4053_v42, %v4049_v25  ;;  %v4061_v24 = vmul.f32 %v4060_v41, %v4049_v25  ;;  %v3317_v33 = vshrl.u32 %v11119_v27, %v11641_v16  ;;  %v3369_v20 = vadd.s32 %v3367_v3, %v3365_v52  ;;  %v11646_v3 = vld [vmem:[#allocation12_spill] sm:$0xff] }
 0x5ad   :  { %v3251_v4 = vsel %vm3249_vm0, %v3250_v19, %v3248_v44  ;;  %vm3384_vm8 = vc.u32 %v3376_v37, %v3380_v10  ;;  %vm11642_vm11 = vcmp.lt.s32.totalorder %v11604_v49, 4  ;;  %v3359_v30 = vshrl.u32 %v10679_v12, 16 }
 0x5ae   :  { %v4055_v21 = vadd.f32 1.0, %v4054_v63  ;;  %v4062_v29 = vadd.f32 1.0, %v4061_v24  ;;  %v3252_v14 = vclz %v3251_v4  ;;  %v3338_v58 = vsel %vm11642_vm11, %v11607_v35, 2102212464  ;;  %v11643_v35 = vld [vmem:[#allocation87_spill] sm:$0xff] }
 0x5af   :  { %v3379_v59 = vmul.u32 %v3375_v61, %v11640_v57  ;;  %v3382_v6 = vshll.u32 %v3378_v62, 16  ;;  %v3385_v5 = vsel %vm3384_vm8, 1, %v11120_v46  ;;  %v3386_v27 = vadd.s32 %v3380_v10, %v3376_v37 }
 0x5b0   :  { %v4063_v11 = vmul.f32 %v4062_v29, %v4047_v0  ;;  %v4072_v23 = vxor.u32 2147483648, %v4055_v21  ;;  %v5514_v47 = vadd.s32 4294967294, %v3252_v14  ;;  %vm4071_vm9 = vcmp.eq.s32.totalorder %v4066_v51, 2 }
 0x5b1   :  { %v3240_v31 = vadd.s32 %v10650_v43, %v10646_v9  ;;  %v3370_v25 = vadd.s32 %v3369_v20, %v3359_v30  ;;  %v3387_v40 = vadd.s32 %v3385_v5, %v3379_v59  ;;  %vm11644_vm12 = vcmp.lt.s32.totalorder %v11604_v49, 1 }
 0x5b2   :  { %v4069_v15 = vxor.u32 2147483648, %v4063_v11  ;;  %vm5515_vm3 = vcmp.lt.s32.totalorder %v5514_v47, 0  ;;  %v3337_v12 = vsel %vm11644_vm12, %v3317_v33, %v11643_v35  ;;  %vm3388_vm2 = vc.u32 %v3386_v27, %v3382_v6 }
 0x5b3   :  { %v3255_v61 = vsel %vm5515_vm3, 0, %v5514_v47  ;;  %v3339_v0 = vsel %vm3335_vm10, %v11608_v32, %v3338_v58  ;;  %v3361_v57 = vshrl.u32 %v10687_v22, 16  ;;  %v3389_v18 = vsel %vm3388_vm2, 1, %v11120_v46 }
 0x5b4   :  { %v4070_v9 = vsel %vm4068_vm6, %v4055_v21, %v4069_v15  ;;  %v4073_v43 = vsel %vm4071_vm9, %v4072_v23, %v4063_v11  ;;  %v3256_v39 = vsub.s32 32, %v3255_v61  ;;  %v3260_v38 = vsub.s32 4294967266, %v3255_v61 }
 0x5b5   :  { %v4074_v34 = vsel %vm4067_vm13, %v4070_v9, %v4073_v43  ;;  %v3371_v13 = vadd.s32 %v3370_v25, %v3361_v57  ;;  %v3381_v2 = vshrl.u32 %v10696_v54, 16  ;;  %v3391_v60 = vadd.s32 %v3389_v18, %v3387_v40 }
 0x5b6   :  { %v4075_v26 = vsel %vm4064_vm1, nan, %v4074_v34  ;;  %v3257_v48 = vshll.u32 %v3248_v44, %v3255_v61  ;;  %v3258_v32 = vshrl.u32 %v3240_v31, %v3256_v39  ;;  %v3261_v56 = vadd.s32 127, %v3260_v38 }
 0x5b7   :  { %5400 = vmatpush.msra.mxu3 %v4075_v26  ;;  %v3383_v22 = vshrl.u32 %v3378_v62, 16  ;;  %v3392_v46 = vadd.s32 %v3391_v60, %v3381_v2  ;;  %v3390_v36 = vadd.s32 %v3386_v27, %v3382_v6  ;;  %v3340_v8 = vsel %vm3334_vm7, %v3337_v12, %v3339_v0 }
 0x5b8   :  { %v3259_v50 = vor.u32 %v3258_v32, %v3257_v48  ;;  %v3262_v55 = vshll.u32 %v3261_v56, 23  ;;  %v3394_v51 = vmul.u32 %v11645_v17, %v3340_v8  ;;  %vm3148_vm15 = vcmp.lt.s32.totalorder %v11646_v3, 0  ;;  %v5321_v48 = vpop.permute.xlu2 %5320 }
 0x5b9   :  { %v3393_v28 = vadd.s32 %v3392_v46, %v3383_v22  ;;  %vm3396_vm10 = vc.u32 %v3371_v13, %v3390_v36  ;;  %v11647_v19 = vand.u32 2147483647, %v11646_v3  ;;  %v3270_v63 = vsub.s32 4, %v10700_v45  ;;  %v5343_v46 = vpop.f32.mrf.mxu0 }
 0x5ba   :  { %v3263_v1 = vor.u32 4788187, %v3262_v55  ;;  %v3266_v53 = vcvt.s32.f32 %v3259_v50  ;;  %v3395_v0 = vadd.s32 %v3390_v36, %v3371_v13  ;;  %vm3289_vm6 = vweird.f32 %v11646_v3  ;;  %v5363_v50 = vpop.f32.mrf.mxu1 }
 0x5bb   :  { %v3397_v54 = vadd.s32 1, %v3393_v28  ;;  %vm10741_vm14 = vcmp.le.f32.partialorder %v11647_v19, 0.7853982  ;;  %v3271_v29 = vsel %vm3148_vm15, %v3270_v63, %v10700_v45  ;;  %v5364_v36 = vadd.f32 %v5363_v50, %v5321_v48 }
 0x5bc   :  { %v3264_v7 = vand.u32 2147483647, %v3263_v1  ;;  %v3273_v59 = vsel %vm10741_vm14, 0, %v3271_v29  ;;  %vm5412_vm1 = vcmask 1043456   ;;  %v5570_v1 = vld [vmem:[%s10782_s5] sm:$0x7] }
 0x5bd   :  { %v3398_v44 = vsel %vm3396_vm10, %v3397_v54, %v3393_v28  ;;  %v3290_v31 = vadd.s32 3, %v3273_v59  ;;  %vm11650_vm8 = vcmask 261120   ;;  %v5344_v54 = vadd.f32 %v5343_v46, %v5321_v48 }
 0x5be   :  { %v3267_v52 = vmul.f32 %v3266_v53, %v3264_v7  ;;  %v3399_v10 = vadd.s32 %v3398_v44, %v3394_v51  ;;  %v5410_v7 = vrot.slane %v5364_v36, 4  ;;  %v11651_v44 = vld [vmem:[#allocation51_spill] sm:$0xff] }
 0x5bf   :  { %v3291_v61 = vand.u32 3, %v3290_v31  ;;  %vm3303_vm11 = vcmp.lt.s32.totalorder %v11651_v44, 0  ;;  %vm3444_vm10 = vweird.f32 %v11651_v44 }
 0x5c0   :  { %v3268_v42 = vxor.u32 2147483648, %v3267_v52  ;;  %v3400_v41 = vadd.s32 536870912, %v3399_v10  ;;  %v5413_v17 = vsel %vm5412_vm1, %v5344_v54, %v5410_v7 }
 0x5c1   :  { %vm3293_vm5 = vcmp.eq.s32.totalorder %v3291_v61, 0  ;;  %vm3296_vm0 = vcmp.eq.s32.totalorder %v3291_v61, 2  ;;  %vm3292_vm13 = vcmp.lt.s32.totalorder %v3291_v61, 2  ;;  %5417 = vst [vmem:[%s10783_s7] sm:$0x77] %v5413_v17 }
 0x5c2   :  { %v3269_v37 = vsel %vm3148_vm15, %v3268_v42, %v3267_v52  ;;  %v10745_v62 = vshrl.u32 %v3400_v41, 30  ;;  %v11652_v52 = vand.u32 2147483647, %v11651_v44  ;;  %vm11653_vm15 = vmmov %vm11650_vm8 }
 0x5c3   :  { %v3272_v24 = vsel %vm10741_vm14, %v11646_v3, %v3269_v37 }
 0x5c4   :  { %v3274_v4 = vmul.f32 %v3272_v24, %v3272_v24  ;;  %v3402_v16 = vshll.u32 %v10745_v62, 30  ;;  %vm3302_vm9 = vcmp.le.f32.partialorder %v11652_v52, 0.7853982  ;;  %v3425_v42 = vsub.s32 4, %v10745_v62 }
 0x5c6   :  { %v3275_v33 = vmul.f32 -0.001358992, %v3274_v4  ;;  %v3282_v20 = vmul.f32 -0.00019511016, %v3274_v4  ;;  %v3403_v21 = vsub.s32 %v3399_v10, %v3402_v16  ;;  %v3426_v37 = vsel %vm3303_vm11, %v3425_v42, %v10745_v62 }
 0x5c8   :  { %v3276_v14 = vadd.f32 0.041655596, %v3275_v33  ;;  %v3283_v58 = vadd.f32 0.008332121, %v3282_v20  ;;  %vm3404_vm7 = vcmp.lt.s32.totalorder %v3403_v21, 0  ;;  %v3405_v30 = vsub.s32 0, %v3403_v21 }
 0x5ca   :  { %v3277_v6 = vmul.f32 %v3276_v14, %v3274_v4  ;;  %v3284_v5 = vmul.f32 %v3283_v58, %v3274_v4  ;;  %v3406_v11 = vsel %vm3404_vm7, %v3405_v30, %v3403_v21 }
 0x5cb   :  { %v3407_v23 = vclz %v3406_v11 }
 0x5cc   :  { %v3278_v47 = vadd.f32 -0.4999988, %v3277_v6  ;;  %v3285_v27 = vadd.f32 -0.16666654, %v3284_v5 }
 0x5cd   :  { %v5517_v25 = vadd.s32 4294967294, %v3407_v23 }
 0x5ce   :  { %v3279_v40 = vmul.f32 %v3278_v47, %v3274_v4  ;;  %v3286_v15 = vmul.f32 %v3285_v27, %v3274_v4  ;;  %v3428_v4 = vsel %vm3302_vm9, 0, %v3426_v37 }
 0x5cf   :  { %vm5518_vm4 = vcmp.lt.s32.totalorder %v5517_v25, 0  ;;  %v3445_v29 = vadd.s32 3, %v3428_v4 }
 0x5d0   :  { %v3280_v35 = vadd.f32 1.0, %v3279_v40  ;;  %v3287_v45 = vadd.f32 1.0, %v3286_v15  ;;  %v3410_v12 = vsel %vm5518_vm4, 0, %v5517_v25 }
 0x5d1   :  { %v3411_v57 = vsub.s32 32, %v3410_v12  ;;  %v3415_v18 = vsub.s32 4294967266, %v3410_v12  ;;  %v3412_v39 = vshll.u32 %v3403_v21, %v3410_v12  ;;  %v3446_v6 = vand.u32 3, %v3445_v29 }
 0x5d2   :  { %v3288_v9 = vmul.f32 %v3287_v45, %v3272_v24  ;;  %v3297_v43 = vxor.u32 2147483648, %v3280_v35 }
 0x5d3   :  { %v3413_v38 = vshrl.u32 %v3395_v0, %v3411_v57  ;;  %v3416_v34 = vadd.s32 127, %v3415_v18  ;;  %vm3448_vm3 = vcmp.eq.s32.totalorder %v3446_v6, 0  ;;  %vm3451_vm12 = vcmp.eq.s32.totalorder %v3446_v6, 2 }
 0x5d4   :  { %v3294_v2 = vxor.u32 2147483648, %v3288_v9  ;;  %v3298_v56 = vsel %vm3296_vm0, %v3297_v43, %v3288_v9  ;;  %vm3447_vm2 = vcmp.lt.s32.totalorder %v3446_v6, 2 }
 0x5d5   :  { %v3414_v60 = vor.u32 %v3413_v38, %v3412_v39  ;;  %v3417_v26 = vshll.u32 %v3416_v34, 23 }
 0x5d6   :  { %v3295_v32 = vsel %vm3293_vm5, %v3280_v35, %v3294_v2 }
 0x5d7   :  { %v3299_v22 = vsel %vm3292_vm13, %v3295_v32, %v3298_v56  ;;  %v3418_v13 = vor.u32 4788187, %v3417_v26  ;;  %v3421_v28 = vcvt.s32.f32 %v3414_v60 }
 0x5d8   :  { %v3300_v55 = vsel %vm3289_vm6, nan, %v3299_v22 }
 0x5d9   :  { %5381 = vmatpush.msra.mxu2 %v3300_v55  ;;  %v3419_v8 = vand.u32 2147483647, %v3418_v13 }
 0x5da   :  { %5557 = vmatmul.msk.f32.vlgmr.msra.gmra.mxu2 %vm11650_vm8, %v5570_v1 }
 0x5db   :  { %v3422_v53 = vmul.f32 %v3421_v28, %v3419_v8 }
 0x5dd   :  { %v3423_v51 = vxor.u32 2147483648, %v3422_v53 }
 0x5df   :  { %v3424_v10 = vsel %vm3303_vm11, %v3423_v51, %v3422_v53 }
 0x5e0   :  { %v3427_v41 = vsel %vm3302_vm9, %v11651_v44, %v3424_v10 }
 0x5e1   :  { %v3429_v3 = vmul.f32 %v3427_v41, %v3427_v41 }
 0x5e3   :  { %v3430_v19 = vmul.f32 -0.001358992, %v3429_v3  ;;  %v3437_v49 = vmul.f32 -0.00019511016, %v3429_v3 }
 0x5e5   :  { %v3431_v63 = vadd.f32 0.041655596, %v3430_v19  ;;  %v3438_v24 = vadd.f32 0.008332121, %v3437_v49 }
 0x5e7   :  { %v3432_v16 = vmul.f32 %v3431_v63, %v3429_v3  ;;  %v3439_v33 = vmul.f32 %v3438_v24, %v3429_v3 }
 0x5e9   :  { %v3433_v20 = vadd.f32 -0.4999988, %v3432_v16  ;;  %v3440_v21 = vadd.f32 -0.16666654, %v3439_v33 }
 0x5eb   :  { %v3434_v14 = vmul.f32 %v3433_v20, %v3429_v3  ;;  %v3441_v58 = vmul.f32 %v3440_v21, %v3429_v3 }
 0x5ed   :  { %v3435_v30 = vadd.f32 1.0, %v3434_v14  ;;  %v3442_v59 = vadd.f32 1.0, %v3441_v58 }
 0x5ef   :  { %v3443_v5 = vmul.f32 %v3442_v59, %v3427_v41  ;;  %v3452_v11 = vxor.u32 2147483648, %v3435_v30 }
 0x5f1   :  { %v3449_v23 = vxor.u32 2147483648, %v3443_v5  ;;  %v3453_v47 = vsel %vm3451_vm12, %v3452_v11, %v3443_v5 }
 0x5f3   :  { %v3450_v62 = vsel %vm3448_vm3, %v3435_v30, %v3449_v23 }
 0x5f4   :  { %v3454_v27 = vsel %vm3447_vm2, %v3450_v62, %v3453_v47 }
 0x5f5   :  { %v3455_v31 = vsel %vm3444_vm10, nan, %v3454_v27 }
 0x5f6   :  { %5401 = vmatpush.msra.mxu3 %v3455_v31 }
 0x5f7   :  { %5558 = vmatmul.msk.f32.vlgmr.msra.gmra.mxu3 %vm11653_vm15, %v5570_v1 }
 0x65d   :  { %v5383_v25 = vpop.f32.mrf.mxu2 }
 0x65e   :  { %v5384_v35 = vadd.f32 %v5383_v25, %v5321_v48 }
 0x67a   :  { %v5403_v40 = vpop.f32.mrf.mxu3 }
 0x67b   :  { %v5404_v15 = vadd.f32 %v5403_v40, %v5321_v48 }
 0x67d   :  { %v5411_v45 = vrot.slane %v5404_v15, 4 }
 0x67f   :  { %v5414_v12 = vsel %vm5412_vm1, %v5384_v35, %v5411_v45 }
 0x680   :  { %5418 = vst [vmem:[%s10783_s7 + $0x8] sm:$0x77] %v5414_v12 }

</bundles_post_ra>
